<compile_context>
chip_gen: v7x
topology: tpu7x:2x2x1
jax: 0.10.0
libtpu: 0.0.40
codegen_flags: <defaults>
</compile_context>

<pallas_src>
import functools

import numpy as np
import jax
import jax.numpy as jnp
from jax import lax
from jax.experimental import pallas as pl
from jax.experimental.pallas import tpu as pltpu

NUM_CNN_OUTPUT_CHANNELS = 32
KSIZE = 5


def _ceil8(v):
    return (v + 7) // 8 * 8


def _pick_rows_per_chunk(hp, wld, cout, budget_bytes=1 << 17):
    """Pooled rows per chunk: largest p<=4 whose f32 accumulator fits the budget.

    Prefers an evenly-dividing p when it gives the same chunk count; otherwise the
    tail is handled by a static remainder chunk (stage 1 only needs this).
    """
    fits = [p for p in range(min(4, hp), 0, -1)
            if 2 * p * wld * cout * 4 <= budget_bytes] or [1]
    n_best = -(-hp // fits[0])
    for p in fits:
        if hp % p == 0 and hp // p == n_best:
            return p
    return fits[0]


def _silu(x):
    # x * sigmoid(x); the divide rides the EUP approx-reciprocal slot (free-ish).
    return x * pl.reciprocal(1.0 + jnp.exp(-x), approx=True)


def _pool2x2(act, rb_ref, p, wld, wp, cout):
    """2x2/2 max-pool of `act` ((2*p*wld, cout) f32 conv rows) -> (p, wp, cout)."""
    a4 = act.reshape(p, 2, wld, cout)
    rb_ref[pl.ds(0, p), :, :] = jnp.maximum(a4[:, 0], a4[:, 1])      # pool over H
    return jnp.maximum(rb_ref[pl.ds(0, p), pl.ds(0, wp, 2), :],      # pool over W
                       rb_ref[pl.ds(0, p), pl.ds(1, wp, 2), :])


def _conv_rows(in_ref, w_ref, bias, r0, *, k, p, wld, cout):
    """2*p conv rows of conv(kxk, VALID, stride 1) + bias + SiLU.

    in_ref : (Hin, Wpad, Cin) bf16 activations; r0 is the first input row.
    w_ref  : (k, k*Cin, Cout) bf16 VMEM ref (kw folded into the contraction dim).
    Returns (2*p*wld, cout) f32 activations.
    """
    cr = 2 * p
    cin = in_ref.shape[-1]
    acc = jnp.zeros((cr * wld, cout), jnp.float32)
    for kh in range(k):                               # statically unrolled taps
        patch = jnp.concatenate(
            [in_ref[pl.ds(r0 + kh, cr), pl.ds(kw, wld), :] for kw in range(k)],
            axis=-1)                                  # (cr, wld, k*cin) bf16
        acc = acc + jnp.dot(patch.reshape(cr * wld, k * cin), w_ref[kh],
                            preferred_element_type=jnp.float32)
    return _silu(acc + bias)


def _convnet_kernel(xcol_ref, w1_ref, b1_ref, w2_hbm, b2_ref, w3_hbm, b3_ref,
                    o_ref,
                    a1_ref, a2_ref, rb1_ref, rb2_ref, rb3_ref,
                    w2_vmem, w3_vmem, dma_sem, *,
                    k, c1, c2, c3,
                    hp1, wp1, wld1, p1,
                    hp2, wp2, wld2, p2,
                    hp3, wp3, wld3, p3):
    # Kick off the stage-2/3 weight fetches now; stage-1 compute hides them.
    cp_w2 = pltpu.make_async_copy(w2_hbm, w2_vmem, dma_sem.at[0])
    cp_w3 = pltpu.make_async_copy(w3_hbm, w3_vmem, dma_sem.at[1])
    cp_w2.start()
    cp_w3.start()

    # NOTE: a1/a2 pad columns are intentionally left uninitialized; they only feed
    # conv-output columns that are sliced away before pooling, so no kept value
    # ever depends on them (see analysis in the perf review).

    # ---- stage 1: wrapper-side im2col -> one (2*p1*wld1, k*k*Cin) matmul / chunk.
    w1 = w1_ref[...]
    b1 = b1_ref[...]

    def s1_chunk(pr0, r0, p):
        cr = 2 * p
        patch = xcol_ref[0, pl.ds(r0, cr), :, :]                # (cr, wld1, kkCin)
        acc = jnp.dot(patch.reshape(cr * wld1, patch.shape[-1]), w1,
                      preferred_element_type=jnp.float32)
        pooled = _pool2x2(_silu(acc + b1), rb1_ref, p, wld1, wp1, c1)
        a1_ref[pl.ds(pr0, p), pl.ds(0, wp1), :] = pooled.astype(a1_ref.dtype)

    n1, rem1 = hp1 // p1, hp1 % p1

    def s1_body(c, carry):
        s1_chunk(pl.multiple_of(c * p1, p1),
                 pl.multiple_of(c * (2 * p1), 2 * p1), p1)
        return carry

    if n1 == 1:
        s1_chunk(0, 0, p1)
    elif n1 > 1:
        lax.fori_loop(0, n1, s1_body, 0)
    if rem1:
        s1_chunk(n1 * p1, n1 * 2 * p1, rem1)                    # static tail chunk

    # ---- stage 2: consumes VMEM-resident stage-1 activations.
    cp_w2.wait()
    b2 = b2_ref[...]

    def s2_chunk(pr0, r0):
        act = _conv_rows(a1_ref, w2_vmem, b2, r0, k=k, p=p2, wld=wld2, cout=c2)
        pooled = _pool2x2(act, rb2_ref, p2, wld2, wp2, c2)
        a2_ref[pl.ds(pr0, p2), pl.ds(0, wp2), :] = pooled.astype(a2_ref.dtype)

    n2 = hp2 // p2
    if n2 == 1:
        s2_chunk(0, 0)
    else:
        def s2_body(c, carry):
            s2_chunk(c * p2, c * (2 * p2))
            return carry
        lax.fori_loop(0, n2, s2_body, 0)

    # ---- stage 3: writes straight to the kernel output.
    cp_w3.wait()
    b3 = b3_ref[...]

    def s3_chunk(pr0, r0):
        act = _conv_rows(a2_ref, w3_vmem, b3, r0, k=k, p=p3, wld=wld3, cout=c3)
        o_ref[0, pl.ds(pr0, p3), :, :] = _pool2x2(act, rb3_ref, p3, wld3, wp3, c3)

    n3 = hp3 // p3
    if n3 == 1:
        s3_chunk(0, 0)
    else:
        def s3_body(c, carry):
            s3_chunk(c * p3, c * (2 * p3))
            return carry
        lax.fori_loop(0, n3, s3_body, 0)


def _im2col(x_nhwc, k, w_pad):
    """(N,H,W,C) -> (N, Ho, w_pad, k*k*C) patches, channel order (kh, kw, c)."""
    n, h, w, c = x_nhwc.shape
    ho, wo = h - k + 1, w - k + 1
    cols = [x_nhwc[:, i:i + ho, j:j + wo, :] for i in range(k) for j in range(k)]
    patches = jnp.concatenate(cols, axis=-1)
    return jnp.pad(patches, ((0, 0), (0, 0), (0, w_pad - wo), (0, 0)))


def convnet_forward(x_nchw, params):
    """Matches ConvNet.forward: three (conv 5x5 VALID -> SiLU -> maxpool 2x2)."""
    (w1, b1), (w2, b2), (w3, b3) = params
    k = KSIZE
    x = jnp.transpose(x_nchw, (0, 2, 3, 1)).astype(jnp.float32)   # NCHW -> NHWC
    n, h, w, cin = x.shape
    c1, c2, c3 = w1.shape[-1], w2.shape[-1], w3.shape[-1]

    ho1, wo1 = h - k + 1, w - k + 1
    hp1, wp1 = ho1 // 2, wo1 // 2
    ho2, wo2 = hp1 - k + 1, wp1 - k + 1
    hp2, wp2 = ho2 // 2, wo2 // 2
    ho3, wo3 = hp2 - k + 1, wp2 - k + 1
    hp3, wp3 = ho3 // 2, wo3 // 2

    wld1 = _ceil8(wo1)                     # stage-1 im2col width (zero padded)
    wld2 = _ceil8(wo2)                     # per-tap window width, stage 2
    wld3 = _ceil8(wo3)                     # per-tap window width, stage 3
    a1_w = _ceil8(wld2 + k - 1)            # stage-1 activation scratch width
    a2_w = _ceil8(wld3 + k - 1)            # stage-2 activation scratch width

    p1 = _pick_rows_per_chunk(hp1, wld1, c1)
    p2 = _pick_rows_per_chunk(hp2, wld2, c2)
    p3 = _pick_rows_per_chunk(hp3, wld3, c3)
    assert hp2 % p2 == 0 and hp3 % p3 == 0   # only stage 1 has a remainder path

    # Wrapper-side layout plumbing (tiny tensors): im2col + bf16, kw-folded weights.
    x_col = _im2col(x, k, wld1).astype(jnp.bfloat16)        # (N, Ho1, wld1, kkCin)
    w1f = w1.reshape(k * k * cin, c1).astype(jnp.bfloat16)
    w2r = w2.reshape(k, k * c1, c2).astype(jnp.bfloat16)    # kw folded into K
    w3r = w3.reshape(k, k * c2, c3).astype(jnp.bfloat16)
    b1f = b1.astype(jnp.float32)
    b2f = b2.astype(jnp.float32)
    b3f = b3.astype(jnp.float32)

    kernel = functools.partial(
        _convnet_kernel, k=k, c1=c1, c2=c2, c3=c3,
        hp1=hp1, wp1=wp1, wld1=wld1, p1=p1,
        hp2=hp2, wp2=wp2, wld2=wld2, p2=p2,
        hp3=hp3, wp3=wp3, wld3=wld3, p3=p3)

    out_nhwc = pl.pallas_call(
        kernel,
        out_shape=jax.ShapeDtypeStruct((n, hp3, wp3, c3), jnp.float32),
        grid=(n,),
        in_specs=[
            pl.BlockSpec((1, ho1, wld1, k * k * cin), lambda i: (i, 0, 0, 0)),
            pl.BlockSpec((k * k * cin, c1), lambda i: (0, 0)),
            pl.BlockSpec((1, c1), lambda i: (0, 0)),
            pl.BlockSpec(memory_space=pl.ANY),     # w2: manual DMA, overlapped
            pl.BlockSpec((1, c2), lambda i: (0, 0)),
            pl.BlockSpec(memory_space=pl.ANY),     # w3: manual DMA, overlapped
            pl.BlockSpec((1, c3), lambda i: (0, 0)),
        ],
        out_specs=pl.BlockSpec((1, hp3, wp3, c3), lambda i: (i, 0, 0, 0)),
        scratch_shapes=[
            pltpu.VMEM((hp1, a1_w, c1), jnp.bfloat16),   # stage-1 pooled acts
            pltpu.VMEM((hp2, a2_w, c2), jnp.bfloat16),   # stage-2 pooled acts
            pltpu.VMEM((p1, wld1, c1), jnp.float32),     # W-pool row buffers
            pltpu.VMEM((p2, wld2, c2), jnp.float32),
            pltpu.VMEM((p3, wld3, c3), jnp.float32),
            pltpu.VMEM((k, k * c1, c2), jnp.bfloat16),   # stage-2 weights (DMA dst)
            pltpu.VMEM((k, k * c2, c3), jnp.bfloat16),   # stage-3 weights (DMA dst)
            pltpu.SemaphoreType.DMA((2,)),
        ],
        compiler_params=pltpu.CompilerParams(dimension_semantics=("parallel",)),
    )(x_col, w1f, b1f, w2r, b2f, w3r, b3f)

    return jnp.transpose(out_nhwc, (0, 3, 1, 2))              # NHWC -> NCHW


def reference_forward(x_nchw, params):
    """Plain-JAX (f32, highest precision) reference of the PyTorch forward."""
    x = x_nchw
    for w, b in params:
        y = lax.conv_general_dilated(x, w, (1, 1), "VALID",
                                     dimension_numbers=("NCHW", "HWIO", "NCHW"),
                                     precision=lax.Precision.HIGHEST)
        y = y + b.reshape(1, -1, 1, 1)
        y = y * jax.nn.sigmoid(y)
        x = lax.reduce_window(y, -jnp.inf, lax.max,
                              (1, 1, 2, 2), (1, 1, 2, 2), "VALID")
    return x


def init_conv_params(key, cin, cout, k):
    # Deterministic kaiming-uniform-like init (same fan_in rule as nn.Conv2d).
    fan_in = cin * k * k
    bound = 1.0 / np.sqrt(fan_in)
    wkey, bkey = jax.random.split(key)
    w = jax.random.uniform(wkey, (k, k, cin, cout), jnp.float32, -bound, bound)
    b = jax.random.uniform(bkey, (1, cout), jnp.float32, -bound, bound)
    return w, b


if __name__ == "__main__":
    key = jax.random.PRNGKey(0)
    kx, k1, k2, k3 = jax.random.split(key, 4)

    # NCHW input like the PyTorch module. 48x48 -> 22x22 -> 9x9 -> 2x2 spatially.
    x = jax.random.normal(kx, (2, 3, 48, 48), jnp.float32)
    params = [
        init_conv_params(k1, 3, 64, KSIZE),
        init_conv_params(k2, 64, 128, KSIZE),
        init_conv_params(k3, 128, NUM_CNN_OUTPUT_CHANNELS, KSIZE),
    ]

    fwd = jax.jit(convnet_forward)
    out = jax.block_until_ready(fwd(x, params))
    assert out.shape == (2, NUM_CNN_OUTPUT_CHANNELS, 2, 2), out.shape

    ref = jax.block_until_ready(reference_forward(x, params))
    np.testing.assert_allclose(np.asarray(out), np.asarray(ref), rtol=2e-2, atol=2e-2)

    print("KERNEL_OK")
</pallas_src>

<mosaic_0001>
module attributes {stable_mosaic.version = 11 : i64} {
  func.func @_convnet_kernel(%arg0: i32, %arg1: memref<1x44x48x75xbf16, #tpu.memory_space<vmem>>, %arg2: memref<75x64xbf16, #tpu.memory_space<vmem>>, %arg3: memref<1x64xf32, #tpu.memory_space<vmem>>, %arg4: memref<5x320x128xbf16, #tpu.memory_space<any>>, %arg5: memref<1x128xf32, #tpu.memory_space<vmem>>, %arg6: memref<5x640x32xbf16, #tpu.memory_space<any>>, %arg7: memref<1x32xf32, #tpu.memory_space<vmem>>, %arg8: memref<1x2x2x32xf32, #tpu.memory_space<vmem>>, %arg9: memref<22x32x64xbf16, #tpu.memory_space<vmem>>, %arg10: memref<9x16x128xbf16, #tpu.memory_space<vmem>>, %arg11: memref<4x48x64xf32, #tpu.memory_space<vmem>>, %arg12: memref<3x24x128xf32, #tpu.memory_space<vmem>>, %arg13: memref<2x8x32xf32, #tpu.memory_space<vmem>>, %arg14: memref<5x320x128xbf16, #tpu.memory_space<vmem>>, %arg15: memref<5x640x32xbf16, #tpu.memory_space<vmem>>, %arg16: memref<2x!tpu.dma_semaphore, #tpu.memory_space<semaphore_mem>>) attributes {dimension_semantics = [#tpu.dimension_semantics<parallel>], iteration_bounds = array<i64: 2>, scalar_prefetch = 0 : i64, scratch_operands = 8 : i64, tpu.core_type = #tpu.core_type<tc>, window_params = [{transform_indices = @transform_0, window_bounds = array<i64: 1, 44, 48, 75>}, {pipeline_mode = #tpu.pipeline_mode<synchronous>, transform_indices = @transform_1, window_bounds = array<i64: 75, 64>}, {pipeline_mode = #tpu.pipeline_mode<synchronous>, transform_indices = @transform_2, window_bounds = array<i64: 1, 64>}, {}, {pipeline_mode = #tpu.pipeline_mode<synchronous>, transform_indices = @transform_4, window_bounds = array<i64: 1, 128>}, {}, {pipeline_mode = #tpu.pipeline_mode<synchronous>, transform_indices = @transform_6, window_bounds = array<i64: 1, 32>}, {transform_indices = @transform_7, window_bounds = array<i64: 1, 2, 2, 32>}]} {
    %c0_i32 = arith.constant 0 : i32
    %0 = tpu.memref_slice %arg16[%c0_i32] : memref<2x!tpu.dma_semaphore, #tpu.memory_space<semaphore_mem>> -> memref<1x!tpu.dma_semaphore, #tpu.memory_space<semaphore_mem>>
    %1 = tpu.memref_squeeze %0 : memref<1x!tpu.dma_semaphore, #tpu.memory_space<semaphore_mem>> -> memref<!tpu.dma_semaphore, #tpu.memory_space<semaphore_mem>>
    tpu.enqueue_dma source(%arg4 : memref<5x320x128xbf16, #tpu.memory_space<any>>) target(%arg14 : memref<5x320x128xbf16, #tpu.memory_space<vmem>>) target_semaphore(%1 : memref<!tpu.dma_semaphore, #tpu.memory_space<semaphore_mem>>)
    %c1_i32 = arith.constant 1 : i32
    %2 = tpu.memref_slice %arg16[%c1_i32] : memref<2x!tpu.dma_semaphore, #tpu.memory_space<semaphore_mem>> -> memref<1x!tpu.dma_semaphore, #tpu.memory_space<semaphore_mem>>
    %3 = tpu.memref_squeeze %2 : memref<1x!tpu.dma_semaphore, #tpu.memory_space<semaphore_mem>> -> memref<!tpu.dma_semaphore, #tpu.memory_space<semaphore_mem>>
    tpu.enqueue_dma source(%arg6 : memref<5x640x32xbf16, #tpu.memory_space<any>>) target(%arg15 : memref<5x640x32xbf16, #tpu.memory_space<vmem>>) target_semaphore(%3 : memref<!tpu.dma_semaphore, #tpu.memory_space<semaphore_mem>>)
    %c0 = arith.constant 0 : index
    %c0_0 = arith.constant 0 : index
    %4 = vector.load %arg2[%c0, %c0_0] : memref<75x64xbf16, #tpu.memory_space<vmem>>, vector<75x64xbf16>
    %c0_1 = arith.constant 0 : index
    %c0_2 = arith.constant 0 : index
    %5 = vector.load %arg3[%c0_1, %c0_2] : memref<1x64xf32, #tpu.memory_space<vmem>>, vector<1x64xf32>
    %c0_i32_3 = arith.constant 0 : i32
    %c5_i32 = arith.constant 5 : i32
    %6 = arith.addi %c0_i32_3, %c5_i32 : i32
    %c1_i32_4 = arith.constant 1 : i32
    scf.for %arg17 = %c0_i32_3 to %6 step %c1_i32_4  : i32 {
      %c4_i32 = arith.constant 4 : i32
      %117 = arith.muli %arg17, %c4_i32 : i32
      %118 = tpu.assume_multiple %117, 4 : i32
      %c8_i32 = arith.constant 8 : i32
      %119 = arith.muli %arg17, %c8_i32 : i32
      %120 = tpu.assume_multiple %119, 8 : i32
      %c0_138 = arith.constant 0 : index
      %121 = arith.index_cast %120 : i32 to index
      %c0_139 = arith.constant 0 : index
      %c0_140 = arith.constant 0 : index
      %122 = vector.load %arg1[%c0_138, %121, %c0_139, %c0_140] : memref<1x44x48x75xbf16, #tpu.memory_space<vmem>>, vector<1x8x48x75xbf16>
      %123 = vector.shape_cast %122 : vector<1x8x48x75xbf16> to vector<8x48x75xbf16>
      %124 = vector.shape_cast %123 : vector<8x48x75xbf16> to vector<384x75xbf16>
      %cst_141 = arith.constant dense<0.000000e+00> : vector<384x64xf32>
      %125 = tpu.matmul %124, %4, %cst_141 {dimension_numbers = #tpu.dot_dimension_numbers<[1], [0], [0], [1], [0, 0, 1, 1], [], []>} : vector<384x75xbf16>, vector<75x64xbf16>, vector<384x64xf32> -> vector<384x64xf32>
      %126 = vector.broadcast %5 : vector<1x64xf32> to vector<384x64xf32>
      %127 = arith.addf %125, %126 : vector<384x64xf32>
      %cst_142 = arith.constant 0.000000e+00 : f32
      %128 = vector.broadcast %cst_142 : f32 to vector<384x64xf32>
      %129 = arith.subf %128, %127 : vector<384x64xf32>
      %130 = math.exp %129 : vector<384x64xf32>
      %cst_143 = arith.constant 1.000000e+00 : f32
      %131 = vector.broadcast %cst_143 : f32 to vector<384x64xf32>
      %132 = arith.addf %131, %130 : vector<384x64xf32>
      %133 = tpu.reciprocal %132 {approx = true} : vector<384x64xf32> -> vector<384x64xf32>
      %134 = arith.mulf %127, %133 : vector<384x64xf32>
      %135 = vector.shape_cast %134 : vector<384x64xf32> to vector<4x2x48x64xf32>
      %136 = vector.extract_strided_slice %135 {offsets = [0, 0, 0, 0], sizes = [4, 1, 48, 64], strides = [1, 1, 1, 1]} : vector<4x2x48x64xf32> to vector<4x1x48x64xf32>
      %137 = vector.shape_cast %136 : vector<4x1x48x64xf32> to vector<4x48x64xf32>
      %138 = vector.extract_strided_slice %135 {offsets = [0, 1, 0, 0], sizes = [4, 1, 48, 64], strides = [1, 1, 1, 1]} : vector<4x2x48x64xf32> to vector<4x1x48x64xf32>
      %139 = vector.shape_cast %138 : vector<4x1x48x64xf32> to vector<4x48x64xf32>
      %140 = arith.maximumf %137, %139 : vector<4x48x64xf32>
      %c0_144 = arith.constant 0 : index
      %c0_145 = arith.constant 0 : index
      %c0_146 = arith.constant 0 : index
      %141 = vector.load %arg11[%c0_144, %c0_145, %c0_146] : memref<4x48x64xf32, #tpu.memory_space<vmem>>, vector<4x48x64xf32>
      tpu.vector_store %arg11[%c0_144, %c0_145, %c0_146], %140 {strides = array<i32>} : memref<4x48x64xf32, #tpu.memory_space<vmem>>, vector<4x48x64xf32>,
      %c0_147 = arith.constant 0 : index
      %c0_148 = arith.constant 0 : index
      %c0_149 = arith.constant 0 : index
      %142 = tpu.strided_load %arg11[%c0_147, %c0_148, %c0_149] {strides = array<i32: 1, 2, 1>} : memref<4x48x64xf32, #tpu.memory_space<vmem>>, vector<4x22x64xf32>
      %c0_150 = arith.constant 0 : index
      %c1_151 = arith.constant 1 : index
      %c0_152 = arith.constant 0 : index
      %143 = tpu.strided_load %arg11[%c0_150, %c1_151, %c0_152] {strides = array<i32: 1, 2, 1>} : memref<4x48x64xf32, #tpu.memory_space<vmem>>, vector<4x22x64xf32>
      %144 = arith.maximumf %142, %143 : vector<4x22x64xf32>
      %145 = arith.truncf %144 : vector<4x22x64xf32> to vector<4x22x64xbf16>
      %146 = arith.index_cast %118 : i32 to index
      %c0_153 = arith.constant 0 : index
      %c0_154 = arith.constant 0 : index
      %147 = vector.load %arg9[%146, %c0_153, %c0_154] : memref<22x32x64xbf16, #tpu.memory_space<vmem>>, vector<4x22x64xbf16>
      tpu.vector_store %arg9[%146, %c0_153, %c0_154], %145 {strides = array<i32>} : memref<22x32x64xbf16, #tpu.memory_space<vmem>>, vector<4x22x64xbf16>,
    }
    %c5_i32_5 = arith.constant 5 : i32
    %c0_6 = arith.constant 0 : index
    %c40 = arith.constant 40 : index
    %c0_7 = arith.constant 0 : index
    %c0_8 = arith.constant 0 : index
    %7 = vector.load %arg1[%c0_6, %c40, %c0_7, %c0_8] : memref<1x44x48x75xbf16, #tpu.memory_space<vmem>>, vector<1x4x48x75xbf16>
    %8 = vector.shape_cast %7 : vector<1x4x48x75xbf16> to vector<4x48x75xbf16>
    %9 = vector.shape_cast %8 : vector<4x48x75xbf16> to vector<192x75xbf16>
    %cst = arith.constant dense<0.000000e+00> : vector<192x64xf32>
    %10 = tpu.matmul %9, %4, %cst {dimension_numbers = #tpu.dot_dimension_numbers<[1], [0], [0], [1], [0, 0, 1, 1], [], []>} : vector<192x75xbf16>, vector<75x64xbf16>, vector<192x64xf32> -> vector<192x64xf32>
    %11 = vector.broadcast %5 : vector<1x64xf32> to vector<192x64xf32>
    %12 = arith.addf %10, %11 : vector<192x64xf32>
    %cst_9 = arith.constant 0.000000e+00 : f32
    %13 = vector.broadcast %cst_9 : f32 to vector<192x64xf32>
    %14 = arith.subf %13, %12 : vector<192x64xf32>
    %15 = math.exp %14 : vector<192x64xf32>
    %cst_10 = arith.constant 1.000000e+00 : f32
    %16 = vector.broadcast %cst_10 : f32 to vector<192x64xf32>
    %17 = arith.addf %16, %15 : vector<192x64xf32>
    %18 = tpu.reciprocal %17 {approx = true} : vector<192x64xf32> -> vector<192x64xf32>
    %19 = arith.mulf %12, %18 : vector<192x64xf32>
    %20 = vector.shape_cast %19 : vector<192x64xf32> to vector<2x2x48x64xf32>
    %21 = vector.extract_strided_slice %20 {offsets = [0, 0, 0, 0], sizes = [2, 1, 48, 64], strides = [1, 1, 1, 1]} : vector<2x2x48x64xf32> to vector<2x1x48x64xf32>
    %22 = vector.shape_cast %21 : vector<2x1x48x64xf32> to vector<2x48x64xf32>
    %23 = vector.extract_strided_slice %20 {offsets = [0, 1, 0, 0], sizes = [2, 1, 48, 64], strides = [1, 1, 1, 1]} : vector<2x2x48x64xf32> to vector<2x1x48x64xf32>
    %24 = vector.shape_cast %23 : vector<2x1x48x64xf32> to vector<2x48x64xf32>
    %25 = arith.maximumf %22, %24 : vector<2x48x64xf32>
    %c0_11 = arith.constant 0 : index
    %c0_12 = arith.constant 0 : index
    %c0_13 = arith.constant 0 : index
    %26 = vector.load %arg11[%c0_11, %c0_12, %c0_13] : memref<4x48x64xf32, #tpu.memory_space<vmem>>, vector<2x48x64xf32>
    tpu.vector_store %arg11[%c0_11, %c0_12, %c0_13], %25 {strides = array<i32>} : memref<4x48x64xf32, #tpu.memory_space<vmem>>, vector<2x48x64xf32>,
    %c0_14 = arith.constant 0 : index
    %c0_15 = arith.constant 0 : index
    %c0_16 = arith.constant 0 : index
    %27 = tpu.strided_load %arg11[%c0_14, %c0_15, %c0_16] {strides = array<i32: 1, 2, 1>} : memref<4x48x64xf32, #tpu.memory_space<vmem>>, vector<2x22x64xf32>
    %c0_17 = arith.constant 0 : index
    %c1 = arith.constant 1 : index
    %c0_18 = arith.constant 0 : index
    %28 = tpu.strided_load %arg11[%c0_17, %c1, %c0_18] {strides = array<i32: 1, 2, 1>} : memref<4x48x64xf32, #tpu.memory_space<vmem>>, vector<2x22x64xf32>
    %29 = arith.maximumf %27, %28 : vector<2x22x64xf32>
    %30 = arith.truncf %29 : vector<2x22x64xf32> to vector<2x22x64xbf16>
    %c20 = arith.constant 20 : index
    %c0_19 = arith.constant 0 : index
    %c0_20 = arith.constant 0 : index
    %31 = vector.load %arg9[%c20, %c0_19, %c0_20] : memref<22x32x64xbf16, #tpu.memory_space<vmem>>, vector<2x22x64xbf16>
    tpu.vector_store %arg9[%c20, %c0_19, %c0_20], %30 {strides = array<i32>} : memref<22x32x64xbf16, #tpu.memory_space<vmem>>, vector<2x22x64xbf16>,
    %c0_i32_21 = arith.constant 0 : i32
    %32 = tpu.memref_slice %arg16[%c0_i32_21] : memref<2x!tpu.dma_semaphore, #tpu.memory_space<semaphore_mem>> -> memref<1x!tpu.dma_semaphore, #tpu.memory_space<semaphore_mem>>
    %33 = tpu.memref_squeeze %32 : memref<1x!tpu.dma_semaphore, #tpu.memory_space<semaphore_mem>> -> memref<!tpu.dma_semaphore, #tpu.memory_space<semaphore_mem>>
    tpu.wait_dma2 semaphore(%33 : memref<!tpu.dma_semaphore, #tpu.memory_space<semaphore_mem>>) src(%arg4 : memref<5x320x128xbf16, #tpu.memory_space<any>>) dst(%arg14 : memref<5x320x128xbf16, #tpu.memory_space<vmem>>)
    %c0_22 = arith.constant 0 : index
    %c0_23 = arith.constant 0 : index
    %34 = vector.load %arg5[%c0_22, %c0_23] : memref<1x128xf32, #tpu.memory_space<vmem>>, vector<1x128xf32>
    %c0_i32_24 = arith.constant 0 : i32
    %c3_i32 = arith.constant 3 : i32
    %35 = arith.addi %c0_i32_24, %c3_i32 : i32
    %c1_i32_25 = arith.constant 1 : i32
    scf.for %arg17 = %c0_i32_24 to %35 step %c1_i32_25  : i32 {
      %c3_i32_138 = arith.constant 3 : i32
      %117 = arith.muli %arg17, %c3_i32_138 : i32
      %c6_i32 = arith.constant 6 : i32
      %118 = arith.muli %arg17, %c6_i32 : i32
      %cst_139 = arith.constant 0.000000e+00 : f32
      %119 = vector.broadcast %cst_139 : f32 to vector<144x128xf32>
      %c0_i32_140 = arith.constant 0 : i32
      %120 = arith.addi %118, %c0_i32_140 : i32
      %121 = arith.index_cast %120 : i32 to index
      %c0_141 = arith.constant 0 : index
      %c0_142 = arith.constant 0 : index
      %122 = vector.load %arg9[%121, %c0_141, %c0_142] : memref<22x32x64xbf16, #tpu.memory_space<vmem>>, vector<6x24x64xbf16>
      %c0_i32_143 = arith.constant 0 : i32
      %123 = arith.addi %118, %c0_i32_143 : i32
      %124 = arith.index_cast %123 : i32 to index
      %c1_144 = arith.constant 1 : index
      %c0_145 = arith.constant 0 : index
      %125 = vector.load %arg9[%124, %c1_144, %c0_145] : memref<22x32x64xbf16, #tpu.memory_space<vmem>>, vector<6x24x64xbf16>
      %c0_i32_146 = arith.constant 0 : i32
      %126 = arith.addi %118, %c0_i32_146 : i32
      %127 = arith.index_cast %126 : i32 to index
      %c2_147 = arith.constant 2 : index
      %c0_148 = arith.constant 0 : index
      %128 = vector.load %arg9[%127, %c2_147, %c0_148] : memref<22x32x64xbf16, #tpu.memory_space<vmem>>, vector<6x24x64xbf16>
      %c0_i32_149 = arith.constant 0 : i32
      %129 = arith.addi %118, %c0_i32_149 : i32
      %130 = arith.index_cast %129 : i32 to index
      %c3_150 = arith.constant 3 : index
      %c0_151 = arith.constant 0 : index
      %131 = vector.load %arg9[%130, %c3_150, %c0_151] : memref<22x32x64xbf16, #tpu.memory_space<vmem>>, vector<6x24x64xbf16>
      %c0_i32_152 = arith.constant 0 : i32
      %132 = arith.addi %118, %c0_i32_152 : i32
      %133 = arith.index_cast %132 : i32 to index
      %c4_153 = arith.constant 4 : index
      %c0_154 = arith.constant 0 : index
      %134 = vector.load %arg9[%133, %c4_153, %c0_154] : memref<22x32x64xbf16, #tpu.memory_space<vmem>>, vector<6x24x64xbf16>
      %135 = tpu.concatenate %122, %125, %128, %131, %134 in 2 : vector<6x24x64xbf16>, vector<6x24x64xbf16>, vector<6x24x64xbf16>, vector<6x24x64xbf16>, vector<6x24x64xbf16> -> vector<6x24x320xbf16>
      %136 = vector.shape_cast %135 : vector<6x24x320xbf16> to vector<144x320xbf16>
      %c0_155 = arith.constant 0 : index
      %c0_156 = arith.constant 0 : index
      %c0_157 = arith.constant 0 : index
      %137 = vector.load %arg14[%c0_155, %c0_156, %c0_157] : memref<5x320x128xbf16, #tpu.memory_space<vmem>>, vector<1x320x128xbf16>
      %138 = vector.shape_cast %137 : vector<1x320x128xbf16> to vector<320x128xbf16>
      %cst_158 = arith.constant dense<0.000000e+00> : vector<144x128xf32>
      %139 = tpu.matmul %136, %138, %cst_158 {dimension_numbers = #tpu.dot_dimension_numbers<[1], [0], [0], [1], [0, 0, 1, 1], [], []>} : vector<144x320xbf16>, vector<320x128xbf16>, vector<144x128xf32> -> vector<144x128xf32>
      %140 = arith.addf %119, %139 : vector<144x128xf32>
      %c1_i32_159 = arith.constant 1 : i32
      %141 = arith.addi %118, %c1_i32_159 : i32
      %142 = arith.index_cast %141 : i32 to index
      %c0_160 = arith.constant 0 : index
      %c0_161 = arith.constant 0 : index
      %143 = vector.load %arg9[%142, %c0_160, %c0_161] : memref<22x32x64xbf16, #tpu.memory_space<vmem>>, vector<6x24x64xbf16>
      %c1_i32_162 = arith.constant 1 : i32
      %144 = arith.addi %118, %c1_i32_162 : i32
      %145 = arith.index_cast %144 : i32 to index
      %c1_163 = arith.constant 1 : index
      %c0_164 = arith.constant 0 : index
      %146 = vector.load %arg9[%145, %c1_163, %c0_164] : memref<22x32x64xbf16, #tpu.memory_space<vmem>>, vector<6x24x64xbf16>
      %c1_i32_165 = arith.constant 1 : i32
      %147 = arith.addi %118, %c1_i32_165 : i32
      %148 = arith.index_cast %147 : i32 to index
      %c2_166 = arith.constant 2 : index
      %c0_167 = arith.constant 0 : index
      %149 = vector.load %arg9[%148, %c2_166, %c0_167] : memref<22x32x64xbf16, #tpu.memory_space<vmem>>, vector<6x24x64xbf16>
      %c1_i32_168 = arith.constant 1 : i32
      %150 = arith.addi %118, %c1_i32_168 : i32
      %151 = arith.index_cast %150 : i32 to index
      %c3_169 = arith.constant 3 : index
      %c0_170 = arith.constant 0 : index
      %152 = vector.load %arg9[%151, %c3_169, %c0_170] : memref<22x32x64xbf16, #tpu.memory_space<vmem>>, vector<6x24x64xbf16>
      %c1_i32_171 = arith.constant 1 : i32
      %153 = arith.addi %118, %c1_i32_171 : i32
      %154 = arith.index_cast %153 : i32 to index
      %c4_172 = arith.constant 4 : index
      %c0_173 = arith.constant 0 : index
      %155 = vector.load %arg9[%154, %c4_172, %c0_173] : memref<22x32x64xbf16, #tpu.memory_space<vmem>>, vector<6x24x64xbf16>
      %156 = tpu.concatenate %143, %146, %149, %152, %155 in 2 : vector<6x24x64xbf16>, vector<6x24x64xbf16>, vector<6x24x64xbf16>, vector<6x24x64xbf16>, vector<6x24x64xbf16> -> vector<6x24x320xbf16>
      %157 = vector.shape_cast %156 : vector<6x24x320xbf16> to vector<144x320xbf16>
      %c1_174 = arith.constant 1 : index
      %c0_175 = arith.constant 0 : index
      %c0_176 = arith.constant 0 : index
      %158 = vector.load %arg14[%c1_174, %c0_175, %c0_176] : memref<5x320x128xbf16, #tpu.memory_space<vmem>>, vector<1x320x128xbf16>
      %159 = vector.shape_cast %158 : vector<1x320x128xbf16> to vector<320x128xbf16>
      %cst_177 = arith.constant dense<0.000000e+00> : vector<144x128xf32>
      %160 = tpu.matmul %157, %159, %cst_177 {dimension_numbers = #tpu.dot_dimension_numbers<[1], [0], [0], [1], [0, 0, 1, 1], [], []>} : vector<144x320xbf16>, vector<320x128xbf16>, vector<144x128xf32> -> vector<144x128xf32>
      %161 = arith.addf %140, %160 : vector<144x128xf32>
      %c2_i32 = arith.constant 2 : i32
      %162 = arith.addi %118, %c2_i32 : i32
      %163 = arith.index_cast %162 : i32 to index
      %c0_178 = arith.constant 0 : index
      %c0_179 = arith.constant 0 : index
      %164 = vector.load %arg9[%163, %c0_178, %c0_179] : memref<22x32x64xbf16, #tpu.memory_space<vmem>>, vector<6x24x64xbf16>
      %c2_i32_180 = arith.constant 2 : i32
      %165 = arith.addi %118, %c2_i32_180 : i32
      %166 = arith.index_cast %165 : i32 to index
      %c1_181 = arith.constant 1 : index
      %c0_182 = arith.constant 0 : index
      %167 = vector.load %arg9[%166, %c1_181, %c0_182] : memref<22x32x64xbf16, #tpu.memory_space<vmem>>, vector<6x24x64xbf16>
      %c2_i32_183 = arith.constant 2 : i32
      %168 = arith.addi %118, %c2_i32_183 : i32
      %169 = arith.index_cast %168 : i32 to index
      %c2_184 = arith.constant 2 : index
      %c0_185 = arith.constant 0 : index
      %170 = vector.load %arg9[%169, %c2_184, %c0_185] : memref<22x32x64xbf16, #tpu.memory_space<vmem>>, vector<6x24x64xbf16>
      %c2_i32_186 = arith.constant 2 : i32
      %171 = arith.addi %118, %c2_i32_186 : i32
      %172 = arith.index_cast %171 : i32 to index
      %c3_187 = arith.constant 3 : index
      %c0_188 = arith.constant 0 : index
      %173 = vector.load %arg9[%172, %c3_187, %c0_188] : memref<22x32x64xbf16, #tpu.memory_space<vmem>>, vector<6x24x64xbf16>
      %c2_i32_189 = arith.constant 2 : i32
      %174 = arith.addi %118, %c2_i32_189 : i32
      %175 = arith.index_cast %174 : i32 to index
      %c4_190 = arith.constant 4 : index
      %c0_191 = arith.constant 0 : index
      %176 = vector.load %arg9[%175, %c4_190, %c0_191] : memref<22x32x64xbf16, #tpu.memory_space<vmem>>, vector<6x24x64xbf16>
      %177 = tpu.concatenate %164, %167, %170, %173, %176 in 2 : vector<6x24x64xbf16>, vector<6x24x64xbf16>, vector<6x24x64xbf16>, vector<6x24x64xbf16>, vector<6x24x64xbf16> -> vector<6x24x320xbf16>
      %178 = vector.shape_cast %177 : vector<6x24x320xbf16> to vector<144x320xbf16>
      %c2_192 = arith.constant 2 : index
      %c0_193 = arith.constant 0 : index
      %c0_194 = arith.constant 0 : index
      %179 = vector.load %arg14[%c2_192, %c0_193, %c0_194] : memref<5x320x128xbf16, #tpu.memory_space<vmem>>, vector<1x320x128xbf16>
      %180 = vector.shape_cast %179 : vector<1x320x128xbf16> to vector<320x128xbf16>
      %cst_195 = arith.constant dense<0.000000e+00> : vector<144x128xf32>
      %181 = tpu.matmul %178, %180, %cst_195 {dimension_numbers = #tpu.dot_dimension_numbers<[1], [0], [0], [1], [0, 0, 1, 1], [], []>} : vector<144x320xbf16>, vector<320x128xbf16>, vector<144x128xf32> -> vector<144x128xf32>
      %182 = arith.addf %161, %181 : vector<144x128xf32>
      %c3_i32_196 = arith.constant 3 : i32
      %183 = arith.addi %118, %c3_i32_196 : i32
      %184 = arith.index_cast %183 : i32 to index
      %c0_197 = arith.constant 0 : index
      %c0_198 = arith.constant 0 : index
      %185 = vector.load %arg9[%184, %c0_197, %c0_198] : memref<22x32x64xbf16, #tpu.memory_space<vmem>>, vector<6x24x64xbf16>
      %c3_i32_199 = arith.constant 3 : i32
      %186 = arith.addi %118, %c3_i32_199 : i32
      %187 = arith.index_cast %186 : i32 to index
      %c1_200 = arith.constant 1 : index
      %c0_201 = arith.constant 0 : index
      %188 = vector.load %arg9[%187, %c1_200, %c0_201] : memref<22x32x64xbf16, #tpu.memory_space<vmem>>, vector<6x24x64xbf16>
      %c3_i32_202 = arith.constant 3 : i32
      %189 = arith.addi %118, %c3_i32_202 : i32
      %190 = arith.index_cast %189 : i32 to index
      %c2_203 = arith.constant 2 : index
      %c0_204 = arith.constant 0 : index
      %191 = vector.load %arg9[%190, %c2_203, %c0_204] : memref<22x32x64xbf16, #tpu.memory_space<vmem>>, vector<6x24x64xbf16>
      %c3_i32_205 = arith.constant 3 : i32
      %192 = arith.addi %118, %c3_i32_205 : i32
      %193 = arith.index_cast %192 : i32 to index
      %c3_206 = arith.constant 3 : index
      %c0_207 = arith.constant 0 : index
      %194 = vector.load %arg9[%193, %c3_206, %c0_207] : memref<22x32x64xbf16, #tpu.memory_space<vmem>>, vector<6x24x64xbf16>
      %c3_i32_208 = arith.constant 3 : i32
      %195 = arith.addi %118, %c3_i32_208 : i32
      %196 = arith.index_cast %195 : i32 to index
      %c4_209 = arith.constant 4 : index
      %c0_210 = arith.constant 0 : index
      %197 = vector.load %arg9[%196, %c4_209, %c0_210] : memref<22x32x64xbf16, #tpu.memory_space<vmem>>, vector<6x24x64xbf16>
      %198 = tpu.concatenate %185, %188, %191, %194, %197 in 2 : vector<6x24x64xbf16>, vector<6x24x64xbf16>, vector<6x24x64xbf16>, vector<6x24x64xbf16>, vector<6x24x64xbf16> -> vector<6x24x320xbf16>
      %199 = vector.shape_cast %198 : vector<6x24x320xbf16> to vector<144x320xbf16>
      %c3_211 = arith.constant 3 : index
      %c0_212 = arith.constant 0 : index
      %c0_213 = arith.constant 0 : index
      %200 = vector.load %arg14[%c3_211, %c0_212, %c0_213] : memref<5x320x128xbf16, #tpu.memory_space<vmem>>, vector<1x320x128xbf16>
      %201 = vector.shape_cast %200 : vector<1x320x128xbf16> to vector<320x128xbf16>
      %cst_214 = arith.constant dense<0.000000e+00> : vector<144x128xf32>
      %202 = tpu.matmul %199, %201, %cst_214 {dimension_numbers = #tpu.dot_dimension_numbers<[1], [0], [0], [1], [0, 0, 1, 1], [], []>} : vector<144x320xbf16>, vector<320x128xbf16>, vector<144x128xf32> -> vector<144x128xf32>
      %203 = arith.addf %182, %202 : vector<144x128xf32>
      %c4_i32 = arith.constant 4 : i32
      %204 = arith.addi %118, %c4_i32 : i32
      %205 = arith.index_cast %204 : i32 to index
      %c0_215 = arith.constant 0 : index
      %c0_216 = arith.constant 0 : index
      %206 = vector.load %arg9[%205, %c0_215, %c0_216] : memref<22x32x64xbf16, #tpu.memory_space<vmem>>, vector<6x24x64xbf16>
      %c4_i32_217 = arith.constant 4 : i32
      %207 = arith.addi %118, %c4_i32_217 : i32
      %208 = arith.index_cast %207 : i32 to index
      %c1_218 = arith.constant 1 : index
      %c0_219 = arith.constant 0 : index
      %209 = vector.load %arg9[%208, %c1_218, %c0_219] : memref<22x32x64xbf16, #tpu.memory_space<vmem>>, vector<6x24x64xbf16>
      %c4_i32_220 = arith.constant 4 : i32
      %210 = arith.addi %118, %c4_i32_220 : i32
      %211 = arith.index_cast %210 : i32 to index
      %c2_221 = arith.constant 2 : index
      %c0_222 = arith.constant 0 : index
      %212 = vector.load %arg9[%211, %c2_221, %c0_222] : memref<22x32x64xbf16, #tpu.memory_space<vmem>>, vector<6x24x64xbf16>
      %c4_i32_223 = arith.constant 4 : i32
      %213 = arith.addi %118, %c4_i32_223 : i32
      %214 = arith.index_cast %213 : i32 to index
      %c3_224 = arith.constant 3 : index
      %c0_225 = arith.constant 0 : index
      %215 = vector.load %arg9[%214, %c3_224, %c0_225] : memref<22x32x64xbf16, #tpu.memory_space<vmem>>, vector<6x24x64xbf16>
      %c4_i32_226 = arith.constant 4 : i32
      %216 = arith.addi %118, %c4_i32_226 : i32
      %217 = arith.index_cast %216 : i32 to index
      %c4_227 = arith.constant 4 : index
      %c0_228 = arith.constant 0 : index
      %218 = vector.load %arg9[%217, %c4_227, %c0_228] : memref<22x32x64xbf16, #tpu.memory_space<vmem>>, vector<6x24x64xbf16>
      %219 = tpu.concatenate %206, %209, %212, %215, %218 in 2 : vector<6x24x64xbf16>, vector<6x24x64xbf16>, vector<6x24x64xbf16>, vector<6x24x64xbf16>, vector<6x24x64xbf16> -> vector<6x24x320xbf16>
      %220 = vector.shape_cast %219 : vector<6x24x320xbf16> to vector<144x320xbf16>
      %c4_229 = arith.constant 4 : index
      %c0_230 = arith.constant 0 : index
      %c0_231 = arith.constant 0 : index
      %221 = vector.load %arg14[%c4_229, %c0_230, %c0_231] : memref<5x320x128xbf16, #tpu.memory_space<vmem>>, vector<1x320x128xbf16>
      %222 = vector.shape_cast %221 : vector<1x320x128xbf16> to vector<320x128xbf16>
      %cst_232 = arith.constant dense<0.000000e+00> : vector<144x128xf32>
      %223 = tpu.matmul %220, %222, %cst_232 {dimension_numbers = #tpu.dot_dimension_numbers<[1], [0], [0], [1], [0, 0, 1, 1], [], []>} : vector<144x320xbf16>, vector<320x128xbf16>, vector<144x128xf32> -> vector<144x128xf32>
      %224 = arith.addf %203, %223 : vector<144x128xf32>
      %225 = vector.broadcast %34 : vector<1x128xf32> to vector<144x128xf32>
      %226 = arith.addf %224, %225 : vector<144x128xf32>
      %cst_233 = arith.constant 0.000000e+00 : f32
      %227 = vector.broadcast %cst_233 : f32 to vector<144x128xf32>
      %228 = arith.subf %227, %226 : vector<144x128xf32>
      %229 = math.exp %228 : vector<144x128xf32>
      %cst_234 = arith.constant 1.000000e+00 : f32
      %230 = vector.broadcast %cst_234 : f32 to vector<144x128xf32>
      %231 = arith.addf %230, %229 : vector<144x128xf32>
      %232 = tpu.reciprocal %231 {approx = true} : vector<144x128xf32> -> vector<144x128xf32>
      %233 = arith.mulf %226, %232 : vector<144x128xf32>
      %234 = vector.shape_cast %233 : vector<144x128xf32> to vector<3x2x24x128xf32>
      %235 = vector.extract_strided_slice %234 {offsets = [0, 0, 0, 0], sizes = [3, 1, 24, 128], strides = [1, 1, 1, 1]} : vector<3x2x24x128xf32> to vector<3x1x24x128xf32>
      %236 = vector.shape_cast %235 : vector<3x1x24x128xf32> to vector<3x24x128xf32>
      %237 = vector.extract_strided_slice %234 {offsets = [0, 1, 0, 0], sizes = [3, 1, 24, 128], strides = [1, 1, 1, 1]} : vector<3x2x24x128xf32> to vector<3x1x24x128xf32>
      %238 = vector.shape_cast %237 : vector<3x1x24x128xf32> to vector<3x24x128xf32>
      %239 = arith.maximumf %236, %238 : vector<3x24x128xf32>
      %c0_235 = arith.constant 0 : index
      %c0_236 = arith.constant 0 : index
      %c0_237 = arith.constant 0 : index
      %240 = vector.load %arg12[%c0_235, %c0_236, %c0_237] : memref<3x24x128xf32, #tpu.memory_space<vmem>>, vector<3x24x128xf32>
      tpu.vector_store %arg12[%c0_235, %c0_236, %c0_237], %239 {strides = array<i32>} : memref<3x24x128xf32, #tpu.memory_space<vmem>>, vector<3x24x128xf32>,
      %c0_238 = arith.constant 0 : index
      %c0_239 = arith.constant 0 : index
      %c0_240 = arith.constant 0 : index
      %241 = tpu.strided_load %arg12[%c0_238, %c0_239, %c0_240] {strides = array<i32: 1, 2, 1>} : memref<3x24x128xf32, #tpu.memory_space<vmem>>, vector<3x9x128xf32>
      %c0_241 = arith.constant 0 : index
      %c1_242 = arith.constant 1 : index
      %c0_243 = arith.constant 0 : index
      %242 = tpu.strided_load %arg12[%c0_241, %c1_242, %c0_243] {strides = array<i32: 1, 2, 1>} : memref<3x24x128xf32, #tpu.memory_space<vmem>>, vector<3x9x128xf32>
      %243 = arith.maximumf %241, %242 : vector<3x9x128xf32>
      %244 = arith.truncf %243 : vector<3x9x128xf32> to vector<3x9x128xbf16>
      %245 = arith.index_cast %117 : i32 to index
      %c0_244 = arith.constant 0 : index
      %c0_245 = arith.constant 0 : index
      %246 = vector.load %arg10[%245, %c0_244, %c0_245] : memref<9x16x128xbf16, #tpu.memory_space<vmem>>, vector<3x9x128xbf16>
      tpu.vector_store %arg10[%245, %c0_244, %c0_245], %244 {strides = array<i32>} : memref<9x16x128xbf16, #tpu.memory_space<vmem>>, vector<3x9x128xbf16>,
    }
    %c3_i32_26 = arith.constant 3 : i32
    %c1_i32_27 = arith.constant 1 : i32
    %36 = tpu.memref_slice %arg16[%c1_i32_27] : memref<2x!tpu.dma_semaphore, #tpu.memory_space<semaphore_mem>> -> memref<1x!tpu.dma_semaphore, #tpu.memory_space<semaphore_mem>>
    %37 = tpu.memref_squeeze %36 : memref<1x!tpu.dma_semaphore, #tpu.memory_space<semaphore_mem>> -> memref<!tpu.dma_semaphore, #tpu.memory_space<semaphore_mem>>
    tpu.wait_dma2 semaphore(%37 : memref<!tpu.dma_semaphore, #tpu.memory_space<semaphore_mem>>) src(%arg6 : memref<5x640x32xbf16, #tpu.memory_space<any>>) dst(%arg15 : memref<5x640x32xbf16, #tpu.memory_space<vmem>>)
    %c0_28 = arith.constant 0 : index
    %c0_29 = arith.constant 0 : index
    %38 = vector.load %arg7[%c0_28, %c0_29] : memref<1x32xf32, #tpu.memory_space<vmem>>, vector<1x32xf32>
    %cst_30 = arith.constant 0.000000e+00 : f32
    %39 = vector.broadcast %cst_30 : f32 to vector<32x32xf32>
    %c0_31 = arith.constant 0 : index
    %c0_32 = arith.constant 0 : index
    %c0_33 = arith.constant 0 : index
    %40 = vector.load %arg10[%c0_31, %c0_32, %c0_33] : memref<9x16x128xbf16, #tpu.memory_space<vmem>>, vector<4x8x128xbf16>
    %c0_34 = arith.constant 0 : index
    %c1_35 = arith.constant 1 : index
    %c0_36 = arith.constant 0 : index
    %41 = vector.load %arg10[%c0_34, %c1_35, %c0_36] : memref<9x16x128xbf16, #tpu.memory_space<vmem>>, vector<4x8x128xbf16>
    %c0_37 = arith.constant 0 : index
    %c2 = arith.constant 2 : index
    %c0_38 = arith.constant 0 : index
    %42 = vector.load %arg10[%c0_37, %c2, %c0_38] : memref<9x16x128xbf16, #tpu.memory_space<vmem>>, vector<4x8x128xbf16>
    %c0_39 = arith.constant 0 : index
    %c3 = arith.constant 3 : index
    %c0_40 = arith.constant 0 : index
    %43 = vector.load %arg10[%c0_39, %c3, %c0_40] : memref<9x16x128xbf16, #tpu.memory_space<vmem>>, vector<4x8x128xbf16>
    %c0_41 = arith.constant 0 : index
    %c4 = arith.constant 4 : index
    %c0_42 = arith.constant 0 : index
    %44 = vector.load %arg10[%c0_41, %c4, %c0_42] : memref<9x16x128xbf16, #tpu.memory_space<vmem>>, vector<4x8x128xbf16>
    %45 = tpu.concatenate %40, %41, %42, %43, %44 in 2 : vector<4x8x128xbf16>, vector<4x8x128xbf16>, vector<4x8x128xbf16>, vector<4x8x128xbf16>, vector<4x8x128xbf16> -> vector<4x8x640xbf16>
    %46 = vector.shape_cast %45 : vector<4x8x640xbf16> to vector<32x640xbf16>
    %c0_43 = arith.constant 0 : index
    %c0_44 = arith.constant 0 : index
    %c0_45 = arith.constant 0 : index
    %47 = vector.load %arg15[%c0_43, %c0_44, %c0_45] : memref<5x640x32xbf16, #tpu.memory_space<vmem>>, vector<1x640x32xbf16>
    %48 = vector.shape_cast %47 : vector<1x640x32xbf16> to vector<640x32xbf16>
    %cst_46 = arith.constant dense<0.000000e+00> : vector<32x32xf32>
    %49 = tpu.matmul %46, %48, %cst_46 {dimension_numbers = #tpu.dot_dimension_numbers<[1], [0], [0], [1], [0, 0, 1, 1], [], []>} : vector<32x640xbf16>, vector<640x32xbf16>, vector<32x32xf32> -> vector<32x32xf32>
    %50 = arith.addf %39, %49 : vector<32x32xf32>
    %c1_47 = arith.constant 1 : index
    %c0_48 = arith.constant 0 : index
    %c0_49 = arith.constant 0 : index
    %51 = vector.load %arg10[%c1_47, %c0_48, %c0_49] : memref<9x16x128xbf16, #tpu.memory_space<vmem>>, vector<4x8x128xbf16>
    %c1_50 = arith.constant 1 : index
    %c1_51 = arith.constant 1 : index
    %c0_52 = arith.constant 0 : index
    %52 = vector.load %arg10[%c1_50, %c1_51, %c0_52] : memref<9x16x128xbf16, #tpu.memory_space<vmem>>, vector<4x8x128xbf16>
    %c1_53 = arith.constant 1 : index
    %c2_54 = arith.constant 2 : index
    %c0_55 = arith.constant 0 : index
    %53 = vector.load %arg10[%c1_53, %c2_54, %c0_55] : memref<9x16x128xbf16, #tpu.memory_space<vmem>>, vector<4x8x128xbf16>
    %c1_56 = arith.constant 1 : index
    %c3_57 = arith.constant 3 : index
    %c0_58 = arith.constant 0 : index
    %54 = vector.load %arg10[%c1_56, %c3_57, %c0_58] : memref<9x16x128xbf16, #tpu.memory_space<vmem>>, vector<4x8x128xbf16>
    %c1_59 = arith.constant 1 : index
    %c4_60 = arith.constant 4 : index
    %c0_61 = arith.constant 0 : index
    %55 = vector.load %arg10[%c1_59, %c4_60, %c0_61] : memref<9x16x128xbf16, #tpu.memory_space<vmem>>, vector<4x8x128xbf16>
    %56 = tpu.concatenate %51, %52, %53, %54, %55 in 2 : vector<4x8x128xbf16>, vector<4x8x128xbf16>, vector<4x8x128xbf16>, vector<4x8x128xbf16>, vector<4x8x128xbf16> -> vector<4x8x640xbf16>
    %57 = vector.shape_cast %56 : vector<4x8x640xbf16> to vector<32x640xbf16>
    %c1_62 = arith.constant 1 : index
    %c0_63 = arith.constant 0 : index
    %c0_64 = arith.constant 0 : index
    %58 = vector.load %arg15[%c1_62, %c0_63, %c0_64] : memref<5x640x32xbf16, #tpu.memory_space<vmem>>, vector<1x640x32xbf16>
    %59 = vector.shape_cast %58 : vector<1x640x32xbf16> to vector<640x32xbf16>
    %cst_65 = arith.constant dense<0.000000e+00> : vector<32x32xf32>
    %60 = tpu.matmul %57, %59, %cst_65 {dimension_numbers = #tpu.dot_dimension_numbers<[1], [0], [0], [1], [0, 0, 1, 1], [], []>} : vector<32x640xbf16>, vector<640x32xbf16>, vector<32x32xf32> -> vector<32x32xf32>
    %61 = arith.addf %50, %60 : vector<32x32xf32>
    %c2_66 = arith.constant 2 : index
    %c0_67 = arith.constant 0 : index
    %c0_68 = arith.constant 0 : index
    %62 = vector.load %arg10[%c2_66, %c0_67, %c0_68] : memref<9x16x128xbf16, #tpu.memory_space<vmem>>, vector<4x8x128xbf16>
    %c2_69 = arith.constant 2 : index
    %c1_70 = arith.constant 1 : index
    %c0_71 = arith.constant 0 : index
    %63 = vector.load %arg10[%c2_69, %c1_70, %c0_71] : memref<9x16x128xbf16, #tpu.memory_space<vmem>>, vector<4x8x128xbf16>
    %c2_72 = arith.constant 2 : index
    %c2_73 = arith.constant 2 : index
    %c0_74 = arith.constant 0 : index
    %64 = vector.load %arg10[%c2_72, %c2_73, %c0_74] : memref<9x16x128xbf16, #tpu.memory_space<vmem>>, vector<4x8x128xbf16>
    %c2_75 = arith.constant 2 : index
    %c3_76 = arith.constant 3 : index
    %c0_77 = arith.constant 0 : index
    %65 = vector.load %arg10[%c2_75, %c3_76, %c0_77] : memref<9x16x128xbf16, #tpu.memory_space<vmem>>, vector<4x8x128xbf16>
    %c2_78 = arith.constant 2 : index
    %c4_79 = arith.constant 4 : index
    %c0_80 = arith.constant 0 : index
    %66 = vector.load %arg10[%c2_78, %c4_79, %c0_80] : memref<9x16x128xbf16, #tpu.memory_space<vmem>>, vector<4x8x128xbf16>
    %67 = tpu.concatenate %62, %63, %64, %65, %66 in 2 : vector<4x8x128xbf16>, vector<4x8x128xbf16>, vector<4x8x128xbf16>, vector<4x8x128xbf16>, vector<4x8x128xbf16> -> vector<4x8x640xbf16>
    %68 = vector.shape_cast %67 : vector<4x8x640xbf16> to vector<32x640xbf16>
    %c2_81 = arith.constant 2 : index
    %c0_82 = arith.constant 0 : index
    %c0_83 = arith.constant 0 : index
    %69 = vector.load %arg15[%c2_81, %c0_82, %c0_83] : memref<5x640x32xbf16, #tpu.memory_space<vmem>>, vector<1x640x32xbf16>
    %70 = vector.shape_cast %69 : vector<1x640x32xbf16> to vector<640x32xbf16>
    %cst_84 = arith.constant dense<0.000000e+00> : vector<32x32xf32>
    %71 = tpu.matmul %68, %70, %cst_84 {dimension_numbers = #tpu.dot_dimension_numbers<[1], [0], [0], [1], [0, 0, 1, 1], [], []>} : vector<32x640xbf16>, vector<640x32xbf16>, vector<32x32xf32> -> vector<32x32xf32>
    %72 = arith.addf %61, %71 : vector<32x32xf32>
    %c3_85 = arith.constant 3 : index
    %c0_86 = arith.constant 0 : index
    %c0_87 = arith.constant 0 : index
    %73 = vector.load %arg10[%c3_85, %c0_86, %c0_87] : memref<9x16x128xbf16, #tpu.memory_space<vmem>>, vector<4x8x128xbf16>
    %c3_88 = arith.constant 3 : index
    %c1_89 = arith.constant 1 : index
    %c0_90 = arith.constant 0 : index
    %74 = vector.load %arg10[%c3_88, %c1_89, %c0_90] : memref<9x16x128xbf16, #tpu.memory_space<vmem>>, vector<4x8x128xbf16>
    %c3_91 = arith.constant 3 : index
    %c2_92 = arith.constant 2 : index
    %c0_93 = arith.constant 0 : index
    %75 = vector.load %arg10[%c3_91, %c2_92, %c0_93] : memref<9x16x128xbf16, #tpu.memory_space<vmem>>, vector<4x8x128xbf16>
    %c3_94 = arith.constant 3 : index
    %c3_95 = arith.constant 3 : index
    %c0_96 = arith.constant 0 : index
    %76 = vector.load %arg10[%c3_94, %c3_95, %c0_96] : memref<9x16x128xbf16, #tpu.memory_space<vmem>>, vector<4x8x128xbf16>
    %c3_97 = arith.constant 3 : index
    %c4_98 = arith.constant 4 : index
    %c0_99 = arith.constant 0 : index
    %77 = vector.load %arg10[%c3_97, %c4_98, %c0_99] : memref<9x16x128xbf16, #tpu.memory_space<vmem>>, vector<4x8x128xbf16>
    %78 = tpu.concatenate %73, %74, %75, %76, %77 in 2 : vector<4x8x128xbf16>, vector<4x8x128xbf16>, vector<4x8x128xbf16>, vector<4x8x128xbf16>, vector<4x8x128xbf16> -> vector<4x8x640xbf16>
    %79 = vector.shape_cast %78 : vector<4x8x640xbf16> to vector<32x640xbf16>
    %c3_100 = arith.constant 3 : index
    %c0_101 = arith.constant 0 : index
    %c0_102 = arith.constant 0 : index
    %80 = vector.load %arg15[%c3_100, %c0_101, %c0_102] : memref<5x640x32xbf16, #tpu.memory_space<vmem>>, vector<1x640x32xbf16>
    %81 = vector.shape_cast %80 : vector<1x640x32xbf16> to vector<640x32xbf16>
    %cst_103 = arith.constant dense<0.000000e+00> : vector<32x32xf32>
    %82 = tpu.matmul %79, %81, %cst_103 {dimension_numbers = #tpu.dot_dimension_numbers<[1], [0], [0], [1], [0, 0, 1, 1], [], []>} : vector<32x640xbf16>, vector<640x32xbf16>, vector<32x32xf32> -> vector<32x32xf32>
    %83 = arith.addf %72, %82 : vector<32x32xf32>
    %c4_104 = arith.constant 4 : index
    %c0_105 = arith.constant 0 : index
    %c0_106 = arith.constant 0 : index
    %84 = vector.load %arg10[%c4_104, %c0_105, %c0_106] : memref<9x16x128xbf16, #tpu.memory_space<vmem>>, vector<4x8x128xbf16>
    %c4_107 = arith.constant 4 : index
    %c1_108 = arith.constant 1 : index
    %c0_109 = arith.constant 0 : index
    %85 = vector.load %arg10[%c4_107, %c1_108, %c0_109] : memref<9x16x128xbf16, #tpu.memory_space<vmem>>, vector<4x8x128xbf16>
    %c4_110 = arith.constant 4 : index
    %c2_111 = arith.constant 2 : index
    %c0_112 = arith.constant 0 : index
    %86 = vector.load %arg10[%c4_110, %c2_111, %c0_112] : memref<9x16x128xbf16, #tpu.memory_space<vmem>>, vector<4x8x128xbf16>
    %c4_113 = arith.constant 4 : index
    %c3_114 = arith.constant 3 : index
    %c0_115 = arith.constant 0 : index
    %87 = vector.load %arg10[%c4_113, %c3_114, %c0_115] : memref<9x16x128xbf16, #tpu.memory_space<vmem>>, vector<4x8x128xbf16>
    %c4_116 = arith.constant 4 : index
    %c4_117 = arith.constant 4 : index
    %c0_118 = arith.constant 0 : index
    %88 = vector.load %arg10[%c4_116, %c4_117, %c0_118] : memref<9x16x128xbf16, #tpu.memory_space<vmem>>, vector<4x8x128xbf16>
    %89 = tpu.concatenate %84, %85, %86, %87, %88 in 2 : vector<4x8x128xbf16>, vector<4x8x128xbf16>, vector<4x8x128xbf16>, vector<4x8x128xbf16>, vector<4x8x128xbf16> -> vector<4x8x640xbf16>
    %90 = vector.shape_cast %89 : vector<4x8x640xbf16> to vector<32x640xbf16>
    %c4_119 = arith.constant 4 : index
    %c0_120 = arith.constant 0 : index
    %c0_121 = arith.constant 0 : index
    %91 = vector.load %arg15[%c4_119, %c0_120, %c0_121] : memref<5x640x32xbf16, #tpu.memory_space<vmem>>, vector<1x640x32xbf16>
    %92 = vector.shape_cast %91 : vector<1x640x32xbf16> to vector<640x32xbf16>
    %cst_122 = arith.constant dense<0.000000e+00> : vector<32x32xf32>
    %93 = tpu.matmul %90, %92, %cst_122 {dimension_numbers = #tpu.dot_dimension_numbers<[1], [0], [0], [1], [0, 0, 1, 1], [], []>} : vector<32x640xbf16>, vector<640x32xbf16>, vector<32x32xf32> -> vector<32x32xf32>
    %94 = arith.addf %83, %93 : vector<32x32xf32>
    %95 = vector.broadcast %38 : vector<1x32xf32> to vector<32x32xf32>
    %96 = arith.addf %94, %95 : vector<32x32xf32>
    %cst_123 = arith.constant 0.000000e+00 : f32
    %97 = vector.broadcast %cst_123 : f32 to vector<32x32xf32>
    %98 = arith.subf %97, %96 : vector<32x32xf32>
    %99 = math.exp %98 : vector<32x32xf32>
    %cst_124 = arith.constant 1.000000e+00 : f32
    %100 = vector.broadcast %cst_124 : f32 to vector<32x32xf32>
    %101 = arith.addf %100, %99 : vector<32x32xf32>
    %102 = tpu.reciprocal %101 {approx = true} : vector<32x32xf32> -> vector<32x32xf32>
    %103 = arith.mulf %96, %102 : vector<32x32xf32>
    %104 = vector.shape_cast %103 : vector<32x32xf32> to vector<2x2x8x32xf32>
    %105 = vector.extract_strided_slice %104 {offsets = [0, 0, 0, 0], sizes = [2, 1, 8, 32], strides = [1, 1, 1, 1]} : vector<2x2x8x32xf32> to vector<2x1x8x32xf32>
    %106 = vector.shape_cast %105 : vector<2x1x8x32xf32> to vector<2x8x32xf32>
    %107 = vector.extract_strided_slice %104 {offsets = [0, 1, 0, 0], sizes = [2, 1, 8, 32], strides = [1, 1, 1, 1]} : vector<2x2x8x32xf32> to vector<2x1x8x32xf32>
    %108 = vector.shape_cast %107 : vector<2x1x8x32xf32> to vector<2x8x32xf32>
    %109 = arith.maximumf %106, %108 : vector<2x8x32xf32>
    %c0_125 = arith.constant 0 : index
    %c0_126 = arith.constant 0 : index
    %c0_127 = arith.constant 0 : index
    %110 = vector.load %arg13[%c0_125, %c0_126, %c0_127] : memref<2x8x32xf32, #tpu.memory_space<vmem>>, vector<2x8x32xf32>
    tpu.vector_store %arg13[%c0_125, %c0_126, %c0_127], %109 {strides = array<i32>} : memref<2x8x32xf32, #tpu.memory_space<vmem>>, vector<2x8x32xf32>,
    %c0_128 = arith.constant 0 : index
    %c0_129 = arith.constant 0 : index
    %c0_130 = arith.constant 0 : index
    %111 = tpu.strided_load %arg13[%c0_128, %c0_129, %c0_130] {strides = array<i32: 1, 2, 1>} : memref<2x8x32xf32, #tpu.memory_space<vmem>>, vector<2x2x32xf32>
    %c0_131 = arith.constant 0 : index
    %c1_132 = arith.constant 1 : index
    %c0_133 = arith.constant 0 : index
    %112 = tpu.strided_load %arg13[%c0_131, %c1_132, %c0_133] {strides = array<i32: 1, 2, 1>} : memref<2x8x32xf32, #tpu.memory_space<vmem>>, vector<2x2x32xf32>
    %113 = arith.maximumf %111, %112 : vector<2x2x32xf32>
    %c0_134 = arith.constant 0 : index
    %c0_135 = arith.constant 0 : index
    %c0_136 = arith.constant 0 : index
    %c0_137 = arith.constant 0 : index
    %114 = vector.load %arg8[%c0_134, %c0_135, %c0_136, %c0_137] : memref<1x2x2x32xf32, #tpu.memory_space<vmem>>, vector<1x2x2x32xf32>
    %115 = vector.shape_cast %114 : vector<1x2x2x32xf32> to vector<2x2x32xf32>
    %116 = vector.shape_cast %113 : vector<2x2x32xf32> to vector<1x2x2x32xf32>
    tpu.vector_store %arg8[%c0_134, %c0_135, %c0_136, %c0_137], %116 {strides = array<i32>} : memref<1x2x2x32xf32, #tpu.memory_space<vmem>>, vector<1x2x2x32xf32>,
    return
  }
  func.func @transform_0(%arg0: i32) -> (i32, i32, i32, i32) {
    %c0_i32 = arith.constant 0 : i32
    %c0_i32_0 = arith.constant 0 : i32
    %c0_i32_1 = arith.constant 0 : i32
    %c0_i32_2 = arith.constant 0 : i32
    return %arg0, %c0_i32, %c0_i32_0, %c0_i32_1 : i32, i32, i32, i32
  }
  func.func @transform_1(%arg0: i32) -> (i32, i32) {
    %c0_i32 = arith.constant 0 : i32
    %c0_i32_0 = arith.constant 0 : i32
    %c0_i32_1 = arith.constant 0 : i32
    return %c0_i32, %c0_i32_0 : i32, i32
  }
  func.func @transform_2(%arg0: i32) -> (i32, i32) {
    %c0_i32 = arith.constant 0 : i32
    %c0_i32_0 = arith.constant 0 : i32
    %c0_i32_1 = arith.constant 0 : i32
    return %c0_i32, %c0_i32_0 : i32, i32
  }
  func.func @transform_4(%arg0: i32) -> (i32, i32) {
    %c0_i32 = arith.constant 0 : i32
    %c0_i32_0 = arith.constant 0 : i32
    %c0_i32_1 = arith.constant 0 : i32
    return %c0_i32, %c0_i32_0 : i32, i32
  }
  func.func @transform_6(%arg0: i32) -> (i32, i32) {
    %c0_i32 = arith.constant 0 : i32
    %c0_i32_0 = arith.constant 0 : i32
    %c0_i32_1 = arith.constant 0 : i32
    return %c0_i32, %c0_i32_0 : i32, i32
  }
  func.func @transform_7(%arg0: i32) -> (i32, i32, i32, i32) {
    %c0_i32 = arith.constant 0 : i32
    %c0_i32_0 = arith.constant 0 : i32
    %c0_i32_1 = arith.constant 0 : i32
    %c0_i32_2 = arith.constant 0 : i32
    return %arg0, %c0_i32, %c0_i32_0, %c0_i32_1 : i32, i32, i32, i32
  }
}

</mosaic_0001>

<bundles_post_ra>
// kernel: convnet_forward.1
= control target key start
LH: loop header
LB: loop body
LE: loop exit
PB: predicated region body
PF: predicated region fallthrough
CT: control target
= control target key end

     0   :  { %12 = vsyncpa [#allocation11], 0  ;;  %s14533_s0 = inlined_call_operand.vmem [shape: bf16[2,44,48,75], index: 0, kind: input, shape index: {}]   ;;  %s14534_s1 = inlined_call_operand.vmem [shape: bf16[75,64], index: 1, kind: input, shape index: {}]   ;;  %s14535_s2 = inlined_call_operand.vmem [shape: f32[1,64], index: 2, kind: input, shape index: {}]   ;;  %s14536_s3 = inlined_call_operand.vmem [shape: bf16[5,320,128], index: 3, kind: input, shape index: {}]   ;;  %s14537_s4 = inlined_call_operand.vmem [shape: f32[1,128], index: 4, kind: input, shape index: {}]   ;;  %s14538_s5 = inlined_call_operand.vmem [shape: bf16[5,640,32], index: 5, kind: input, shape index: {}]   ;;  %s14539_s6 = inlined_call_operand.vmem [shape: f32[1,32], index: 6, kind: input, shape index: {}]   ;;  %s14540_s7 = inlined_call_operand.hbm [shape: f32[2,2,2,32], index: 7, kind: output, shape index: {}]  }
   0x1   :  { %14 = vsyncpa [#allocation11 + $0x1], 0  ;;  %s10792_s24 = smov 0   ;;  %s10794_s25 = smov 0  }
   0x2   :  { %s10796_s26 = smov 0   ;;  %s10798_s27 = smov 0  }
   0x3 LB: > { %s10813_s28 = sadd.s32 4294967295, %s10735_s27   ;;  %s8405_s29 = sadd.s32 4294967294, %s10735_s27   ;;  %s10735_s27 = sphi %s10798_s27, %s14634_s27   ;;  %s10731_s26 = sphi %s10796_s26, %s14633_s26   ;;  %s10727_s25 = sphi %s10794_s25, %s14632_s25   ;;  %s10723_s24 = sphi %s10792_s24, %s14631_s24  }
   0x4   : > { %s10817_s30 = sadd.s32 1, %s10735_s27   ;;  %s137_s8 = sadd.s32 1, %s10731_s26 }
   0x5   : > { %s134_s9 = ssub.s32 %s10735_s27, %s10817_s30  ;;  %p147_p0 = scmp.ne.s32.totalorder %s10731_s26, %s10727_s25 }
   0x6   : > { %p135_p1 = scmp.eq.s32.totalorder %s134_s9, 0  ;;  %p148_p2 = scmp.eq.s32.totalorder %s10813_s28, 1 }
   0x7   : > { %p153_p3 = scmp.ne.s32.totalorder %s10727_s25, %s10723_s24  ;;  %p154_p4 = scmp.eq.s32.totalorder %s8405_s29, 1 }
   0x8   : > { %s10828_s10 = scalar_select %p135_p1, %s10731_s26, %s137_s8  }
   0x9   : > { %p10830_p5 = por %p148_p2, %p147_p0  ;;  %p10834_p6 = por %p154_p4, %p153_p3 }
   0xa   : > { %p8408_p7 = scmp.ge.s32.totalorder %s10735_s27, 1  ;;  %p192_p8 = scmp.lt.s32.totalorder %s10735_s27, 3 }
   0xc   : > { %p193_p9 = pnand %p8408_p7, %p192_p8 }
   0xe   : > { %196 = sbr.rel (%p193_p9) target bundleno = 2119 (0x847), region = 40 }
  0x15   : > { %s217_s13 = sand.u32 1, %s10727_s25   ;;  %p220_p10 = scmp.lt.s32.totalorder %s10813_s28, 1  ;;  %v258_v0 = vld [vmem:[%s14536_s3] sm:$0xff]  ;;  %v260_v1 = vld [vmem:[%s14536_s3 + $0x8] sm:$0xff]  ;;  %v262_v2 = vld [vmem:[%s14536_s3 + $0x10] sm:$0xff] }
  0x16   : > { %s10853_s20 = sshll.u32 %s217_s13, 2  ;;  %259 = vst [vmem:[#allocation7] sm:$0xff] %v258_v0  ;;  %261 = vst [vmem:[#allocation7 + $0x8] sm:$0xff] %v260_v1  ;;  %v264_v3 = vld [vmem:[%s14536_s3 + $0x18] sm:$0xff]  ;;  %v266_v4 = vld [vmem:[%s14536_s3 + $0x20] sm:$0xff] }
  0x17   : > { %263 = vst [vmem:[#allocation7 + $0x10] sm:$0xff] %v262_v2  ;;  %v268_v5 = vld [vmem:[%s14536_s3 + $0x28] sm:$0xff]  ;;  %265 = vst [vmem:[#allocation7 + $0x18] sm:$0xff] %v264_v3  ;;  %v270_v6 = vld [vmem:[%s14536_s3 + $0x30] sm:$0xff]  ;;  %s221_s21 = scalar_select %p220_p10, %s10813_s28, 1 }
  0x18   : > { %267 = vst [vmem:[#allocation7 + $0x20] sm:$0xff] %v266_v4  ;;  %269 = vst [vmem:[#allocation7 + $0x28] sm:$0xff] %v268_v5  ;;  %v272_v7 = vld [vmem:[%s14536_s3 + $0x38] sm:$0xff]  ;;  %v274_v8 = vld [vmem:[%s14536_s3 + $0x40] sm:$0xff]  ;;  %s11155_s18 = scalar_lea.vmem [#allocation10], %s10853_s20 }
  0x19   : > { %271 = vst [vmem:[#allocation7 + $0x30] sm:$0xff] %v270_v6  ;;  %273 = vst [vmem:[#allocation7 + $0x38] sm:$0xff] %v272_v7  ;;  %v276_v9 = vld [vmem:[%s14536_s3 + $0x48] sm:$0xff]  ;;  %v278_v10 = vld [vmem:[%s14536_s3 + $0x50] sm:$0xff]  ;;  %s10101_s23 = smul.u32 1056, %s221_s21 }
  0x1a   : > { %275 = vst [vmem:[#allocation7 + $0x40] sm:$0xff] %v274_v8  ;;  %v280_v11 = vld [vmem:[%s14536_s3 + $0x58] sm:$0xff]  ;;  %277 = vst [vmem:[#allocation7 + $0x48] sm:$0xff] %v276_v9  ;;  %v282_v12 = vld [vmem:[%s14536_s3 + $0x60] sm:$0xff] }
  0x1b   : > { %279 = vst [vmem:[#allocation7 + $0x50] sm:$0xff] %v278_v10  ;;  %281 = vst [vmem:[#allocation7 + $0x58] sm:$0xff] %v280_v11  ;;  %v284_v13 = vld [vmem:[%s14536_s3 + $0x68] sm:$0xff]  ;;  %v286_v14 = vld [vmem:[%s14536_s3 + $0x70] sm:$0xff]  ;;  %s10915_s14 = scalar_lea.vmem %s14533_s0, %s10101_s23 }
  0x1c   : > { %283 = vst [vmem:[#allocation7 + $0x60] sm:$0xff] %v282_v12  ;;  %285 = vst [vmem:[#allocation7 + $0x68] sm:$0xff] %v284_v13  ;;  %v288_v15 = vld [vmem:[%s14536_s3 + $0x78] sm:$0xff]  ;;  %v290_v16 = vld [vmem:[%s14536_s3 + $0x80] sm:$0xff] }
  0x1d   : > { %287 = vst [vmem:[#allocation7 + $0x70] sm:$0xff] %v286_v14  ;;  %v292_v17 = vld [vmem:[%s14536_s3 + $0x88] sm:$0xff]  ;;  %289 = vst [vmem:[#allocation7 + $0x78] sm:$0xff] %v288_v15  ;;  %v294_v18 = vld [vmem:[%s14536_s3 + $0x90] sm:$0xff] }
  0x1e   : > { %291 = vst [vmem:[#allocation7 + $0x80] sm:$0xff] %v290_v16  ;;  %293 = vst [vmem:[#allocation7 + $0x88] sm:$0xff] %v292_v17  ;;  %v296_v19 = vld [vmem:[%s14536_s3 + $0x98] sm:$0xff]  ;;  %v298_v20 = vld [vmem:[%s14536_s3 + $0xa0] sm:$0xff] }
  0x1f   : > { %295 = vst [vmem:[#allocation7 + $0x90] sm:$0xff] %v294_v18  ;;  %297 = vst [vmem:[#allocation7 + $0x98] sm:$0xff] %v296_v19  ;;  %v300_v21 = vld [vmem:[%s14536_s3 + $0xa8] sm:$0xff]  ;;  %v302_v22 = vld [vmem:[%s14536_s3 + $0xb0] sm:$0xff] }
  0x20   : > { %299 = vst [vmem:[#allocation7 + $0xa0] sm:$0xff] %v298_v20  ;;  %v304_v23 = vld [vmem:[%s14536_s3 + $0xb8] sm:$0xff]  ;;  %301 = vst [vmem:[#allocation7 + $0xa8] sm:$0xff] %v300_v21  ;;  %v306_v24 = vld [vmem:[%s14536_s3 + $0xc0] sm:$0xff] }
  0x21   : > { %303 = vst [vmem:[#allocation7 + $0xb0] sm:$0xff] %v302_v22  ;;  %305 = vst [vmem:[#allocation7 + $0xb8] sm:$0xff] %v304_v23  ;;  %v308_v25 = vld [vmem:[%s14536_s3 + $0xc8] sm:$0xff]  ;;  %v310_v26 = vld [vmem:[%s14536_s3 + $0xd0] sm:$0xff] }
  0x22   : > { %307 = vst [vmem:[#allocation7 + $0xc0] sm:$0xff] %v306_v24  ;;  %309 = vst [vmem:[#allocation7 + $0xc8] sm:$0xff] %v308_v25  ;;  %v312_v27 = vld [vmem:[%s14536_s3 + $0xd8] sm:$0xff]  ;;  %v314_v28 = vld [vmem:[%s14536_s3 + $0xe0] sm:$0xff] }
  0x23   : > { %311 = vst [vmem:[#allocation7 + $0xd0] sm:$0xff] %v310_v26  ;;  %v316_v29 = vld [vmem:[%s14536_s3 + $0xe8] sm:$0xff]  ;;  %313 = vst [vmem:[#allocation7 + $0xd8] sm:$0xff] %v312_v27  ;;  %v318_v30 = vld [vmem:[%s14536_s3 + $0xf0] sm:$0xff] }
  0x24   : > { %315 = vst [vmem:[#allocation7 + $0xe0] sm:$0xff] %v314_v28  ;;  %317 = vst [vmem:[#allocation7 + $0xe8] sm:$0xff] %v316_v29  ;;  %v320_v31 = vld [vmem:[%s14536_s3 + $0xf8] sm:$0xff]  ;;  %v322_v32 = vld [vmem:[%s14536_s3 + $0x100] sm:$0xff] }
  0x25   : > { %319 = vst [vmem:[#allocation7 + $0xf0] sm:$0xff] %v318_v30  ;;  %321 = vst [vmem:[#allocation7 + $0xf8] sm:$0xff] %v320_v31  ;;  %v324_v33 = vld [vmem:[%s14536_s3 + $0x108] sm:$0xff]  ;;  %v326_v34 = vld [vmem:[%s14536_s3 + $0x110] sm:$0xff] }
  0x26   : > { %323 = vst [vmem:[#allocation7 + $0x100] sm:$0xff] %v322_v32  ;;  %v328_v35 = vld [vmem:[%s14536_s3 + $0x118] sm:$0xff]  ;;  %325 = vst [vmem:[#allocation7 + $0x108] sm:$0xff] %v324_v33  ;;  %v330_v36 = vld [vmem:[%s14536_s3 + $0x120] sm:$0xff] }
  0x27   : > { %327 = vst [vmem:[#allocation7 + $0x110] sm:$0xff] %v326_v34  ;;  %329 = vst [vmem:[#allocation7 + $0x118] sm:$0xff] %v328_v35  ;;  %v332_v37 = vld [vmem:[%s14536_s3 + $0x128] sm:$0xff]  ;;  %v334_v38 = vld [vmem:[%s14536_s3 + $0x130] sm:$0xff] }
  0x28   : > { %331 = vst [vmem:[#allocation7 + $0x120] sm:$0xff] %v330_v36  ;;  %333 = vst [vmem:[#allocation7 + $0x128] sm:$0xff] %v332_v37  ;;  %v336_v39 = vld [vmem:[%s14536_s3 + $0x138] sm:$0xff]  ;;  %v338_v40 = vld [vmem:[%s14536_s3 + $0x140] sm:$0xff] }
  0x29   : > { %335 = vst [vmem:[#allocation7 + $0x130] sm:$0xff] %v334_v38  ;;  %v340_v41 = vld [vmem:[%s14536_s3 + $0x148] sm:$0xff]  ;;  %337 = vst [vmem:[#allocation7 + $0x138] sm:$0xff] %v336_v39  ;;  %v342_v42 = vld [vmem:[%s14536_s3 + $0x150] sm:$0xff] }
  0x2a   : > { %339 = vst [vmem:[#allocation7 + $0x140] sm:$0xff] %v338_v40  ;;  %341 = vst [vmem:[#allocation7 + $0x148] sm:$0xff] %v340_v41  ;;  %v344_v43 = vld [vmem:[%s14536_s3 + $0x158] sm:$0xff]  ;;  %v346_v44 = vld [vmem:[%s14536_s3 + $0x160] sm:$0xff] }
  0x2b   : > { %343 = vst [vmem:[#allocation7 + $0x150] sm:$0xff] %v342_v42  ;;  %345 = vst [vmem:[#allocation7 + $0x158] sm:$0xff] %v344_v43  ;;  %v348_v45 = vld [vmem:[%s14536_s3 + $0x168] sm:$0xff]  ;;  %v350_v46 = vld [vmem:[%s14536_s3 + $0x170] sm:$0xff] }
  0x2c   : > { %347 = vst [vmem:[#allocation7 + $0x160] sm:$0xff] %v346_v44  ;;  %v352_v47 = vld [vmem:[%s14536_s3 + $0x178] sm:$0xff]  ;;  %349 = vst [vmem:[#allocation7 + $0x168] sm:$0xff] %v348_v45  ;;  %v354_v48 = vld [vmem:[%s14536_s3 + $0x180] sm:$0xff] }
  0x2d   : > { %351 = vst [vmem:[#allocation7 + $0x170] sm:$0xff] %v350_v46  ;;  %353 = vst [vmem:[#allocation7 + $0x178] sm:$0xff] %v352_v47  ;;  %v356_v49 = vld [vmem:[%s14536_s3 + $0x188] sm:$0xff]  ;;  %v358_v50 = vld [vmem:[%s14536_s3 + $0x190] sm:$0xff] }
  0x2e   : > { %355 = vst [vmem:[#allocation7 + $0x180] sm:$0xff] %v354_v48  ;;  %357 = vst [vmem:[#allocation7 + $0x188] sm:$0xff] %v356_v49  ;;  %v360_v51 = vld [vmem:[%s14536_s3 + $0x198] sm:$0xff]  ;;  %v362_v52 = vld [vmem:[%s14536_s3 + $0x1a0] sm:$0xff] }
  0x2f   : > { %359 = vst [vmem:[#allocation7 + $0x190] sm:$0xff] %v358_v50  ;;  %v364_v53 = vld [vmem:[%s14536_s3 + $0x1a8] sm:$0xff]  ;;  %361 = vst [vmem:[#allocation7 + $0x198] sm:$0xff] %v360_v51  ;;  %v366_v54 = vld [vmem:[%s14536_s3 + $0x1b0] sm:$0xff] }
  0x30   : > { %363 = vst [vmem:[#allocation7 + $0x1a0] sm:$0xff] %v362_v52  ;;  %365 = vst [vmem:[#allocation7 + $0x1a8] sm:$0xff] %v364_v53  ;;  %v368_v55 = vld [vmem:[%s14536_s3 + $0x1b8] sm:$0xff]  ;;  %v370_v56 = vld [vmem:[%s14536_s3 + $0x1c0] sm:$0xff] }
  0x31   : > { %367 = vst [vmem:[#allocation7 + $0x1b0] sm:$0xff] %v366_v54  ;;  %369 = vst [vmem:[#allocation7 + $0x1b8] sm:$0xff] %v368_v55  ;;  %v372_v57 = vld [vmem:[%s14536_s3 + $0x1c8] sm:$0xff]  ;;  %v374_v58 = vld [vmem:[%s14536_s3 + $0x1d0] sm:$0xff] }
  0x32   : > { %371 = vst [vmem:[#allocation7 + $0x1c0] sm:$0xff] %v370_v56  ;;  %v376_v59 = vld [vmem:[%s14536_s3 + $0x1d8] sm:$0xff]  ;;  %373 = vst [vmem:[#allocation7 + $0x1c8] sm:$0xff] %v372_v57  ;;  %v378_v60 = vld [vmem:[%s14536_s3 + $0x1e0] sm:$0xff] }
  0x33   : > { %375 = vst [vmem:[#allocation7 + $0x1d0] sm:$0xff] %v374_v58  ;;  %377 = vst [vmem:[#allocation7 + $0x1d8] sm:$0xff] %v376_v59  ;;  %v380_v61 = vld [vmem:[%s14536_s3 + $0x1e8] sm:$0xff]  ;;  %v382_v62 = vld [vmem:[%s14536_s3 + $0x1f0] sm:$0xff] }
  0x34   : > { %379 = vst [vmem:[#allocation7 + $0x1e0] sm:$0xff] %v378_v60  ;;  %381 = vst [vmem:[#allocation7 + $0x1e8] sm:$0xff] %v380_v61  ;;  %v384_v63 = vld [vmem:[%s14536_s3 + $0x1f8] sm:$0xff]  ;;  %v386_v0 = vld [vmem:[%s14536_s3 + $0x200] sm:$0xff] }
  0x35   : > { %383 = vst [vmem:[#allocation7 + $0x1f0] sm:$0xff] %v382_v62  ;;  %v388_v1 = vld [vmem:[%s14536_s3 + $0x208] sm:$0xff]  ;;  %385 = vst [vmem:[#allocation7 + $0x1f8] sm:$0xff] %v384_v63  ;;  %v390_v2 = vld [vmem:[%s14536_s3 + $0x210] sm:$0xff] }
  0x36   : > { %387 = vst [vmem:[#allocation7 + $0x200] sm:$0xff] %v386_v0  ;;  %389 = vst [vmem:[#allocation7 + $0x208] sm:$0xff] %v388_v1  ;;  %v392_v3 = vld [vmem:[%s14536_s3 + $0x218] sm:$0xff]  ;;  %v394_v4 = vld [vmem:[%s14536_s3 + $0x220] sm:$0xff] }
  0x37   : > { %391 = vst [vmem:[#allocation7 + $0x210] sm:$0xff] %v390_v2  ;;  %393 = vst [vmem:[#allocation7 + $0x218] sm:$0xff] %v392_v3  ;;  %v396_v5 = vld [vmem:[%s14536_s3 + $0x228] sm:$0xff]  ;;  %v398_v6 = vld [vmem:[%s14536_s3 + $0x230] sm:$0xff] }
  0x38   : > { %395 = vst [vmem:[#allocation7 + $0x220] sm:$0xff] %v394_v4  ;;  %v400_v7 = vld [vmem:[%s14536_s3 + $0x238] sm:$0xff]  ;;  %397 = vst [vmem:[#allocation7 + $0x228] sm:$0xff] %v396_v5  ;;  %v402_v8 = vld [vmem:[%s14536_s3 + $0x240] sm:$0xff] }
  0x39   : > { %399 = vst [vmem:[#allocation7 + $0x230] sm:$0xff] %v398_v6  ;;  %401 = vst [vmem:[#allocation7 + $0x238] sm:$0xff] %v400_v7  ;;  %v404_v9 = vld [vmem:[%s14536_s3 + $0x248] sm:$0xff]  ;;  %v406_v10 = vld [vmem:[%s14536_s3 + $0x250] sm:$0xff] }
  0x3a   : > { %403 = vst [vmem:[#allocation7 + $0x240] sm:$0xff] %v402_v8  ;;  %405 = vst [vmem:[#allocation7 + $0x248] sm:$0xff] %v404_v9  ;;  %v408_v11 = vld [vmem:[%s14536_s3 + $0x258] sm:$0xff]  ;;  %v410_v12 = vld [vmem:[%s14536_s3 + $0x260] sm:$0xff] }
  0x3b   : > { %407 = vst [vmem:[#allocation7 + $0x250] sm:$0xff] %v406_v10  ;;  %v412_v13 = vld [vmem:[%s14536_s3 + $0x268] sm:$0xff]  ;;  %409 = vst [vmem:[#allocation7 + $0x258] sm:$0xff] %v408_v11  ;;  %v414_v14 = vld [vmem:[%s14536_s3 + $0x270] sm:$0xff] }
  0x3c   : > { %411 = vst [vmem:[#allocation7 + $0x260] sm:$0xff] %v410_v12  ;;  %413 = vst [vmem:[#allocation7 + $0x268] sm:$0xff] %v412_v13  ;;  %v416_v15 = vld [vmem:[%s14536_s3 + $0x278] sm:$0xff]  ;;  %v418_v16 = vld [vmem:[%s14536_s3 + $0x280] sm:$0xff] }
  0x3d   : > { %415 = vst [vmem:[#allocation7 + $0x270] sm:$0xff] %v414_v14  ;;  %417 = vst [vmem:[#allocation7 + $0x278] sm:$0xff] %v416_v15  ;;  %v420_v17 = vld [vmem:[%s14536_s3 + $0x288] sm:$0xff]  ;;  %v422_v18 = vld [vmem:[%s14536_s3 + $0x290] sm:$0xff] }
  0x3e   : > { %419 = vst [vmem:[#allocation7 + $0x280] sm:$0xff] %v418_v16  ;;  %v424_v19 = vld [vmem:[%s14536_s3 + $0x298] sm:$0xff]  ;;  %421 = vst [vmem:[#allocation7 + $0x288] sm:$0xff] %v420_v17  ;;  %v426_v20 = vld [vmem:[%s14536_s3 + $0x2a0] sm:$0xff] }
  0x3f   : > { %423 = vst [vmem:[#allocation7 + $0x290] sm:$0xff] %v422_v18  ;;  %425 = vst [vmem:[#allocation7 + $0x298] sm:$0xff] %v424_v19  ;;  %v428_v21 = vld [vmem:[%s14536_s3 + $0x2a8] sm:$0xff]  ;;  %v430_v22 = vld [vmem:[%s14536_s3 + $0x2b0] sm:$0xff] }
  0x40   : > { %427 = vst [vmem:[#allocation7 + $0x2a0] sm:$0xff] %v426_v20  ;;  %429 = vst [vmem:[#allocation7 + $0x2a8] sm:$0xff] %v428_v21  ;;  %v432_v23 = vld [vmem:[%s14536_s3 + $0x2b8] sm:$0xff]  ;;  %v434_v24 = vld [vmem:[%s14536_s3 + $0x2c0] sm:$0xff] }
  0x41   : > { %431 = vst [vmem:[#allocation7 + $0x2b0] sm:$0xff] %v430_v22  ;;  %v436_v25 = vld [vmem:[%s14536_s3 + $0x2c8] sm:$0xff]  ;;  %433 = vst [vmem:[#allocation7 + $0x2b8] sm:$0xff] %v432_v23  ;;  %v438_v26 = vld [vmem:[%s14536_s3 + $0x2d0] sm:$0xff] }
  0x42   : > { %435 = vst [vmem:[#allocation7 + $0x2c0] sm:$0xff] %v434_v24  ;;  %437 = vst [vmem:[#allocation7 + $0x2c8] sm:$0xff] %v436_v25  ;;  %v440_v27 = vld [vmem:[%s14536_s3 + $0x2d8] sm:$0xff]  ;;  %v442_v28 = vld [vmem:[%s14536_s3 + $0x2e0] sm:$0xff] }
  0x43   : > { %439 = vst [vmem:[#allocation7 + $0x2d0] sm:$0xff] %v438_v26  ;;  %441 = vst [vmem:[#allocation7 + $0x2d8] sm:$0xff] %v440_v27  ;;  %v444_v29 = vld [vmem:[%s14536_s3 + $0x2e8] sm:$0xff]  ;;  %v446_v30 = vld [vmem:[%s14536_s3 + $0x2f0] sm:$0xff] }
  0x44   : > { %443 = vst [vmem:[#allocation7 + $0x2e0] sm:$0xff] %v442_v28  ;;  %v448_v31 = vld [vmem:[%s14536_s3 + $0x2f8] sm:$0xff]  ;;  %445 = vst [vmem:[#allocation7 + $0x2e8] sm:$0xff] %v444_v29  ;;  %v450_v32 = vld [vmem:[%s14536_s3 + $0x300] sm:$0xff] }
  0x45   : > { %447 = vst [vmem:[#allocation7 + $0x2f0] sm:$0xff] %v446_v30  ;;  %449 = vst [vmem:[#allocation7 + $0x2f8] sm:$0xff] %v448_v31  ;;  %v452_v33 = vld [vmem:[%s14536_s3 + $0x308] sm:$0xff]  ;;  %v454_v34 = vld [vmem:[%s14536_s3 + $0x310] sm:$0xff] }
  0x46   : > { %451 = vst [vmem:[#allocation7 + $0x300] sm:$0xff] %v450_v32  ;;  %453 = vst [vmem:[#allocation7 + $0x308] sm:$0xff] %v452_v33  ;;  %v456_v35 = vld [vmem:[%s14536_s3 + $0x318] sm:$0xff] }
  0x47   : > { %455 = vst [vmem:[#allocation7 + $0x310] sm:$0xff] %v454_v34  ;;  %457 = vst [vmem:[#allocation7 + $0x318] sm:$0xff] %v456_v35 }
  0x48   : > { %465 = vsyncadd [#allocation9], 12800  ;;  %v499_v36 = vld [vmem:[%s14538_s5] sm:$0xff]  ;;  %v501_v37 = vld [vmem:[%s14538_s5 + $0x8] sm:$0xff] }
  0x49   : > { %500 = vst [vmem:[#allocation8] sm:$0xff] %v499_v36  ;;  %502 = vst [vmem:[#allocation8 + $0x8] sm:$0xff] %v501_v37  ;;  %v503_v38 = vld [vmem:[%s14538_s5 + $0x10] sm:$0xff]  ;;  %v505_v39 = vld [vmem:[%s14538_s5 + $0x18] sm:$0xff] }
  0x4a   : > { %v507_v40 = vld [vmem:[%s14538_s5 + $0x20] sm:$0xff]  ;;  %504 = vst [vmem:[#allocation8 + $0x10] sm:$0xff] %v503_v38  ;;  %506 = vst [vmem:[#allocation8 + $0x18] sm:$0xff] %v505_v39  ;;  %v509_v41 = vld [vmem:[%s14538_s5 + $0x28] sm:$0xff] }
  0x4b   : > { %508 = vst [vmem:[#allocation8 + $0x20] sm:$0xff] %v507_v40  ;;  %v511_v42 = vld [vmem:[%s14538_s5 + $0x30] sm:$0xff]  ;;  %v513_v43 = vld [vmem:[%s14538_s5 + $0x38] sm:$0xff]  ;;  %510 = vst [vmem:[#allocation8 + $0x28] sm:$0xff] %v509_v41 }
  0x4c   : > { %512 = vst [vmem:[#allocation8 + $0x30] sm:$0xff] %v511_v42  ;;  %514 = vst [vmem:[#allocation8 + $0x38] sm:$0xff] %v513_v43  ;;  %v515_v44 = vld [vmem:[%s14538_s5 + $0x40] sm:$0xff]  ;;  %v517_v45 = vld [vmem:[%s14538_s5 + $0x48] sm:$0xff] }
  0x4d   : > { %v519_v46 = vld [vmem:[%s14538_s5 + $0x50] sm:$0xff]  ;;  %516 = vst [vmem:[#allocation8 + $0x40] sm:$0xff] %v515_v44  ;;  %518 = vst [vmem:[#allocation8 + $0x48] sm:$0xff] %v517_v45  ;;  %v521_v47 = vld [vmem:[%s14538_s5 + $0x58] sm:$0xff] }
  0x4e   : > { %520 = vst [vmem:[#allocation8 + $0x50] sm:$0xff] %v519_v46  ;;  %v523_v48 = vld [vmem:[%s14538_s5 + $0x60] sm:$0xff]  ;;  %v525_v49 = vld [vmem:[%s14538_s5 + $0x68] sm:$0xff]  ;;  %522 = vst [vmem:[#allocation8 + $0x58] sm:$0xff] %v521_v47 }
  0x4f   : > { %524 = vst [vmem:[#allocation8 + $0x60] sm:$0xff] %v523_v48  ;;  %526 = vst [vmem:[#allocation8 + $0x68] sm:$0xff] %v525_v49  ;;  %v527_v50 = vld [vmem:[%s14538_s5 + $0x70] sm:$0xff]  ;;  %v529_v51 = vld [vmem:[%s14538_s5 + $0x78] sm:$0xff] }
  0x50   : > { %v531_v52 = vld [vmem:[%s14538_s5 + $0x80] sm:$0xff]  ;;  %528 = vst [vmem:[#allocation8 + $0x70] sm:$0xff] %v527_v50  ;;  %530 = vst [vmem:[#allocation8 + $0x78] sm:$0xff] %v529_v51  ;;  %v533_v53 = vld [vmem:[%s14538_s5 + $0x88] sm:$0xff] }
  0x51   : > { %532 = vst [vmem:[#allocation8 + $0x80] sm:$0xff] %v531_v52  ;;  %v535_v54 = vld [vmem:[%s14538_s5 + $0x90] sm:$0xff]  ;;  %v537_v55 = vld [vmem:[%s14538_s5 + $0x98] sm:$0xff]  ;;  %534 = vst [vmem:[#allocation8 + $0x88] sm:$0xff] %v533_v53 }
  0x52   : > { %536 = vst [vmem:[#allocation8 + $0x90] sm:$0xff] %v535_v54  ;;  %538 = vst [vmem:[#allocation8 + $0x98] sm:$0xff] %v537_v55  ;;  %v539_v56 = vld [vmem:[%s14538_s5 + $0xa0] sm:$0xff]  ;;  %v541_v57 = vld [vmem:[%s14538_s5 + $0xa8] sm:$0xff] }
  0x53   : > { %v543_v58 = vld [vmem:[%s14538_s5 + $0xb0] sm:$0xff]  ;;  %540 = vst [vmem:[#allocation8 + $0xa0] sm:$0xff] %v539_v56  ;;  %542 = vst [vmem:[#allocation8 + $0xa8] sm:$0xff] %v541_v57  ;;  %v545_v59 = vld [vmem:[%s14538_s5 + $0xb8] sm:$0xff] }
  0x54   : > { %544 = vst [vmem:[#allocation8 + $0xb0] sm:$0xff] %v543_v58  ;;  %v547_v60 = vld [vmem:[%s14538_s5 + $0xc0] sm:$0xff]  ;;  %v549_v61 = vld [vmem:[%s14538_s5 + $0xc8] sm:$0xff]  ;;  %546 = vst [vmem:[#allocation8 + $0xb8] sm:$0xff] %v545_v59 }
  0x55   : > { %548 = vst [vmem:[#allocation8 + $0xc0] sm:$0xff] %v547_v60  ;;  %550 = vst [vmem:[#allocation8 + $0xc8] sm:$0xff] %v549_v61  ;;  %v551_v62 = vld [vmem:[%s14538_s5 + $0xd0] sm:$0xff]  ;;  %v553_v63 = vld [vmem:[%s14538_s5 + $0xd8] sm:$0xff] }
  0x56   : > { %v555_v0 = vld [vmem:[%s14538_s5 + $0xe0] sm:$0xff]  ;;  %552 = vst [vmem:[#allocation8 + $0xd0] sm:$0xff] %v551_v62  ;;  %554 = vst [vmem:[#allocation8 + $0xd8] sm:$0xff] %v553_v63  ;;  %v557_v1 = vld [vmem:[%s14538_s5 + $0xe8] sm:$0xff] }
  0x57   : > { %556 = vst [vmem:[#allocation8 + $0xe0] sm:$0xff] %v555_v0  ;;  %v559_v2 = vld [vmem:[%s14538_s5 + $0xf0] sm:$0xff]  ;;  %v561_v3 = vld [vmem:[%s14538_s5 + $0xf8] sm:$0xff]  ;;  %558 = vst [vmem:[#allocation8 + $0xe8] sm:$0xff] %v557_v1 }
  0x58   : > { %560 = vst [vmem:[#allocation8 + $0xf0] sm:$0xff] %v559_v2  ;;  %562 = vst [vmem:[#allocation8 + $0xf8] sm:$0xff] %v561_v3  ;;  %v563_v4 = vld [vmem:[%s14538_s5 + $0x100] sm:$0xff]  ;;  %v565_v5 = vld [vmem:[%s14538_s5 + $0x108] sm:$0xff] }
  0x59   : > { %v567_v6 = vld [vmem:[%s14538_s5 + $0x110] sm:$0xff]  ;;  %564 = vst [vmem:[#allocation8 + $0x100] sm:$0xff] %v563_v4  ;;  %566 = vst [vmem:[#allocation8 + $0x108] sm:$0xff] %v565_v5  ;;  %v569_v7 = vld [vmem:[%s14538_s5 + $0x118] sm:$0xff] }
  0x5a   : > { %568 = vst [vmem:[#allocation8 + $0x110] sm:$0xff] %v567_v6  ;;  %v571_v8 = vld [vmem:[%s14538_s5 + $0x120] sm:$0xff]  ;;  %v573_v9 = vld [vmem:[%s14538_s5 + $0x128] sm:$0xff]  ;;  %570 = vst [vmem:[#allocation8 + $0x118] sm:$0xff] %v569_v7 }
  0x5b   : > { %572 = vst [vmem:[#allocation8 + $0x120] sm:$0xff] %v571_v8  ;;  %574 = vst [vmem:[#allocation8 + $0x128] sm:$0xff] %v573_v9  ;;  %v575_v10 = vld [vmem:[%s14538_s5 + $0x130] sm:$0xff]  ;;  %v577_v11 = vld [vmem:[%s14538_s5 + $0x138] sm:$0xff] }
  0x5c   : > { %v579_v12 = vld [vmem:[%s14538_s5 + $0x140] sm:$0xff]  ;;  %576 = vst [vmem:[#allocation8 + $0x130] sm:$0xff] %v575_v10  ;;  %578 = vst [vmem:[#allocation8 + $0x138] sm:$0xff] %v577_v11  ;;  %v581_v13 = vld [vmem:[%s14538_s5 + $0x148] sm:$0xff] }
  0x5d   : > { %580 = vst [vmem:[#allocation8 + $0x140] sm:$0xff] %v579_v12  ;;  %v583_v14 = vld [vmem:[%s14538_s5 + $0x150] sm:$0xff]  ;;  %v585_v15 = vld [vmem:[%s14538_s5 + $0x158] sm:$0xff]  ;;  %582 = vst [vmem:[#allocation8 + $0x148] sm:$0xff] %v581_v13 }
  0x5e   : > { %584 = vst [vmem:[#allocation8 + $0x150] sm:$0xff] %v583_v14  ;;  %586 = vst [vmem:[#allocation8 + $0x158] sm:$0xff] %v585_v15  ;;  %v587_v16 = vld [vmem:[%s14538_s5 + $0x160] sm:$0xff]  ;;  %v589_v17 = vld [vmem:[%s14538_s5 + $0x168] sm:$0xff] }
  0x5f   : > { %v591_v18 = vld [vmem:[%s14538_s5 + $0x170] sm:$0xff]  ;;  %588 = vst [vmem:[#allocation8 + $0x160] sm:$0xff] %v587_v16  ;;  %590 = vst [vmem:[#allocation8 + $0x168] sm:$0xff] %v589_v17  ;;  %v593_v19 = vld [vmem:[%s14538_s5 + $0x178] sm:$0xff] }
  0x60   : > { %592 = vst [vmem:[#allocation8 + $0x170] sm:$0xff] %v591_v18  ;;  %v595_v20 = vld [vmem:[%s14538_s5 + $0x180] sm:$0xff]  ;;  %v597_v21 = vld [vmem:[%s14538_s5 + $0x188] sm:$0xff]  ;;  %594 = vst [vmem:[#allocation8 + $0x178] sm:$0xff] %v593_v19 }
  0x61   : > { %596 = vst [vmem:[#allocation8 + $0x180] sm:$0xff] %v595_v20  ;;  %598 = vst [vmem:[#allocation8 + $0x188] sm:$0xff] %v597_v21  ;;  %v599_v22 = vld [vmem:[%s14538_s5 + $0x190] sm:$0xff]  ;;  %v601_v23 = vld [vmem:[%s14538_s5 + $0x198] sm:$0xff] }
  0x62   : > { %v603_v24 = vld [vmem:[%s14538_s5 + $0x1a0] sm:$0xff]  ;;  %600 = vst [vmem:[#allocation8 + $0x190] sm:$0xff] %v599_v22  ;;  %602 = vst [vmem:[#allocation8 + $0x198] sm:$0xff] %v601_v23  ;;  %v605_v25 = vld [vmem:[%s14538_s5 + $0x1a8] sm:$0xff] }
  0x63   : > { %604 = vst [vmem:[#allocation8 + $0x1a0] sm:$0xff] %v603_v24  ;;  %v607_v26 = vld [vmem:[%s14538_s5 + $0x1b0] sm:$0xff]  ;;  %v609_v27 = vld [vmem:[%s14538_s5 + $0x1b8] sm:$0xff]  ;;  %606 = vst [vmem:[#allocation8 + $0x1a8] sm:$0xff] %v605_v25 }
  0x64   : > { %608 = vst [vmem:[#allocation8 + $0x1b0] sm:$0xff] %v607_v26  ;;  %610 = vst [vmem:[#allocation8 + $0x1b8] sm:$0xff] %v609_v27  ;;  %v611_v28 = vld [vmem:[%s14538_s5 + $0x1c0] sm:$0xff]  ;;  %v613_v29 = vld [vmem:[%s14538_s5 + $0x1c8] sm:$0xff] }
  0x65   : > { %v615_v30 = vld [vmem:[%s14538_s5 + $0x1d0] sm:$0xff]  ;;  %612 = vst [vmem:[#allocation8 + $0x1c0] sm:$0xff] %v611_v28  ;;  %614 = vst [vmem:[#allocation8 + $0x1c8] sm:$0xff] %v613_v29  ;;  %v617_v31 = vld [vmem:[%s14538_s5 + $0x1d8] sm:$0xff] }
  0x66   : > { %616 = vst [vmem:[#allocation8 + $0x1d0] sm:$0xff] %v615_v30  ;;  %v619_v32 = vld [vmem:[%s14538_s5 + $0x1e0] sm:$0xff]  ;;  %v621_v33 = vld [vmem:[%s14538_s5 + $0x1e8] sm:$0xff]  ;;  %618 = vst [vmem:[#allocation8 + $0x1d8] sm:$0xff] %v617_v31 }
  0x67   : > { %620 = vst [vmem:[#allocation8 + $0x1e0] sm:$0xff] %v619_v32  ;;  %622 = vst [vmem:[#allocation8 + $0x1e8] sm:$0xff] %v621_v33  ;;  %v623_v34 = vld [vmem:[%s14538_s5 + $0x1f0] sm:$0xff]  ;;  %v625_v35 = vld [vmem:[%s14538_s5 + $0x1f8] sm:$0xff] }
  0x68   : > { %v627_v36 = vld [vmem:[%s14538_s5 + $0x200] sm:$0xff]  ;;  %624 = vst [vmem:[#allocation8 + $0x1f0] sm:$0xff] %v623_v34  ;;  %626 = vst [vmem:[#allocation8 + $0x1f8] sm:$0xff] %v625_v35  ;;  %v629_v37 = vld [vmem:[%s14538_s5 + $0x208] sm:$0xff] }
  0x69   : > { %628 = vst [vmem:[#allocation8 + $0x200] sm:$0xff] %v627_v36  ;;  %v631_v38 = vld [vmem:[%s14538_s5 + $0x210] sm:$0xff]  ;;  %v633_v39 = vld [vmem:[%s14538_s5 + $0x218] sm:$0xff]  ;;  %630 = vst [vmem:[#allocation8 + $0x208] sm:$0xff] %v629_v37 }
  0x6a   : > { %632 = vst [vmem:[#allocation8 + $0x210] sm:$0xff] %v631_v38  ;;  %634 = vst [vmem:[#allocation8 + $0x218] sm:$0xff] %v633_v39  ;;  %v635_v40 = vld [vmem:[%s14538_s5 + $0x220] sm:$0xff]  ;;  %v637_v41 = vld [vmem:[%s14538_s5 + $0x228] sm:$0xff] }
  0x6b   : > { %v639_v42 = vld [vmem:[%s14538_s5 + $0x230] sm:$0xff]  ;;  %636 = vst [vmem:[#allocation8 + $0x220] sm:$0xff] %v635_v40  ;;  %638 = vst [vmem:[#allocation8 + $0x228] sm:$0xff] %v637_v41  ;;  %v641_v43 = vld [vmem:[%s14538_s5 + $0x238] sm:$0xff] }
  0x6c   : > { %640 = vst [vmem:[#allocation8 + $0x230] sm:$0xff] %v639_v42  ;;  %v643_v44 = vld [vmem:[%s14538_s5 + $0x240] sm:$0xff]  ;;  %v645_v45 = vld [vmem:[%s14538_s5 + $0x248] sm:$0xff]  ;;  %642 = vst [vmem:[#allocation8 + $0x238] sm:$0xff] %v641_v43 }
  0x6d   : > { %644 = vst [vmem:[#allocation8 + $0x240] sm:$0xff] %v643_v44  ;;  %646 = vst [vmem:[#allocation8 + $0x248] sm:$0xff] %v645_v45  ;;  %v647_v46 = vld [vmem:[%s14538_s5 + $0x250] sm:$0xff]  ;;  %v649_v47 = vld [vmem:[%s14538_s5 + $0x258] sm:$0xff] }
  0x6e   : > { %v651_v48 = vld [vmem:[%s14538_s5 + $0x260] sm:$0xff]  ;;  %648 = vst [vmem:[#allocation8 + $0x250] sm:$0xff] %v647_v46  ;;  %650 = vst [vmem:[#allocation8 + $0x258] sm:$0xff] %v649_v47  ;;  %v653_v49 = vld [vmem:[%s14538_s5 + $0x268] sm:$0xff] }
  0x6f   : > { %652 = vst [vmem:[#allocation8 + $0x260] sm:$0xff] %v651_v48  ;;  %v655_v50 = vld [vmem:[%s14538_s5 + $0x270] sm:$0xff]  ;;  %v657_v51 = vld [vmem:[%s14538_s5 + $0x278] sm:$0xff]  ;;  %654 = vst [vmem:[#allocation8 + $0x268] sm:$0xff] %v653_v49 }
  0x70   : > { %656 = vst [vmem:[#allocation8 + $0x270] sm:$0xff] %v655_v50  ;;  %658 = vst [vmem:[#allocation8 + $0x278] sm:$0xff] %v657_v51  ;;  %v659_v52 = vld [vmem:[%s14538_s5 + $0x280] sm:$0xff]  ;;  %v661_v53 = vld [vmem:[%s14538_s5 + $0x288] sm:$0xff] }
  0x71   : > { %v663_v54 = vld [vmem:[%s14538_s5 + $0x290] sm:$0xff]  ;;  %660 = vst [vmem:[#allocation8 + $0x280] sm:$0xff] %v659_v52  ;;  %662 = vst [vmem:[#allocation8 + $0x288] sm:$0xff] %v661_v53  ;;  %v665_v55 = vld [vmem:[%s14538_s5 + $0x298] sm:$0xff] }
  0x72   : > { %664 = vst [vmem:[#allocation8 + $0x290] sm:$0xff] %v663_v54  ;;  %v667_v56 = vld [vmem:[%s14538_s5 + $0x2a0] sm:$0xff]  ;;  %v669_v57 = vld [vmem:[%s14538_s5 + $0x2a8] sm:$0xff]  ;;  %666 = vst [vmem:[#allocation8 + $0x298] sm:$0xff] %v665_v55 }
  0x73   : > { %668 = vst [vmem:[#allocation8 + $0x2a0] sm:$0xff] %v667_v56  ;;  %670 = vst [vmem:[#allocation8 + $0x2a8] sm:$0xff] %v669_v57  ;;  %v671_v58 = vld [vmem:[%s14538_s5 + $0x2b0] sm:$0xff]  ;;  %v673_v59 = vld [vmem:[%s14538_s5 + $0x2b8] sm:$0xff] }
  0x74   : > { %v675_v60 = vld [vmem:[%s14538_s5 + $0x2c0] sm:$0xff]  ;;  %672 = vst [vmem:[#allocation8 + $0x2b0] sm:$0xff] %v671_v58  ;;  %674 = vst [vmem:[#allocation8 + $0x2b8] sm:$0xff] %v673_v59  ;;  %v677_v61 = vld [vmem:[%s14538_s5 + $0x2c8] sm:$0xff] }
  0x75   : > { %676 = vst [vmem:[#allocation8 + $0x2c0] sm:$0xff] %v675_v60  ;;  %v679_v62 = vld [vmem:[%s14538_s5 + $0x2d0] sm:$0xff]  ;;  %v681_v63 = vld [vmem:[%s14538_s5 + $0x2d8] sm:$0xff]  ;;  %678 = vst [vmem:[#allocation8 + $0x2c8] sm:$0xff] %v677_v61 }
  0x76   : > { %680 = vst [vmem:[#allocation8 + $0x2d0] sm:$0xff] %v679_v62  ;;  %682 = vst [vmem:[#allocation8 + $0x2d8] sm:$0xff] %v681_v63  ;;  %v683_v0 = vld [vmem:[%s14538_s5 + $0x2e0] sm:$0xff]  ;;  %v685_v1 = vld [vmem:[%s14538_s5 + $0x2e8] sm:$0xff] }
  0x77   : > { %v687_v2 = vld [vmem:[%s14538_s5 + $0x2f0] sm:$0xff]  ;;  %684 = vst [vmem:[#allocation8 + $0x2e0] sm:$0xff] %v683_v0  ;;  %686 = vst [vmem:[#allocation8 + $0x2e8] sm:$0xff] %v685_v1  ;;  %v689_v3 = vld [vmem:[%s14538_s5 + $0x2f8] sm:$0xff] }
  0x78   : > { %688 = vst [vmem:[#allocation8 + $0x2f0] sm:$0xff] %v687_v2  ;;  %v691_v4 = vld [vmem:[%s14538_s5 + $0x300] sm:$0xff]  ;;  %v693_v5 = vld [vmem:[%s14538_s5 + $0x308] sm:$0xff]  ;;  %690 = vst [vmem:[#allocation8 + $0x2f8] sm:$0xff] %v689_v3 }
  0x79   : > { %692 = vst [vmem:[#allocation8 + $0x300] sm:$0xff] %v691_v4  ;;  %694 = vst [vmem:[#allocation8 + $0x308] sm:$0xff] %v693_v5  ;;  %v695_v6 = vld [vmem:[%s14538_s5 + $0x310] sm:$0xff]  ;;  %v697_v7 = vld [vmem:[%s14538_s5 + $0x318] sm:$0xff] }
  0x7a   : > { %v699_v8 = vld [vmem:[%s14538_s5 + $0x320] sm:$0xff]  ;;  %696 = vst [vmem:[#allocation8 + $0x310] sm:$0xff] %v695_v6  ;;  %698 = vst [vmem:[#allocation8 + $0x318] sm:$0xff] %v697_v7  ;;  %v701_v9 = vld [vmem:[%s14538_s5 + $0x328] sm:$0xff] }
  0x7b   : > { %700 = vst [vmem:[#allocation8 + $0x320] sm:$0xff] %v699_v8  ;;  %v703_v10 = vld [vmem:[%s14538_s5 + $0x330] sm:$0xff]  ;;  %v705_v11 = vld [vmem:[%s14538_s5 + $0x338] sm:$0xff]  ;;  %702 = vst [vmem:[#allocation8 + $0x328] sm:$0xff] %v701_v9 }
  0x7c   : > { %704 = vst [vmem:[#allocation8 + $0x330] sm:$0xff] %v703_v10  ;;  %706 = vst [vmem:[#allocation8 + $0x338] sm:$0xff] %v705_v11  ;;  %v707_v12 = vld [vmem:[%s14538_s5 + $0x340] sm:$0xff]  ;;  %v709_v13 = vld [vmem:[%s14538_s5 + $0x348] sm:$0xff] }
  0x7d   : > { %v711_v14 = vld [vmem:[%s14538_s5 + $0x350] sm:$0xff]  ;;  %708 = vst [vmem:[#allocation8 + $0x340] sm:$0xff] %v707_v12  ;;  %710 = vst [vmem:[#allocation8 + $0x348] sm:$0xff] %v709_v13  ;;  %v713_v15 = vld [vmem:[%s14538_s5 + $0x358] sm:$0xff] }
  0x7e   : > { %712 = vst [vmem:[#allocation8 + $0x350] sm:$0xff] %v711_v14  ;;  %v715_v16 = vld [vmem:[%s14538_s5 + $0x360] sm:$0xff]  ;;  %v717_v17 = vld [vmem:[%s14538_s5 + $0x368] sm:$0xff]  ;;  %714 = vst [vmem:[#allocation8 + $0x358] sm:$0xff] %v713_v15 }
  0x7f   : > { %716 = vst [vmem:[#allocation8 + $0x360] sm:$0xff] %v715_v16  ;;  %718 = vst [vmem:[#allocation8 + $0x368] sm:$0xff] %v717_v17  ;;  %v719_v18 = vld [vmem:[%s14538_s5 + $0x370] sm:$0xff]  ;;  %v721_v19 = vld [vmem:[%s14538_s5 + $0x378] sm:$0xff] }
  0x80   : > { %v723_v20 = vld [vmem:[%s14538_s5 + $0x380] sm:$0xff]  ;;  %720 = vst [vmem:[#allocation8 + $0x370] sm:$0xff] %v719_v18  ;;  %722 = vst [vmem:[#allocation8 + $0x378] sm:$0xff] %v721_v19  ;;  %v725_v21 = vld [vmem:[%s14538_s5 + $0x388] sm:$0xff] }
  0x81   : > { %724 = vst [vmem:[#allocation8 + $0x380] sm:$0xff] %v723_v20  ;;  %v727_v22 = vld [vmem:[%s14538_s5 + $0x390] sm:$0xff]  ;;  %v729_v23 = vld [vmem:[%s14538_s5 + $0x398] sm:$0xff]  ;;  %726 = vst [vmem:[#allocation8 + $0x388] sm:$0xff] %v725_v21 }
  0x82   : > { %728 = vst [vmem:[#allocation8 + $0x390] sm:$0xff] %v727_v22  ;;  %730 = vst [vmem:[#allocation8 + $0x398] sm:$0xff] %v729_v23  ;;  %v731_v24 = vld [vmem:[%s14538_s5 + $0x3a0] sm:$0xff]  ;;  %v733_v25 = vld [vmem:[%s14538_s5 + $0x3a8] sm:$0xff] }
  0x83   : > { %v735_v26 = vld [vmem:[%s14538_s5 + $0x3b0] sm:$0xff]  ;;  %732 = vst [vmem:[#allocation8 + $0x3a0] sm:$0xff] %v731_v24  ;;  %734 = vst [vmem:[#allocation8 + $0x3a8] sm:$0xff] %v733_v25  ;;  %v737_v27 = vld [vmem:[%s14538_s5 + $0x3b8] sm:$0xff] }
  0x84   : > { %736 = vst [vmem:[#allocation8 + $0x3b0] sm:$0xff] %v735_v26  ;;  %v739_v28 = vld [vmem:[%s14538_s5 + $0x3c0] sm:$0xff]  ;;  %v741_v29 = vld [vmem:[%s14538_s5 + $0x3c8] sm:$0xff]  ;;  %738 = vst [vmem:[#allocation8 + $0x3b8] sm:$0xff] %v737_v27 }
  0x85   : > { %740 = vst [vmem:[#allocation8 + $0x3c0] sm:$0xff] %v739_v28  ;;  %742 = vst [vmem:[#allocation8 + $0x3c8] sm:$0xff] %v741_v29  ;;  %v743_v30 = vld [vmem:[%s14538_s5 + $0x3d0] sm:$0xff]  ;;  %v745_v31 = vld [vmem:[%s14538_s5 + $0x3d8] sm:$0xff] }
  0x86   : > { %v747_v32 = vld [vmem:[%s14538_s5 + $0x3e0] sm:$0xff]  ;;  %744 = vst [vmem:[#allocation8 + $0x3d0] sm:$0xff] %v743_v30  ;;  %746 = vst [vmem:[#allocation8 + $0x3d8] sm:$0xff] %v745_v31  ;;  %v749_v33 = vld [vmem:[%s14538_s5 + $0x3e8] sm:$0xff] }
  0x87   : > { %748 = vst [vmem:[#allocation8 + $0x3e0] sm:$0xff] %v747_v32  ;;  %v751_v34 = vld [vmem:[%s14538_s5 + $0x3f0] sm:$0xff]  ;;  %v753_v35 = vld [vmem:[%s14538_s5 + $0x3f8] sm:$0xff]  ;;  %750 = vst [vmem:[#allocation8 + $0x3e8] sm:$0xff] %v749_v33 }
  0x88   : > { %752 = vst [vmem:[#allocation8 + $0x3f0] sm:$0xff] %v751_v34  ;;  %754 = vst [vmem:[#allocation8 + $0x3f8] sm:$0xff] %v753_v35  ;;  %v755_v36 = vld [vmem:[%s14538_s5 + $0x400] sm:$0xff]  ;;  %v757_v37 = vld [vmem:[%s14538_s5 + $0x408] sm:$0xff] }
  0x89   : > { %v759_v38 = vld [vmem:[%s14538_s5 + $0x410] sm:$0xff]  ;;  %756 = vst [vmem:[#allocation8 + $0x400] sm:$0xff] %v755_v36  ;;  %758 = vst [vmem:[#allocation8 + $0x408] sm:$0xff] %v757_v37  ;;  %v761_v39 = vld [vmem:[%s14538_s5 + $0x418] sm:$0xff] }
  0x8a   : > { %760 = vst [vmem:[#allocation8 + $0x410] sm:$0xff] %v759_v38  ;;  %v763_v40 = vld [vmem:[%s14538_s5 + $0x420] sm:$0xff]  ;;  %v765_v41 = vld [vmem:[%s14538_s5 + $0x428] sm:$0xff]  ;;  %762 = vst [vmem:[#allocation8 + $0x418] sm:$0xff] %v761_v39 }
  0x8b   : > { %764 = vst [vmem:[#allocation8 + $0x420] sm:$0xff] %v763_v40  ;;  %766 = vst [vmem:[#allocation8 + $0x428] sm:$0xff] %v765_v41  ;;  %v767_v42 = vld [vmem:[%s14538_s5 + $0x430] sm:$0xff]  ;;  %v769_v43 = vld [vmem:[%s14538_s5 + $0x438] sm:$0xff] }
  0x8c   : > { %v771_v44 = vld [vmem:[%s14538_s5 + $0x440] sm:$0xff]  ;;  %768 = vst [vmem:[#allocation8 + $0x430] sm:$0xff] %v767_v42  ;;  %770 = vst [vmem:[#allocation8 + $0x438] sm:$0xff] %v769_v43  ;;  %v773_v45 = vld [vmem:[%s14538_s5 + $0x448] sm:$0xff] }
  0x8d   : > { %772 = vst [vmem:[#allocation8 + $0x440] sm:$0xff] %v771_v44  ;;  %v775_v46 = vld [vmem:[%s14538_s5 + $0x450] sm:$0xff]  ;;  %v777_v47 = vld [vmem:[%s14538_s5 + $0x458] sm:$0xff]  ;;  %774 = vst [vmem:[#allocation8 + $0x448] sm:$0xff] %v773_v45 }
  0x8e   : > { %776 = vst [vmem:[#allocation8 + $0x450] sm:$0xff] %v775_v46  ;;  %778 = vst [vmem:[#allocation8 + $0x458] sm:$0xff] %v777_v47  ;;  %v779_v48 = vld [vmem:[%s14538_s5 + $0x460] sm:$0xff]  ;;  %v781_v49 = vld [vmem:[%s14538_s5 + $0x468] sm:$0xff] }
  0x8f   : > { %v783_v50 = vld [vmem:[%s14538_s5 + $0x470] sm:$0xff]  ;;  %780 = vst [vmem:[#allocation8 + $0x460] sm:$0xff] %v779_v48  ;;  %782 = vst [vmem:[#allocation8 + $0x468] sm:$0xff] %v781_v49  ;;  %v785_v51 = vld [vmem:[%s14538_s5 + $0x478] sm:$0xff] }
  0x90   : > { %784 = vst [vmem:[#allocation8 + $0x470] sm:$0xff] %v783_v50  ;;  %v787_v52 = vld [vmem:[%s14538_s5 + $0x480] sm:$0xff]  ;;  %v789_v53 = vld [vmem:[%s14538_s5 + $0x488] sm:$0xff]  ;;  %786 = vst [vmem:[#allocation8 + $0x478] sm:$0xff] %v785_v51 }
  0x91   : > { %788 = vst [vmem:[#allocation8 + $0x480] sm:$0xff] %v787_v52  ;;  %790 = vst [vmem:[#allocation8 + $0x488] sm:$0xff] %v789_v53  ;;  %v791_v54 = vld [vmem:[%s14538_s5 + $0x490] sm:$0xff]  ;;  %v793_v55 = vld [vmem:[%s14538_s5 + $0x498] sm:$0xff] }
  0x92   : > { %v795_v56 = vld [vmem:[%s14538_s5 + $0x4a0] sm:$0xff]  ;;  %792 = vst [vmem:[#allocation8 + $0x490] sm:$0xff] %v791_v54  ;;  %794 = vst [vmem:[#allocation8 + $0x498] sm:$0xff] %v793_v55  ;;  %v797_v57 = vld [vmem:[%s14538_s5 + $0x4a8] sm:$0xff] }
  0x93   : > { %796 = vst [vmem:[#allocation8 + $0x4a0] sm:$0xff] %v795_v56  ;;  %v799_v58 = vld [vmem:[%s14538_s5 + $0x4b0] sm:$0xff]  ;;  %v801_v59 = vld [vmem:[%s14538_s5 + $0x4b8] sm:$0xff]  ;;  %798 = vst [vmem:[#allocation8 + $0x4a8] sm:$0xff] %v797_v57 }
  0x94   : > { %800 = vst [vmem:[#allocation8 + $0x4b0] sm:$0xff] %v799_v58  ;;  %802 = vst [vmem:[#allocation8 + $0x4b8] sm:$0xff] %v801_v59  ;;  %v803_v60 = vld [vmem:[%s14538_s5 + $0x4c0] sm:$0xff]  ;;  %v805_v61 = vld [vmem:[%s14538_s5 + $0x4c8] sm:$0xff] }
  0x95   : > { %v807_v62 = vld [vmem:[%s14538_s5 + $0x4d0] sm:$0xff]  ;;  %804 = vst [vmem:[#allocation8 + $0x4c0] sm:$0xff] %v803_v60  ;;  %806 = vst [vmem:[#allocation8 + $0x4c8] sm:$0xff] %v805_v61  ;;  %v809_v63 = vld [vmem:[%s14538_s5 + $0x4d8] sm:$0xff] }
  0x96   : > { %808 = vst [vmem:[#allocation8 + $0x4d0] sm:$0xff] %v807_v62  ;;  %v811_v0 = vld [vmem:[%s14538_s5 + $0x4e0] sm:$0xff]  ;;  %v813_v1 = vld [vmem:[%s14538_s5 + $0x4e8] sm:$0xff]  ;;  %810 = vst [vmem:[#allocation8 + $0x4d8] sm:$0xff] %v809_v63 }
  0x97   : > { %812 = vst [vmem:[#allocation8 + $0x4e0] sm:$0xff] %v811_v0  ;;  %814 = vst [vmem:[#allocation8 + $0x4e8] sm:$0xff] %v813_v1  ;;  %v815_v2 = vld [vmem:[%s14538_s5 + $0x4f0] sm:$0xff]  ;;  %v817_v3 = vld [vmem:[%s14538_s5 + $0x4f8] sm:$0xff] }
  0x98   : > { %v819_v4 = vld [vmem:[%s14538_s5 + $0x500] sm:$0xff]  ;;  %816 = vst [vmem:[#allocation8 + $0x4f0] sm:$0xff] %v815_v2  ;;  %818 = vst [vmem:[#allocation8 + $0x4f8] sm:$0xff] %v817_v3  ;;  %v821_v5 = vld [vmem:[%s14538_s5 + $0x508] sm:$0xff] }
  0x99   : > { %820 = vst [vmem:[#allocation8 + $0x500] sm:$0xff] %v819_v4  ;;  %v823_v6 = vld [vmem:[%s14538_s5 + $0x510] sm:$0xff]  ;;  %v825_v7 = vld [vmem:[%s14538_s5 + $0x518] sm:$0xff]  ;;  %822 = vst [vmem:[#allocation8 + $0x508] sm:$0xff] %v821_v5 }
  0x9a   : > { %824 = vst [vmem:[#allocation8 + $0x510] sm:$0xff] %v823_v6  ;;  %826 = vst [vmem:[#allocation8 + $0x518] sm:$0xff] %v825_v7  ;;  %v827_v8 = vld [vmem:[%s14538_s5 + $0x520] sm:$0xff]  ;;  %v829_v9 = vld [vmem:[%s14538_s5 + $0x528] sm:$0xff] }
  0x9b   : > { %v831_v10 = vld [vmem:[%s14538_s5 + $0x530] sm:$0xff]  ;;  %828 = vst [vmem:[#allocation8 + $0x520] sm:$0xff] %v827_v8  ;;  %830 = vst [vmem:[#allocation8 + $0x528] sm:$0xff] %v829_v9  ;;  %v833_v11 = vld [vmem:[%s14538_s5 + $0x538] sm:$0xff] }
  0x9c   : > { %832 = vst [vmem:[#allocation8 + $0x530] sm:$0xff] %v831_v10  ;;  %v835_v12 = vld [vmem:[%s14538_s5 + $0x540] sm:$0xff]  ;;  %v837_v13 = vld [vmem:[%s14538_s5 + $0x548] sm:$0xff]  ;;  %834 = vst [vmem:[#allocation8 + $0x538] sm:$0xff] %v833_v11 }
  0x9d   : > { %836 = vst [vmem:[#allocation8 + $0x540] sm:$0xff] %v835_v12  ;;  %838 = vst [vmem:[#allocation8 + $0x548] sm:$0xff] %v837_v13  ;;  %v839_v14 = vld [vmem:[%s14538_s5 + $0x550] sm:$0xff]  ;;  %v841_v15 = vld [vmem:[%s14538_s5 + $0x558] sm:$0xff] }
  0x9e   : > { %v843_v16 = vld [vmem:[%s14538_s5 + $0x560] sm:$0xff]  ;;  %840 = vst [vmem:[#allocation8 + $0x550] sm:$0xff] %v839_v14  ;;  %842 = vst [vmem:[#allocation8 + $0x558] sm:$0xff] %v841_v15  ;;  %v845_v17 = vld [vmem:[%s14538_s5 + $0x568] sm:$0xff] }
  0x9f   : > { %844 = vst [vmem:[#allocation8 + $0x560] sm:$0xff] %v843_v16  ;;  %v847_v18 = vld [vmem:[%s14538_s5 + $0x570] sm:$0xff]  ;;  %v849_v19 = vld [vmem:[%s14538_s5 + $0x578] sm:$0xff]  ;;  %846 = vst [vmem:[#allocation8 + $0x568] sm:$0xff] %v845_v17 }
  0xa0   : > { %848 = vst [vmem:[#allocation8 + $0x570] sm:$0xff] %v847_v18  ;;  %850 = vst [vmem:[#allocation8 + $0x578] sm:$0xff] %v849_v19  ;;  %v851_v20 = vld [vmem:[%s14538_s5 + $0x580] sm:$0xff]  ;;  %v853_v21 = vld [vmem:[%s14538_s5 + $0x588] sm:$0xff] }
  0xa1   : > { %v855_v22 = vld [vmem:[%s14538_s5 + $0x590] sm:$0xff]  ;;  %852 = vst [vmem:[#allocation8 + $0x580] sm:$0xff] %v851_v20  ;;  %854 = vst [vmem:[#allocation8 + $0x588] sm:$0xff] %v853_v21  ;;  %v857_v23 = vld [vmem:[%s14538_s5 + $0x598] sm:$0xff] }
  0xa2   : > { %856 = vst [vmem:[#allocation8 + $0x590] sm:$0xff] %v855_v22  ;;  %v859_v24 = vld [vmem:[%s14538_s5 + $0x5a0] sm:$0xff]  ;;  %v861_v25 = vld [vmem:[%s14538_s5 + $0x5a8] sm:$0xff]  ;;  %858 = vst [vmem:[#allocation8 + $0x598] sm:$0xff] %v857_v23 }
  0xa3   : > { %860 = vst [vmem:[#allocation8 + $0x5a0] sm:$0xff] %v859_v24  ;;  %862 = vst [vmem:[#allocation8 + $0x5a8] sm:$0xff] %v861_v25  ;;  %v863_v26 = vld [vmem:[%s14538_s5 + $0x5b0] sm:$0xff]  ;;  %v865_v27 = vld [vmem:[%s14538_s5 + $0x5b8] sm:$0xff] }
  0xa4   : > { %v867_v28 = vld [vmem:[%s14538_s5 + $0x5c0] sm:$0xff]  ;;  %864 = vst [vmem:[#allocation8 + $0x5b0] sm:$0xff] %v863_v26  ;;  %866 = vst [vmem:[#allocation8 + $0x5b8] sm:$0xff] %v865_v27  ;;  %v869_v29 = vld [vmem:[%s14538_s5 + $0x5c8] sm:$0xff] }
  0xa5   : > { %868 = vst [vmem:[#allocation8 + $0x5c0] sm:$0xff] %v867_v28  ;;  %v871_v30 = vld [vmem:[%s14538_s5 + $0x5d0] sm:$0xff]  ;;  %v873_v31 = vld [vmem:[%s14538_s5 + $0x5d8] sm:$0xff]  ;;  %870 = vst [vmem:[#allocation8 + $0x5c8] sm:$0xff] %v869_v29 }
  0xa6   : > { %872 = vst [vmem:[#allocation8 + $0x5d0] sm:$0xff] %v871_v30  ;;  %874 = vst [vmem:[#allocation8 + $0x5d8] sm:$0xff] %v873_v31  ;;  %v875_v32 = vld [vmem:[%s14538_s5 + $0x5e0] sm:$0xff]  ;;  %v877_v33 = vld [vmem:[%s14538_s5 + $0x5e8] sm:$0xff] }
  0xa7   : > { %v879_v34 = vld [vmem:[%s14538_s5 + $0x5f0] sm:$0xff]  ;;  %876 = vst [vmem:[#allocation8 + $0x5e0] sm:$0xff] %v875_v32  ;;  %878 = vst [vmem:[#allocation8 + $0x5e8] sm:$0xff] %v877_v33  ;;  %v881_v35 = vld [vmem:[%s14538_s5 + $0x5f8] sm:$0xff] }
  0xa8   : > { %880 = vst [vmem:[#allocation8 + $0x5f0] sm:$0xff] %v879_v34  ;;  %v883_v36 = vld [vmem:[%s14538_s5 + $0x600] sm:$0xff]  ;;  %v885_v37 = vld [vmem:[%s14538_s5 + $0x608] sm:$0xff]  ;;  %882 = vst [vmem:[#allocation8 + $0x5f8] sm:$0xff] %v881_v35 }
  0xa9   : > { %884 = vst [vmem:[#allocation8 + $0x600] sm:$0xff] %v883_v36  ;;  %886 = vst [vmem:[#allocation8 + $0x608] sm:$0xff] %v885_v37  ;;  %v887_v38 = vld [vmem:[%s14538_s5 + $0x610] sm:$0xff]  ;;  %v889_v39 = vld [vmem:[%s14538_s5 + $0x618] sm:$0xff] }
  0xaa   : > { %v891_v40 = vld [vmem:[%s14538_s5 + $0x620] sm:$0xff]  ;;  %888 = vst [vmem:[#allocation8 + $0x610] sm:$0xff] %v887_v38  ;;  %890 = vst [vmem:[#allocation8 + $0x618] sm:$0xff] %v889_v39  ;;  %v893_v41 = vld [vmem:[%s14538_s5 + $0x628] sm:$0xff] }
  0xab   : > { %892 = vst [vmem:[#allocation8 + $0x620] sm:$0xff] %v891_v40  ;;  %v895_v42 = vld [vmem:[%s14538_s5 + $0x630] sm:$0xff]  ;;  %v897_v43 = vld [vmem:[%s14538_s5 + $0x638] sm:$0xff]  ;;  %894 = vst [vmem:[#allocation8 + $0x628] sm:$0xff] %v893_v41 }
  0xac   : > { %896 = vst [vmem:[#allocation8 + $0x630] sm:$0xff] %v895_v42  ;;  %898 = vst [vmem:[#allocation8 + $0x638] sm:$0xff] %v897_v43 }
  0xad   : > { %906 = vsyncadd [#allocation9 + $0x1], 25600  ;;  %v11760_v44 = vld [vmem:[%s14534_s1] sm:$0xf]  ;;  %v11765_v45 = vld [vmem:[%s14534_s1 + $0x4] sm:$0xf] }
  0xae   : > { %14573 = vst [vmem:[#allocation17_spill] sm:$0xff] %v11760_v44  ;;  %14574 = vst [vmem:[#allocation18_spill] sm:$0xff] %v11765_v45  ;;  %v11770_v46 = vld [vmem:[%s14534_s1 + $0x8] sm:$0xf]  ;;  %v11775_v47 = vld [vmem:[%s14534_s1 + $0xc] sm:$0xf] }
  0xaf   : > { %14575 = vst [vmem:[#allocation19_spill] sm:$0xff] %v11770_v46  ;;  %14576 = vst [vmem:[#allocation20_spill] sm:$0xff] %v11775_v47  ;;  %v11780_v48 = vld [vmem:[%s14534_s1 + $0x10] sm:$0xf]  ;;  %v11785_v49 = vld [vmem:[%s14534_s1 + $0x14] sm:$0xf] }
  0xb0   : > { %14577 = vst [vmem:[#allocation21_spill] sm:$0xff] %v11780_v48  ;;  %14578 = vst [vmem:[#allocation22_spill] sm:$0xff] %v11785_v49  ;;  %v11790_v50 = vld [vmem:[%s14534_s1 + $0x18] sm:$0xf]  ;;  %v11795_v51 = vld [vmem:[%s14534_s1 + $0x1c] sm:$0xf] }
  0xb1   : > { %14579 = vst [vmem:[#allocation23_spill] sm:$0xff] %v11790_v50  ;;  %14580 = vst [vmem:[#allocation24_spill] sm:$0xff] %v11795_v51  ;;  %v11800_v52 = vld [vmem:[%s14534_s1 + $0x20] sm:$0xf]  ;;  %v11805_v53 = vld [vmem:[%s14534_s1 + $0x24] sm:$0x3] }
  0xb2   : > { %14581 = vst [vmem:[#allocation25_spill] sm:$0xff] %v11800_v52  ;;  %14582 = vst [vmem:[#allocation26_spill] sm:$0xff] %v11805_v53  ;;  %v11810_v54 = vld [vmem:[%s14535_s2] ss:$0 sm:$0xff]  ;;  %s11812_s8 = smov 0  }
  0xb3 LB: >> { %vm1205_vm0 = vcmask 1044480   ;;  %s8823_s9 = smul.u32 192, %s10739_s8  ;;  %vm1206_vm1 = vcmask 1045504   ;;  %v10745_v58 = vmov 65535   ;;  %vm1132_vm2 = vcmask 613376   ;;  %s8825_s16 = sshll.u32 %s10739_s8, 6  ;;  %s10739_s8 = sphi %s11812_s8, %s923_s8  }
  0xb4   : >> { %v1207_v59 = vsel %vm1205_vm0, 4294967295, %v10745_v58  ;;  %vm1749_vm3 = vcmask 523264   ;;  %vm1845_vm4 = vcmask 518144   ;;  %s12231_s20 = scalar_lea.vmem [#allocation2], %s8825_s16  ;;  %s923_s8 = sadd.s32 1, %s10739_s8  }
  0xb5   : >> { %v14583_v45 = vld [vmem:[#allocation18_spill] sm:$0xff]  ;;  %v14584_v44 = vld [vmem:[#allocation17_spill] sm:$0xff]  ;;  %s11837_s15 = scalar_lea.vmem %s10915_s14, %s8823_s9  ;;  %v1208_v0 = vsel %vm1206_vm1, %v1207_v59, 0  ;;  %p920_p11 = scmp.ge.s32.totalorder %s923_s8, 5  }
  0xb6   : >> { %v11819_v55 = vcombine.low %v14584_v44, %v14583_v45  ;;  %v14586_v47 = vld [vmem:[#allocation20_spill] sm:$0xff]  ;;  %v14587_v46 = vld [vmem:[#allocation19_spill] sm:$0xff]  ;;  %v10165_v2 = vld [vmem:[%s11837_s15 + $0x8] sm:$0xff]  }
  0xb7   : >> { %v11823_v56 = vcombine.low %v14587_v46, %v14586_v47  ;;  %v14589_v49 = vld [vmem:[#allocation22_spill] sm:$0xff]  ;;  %v14590_v48 = vld [vmem:[#allocation21_spill] sm:$0xff]  ;;  %v10163_v60 = vld [vmem:[%s11837_s15] sm:$0xff]  }
  0xb8   : >> { %14585 = vst [vmem:[#allocation27_spill] sm:$0xff] %v11819_v55  ;;  %9621 = vmatprep.subr.bf16.mxu0 %v11819_v55  ;;  %10033 = vmatprep.subr.bf16.mxu1 %v11819_v55  ;;  %v11834_v57 = vcombine.low %v14590_v48, %v14589_v49  ;;  %v10164_v61 = vld [vmem:[%s11837_s15 + $0x60] sm:$0xff]   ;;  %v14593_v50 = vld [vmem:[#allocation23_spill] sm:$0xff]  ;;  %v10166_v3 = vld [vmem:[%s11837_s15 + $0x68] sm:$0xff]  }
  0xb9   : >> { %14588 = vst [vmem:[#allocation28_spill] sm:$0xff] %v11823_v56  ;;  %9622 = vmatpush3.bf16.msra.mxu0 %v11819_v55  ;;  %10038 = vmatpush3.bf16.msra.mxu1 %v11819_v55  ;;  %v14592_v51 = vld [vmem:[#allocation24_spill] sm:$0xff]  ;;  %v14595_v53 = vld [vmem:[#allocation26_spill] sm:$0xff]  ;;  %v14596_v52 = vld [vmem:[#allocation25_spill] sm:$0xff] }
  0xba   : >> { %9623 = vmatprep.subr.bf16.mxu0 %v11823_v56  ;;  %10034 = vmatprep.subr.bf16.mxu1 %v11823_v56  ;;  %14591 = vst [vmem:[#allocation29_spill] sm:$0xff] %v11834_v57  ;;  %v11848_v62 = vcombine.low %v14593_v50, %v14592_v51  ;;  %v8443_v63 = vcombine.low %v14596_v52, %v14595_v53  ;;  %v10167_v4 = vld [vmem:[%s11837_s15 + $0x10] sm:$0xff]   ;;  %v10169_v6 = vld [vmem:[%s11837_s15 + $0x18] sm:$0xff]   ;;  %v10171_v8 = vld [vmem:[%s11837_s15 + $0x20] sm:$0xff]  }
  0xbb   : >> { %9631 = vmatprep.mubr.msk.bf16.mxu0 %vm1132_vm2, %v10163_v60  ;;  %9655 = vmatprep.mubr.msk.bf16.mxu1 %vm1132_vm2, %v10164_v61  ;;  %v10168_v5 = vld [vmem:[%s11837_s15 + $0x70] sm:$0xff]   ;;  %v10170_v7 = vld [vmem:[%s11837_s15 + $0x78] sm:$0xff]   ;;  %v10172_v9 = vld [vmem:[%s11837_s15 + $0x80] sm:$0xff]  }
  0xbc   : >> { %14594 = vst [vmem:[#allocation30_spill] sm:$0xff] %v11848_v62  ;;  %v11859_v1 = vand.u32 %v8443_v63, %v1208_v0  ;;  %v10173_v10 = vld [vmem:[%s11837_s15 + $0x28] sm:$0xff]   ;;  %v10175_v12 = vld [vmem:[%s11837_s15 + $0x30] sm:$0xff]   ;;  %v10177_v14 = vld [vmem:[%s11837_s15 + $0x38] sm:$0xff]  }
  0xbd   : >> { %9624 = vmatpush3.bf16.msra.mxu0 %v11823_v56  ;;  %10039 = vmatpush3.bf16.msra.mxu1 %v11823_v56  ;;  %v10174_v11 = vld [vmem:[%s11837_s15 + $0x88] sm:$0xff]   ;;  %v10176_v13 = vld [vmem:[%s11837_s15 + $0x90] sm:$0xff]   ;;  %v10178_v15 = vld [vmem:[%s11837_s15 + $0x98] sm:$0xff]  }
  0xbe   : >> { %9625 = vmatprep.subr.bf16.mxu0 %v11834_v57  ;;  %10035 = vmatprep.subr.bf16.mxu1 %v11834_v57  ;;  %14597 = vst [vmem:[#allocation31_spill] sm:$0xff] %v11859_v1  ;;  %v10179_v16 = vld [vmem:[%s11837_s15 + $0x40] sm:$0xff]   ;;  %v10181_v18 = vld [vmem:[%s11837_s15 + $0x48] sm:$0xff]   ;;  %v10183_v20 = vld [vmem:[%s11837_s15 + $0x50] sm:$0xff]  }
  0xbf   : >> { %v10180_v17 = vld [vmem:[%s11837_s15 + $0xa0] sm:$0xff]   ;;  %v10182_v19 = vld [vmem:[%s11837_s15 + $0xa8] sm:$0xff]   ;;  %v10184_v21 = vld [vmem:[%s11837_s15 + $0xb0] sm:$0xff]  }
  0xc0   : >> { %v10185_v22 = vld [vmem:[%s11837_s15 + $0x58] sm:$0xff]  }
  0xc1   : >> { %9626 = vmatpush3.bf16.msra.mxu0 %v11834_v57  ;;  %10040 = vmatpush3.bf16.msra.mxu1 %v11834_v57  ;;  %v10186_v23 = vld [vmem:[%s11837_s15 + $0xb8] sm:$0xff]  }
  0xc2   : >> { %9627 = vmatprep.subr.bf16.mxu0 %v11848_v62  ;;  %10036 = vmatprep.subr.bf16.mxu1 %v11848_v62 }
  0xc5   : >> { %9628 = vmatpush3.bf16.msra.mxu0 %v11848_v62  ;;  %10041 = vmatpush3.bf16.msra.mxu1 %v11848_v62 }
  0xc6   : >> { %9629 = vmatprep.subr.bf16.mxu0 %v11859_v1  ;;  %10037 = vmatprep.subr.bf16.mxu1 %v11859_v1 }
  0xc9   : >> { %9630 = vmatpush3.bf16.msra.mxu0 %v11859_v1  ;;  %10042 = vmatpush3.bf16.msra.mxu1 %v11859_v1 }
  0xcc   : >> { %9632 = vmatmul.mubr.msk.bf16.vlgmr.msra.gmra.mrb[0].mxu0 %vm1132_vm2, %v10165_v2  ;;  %9656 = vmatmul.mubr.msk.bf16.vlgmr.msra.gmra.mrb[0].mxu1 %vm1132_vm2, %v10166_v3 }
  0xcd   : >> { %9635 = vmatprep.mubr.msk.bf16.mxu0 %vm1132_vm2, %v10167_v4  ;;  %9659 = vmatprep.mubr.msk.bf16.mxu1 %vm1132_vm2, %v10168_v5 }
  0xd4   : >> { %9636 = vmatmul.mubr.msk.bf16.gmra.mrb[4].mxu0 %vm1132_vm2, %v10169_v6  ;;  %9660 = vmatmul.mubr.msk.bf16.gmra.mrb[4].mxu1 %vm1132_vm2, %v10170_v7 }
  0xd5   : >> { %9639 = vmatprep.mubr.msk.bf16.mxu0 %vm1132_vm2, %v10171_v8  ;;  %9663 = vmatprep.mubr.msk.bf16.mxu1 %vm1132_vm2, %v10172_v9 }
  0xdc   : >> { %9640 = vmatmul.mubr.msk.bf16.gmra.mrb[8].mxu0 %vm1132_vm2, %v10173_v10  ;;  %9664 = vmatmul.mubr.msk.bf16.gmra.mrb[8].mxu1 %vm1132_vm2, %v10174_v11 }
  0xdd   : >> { %9643 = vmatprep.mubr.msk.bf16.mxu0 %vm1132_vm2, %v10175_v12  ;;  %9667 = vmatprep.mubr.msk.bf16.mxu1 %vm1132_vm2, %v10176_v13 }
  0xe4   : >> { %9644 = vmatmul.mubr.msk.bf16.gmra.mrb[12].mxu0 %vm1132_vm2, %v10177_v14  ;;  %9668 = vmatmul.mubr.msk.bf16.gmra.mrb[12].mxu1 %vm1132_vm2, %v10178_v15 }
  0xe5   : >> { %9647 = vmatprep.mubr.msk.bf16.mxu0 %vm1132_vm2, %v10179_v16  ;;  %9671 = vmatprep.mubr.msk.bf16.mxu1 %vm1132_vm2, %v10180_v17 }
  0xec   : >> { %9648 = vmatmul.mubr.msk.bf16.gmra.mrb[16].mxu0 %vm1132_vm2, %v10181_v18  ;;  %9672 = vmatmul.mubr.msk.bf16.gmra.mrb[16].mxu1 %vm1132_vm2, %v10182_v19 }
  0xed   : >> { %9651 = vmatprep.mubr.msk.bf16.mxu0 %vm1132_vm2, %v10183_v20  ;;  %9675 = vmatprep.mubr.msk.bf16.mxu1 %vm1132_vm2, %v10184_v21 }
  0xf4   : >> { %9652 = vmatmul.mubr.msk.bf16.gmra.mrb[20].mxu0 %vm1132_vm2, %v10185_v22  ;;  %9676 = vmatmul.mubr.msk.bf16.gmra.mrb[20].mxu1 %vm1132_vm2, %v10186_v23 }
 0x19f   : >> { %v9633_v24 = vpop.f32.mrb[0].mxu0  ;;  %v9657_v25 = vpop.f32.mrb[0].mxu1 }
 0x1a0   : >> { %v11912_v26 = vadd.f32 %v9633_v24, %v11810_v54  ;;  %v11915_v27 = vadd.f32 %v9657_v25, %v11810_v54  ;;  %v1246_v28 = vpop.f32.mrb[1].mxu0  ;;  %v1342_v29 = vpop.f32.mrb[1].mxu1 }
 0x1a1   : >> { %v11918_v30 = vadd.f32 %v11810_v54, %v1246_v28  ;;  %v11921_v31 = vadd.f32 %v11810_v54, %v1342_v29  ;;  %v9634_v32 = vpop.f32.mrb[2].mxu0  ;;  %v9658_v33 = vpop.f32.mrb[2].mxu1 }
 0x1a2   : >> { %v1439_v34 = vsub.f32 0.0, %v11912_v26  ;;  %v1463_v35 = vsub.f32 0.0, %v11915_v27  ;;  %v11926_v36 = vadd.f32 %v9634_v32, %v11810_v54  ;;  %v11929_v37 = vadd.f32 %v9658_v33, %v11810_v54  ;;  %v1249_v38 = vpop.f32.mrb[3].mxu0  ;;  %v1345_v39 = vpop.f32.mrb[3].mxu1 }
 0x1a3   : >> { %v1437_v40 = vsub.f32 0.0, %v11918_v30  ;;  %v1461_v41 = vsub.f32 0.0, %v11921_v31  ;;  %v11934_v42 = vadd.f32 %v11810_v54, %v1249_v38  ;;  %v11937_v43 = vadd.f32 %v11810_v54, %v1345_v39 }
 0x1a4   : >> { %v1489_v58 = vmul.f32 1.442695, %v1439_v34  ;;  %v1537_v59 = vmul.f32 1.442695, %v1463_v35  ;;  %v1440_v60 = vsub.f32 0.0, %v11926_v36  ;;  %v1464_v61 = vsub.f32 0.0, %v11929_v37 }
 0x1a5   : >> { %v1485_v63 = vmul.f32 1.442695, %v1437_v40  ;;  %v1533_v0 = vmul.f32 1.442695, %v1461_v41  ;;  %v1438_v2 = vsub.f32 0.0, %v11934_v42  ;;  %v1462_v3 = vsub.f32 0.0, %v11937_v43 }
 0x1a6   : >> { %10187 = vpow2.f32 %v1489_v58  ;;  %v1491_v4 = vmul.f32 1.442695, %v1440_v60  ;;  %v1539_v5 = vmul.f32 1.442695, %v1464_v61 }
 0x1a7   : >> { %10189 = vpow2.f32 %v1537_v59  ;;  %v9637_v6 = vpop.f32.mrb[4].mxu0  ;;  %v9661_v7 = vpop.f32.mrb[4].mxu1  ;;  %v1487_v8 = vmul.f32 1.442695, %v1438_v2  ;;  %v1535_v13 = vmul.f32 1.442695, %v1462_v3 }
 0x1a8   : >> { %10191 = vpow2.f32 %v1485_v63  ;;  %v11944_v9 = vadd.f32 %v9637_v6, %v11810_v54  ;;  %v11947_v10 = vadd.f32 %v9661_v7, %v11810_v54  ;;  %v1262_v11 = vpop.f32.mrb[5].mxu0  ;;  %v1358_v12 = vpop.f32.mrb[5].mxu1 }
 0x1a9   : >> { %10193 = vpow2.f32 %v1533_v0  ;;  %v11950_v14 = vadd.f32 %v11810_v54, %v1262_v11  ;;  %v11953_v15 = vadd.f32 %v11810_v54, %v1358_v12  ;;  %v9638_v16 = vpop.f32.mrb[6].mxu0  ;;  %v9662_v17 = vpop.f32.mrb[6].mxu1 }
 0x1aa   : >> { %10195 = vpow2.f32 %v1491_v4  ;;  %v1443_v18 = vsub.f32 0.0, %v11944_v9  ;;  %v1467_v19 = vsub.f32 0.0, %v11947_v10  ;;  %v11958_v20 = vadd.f32 %v9638_v16, %v11810_v54  ;;  %v1265_v21 = vpop.f32.mrb[7].mxu0  ;;  %v1361_v22 = vpop.f32.mrb[7].mxu1 }
 0x1ab   : >> { %10197 = vpow2.f32 %v1539_v5  ;;  %v1441_v23 = vsub.f32 0.0, %v11950_v14  ;;  %v1465_v24 = vsub.f32 0.0, %v11953_v15  ;;  %v11964_v40 = vadd.f32 %v9662_v17, %v11810_v54 }
 0x1ac   : >> { %10199 = vpow2.f32 %v1487_v8  ;;  %v1497_v25 = vmul.f32 1.442695, %v1443_v18  ;;  %v1545_v28 = vmul.f32 1.442695, %v1467_v19  ;;  %v1444_v29 = vsub.f32 0.0, %v11958_v20 }
 0x1ad   : >> { %10201 = vpow2.f32 %v1535_v13  ;;  %v1493_v32 = vmul.f32 1.442695, %v1441_v23  ;;  %v1541_v33 = vmul.f32 1.442695, %v1465_v24  ;;  %v11967_v3 = vadd.f32 %v11810_v54, %v1265_v21 }
 0x1ae   : >> { %10203 = vpow2.f32 %v1497_v25  ;;  %v1499_v34 = vmul.f32 1.442695, %v1444_v29  ;;  %v1468_v12 = vsub.f32 0.0, %v11964_v40  ;;  %v11971_v17 = vadd.f32 %v11810_v54, %v1361_v22 }
 0x1af   : >> { %10205 = vpow2.f32 %v1545_v28  ;;  %v9641_v35 = vpop.f32.mrb[8].mxu0  ;;  %v9665_v38 = vpop.f32.mrb[8].mxu1  ;;  %v1442_v21 = vsub.f32 0.0, %v11967_v3 }
 0x1b0   : >> { %v10188_v39 = vpop.eup %10187  ;;  %10207 = vpow2.f32 %v1493_v32  ;;  %v1278_v41 = vpop.f32.mrb[9].mxu0  ;;  %v11975_v25 = vadd.f32 %v9641_v35, %v11810_v54  ;;  %v11978_v22 = vadd.f32 %v9665_v38, %v11810_v54 }
 0x1b1   : >> { %v1374_v58 = vpop.f32.mrb[9].mxu1  ;;  %v10190_v59 = vpop.eup %10189  ;;  %v1583_v60 = vadd.f32 1.0, %v10188_v39  ;;  %10209 = vpow2.f32 %v1541_v33  ;;  %v11986_v35 = vadd.f32 %v11810_v54, %v1278_v41 }
 0x1b2   : >> { %v9642_v61 = vpop.f32.mrb[10].mxu0  ;;  %v9666_v63 = vpop.f32.mrb[10].mxu1  ;;  %v1607_v2 = vadd.f32 1.0, %v10190_v59  ;;  %10211 = vpow2.f32 %v1499_v34  ;;  %v1547_v34 = vmul.f32 1.442695, %v1468_v12  ;;  %v11993_v12 = vadd.f32 %v11810_v54, %v1374_v58 }
 0x1b3   : >> { %v10192_v0 = vpop.eup %10191  ;;  %v1281_v4 = vpop.f32.mrb[11].mxu0  ;;  %10213 = vrcp.f32 %v1583_v60  ;;  %v1447_v41 = vsub.f32 0.0, %v11975_v25  ;;  %v12005_v58 = vadd.f32 %v9666_v63, %v11810_v54 }
 0x1b4   : >> { %v10194_v5 = vpop.eup %10193  ;;  %v1581_v6 = vadd.f32 1.0, %v10192_v0  ;;  %v1377_v7 = vpop.f32.mrb[11].mxu1  ;;  %10215 = vrcp.f32 %v1607_v2  ;;  %v1466_v2 = vsub.f32 0.0, %v11971_v17 }
 0x1b5   : >> { %v10196_v8 = vpop.eup %10195  ;;  %v1605_v11 = vadd.f32 1.0, %v10194_v5  ;;  %v1505_v45 = vmul.f32 1.442695, %v1447_v41 }
 0x1b6   : >> { %v10198_v13 = vpop.eup %10197  ;;  %10217 = vrcp.f32 %v1581_v6  ;;  %v1584_v16 = vadd.f32 1.0, %v10196_v8 }
 0x1b7   : >> { %v10200_v18 = vpop.eup %10199  ;;  %10219 = vrcp.f32 %v1605_v11  ;;  %v1608_v19 = vadd.f32 1.0, %v10198_v13  ;;  %v9645_v28 = vpop.f32.mrb[12].mxu0  ;;  %v1495_v11 = vmul.f32 1.442695, %v1442_v21  ;;  %v1471_v21 = vsub.f32 0.0, %v11978_v22 }
 0x1b8   : >> { %v10202_v23 = vpop.eup %10201  ;;  %10221 = vrcp.f32 %v1584_v16  ;;  %v1582_v24 = vadd.f32 1.0, %v10200_v18  ;;  %v9669_v29 = vpop.f32.mrb[12].mxu1 }
 0x1b9   : >> { %v10204_v32 = vpop.eup %10203  ;;  %10223 = vrcp.f32 %v1608_v19  ;;  %v1606_v33 = vadd.f32 1.0, %v10202_v23  ;;  %v11980_v39 = vpop.f32.mrb[13].mxu0  ;;  %v12001_v23 = vadd.f32 %v9642_v61, %v11810_v54  ;;  %v1543_v61 = vmul.f32 1.442695, %v1466_v2 }
 0x1ba   : >> { %v11982_v59 = vpop.f32.mrb[13].mxu1  ;;  %v10206_v60 = vpop.eup %10205  ;;  %10225 = vrcp.f32 %v1582_v24  ;;  %v1587_v0 = vadd.f32 1.0, %v10204_v32  ;;  %v1553_v2 = vmul.f32 1.442695, %v1471_v21 }
 0x1bb   : >> { %v11988_v5 = vpop.f32.mrb[14].mxu0  ;;  %v11990_v6 = vpop.f32.mrb[14].mxu1  ;;  %10227 = vrcp.f32 %v1606_v33  ;;  %v1611_v38 = vadd.f32 1.0, %v10206_v60 }
 0x1bc   : >> { %v10208_v8 = vpop.eup %10207  ;;  %v11995_v13 = vpop.f32.mrb[15].mxu0  ;;  %10229 = vrcp.f32 %v1587_v0  ;;  %v1445_v0 = vsub.f32 0.0, %v11986_v35 }
 0x1bd   : >> { %v11997_v16 = vpop.f32.mrb[15].mxu1  ;;  %v10210_v18 = vpop.eup %10209  ;;  %v1585_v19 = vadd.f32 1.0, %v10208_v8  ;;  %10231 = vrcp.f32 %v1611_v38  ;;  %v12011_v8 = vadd.f32 %v11810_v54, %v1281_v4  ;;  %v1469_v38 = vsub.f32 0.0, %v11993_v12 }
 0x1be   : >> { %v10212_v24 = vpop.eup %10211  ;;  %v1609_v32 = vadd.f32 1.0, %v10210_v18  ;;  %v12017_v18 = vadd.f32 %v11810_v54, %v1377_v7  ;;  %v12029_v7 = vadd.f32 %v9669_v29, %v11810_v54 }
 0x1bf   : >> { %v12007_v33 = vpop.eup %10213  ;;  %10233 = vrcp.f32 %v1585_v19  ;;  %v1588_v60 = vadd.f32 1.0, %v10212_v24  ;;  %14598 = vst [vmem:[#allocation32_spill] sm:$0xff] %v12011_v8  ;;  %v1448_v19 = vsub.f32 0.0, %v12001_v23  ;;  %v12021_v24 = vadd.f32 %v9645_v28, %v11810_v54  ;;  %v12023_v46 = vpop.f32.mrb[16].mxu0 }
 0x1c0   : >> { %v12013_v44 = vpop.eup %10215  ;;  %10235 = vrcp.f32 %v1609_v32  ;;  %14599 = vst [vmem:[#allocation33_spill] sm:$0xff] %v12017_v18  ;;  %v12025_v4 = vpop.f32.mrb[16].mxu1  ;;  %v1472_v32 = vsub.f32 0.0, %v12005_v58  ;;  %14601 = vst [vmem:[#allocation35_spill] sm:$0xff] %v12029_v7  ;;  %v1501_v28 = vmul.f32 1.442695, %v1445_v0 }
 0x1c1   : >> { %v10218_v63 = vpop.eup %10217  ;;  %10237 = vrcp.f32 %v1588_v60  ;;  %14600 = vst [vmem:[#allocation34_spill] sm:$0xff] %v12021_v24  ;;  %v12031_v48 = vpop.f32.mrb[17].mxu0  ;;  %v1446_v49 = vsub.f32 0.0, %v12011_v8  ;;  %v1549_v21 = vmul.f32 1.442695, %v1469_v38  ;;  %v1470_v29 = vsub.f32 0.0, %v12017_v18 }
 0x1c2   : >> { %v10220_v47 = vpop.eup %10219  ;;  %10239 = vpow2.f32 %v1547_v34  ;;  %v12033_v41 = vpop.f32.mrb[17].mxu1  ;;  %v1451_v0 = vsub.f32 0.0, %v12021_v24  ;;  %v1555_v57 = vmul.f32 1.442695, %v1472_v32  ;;  %v1475_v56 = vsub.f32 0.0, %v12029_v7 }
 0x1c3   : >> { %v12035_v60 = vpop.eup %10221  ;;  %10241 = vpow2.f32 %v1495_v11  ;;  %v12038_v50 = vpop.f32.mrb[18].mxu0  ;;  %v1507_v11 = vmul.f32 1.442695, %v1448_v19  ;;  %v1677_v18 = vmul.f32 %v10218_v63, %v11918_v30  ;;  %v1701_v24 = vmul.f32 %v10220_v47, %v11921_v31 }
 0x1c4   : >> { %v12040_v51 = vpop.f32.mrb[18].mxu1  ;;  %v12042_v34 = vpop.eup %10223  ;;  %10243 = vpow2.f32 %v1543_v61  ;;  %v1503_v61 = vmul.f32 1.442695, %v1446_v49  ;;  %v1513_v32 = vmul.f32 1.442695, %v1451_v0  ;;  %v12071_v47 = vadd.f32 %v11810_v54, %v11980_v39 }
 0x1c5   : >> { %v12045_v52 = vpop.f32.mrb[19].mxu0  ;;  %v12047_v53 = vpop.f32.mrb[19].mxu1  ;;  %10245 = vpow2.f32 %v1505_v45  ;;  %v1551_v45 = vmul.f32 1.442695, %v1470_v29  ;;  %v1561_v30 = vmul.f32 1.442695, %v1475_v56 }
 0x1c6   : >> { %14602 = vst [vmem:[#allocation36_spill] sm:$0xff] %v12047_v53  ;;  %v10226_v1 = vpop.eup %10225  ;;  %10247 = vpow2.f32 %v1553_v2 }
 0x1c7   : >> { %v12050_v62 = vpop.eup %10227  ;;  %10249 = vpow2.f32 %v1501_v28  ;;  %v12059_v7 = vpop.f32.mrb[20].mxu0 }
 0x1c8   : >> { %v10230_v55 = vpop.eup %10229  ;;  %10251 = vpow2.f32 %v1549_v21  ;;  %v12061_v8 = vpop.f32.mrb[20].mxu1 }
 0x1c9   : >> { %v10232_v38 = vpop.eup %10231  ;;  %v1683_v53 = vmul.f32 %v10230_v55, %v11944_v9  ;;  %10253 = vpow2.f32 %v1507_v11  ;;  %v12065_v55 = vpop.f32.mrb[21].mxu0 }
 0x1ca   : >> { %v12055_v19 = vpop.eup %10233  ;;  %v1707_v2 = vmul.f32 %v10232_v38, %v11947_v10  ;;  %10255 = vpow2.f32 %v1555_v57  ;;  %v12067_v9 = vpop.f32.mrb[21].mxu1 }
 0x1cb   : >> { %v12063_v49 = vpop.eup %10235  ;;  %v1725_v28 = vmax.f32 %v1677_v18, %v1683_v53  ;;  %10257 = vpow2.f32 %v1503_v61  ;;  %v12073_v31 = vpop.f32.mrb[22].mxu0  ;;  %v1678_v53 = vmul.f32 %v10226_v1, %v11934_v42  ;;  %v1449_v42 = vsub.f32 0.0, %v12071_v47 }
 0x1cc   : >> { %v10238_v63 = vpop.eup %10237  ;;  %v1737_v21 = vmax.f32 %v1701_v24, %v1707_v2  ;;  %v12075_v10 = vpop.f32.mrb[22].mxu1  ;;  %10259 = vpow2.f32 %v1551_v45  ;;  %v12088_v45 = vmul.f32 %v12007_v33, %v11912_v26  ;;  %v12105_v33 = vmul.f32 %v12035_v60, %v11926_v36 }
 0x1cd   : >> { %v10240_v29 = vpop.eup %10239  ;;  %1750 = vst.msk [vmem:[#allocation4] sm:$0xff] %vm1749_vm3, %v1725_v28  ;;  %v1684_v56 = vmul.f32 %v10238_v63, %v11958_v20  ;;  %v12080_v57 = vpop.f32.mrb[23].mxu0  ;;  %10261 = vpow2.f32 %v1513_v32  ;;  %v12093_v32 = vadd.f32 %v11810_v54, %v11982_v59  ;;  %v12109_v59 = vadd.f32 %v11990_v6, %v11810_v54 }
 0x1ce   : >> { %v12082_v18 = vpop.f32.mrb[23].mxu1  ;;  %v10242_v24 = vpop.eup %10241  ;;  %1762 = vst.msk [vmem:[#allocation4 + $0x60] sm:$0xff] %vm1749_vm3, %v1737_v21  ;;  %v1612_v39 = vadd.f32 1.0, %v10240_v29  ;;  %10263 = vpow2.f32 %v1561_v30  ;;  %v12097_v30 = vmul.f32 %v12013_v44, %v11915_v27  ;;  %v12101_v21 = vadd.f32 %v11988_v5, %v11810_v54 }
 0x1cf   : >> { %v10244_v11 = vpop.eup %10243  ;;  %v1726_v0 = vmax.f32 %v1678_v53, %v1684_v56  ;;  %v1586_v61 = vadd.f32 1.0, %v10242_v24  ;;  %v1509_v27 = vmul.f32 1.442695, %v1449_v42  ;;  %v12113_v56 = vadd.f32 %v11810_v54, %v11995_v13 }
 0x1d0   : >> { %v10246_v38 = vpop.eup %10245  ;;  %10265 = vrcp.f32 %v1612_v39  ;;  %v1610_v1 = vadd.f32 1.0, %v10244_v11  ;;  %v1473_v36 = vsub.f32 0.0, %v12093_v32  ;;  %v12118_v60 = vadd.f32 %v11810_v54, %v11997_v16 }
 0x1d1   : >> { %v10248_v20 = vpop.eup %10247  ;;  %1751 = vst.msk [vmem:[#allocation4 + $0x8] sm:$0xff] %vm1749_vm3, %v1726_v0  ;;  %10267 = vrcp.f32 %v1586_v61  ;;  %v1591_v2 = vadd.f32 1.0, %v10246_v38  ;;  %v1452_v11 = vsub.f32 0.0, %v12101_v21  ;;  %v12123_v0 = vadd.f32 %v12023_v46, %v11810_v54 }
 0x1d2   : >> { %v10250_v28 = vpop.eup %10249  ;;  %10269 = vrcp.f32 %v1610_v1  ;;  %v1615_v63 = vadd.f32 1.0, %v10248_v20  ;;  %v1476_v38 = vsub.f32 0.0, %v12109_v59  ;;  %v12128_v1 = vadd.f32 %v12025_v4, %v11810_v54 }
 0x1d3   : >> { %v10252_v26 = vpop.eup %10251  ;;  %10271 = vrcp.f32 %v1591_v2  ;;  %v1589_v29 = vadd.f32 1.0, %v10250_v28  ;;  %v1450_v20 = vsub.f32 0.0, %v12113_v56  ;;  %v12133_v2 = vadd.f32 %v12038_v50, %v11810_v54 }
 0x1d4   : >> { %v10254_v53 = vpop.eup %10253  ;;  %10273 = vrcp.f32 %v1615_v63  ;;  %v1613_v44 = vadd.f32 1.0, %v10252_v26  ;;  %v12139_v28 = vmul.f32 %v12042_v34, %v11929_v37  ;;  %v1474_v63 = vsub.f32 0.0, %v12118_v60 }
 0x1d5   : >> { %v10256_v5 = vpop.eup %10255  ;;  %10275 = vrcp.f32 %v1589_v29  ;;  %v1592_v24 = vadd.f32 1.0, %v10254_v53  ;;  %v12144_v4 = vadd.f32 %v11810_v54, %v12031_v48  ;;  %v1702_v29 = vmul.f32 %v12050_v62, %v11937_v43 }
 0x1d6   : >> { %v10258_v39 = vpop.eup %10257  ;;  %10277 = vrcp.f32 %v1613_v44  ;;  %v1616_v6 = vadd.f32 1.0, %v10256_v5  ;;  %v1557_v50 = vmul.f32 1.442695, %v1473_v36  ;;  %v1455_v53 = vsub.f32 0.0, %v12123_v0 }
 0x1d7   : >> { %v10260_v13 = vpop.eup %10259  ;;  %10279 = vrcp.f32 %v1592_v24  ;;  %v1590_v61 = vadd.f32 1.0, %v10258_v39  ;;  %v12150_v37 = vmul.f32 1.442695, %v1452_v11  ;;  %v12152_v34 = vmul.f32 1.442695, %v1476_v38 }
 0x1d8   : >> { %v10262_v16 = vpop.eup %10261  ;;  %10281 = vrcp.f32 %v1616_v6  ;;  %v1614_v42 = vadd.f32 1.0, %v10260_v13  ;;  %v1479_v24 = vsub.f32 0.0, %v12128_v1  ;;  %v1681_v48 = vmul.f32 %v12055_v19, %v11950_v14 }
 0x1d9   : >> { %v12135_v46 = vpop.eup %10263  ;;  %10283 = vrcp.f32 %v1590_v61  ;;  %v1511_v6 = vmul.f32 1.442695, %v1450_v20  ;;  %v1456_v62 = vsub.f32 0.0, %v12133_v2  ;;  %v12160_v43 = vadd.f32 %v12040_v51, %v11810_v54 }
 0x1da   : >> { %v10266_v26 = vpop.eup %10265  ;;  %10285 = vrcp.f32 %v1614_v42  ;;  %v1559_v13 = vmul.f32 1.442695, %v1474_v63  ;;  %v1453_v61 = vsub.f32 0.0, %v12144_v4  ;;  %v1521_v14 = vmul.f32 1.442695, %v1455_v53 }
 0x1db   : >> { %v10268_v44 = vpop.eup %10267  ;;  %v1708_v5 = vmul.f32 %v10266_v26, %v11964_v40  ;;  %v1705_v40 = vmul.f32 %v12063_v49, %v11953_v15  ;;  %10287 = vpow2.f32 %v1509_v27  ;;  %v12168_v19 = vadd.f32 %v11810_v54, %v12033_v41 }
 0x1dc   : >> { %v10270_v39 = vpop.eup %10269  ;;  %10289 = vpow2.f32 %v1557_v50  ;;  %v1569_v15 = vmul.f32 1.442695, %v1479_v24  ;;  %v12174_v49 = vadd.f32 %v11810_v54, %v12045_v52  ;;  %v1523_v27 = vmul.f32 1.442695, %v1456_v62 }
 0x1dd   : >> { %v10272_v36 = vpop.eup %10271  ;;  %v1738_v11 = vmax.f32 %v1702_v29, %v1708_v5  ;;  %v1480_v29 = vsub.f32 0.0, %v12160_v43  ;;  %10291 = vpow2.f32 %v1511_v6  ;;  %v1682_v50 = vmul.f32 %v10268_v44, %v11967_v3  ;;  %v14603_v44 = vld [vmem:[#allocation32_spill] sm:$0xff] }
 0x1de   : >> { %v10274_v38 = vpop.eup %10273  ;;  %v1687_v42 = vmul.f32 %v10272_v36, %v11975_v25  ;;  %v1595_v36 = vadd.f32 1.0, %v10262_v16  ;;  %10293 = vpow2.f32 %v1559_v13  ;;  %v14605_v13 = vld [vmem:[#allocation36_spill] sm:$0xff] }
 0x1df   : >> { %v10276_v20 = vpop.eup %10275  ;;  %1763 = vst.msk [vmem:[#allocation4 + $0x68] sm:$0xff] %vm1749_vm3, %v1738_v11  ;;  %v1711_v51 = vmul.f32 %v10274_v38, %v11978_v22  ;;  %10295 = vpow2.f32 %v1521_v14  ;;  %v1454_v11 = vsub.f32 0.0, %v12174_v49  ;;  %v12198_v38 = vadd.f32 %v11810_v54, %v14605_v13 }
 0x1e0   : >> { %v10278_v63 = vpop.eup %10277  ;;  %v1729_v26 = vmax.f32 %v1681_v48, %v1687_v42  ;;  %v1685_v25 = vmul.f32 %v10276_v20, %v11986_v35  ;;  %v1706_v48 = vmul.f32 %v10270_v39, %v11971_v17  ;;  %10297 = vpow2.f32 %v1569_v15  ;;  %v1774_v15 = vld [vmem:[#allocation4] ss:$2 sm:$0xff] }
 0x1e1   : >> { %v10280_v41 = vpop.eup %10279  ;;  %v1741_v53 = vmax.f32 %v1705_v40, %v1711_v51  ;;  %v1709_v5 = vmul.f32 %v10278_v63, %v11993_v12  ;;  %v14604_v40 = vld [vmem:[#allocation33_spill] sm:$0xff]  ;;  %v1619_v39 = vadd.f32 1.0, %v12135_v46  ;;  %10299 = vrcp.f32 %v1595_v36 }
 0x1e2   : >> { %v10282_v22 = vpop.eup %10281  ;;  %1754 = vst.msk [vmem:[#allocation4 + $0x20] sm:$0xff] %vm1749_vm3, %v1729_v26  ;;  %v1727_v52 = vmax.f32 %v12088_v45, %v1685_v25  ;;  %v1688_v24 = vmul.f32 %v10280_v41, %v12001_v23  ;;  %v1571_v45 = vmul.f32 1.442695, %v1480_v29  ;;  %10301 = vpow2.f32 %v1523_v27  ;;  %v1798_v25 = vld [vmem:[#allocation4 + $0x1] ss:$2 sm:$0xff] }
 0x1e3   : >> { %v10284_v35 = vpop.eup %10283  ;;  %1766 = vst.msk [vmem:[#allocation4 + $0x80] sm:$0xff] %vm1749_vm3, %v1741_v53  ;;  %v1739_v62 = vmax.f32 %v12097_v30, %v1709_v5  ;;  %v1712_v12 = vmul.f32 %v10282_v22, %v12005_v58  ;;  %v1477_v30 = vsub.f32 0.0, %v12168_v19  ;;  %v12204_v46 = vadd.f32 %v12059_v7, %v11810_v54 }
 0x1e4   : >> { %v10286_v16 = vpop.eup %10285  ;;  %1752 = vst.msk [vmem:[#allocation4 + $0x10] sm:$0xff] %vm1749_vm3, %v1727_v52  ;;  %v1730_v3 = vmax.f32 %v1682_v50, %v1688_v24  ;;  %v1686_v6 = vmul.f32 %v10284_v35, %v14603_v44  ;;  %v12208_v14 = vadd.f32 %v12061_v8, %v11810_v54  ;;  %v1517_v20 = vmul.f32 1.442695, %v1453_v61 }
 0x1e5   : >> { %1764 = vst.msk [vmem:[#allocation4 + $0x70] sm:$0xff] %vm1749_vm3, %v1739_v62  ;;  %v1742_v23 = vmax.f32 %v1706_v48, %v1712_v12  ;;  %v1710_v17 = vmul.f32 %v10286_v16, %v14604_v40  ;;  %10303 = vpow2.f32 %v1571_v45  ;;  %v12213_v51 = vadd.f32 %v11810_v54, %v12065_v55 }
 0x1e6   : >> { %1755 = vst.msk [vmem:[#allocation4 + $0x28] sm:$0xff] %vm1749_vm3, %v1730_v3  ;;  %v1728_v58 = vmax.f32 %v12105_v33, %v1686_v6  ;;  %v10288_v33 = vpop.eup %10287  ;;  %10305 = vrcp.f32 %v1619_v39  ;;  %v1565_v7 = vmul.f32 1.442695, %v1477_v30  ;;  %v1519_v8 = vmul.f32 1.442695, %v1454_v11 }
 0x1e7   : >> { %1767 = vst.msk [vmem:[#allocation4 + $0x88] sm:$0xff] %vm1749_vm3, %v1742_v23  ;;  %v1740_v42 = vmax.f32 %v12139_v28, %v1710_v17  ;;  %v10290_v28 = vpop.eup %10289  ;;  %10307 = vpow2.f32 %v12150_v37  ;;  %v1478_v63 = vsub.f32 0.0, %v12198_v38  ;;  %v1593_v61 = vadd.f32 1.0, %v10288_v33  ;;  %v1786_v41 = vld [vmem:[#allocation4 + $0x60] ss:$2 sm:$0xff] }
 0x1e8   : >> { %1753 = vst.msk [vmem:[#allocation4 + $0x18] sm:$0xff] %vm1749_vm3, %v1728_v58  ;;  %v10292_v26 = vpop.eup %10291  ;;  %10309 = vpow2.f32 %v12152_v34  ;;  %v1459_v55 = vsub.f32 0.0, %v12204_v46  ;;  %v1483_v27 = vsub.f32 0.0, %v12208_v14  ;;  %v1810_v53 = vld [vmem:[#allocation4 + $0x61] ss:$2 sm:$0xff]  ;;  %v1617_v5 = vadd.f32 1.0, %v10290_v28 }
 0x1e9   : >> { %1765 = vst.msk [vmem:[#allocation4 + $0x78] sm:$0xff] %vm1749_vm3, %v1740_v42  ;;  %v10294_v29 = vpop.eup %10293  ;;  %10311 = vpow2.f32 %v1517_v20  ;;  %v1457_v37 = vsub.f32 0.0, %v12213_v51  ;;  %v1821_v24 = vmax.f32 %v1774_v15, %v1798_v25  ;;  %v12225_v62 = vadd.f32 %v11810_v54, %v12067_v9 }
 0x1ea   : >> { %v10296_v36 = vpop.eup %10295  ;;  %10313 = vpow2.f32 %v1565_v7  ;;  %v1827_v12 = vmax.f32 %v1786_v41, %v1810_v53  ;;  %v1594_v30 = vadd.f32 1.0, %v10292_v26  ;;  %v1618_v9 = vadd.f32 1.0, %v10294_v29 }
 0x1eb   : >> { %v10298_v52 = vpop.eup %10297  ;;  %10315 = vpow2.f32 %v1519_v8  ;;  %v1599_v6 = vadd.f32 1.0, %v10296_v36  ;;  %v12237_v7 = vadd.f32 %v12073_v31, %v11810_v54  ;;  %v12245_v25 = vadd.f32 %v12075_v10, %v11810_v54 }
 0x1ec   : >> { %10317 = vrcp.f32 %v1593_v61  ;;  %v12227_v45 = vpop.eup %10299  ;;  %v1623_v58 = vadd.f32 1.0, %v10298_v52  ;;  %v1567_v29 = vmul.f32 1.442695, %v1478_v63  ;;  %v12251_v31 = vadd.f32 %v11810_v54, %v12080_v57 }
 0x1ed   : >> { %v1778_v22 = vld [vmem:[#allocation4 + $0x20] ss:$2 sm:$0x3f]  ;;  %v1802_v50 = vld [vmem:[#allocation4 + $0x21] ss:$2 sm:$0x3f]  ;;  %v10302_v11 = vpop.eup %10301  ;;  %10319 = vrcp.f32 %v1617_v5  ;;  %v12258_v10 = vadd.f32 %v11810_v54, %v12082_v18 }
 0x1ee   : >> { %v1823_v35 = vmax.f32 %v1778_v22, %v1802_v50  ;;  %v1790_v48 = vld [vmem:[#allocation4 + $0x80] ss:$2 sm:$0x3f]  ;;  %v1814_v34 = vld [vmem:[#allocation4 + $0x81] ss:$2 sm:$0x3f]  ;;  %10321 = vrcp.f32 %v1599_v6 }
 0x1ef   : >> { %v1829_v16 = vmax.f32 %v1790_v48, %v1814_v34  ;;  %v1776_v3 = vld [vmem:[#allocation4 + $0x10] ss:$2 sm:$0xff]  ;;  %v1800_v44 = vld [vmem:[#allocation4 + $0x11] ss:$2 sm:$0xff]  ;;  %v10304_v33 = vpop.eup %10303  ;;  %v1600_v28 = vadd.f32 1.0, %v10302_v11  ;;  %10323 = vrcp.f32 %v1623_v58  ;;  %v1481_v5 = vsub.f32 0.0, %v12225_v62 }
 0x1f0   : >> { %v1834_v23 = vpack.c.bf16 %v1823_v35, %v1823_v35  ;;  %v1822_v40 = vmax.f32 %v1776_v3, %v1800_v44  ;;  %v1788_v17 = vld [vmem:[#allocation4 + $0x70] ss:$2 sm:$0xff]  ;;  %v1812_v39 = vld [vmem:[#allocation4 + $0x71] ss:$2 sm:$0xff]  ;;  %v12239_v15 = vpop.eup %10305  ;;  %v1624_v26 = vadd.f32 1.0, %v10304_v33  ;;  %10325 = vrcp.f32 %v1594_v30 }
 0x1f1   : >> { %v1838_v13 = vpack.c.bf16 %v1829_v16, %v1829_v16  ;;  %v1828_v42 = vmax.f32 %v1788_v17, %v1812_v39  ;;  %v10308_v61 = vpop.eup %10307  ;;  %10327 = vrcp.f32 %v1618_v9  ;;  %v1529_v53 = vmul.f32 1.442695, %v1459_v55 }
 0x1f2   : >> { %1846 = vst.msk [vmem:[%s12231_s20 + $0x8] sm:$0x7] %vm1845_vm4, %v1834_v23  ;;  %v1833_v20 = vpack.c.bf16 %v1822_v40, %v1821_v24  ;;  %v10310_v41 = vpop.eup %10309  ;;  %10329 = vrcp.f32 %v1600_v28  ;;  %v1577_v22 = vmul.f32 1.442695, %v1483_v27  ;;  %v1460_v63 = vsub.f32 0.0, %v12237_v7 }
 0x1f3   : >> { %1850 = vst.msk [vmem:[%s12231_s20 + $0x28] sm:$0x7] %vm1845_vm4, %v1838_v13  ;;  %v1837_v8 = vpack.c.bf16 %v1828_v42, %v1827_v12  ;;  %v10312_v36 = vpop.eup %10311  ;;  %10331 = vrcp.f32 %v1624_v26  ;;  %v1525_v57 = vmul.f32 1.442695, %v1457_v37  ;;  %v1484_v52 = vsub.f32 0.0, %v12245_v25 }
 0x1f4   : >> { %1844 = vst.msk [vmem:[%s12231_s20] sm:$0xff] %vm1749_vm3, %v1833_v20  ;;  %v10314_v50 = vpop.eup %10313  ;;  %v1596_v35 = vadd.f32 1.0, %v10308_v61  ;;  %10333 = vpow2.f32 %v1567_v29  ;;  %v1458_v55 = vsub.f32 0.0, %v12251_v31  ;;  %v1573_v34 = vmul.f32 1.442695, %v1481_v5 }
 0x1f5   : >> { %1849 = vst.msk [vmem:[%s12231_s20 + $0x20] sm:$0xff] %vm1749_vm3, %v1837_v8  ;;  %v10316_v24 = vpop.eup %10315  ;;  %10335 = vpow2.f32 %v1529_v53  ;;  %v1482_v18 = vsub.f32 0.0, %v12258_v10  ;;  %v1531_v12 = vmul.f32 1.442695, %v1460_v63  ;;  %v1579_v16 = vmul.f32 1.442695, %v1484_v52 }
 0x1f6   : >> { %v10318_v48 = vpop.eup %10317  ;;  %10337 = vpow2.f32 %v1577_v22  ;;  %v1527_v37 = vmul.f32 1.442695, %v1458_v55  ;;  %v1620_v30 = vadd.f32 1.0, %v10310_v41  ;;  %v1597_v42 = vadd.f32 1.0, %v10312_v36 }
 0x1f7   : >> { %v10320_v27 = vpop.eup %10319  ;;  %10339 = vpow2.f32 %v1525_v57  ;;  %v1689_v6 = vmul.f32 %v10318_v48, %v12071_v47  ;;  %v1575_v40 = vmul.f32 1.442695, %v1482_v18  ;;  %v1621_v20 = vadd.f32 1.0, %v10314_v50 }
 0x1f8   : >> { %v10322_v3 = vpop.eup %10321  ;;  %10341 = vrcp.f32 %v1596_v35  ;;  %v1713_v39 = vmul.f32 %v10320_v27, %v12093_v32  ;;  %v1598_v32 = vadd.f32 1.0, %v10316_v24 }
 0x1f9   : >> { %v10324_v44 = vpop.eup %10323  ;;  %v1695_v23 = vmul.f32 %v10322_v3, %v12123_v0  ;;  %10343 = vpow2.f32 %v1573_v34 }
 0x1fa   : >> { %v10326_v17 = vpop.eup %10325  ;;  %v1719_v58 = vmul.f32 %v10324_v44, %v12128_v1  ;;  %10345 = vpow2.f32 %v1531_v12 }
 0x1fb   : >> { %v10328_v11 = vpop.eup %10327  ;;  %v1731_v13 = vmax.f32 %v1689_v6, %v1695_v23  ;;  %10347 = vpow2.f32 %v1579_v16  ;;  %v1690_v0 = vmul.f32 %v10326_v17, %v12113_v56 }
 0x1fc   : >> { %v10330_v9 = vpop.eup %10329  ;;  %v1743_v33 = vmax.f32 %v1713_v39, %v1719_v58  ;;  %10349 = vpow2.f32 %v1527_v37  ;;  %v1714_v1 = vmul.f32 %v10328_v11, %v12118_v60 }
 0x1fd   : >> { %v10332_v47 = vpop.eup %10331  ;;  %1756 = vst.msk [vmem:[#allocation4 + $0x30] sm:$0xff] %vm1749_vm3, %v1731_v13  ;;  %v1696_v28 = vmul.f32 %v10330_v9, %v12133_v2  ;;  %10351 = vpow2.f32 %v1575_v40 }
 0x1fe   : >> { %v10334_v8 = vpop.eup %10333  ;;  %10353 = vrcp.f32 %v1620_v30  ;;  %1768 = vst.msk [vmem:[#allocation4 + $0x90] sm:$0xff] %vm1749_vm3, %v1743_v33  ;;  %v1720_v26 = vmul.f32 %v10332_v47, %v12160_v43  ;;  %v14606_v30 = vld [vmem:[#allocation34_spill] sm:$0xff] }
 0x1ff   : >> { %v10336_v61 = vpop.eup %10335  ;;  %10355 = vrcp.f32 %v1597_v42  ;;  %v1732_v29 = vmax.f32 %v1690_v0, %v1696_v28  ;;  %v1622_v2 = vadd.f32 1.0, %v10334_v8  ;;  %v1691_v58 = vmul.f32 %v12227_v45, %v14606_v30  ;;  %v10388_v30 = vld [vmem:[%s10915_s14 + $0x410] sm:$0xff] (%p920_p11)  }
 0x200   : >> { %v10338_v41 = vpop.eup %10337  ;;  %10357 = vrcp.f32 %v1621_v20  ;;  %v1744_v56 = vmax.f32 %v1714_v1, %v1720_v26  ;;  %v1603_v53 = vadd.f32 1.0, %v10336_v61  ;;  %v14607_v20 = vld [vmem:[#allocation35_spill] sm:$0xff] }
 0x201   : >> { %v10340_v5 = vpop.eup %10339  ;;  %1757 = vst.msk [vmem:[#allocation4 + $0x38] sm:$0xff] %vm1749_vm3, %v1732_v29  ;;  %10359 = vrcp.f32 %v1598_v32  ;;  %v1627_v36 = vadd.f32 1.0, %v10338_v41 }
 0x202   : >> { %v10342_v22 = vpop.eup %10341  ;;  %1769 = vst.msk [vmem:[#allocation4 + $0x98] sm:$0xff] %vm1749_vm3, %v1744_v56  ;;  %10361 = vrcp.f32 %v1603_v53  ;;  %v1601_v60 = vadd.f32 1.0, %v10340_v5 }
 0x203   : >> { %v10344_v63 = vpop.eup %10343  ;;  %10363 = vrcp.f32 %v1627_v36  ;;  %v1692_v8 = vmul.f32 %v10342_v22, %v12101_v21 }
 0x204   : >> { %v10346_v43 = vpop.eup %10345  ;;  %10365 = vrcp.f32 %v1601_v60  ;;  %v1625_v50 = vadd.f32 1.0, %v10344_v63 }
 0x205   : >> { %v10348_v57 = vpop.eup %10347  ;;  %10367 = vrcp.f32 %v1622_v2  ;;  %v1604_v52 = vadd.f32 1.0, %v10346_v43 }
 0x206   : >> { %v10350_v24 = vpop.eup %10349  ;;  %10369 = vrcp.f32 %v1625_v50  ;;  %v1628_v35 = vadd.f32 1.0, %v10348_v57 }
 0x207   : >> { %v10352_v55 = vpop.eup %10351  ;;  %10371 = vrcp.f32 %v1604_v52  ;;  %v1602_v48 = vadd.f32 1.0, %v10350_v24 }
 0x208   : >> { %v10354_v34 = vpop.eup %10353  ;;  %10373 = vrcp.f32 %v1628_v35  ;;  %v1626_v18 = vadd.f32 1.0, %v10352_v55  ;;  %v1780_v21 = vld [vmem:[#allocation4 + $0x30] ss:$2 sm:$0xff] }
 0x209   : >> { %v10356_v12 = vpop.eup %10355  ;;  %10375 = vrcp.f32 %v1602_v48  ;;  %v1816_v29 = vld [vmem:[#allocation4 + $0x91] ss:$2 sm:$0xff] }
 0x20a   : >> { %v10358_v27 = vpop.eup %10357  ;;  %10377 = vrcp.f32 %v1626_v18  ;;  %v1693_v44 = vmul.f32 %v10356_v12, %v12144_v4  ;;  %v1715_v4 = vmul.f32 %v12239_v15, %v14607_v20  ;;  %v14608_v48 = vld [vmem:[#allocation27_spill] sm:$0xff] (%p920_p11)  ;;  %v10380_v18 = vld [vmem:[%s10915_s14 + $0x3f0] sm:$0xff] (%p920_p11)   ;;  %v14609_v12 = vld [vmem:[#allocation28_spill] sm:$0xff] (%p920_p11) }
 0x20b   : >> { %v10360_v16 = vpop.eup %10359  ;;  %v1717_v40 = vmul.f32 %v10358_v27, %v12168_v19  ;;  %9679 = vmatprep.subr.bf16.mxu0 (%p920_p11), %v14608_v48  ;;  %10043 = vmatprep.subr.bf16.mxu1 (%p920_p11), %v14608_v48  ;;  %v14610_v27 = vld [vmem:[#allocation29_spill] sm:$0xff] (%p920_p11) }
 0x20c   : >> { %v10362_v3 = vpop.eup %10361  ;;  %9680 = vmatpush3.bf16.msra.mxu0 (%p920_p11), %v14608_v48  ;;  %10048 = vmatpush3.bf16.msra.mxu1 (%p920_p11), %v14608_v48 }
 0x20d   : >> { %v10364_v37 = vpop.eup %10363  ;;  %v1699_v6 = vmul.f32 %v10362_v3, %v12204_v46  ;;  %9681 = vmatprep.subr.bf16.mxu0 (%p920_p11), %v14609_v12  ;;  %10044 = vmatprep.subr.bf16.mxu1 (%p920_p11), %v14609_v12  ;;  %v14612_v3 = vld [vmem:[#allocation31_spill] sm:$0xff] (%p920_p11) }
 0x20e   : >> { %v10366_v23 = vpop.eup %10365  ;;  %v1723_v17 = vmul.f32 %v10364_v37, %v12208_v14  ;;  %v1694_v14 = vmul.f32 %v10360_v16, %v12174_v49  ;;  %v1716_v49 = vmul.f32 %v10354_v34, %v12109_v59  ;;  %v10379_v34 = vld [vmem:[%s10915_s14 + $0x3c0] sm:$0xff] (%p920_p11)   ;;  %9701 = vmatprep.mubr.msk.bf16.mxu1 (%p920_p11), %vm1132_vm2, %v10380_v18  ;;  %v14611_v16 = vld [vmem:[#allocation30_spill] sm:$0xff] (%p920_p11)  ;;  %v10381_v37 = vld [vmem:[%s10915_s14 + $0x3c8] sm:$0xff] (%p920_p11)  }
 0x20f   : >> { %v10368_v39 = vpop.eup %10367  ;;  %v1735_v11 = vmax.f32 %v1693_v44, %v1699_v6  ;;  %v1697_v13 = vmul.f32 %v10366_v23, %v12213_v51  ;;  %9689 = vmatprep.mubr.msk.bf16.mxu0 (%p920_p11), %vm1132_vm2, %v10379_v34  ;;  %v10382_v44 = vld [vmem:[%s10915_s14 + $0x3f8] sm:$0xff] (%p920_p11)   ;;  %v10383_v6 = vld [vmem:[%s10915_s14 + $0x3d0] sm:$0xff] (%p920_p11)   ;;  %v10384_v23 = vld [vmem:[%s10915_s14 + $0x400] sm:$0xff] (%p920_p11)  }
 0x210   : >> { %v10370_v42 = vpop.eup %10369  ;;  %v1747_v9 = vmax.f32 %v1717_v40, %v1723_v17  ;;  %v1718_v51 = vmul.f32 %v10368_v39, %v12198_v38  ;;  %9682 = vmatpush3.bf16.msra.mxu0 (%p920_p11), %v14609_v12  ;;  %10049 = vmatpush3.bf16.msra.mxu1 (%p920_p11), %v14609_v12  ;;  %v10385_v40 = vld [vmem:[%s10915_s14 + $0x3d8] sm:$0xff] (%p920_p11)   ;;  %v10386_v17 = vld [vmem:[%s10915_s14 + $0x408] sm:$0xff] (%p920_p11)   ;;  %v10387_v39 = vld [vmem:[%s10915_s14 + $0x3e0] sm:$0xff] (%p920_p11)  }
 0x211   : >> { %v10372_v33 = vpop.eup %10371  ;;  %1760 = vst.msk [vmem:[#allocation4 + $0x50] sm:$0xff] %vm1749_vm3, %v1735_v11  ;;  %v1733_v46 = vmax.f32 %v1691_v58, %v1697_v13  ;;  %v1721_v19 = vmul.f32 %v10370_v42, %v12225_v62  ;;  %9683 = vmatprep.subr.bf16.mxu0 (%p920_p11), %v14610_v27  ;;  %10045 = vmatprep.subr.bf16.mxu1 (%p920_p11), %v14610_v27  ;;  %v10389_v58 = vld [vmem:[%s10915_s14 + $0x3e8] sm:$0xff] (%p920_p11)   ;;  %v10390_v11 = vld [vmem:[%s10915_s14 + $0x418] sm:$0xff] (%p920_p11)  }
 0x212   : >> { %v10374_v47 = vpop.eup %10373  ;;  %1772 = vst.msk [vmem:[#allocation4 + $0xb0] sm:$0xff] %vm1749_vm3, %v1747_v9  ;;  %v1700_v45 = vmul.f32 %v10372_v33, %v12237_v7 }
 0x213   : >> { %v10376_v0 = vpop.eup %10375  ;;  %1758 = vst.msk [vmem:[#allocation4 + $0x40] sm:$0xff] %vm1749_vm3, %v1733_v46  ;;  %v1745_v28 = vmax.f32 %v1715_v4, %v1721_v19  ;;  %v1724_v15 = vmul.f32 %v10374_v47, %v12245_v25  ;;  %v1804_v25 = vld [vmem:[#allocation4 + $0x31] ss:$2 sm:$0xff] }
 0x214   : >> { %v10378_v32 = vpop.eup %10377  ;;  %v1736_v1 = vmax.f32 %v1694_v14, %v1700_v45  ;;  %v1698_v62 = vmul.f32 %v10376_v0, %v12251_v31  ;;  %v1792_v31 = vld [vmem:[#allocation4 + $0x90] ss:$2 sm:$0xff]  ;;  %v1824_v22 = vmax.f32 %v1780_v21, %v1804_v25  ;;  %9684 = vmatpush3.bf16.msra.mxu0 (%p920_p11), %v14610_v27  ;;  %10050 = vmatpush3.bf16.msra.mxu1 (%p920_p11), %v14610_v27 }
 0x215   : >> { %1770 = vst.msk [vmem:[#allocation4 + $0xa0] sm:$0xff] %vm1749_vm3, %v1745_v28  ;;  %v1748_v26 = vmax.f32 %v1718_v51, %v1724_v15  ;;  %v1722_v7 = vmul.f32 %v10378_v32, %v12258_v10  ;;  %v1830_v57 = vmax.f32 %v1792_v31, %v1816_v29  ;;  %9685 = vmatprep.subr.bf16.mxu0 (%p920_p11), %v14611_v16 }
 0x216   : >> { %1761 = vst.msk [vmem:[#allocation4 + $0x58] sm:$0xff] %vm1749_vm3, %v1736_v1  ;;  %v1734_v38 = vmax.f32 %v1692_v8, %v1698_v62  ;;  %10046 = vmatprep.subr.bf16.mxu1 (%p920_p11), %v14611_v16 }
 0x217   : >> { %1773 = vst.msk [vmem:[#allocation4 + $0xb8] sm:$0xff] %vm1749_vm3, %v1748_v26  ;;  %v1746_v61 = vmax.f32 %v1716_v49, %v1722_v7 }
 0x218   : >> { %1759 = vst.msk [vmem:[#allocation4 + $0x48] sm:$0xff] %vm1749_vm3, %v1734_v38  ;;  %9686 = vmatpush3.bf16.msra.mxu0 (%p920_p11), %v14611_v16  ;;  %10051 = vmatpush3.bf16.msra.mxu1 (%p920_p11), %v14611_v16 }
 0x219   : >> { %1771 = vst.msk [vmem:[#allocation4 + $0xa8] sm:$0xff] %vm1749_vm3, %v1746_v61  ;;  %9687 = vmatprep.subr.bf16.mxu0 (%p920_p11), %v14612_v3  ;;  %10047 = vmatprep.subr.bf16.mxu1 (%p920_p11), %v14612_v3 }
 0x21c   : > { %9688 = vmatpush3.bf16.msra.mxu0 (%p920_p11), %v14612_v3  ;;  %10052 = vmatpush3.bf16.msra.mxu1 (%p920_p11), %v14612_v3 }
 0x21d   : >> { %v1784_v59 = vld [vmem:[#allocation4 + $0x50] ss:$2 sm:$0x3f]  ;;  %v1808_v41 = vld [vmem:[#allocation4 + $0x51] ss:$2 sm:$0x3f] }
 0x21e   : >> { %v1826_v56 = vmax.f32 %v1784_v59, %v1808_v41  ;;  %v1796_v10 = vld [vmem:[#allocation4 + $0xb0] ss:$2 sm:$0x3f]  ;;  %v1820_v53 = vld [vmem:[#allocation4 + $0xb1] ss:$2 sm:$0x3f] }
 0x21f   : >> { %v1832_v5 = vmax.f32 %v1796_v10, %v1820_v53  ;;  %v1782_v2 = vld [vmem:[#allocation4 + $0x40] ss:$2 sm:$0xff]  ;;  %v1806_v36 = vld [vmem:[#allocation4 + $0x41] ss:$2 sm:$0xff]  ;;  %922 = sbr.rel (!%p920_p11) target bundleno = 179 (0xb3), region = 245  ;;  %9690 = vmatmul.mubr.msk.bf16.vlgmr.msra.gmra.mrb[0].mxu0 (%p920_p11), %vm1132_vm2, %v10381_v37  ;;  %9702 = vmatmul.mubr.msk.bf16.vlgmr.msra.gmra.mrb[0].mxu1 (%p920_p11), %vm1132_vm2, %v10382_v44 }
 0x220   : >> { %v1836_v60 = vpack.c.bf16 %v1826_v56, %v1826_v56  ;;  %v1825_v63 = vmax.f32 %v1782_v2, %v1806_v36  ;;  %v1794_v43 = vld [vmem:[#allocation4 + $0xa0] ss:$2 sm:$0xff]  ;;  %v1818_v50 = vld [vmem:[#allocation4 + $0xa1] ss:$2 sm:$0xff]  ;;  %9693 = vmatprep.mubr.msk.bf16.mxu0 (%p920_p11), %vm1132_vm2, %v10383_v6  ;;  %9705 = vmatprep.mubr.msk.bf16.mxu1 (%p920_p11), %vm1132_vm2, %v10384_v23 }
 0x221   : >> { %v1840_v52 = vpack.c.bf16 %v1832_v5, %v1832_v5  ;;  %v1831_v24 = vmax.f32 %v1794_v43, %v1818_v50 }
 0x222   : >> { %1848 = vst.msk [vmem:[%s12231_s20 + $0x18] sm:$0x7] %vm1845_vm4, %v1836_v60  ;;  %v1835_v35 = vpack.c.bf16 %v1825_v63, %v1824_v22 }
 0x223   : >> { %1852 = vst.msk [vmem:[%s12231_s20 + $0x38] sm:$0x7] %vm1845_vm4, %v1840_v52  ;;  %v1839_v55 = vpack.c.bf16 %v1831_v24, %v1830_v57 }
 0x224   : >> { %1847 = vst.msk [vmem:[%s12231_s20 + $0x10] sm:$0xff] %vm1749_vm3, %v1835_v35 }
 0x225   : >> { %1851 = vst.msk [vmem:[%s12231_s20 + $0x30] sm:$0xff] %vm1749_vm3, %v1839_v55 }
 0x227   : > { %9694 = vmatmul.mubr.msk.bf16.gmra.mrb[4].mxu0 %vm1132_vm2, %v10385_v40  ;;  %9706 = vmatmul.mubr.msk.bf16.gmra.mrb[4].mxu1 %vm1132_vm2, %v10386_v17 }
 0x228   : > { %9697 = vmatprep.mubr.msk.bf16.mxu0 %vm1132_vm2, %v10387_v39  ;;  %9709 = vmatprep.mubr.msk.bf16.mxu1 %vm1132_vm2, %v10388_v30 }
 0x22f   : > { %9698 = vmatmul.mubr.msk.bf16.gmra.mrb[8].mxu0 %vm1132_vm2, %v10389_v58  ;;  %9710 = vmatmul.mubr.msk.bf16.gmra.mrb[8].mxu1 %vm1132_vm2, %v10390_v11 }
 0x2f2   : > { %v9691_v13 = vpop.f32.mrb[0].mxu0  ;;  %v9703_v42 = vpop.f32.mrb[0].mxu1 }
 0x2f3   : > { %v12358_v9 = vadd.f32 %v9691_v13, %v11810_v54  ;;  %v12361_v33 = vadd.f32 %v9703_v42, %v11810_v54  ;;  %v2051_v20 = vpop.f32.mrb[1].mxu0  ;;  %v2099_v4 = vpop.f32.mrb[1].mxu1 }
 0x2f4   : > { %v12364_v46 = vadd.f32 %v11810_v54, %v2051_v20  ;;  %v12367_v19 = vadd.f32 %v11810_v54, %v2099_v4  ;;  %v9692_v47 = vpop.f32.mrb[2].mxu0  ;;  %v9704_v14 = vpop.f32.mrb[2].mxu1 }
 0x2f5   : > { %v2148_v45 = vsub.f32 0.0, %v12358_v9  ;;  %v2160_v0 = vsub.f32 0.0, %v12361_v33  ;;  %v12372_v51 = vadd.f32 %v9692_v47, %v11810_v54  ;;  %v12375_v28 = vadd.f32 %v9704_v14, %v11810_v54  ;;  %v2054_v15 = vpop.f32.mrb[3].mxu0  ;;  %v2102_v32 = vpop.f32.mrb[3].mxu1 }
 0x2f6   : > { %v2146_v8 = vsub.f32 0.0, %v12364_v46  ;;  %v2158_v1 = vsub.f32 0.0, %v12367_v19  ;;  %v12380_v62 = vadd.f32 %v11810_v54, %v2054_v15  ;;  %v12383_v49 = vadd.f32 %v11810_v54, %v2102_v32 }
 0x2f7   : > { %v2174_v26 = vmul.f32 1.442695, %v2148_v45  ;;  %v2198_v7 = vmul.f32 1.442695, %v2160_v0  ;;  %v2149_v38 = vsub.f32 0.0, %v12372_v51  ;;  %v2161_v61 = vsub.f32 0.0, %v12375_v28 }
 0x2f8   : > { %v2170_v21 = vmul.f32 1.442695, %v2146_v8  ;;  %v2194_v25 = vmul.f32 1.442695, %v2158_v1  ;;  %v2147_v31 = vsub.f32 0.0, %v12380_v62  ;;  %v2159_v29 = vsub.f32 0.0, %v12383_v49 }
 0x2f9   : > { %10391 = vpow2.f32 %v2174_v26  ;;  %v2176_v59 = vmul.f32 1.442695, %v2149_v38  ;;  %v2200_v41 = vmul.f32 1.442695, %v2161_v61 }
 0x2fa   : > { %10393 = vpow2.f32 %v2198_v7  ;;  %v9695_v56 = vpop.f32.mrb[4].mxu0  ;;  %v9707_v10 = vpop.f32.mrb[4].mxu1  ;;  %v2172_v53 = vmul.f32 1.442695, %v2147_v31  ;;  %v2196_v60 = vmul.f32 1.442695, %v2159_v29 }
 0x2fb   : > { %10395 = vpow2.f32 %v2170_v21  ;;  %v12390_v5 = vadd.f32 %v9695_v56, %v11810_v54  ;;  %v12393_v2 = vadd.f32 %v9707_v10, %v11810_v54  ;;  %v2067_v36 = vpop.f32.mrb[5].mxu0  ;;  %v2115_v22 = vpop.f32.mrb[5].mxu1 }
 0x2fc   : > { %10397 = vpow2.f32 %v2194_v25  ;;  %v12396_v63 = vadd.f32 %v11810_v54, %v2067_v36  ;;  %v12399_v43 = vadd.f32 %v11810_v54, %v2115_v22  ;;  %v9696_v50 = vpop.f32.mrb[6].mxu0  ;;  %v9708_v57 = vpop.f32.mrb[6].mxu1 }
 0x2fd   : > { %10399 = vpow2.f32 %v2176_v59  ;;  %v2152_v52 = vsub.f32 0.0, %v12390_v5  ;;  %v2164_v24 = vsub.f32 0.0, %v12393_v2  ;;  %v12404_v35 = vadd.f32 %v9696_v50, %v11810_v54  ;;  %v2070_v55 = vpop.f32.mrb[7].mxu0  ;;  %v2118_v48 = vpop.f32.mrb[7].mxu1 }
 0x2fe   : > { %10401 = vpow2.f32 %v2200_v41  ;;  %v2150_v34 = vsub.f32 0.0, %v12396_v63  ;;  %v2162_v18 = vsub.f32 0.0, %v12399_v43  ;;  %v12410_v45 = vadd.f32 %v9708_v57, %v11810_v54 }
 0x2ff   : > { %10403 = vpow2.f32 %v2172_v53  ;;  %v2182_v12 = vmul.f32 1.442695, %v2152_v52  ;;  %v2206_v27 = vmul.f32 1.442695, %v2164_v24  ;;  %v2153_v16 = vsub.f32 0.0, %v12404_v35 }
 0x300   : > { %10405 = vpow2.f32 %v2196_v60  ;;  %v2178_v37 = vmul.f32 1.442695, %v2150_v34  ;;  %v2202_v40 = vmul.f32 1.442695, %v2162_v18  ;;  %v12413_v8 = vadd.f32 %v11810_v54, %v2070_v55 }
 0x301   : > { %10407 = vpow2.f32 %v2182_v12  ;;  %v2184_v3 = vmul.f32 1.442695, %v2153_v16  ;;  %v12416_v1 = vadd.f32 %v11810_v54, %v2118_v48  ;;  %v2165_v25 = vsub.f32 0.0, %v12410_v45 }
 0x302   : > { %10409 = vpow2.f32 %v2206_v27  ;;  %v9699_v44 = vpop.f32.mrb[8].mxu0  ;;  %v9711_v6 = vpop.f32.mrb[8].mxu1  ;;  %v2151_v59 = vsub.f32 0.0, %v12413_v8 }
 0x303   : > { %v10392_v23 = vpop.eup %10391  ;;  %v2083_v17 = vpop.f32.mrb[9].mxu0  ;;  %10411 = vpow2.f32 %v2184_v3  ;;  %v12420_v31 = vadd.f32 %v9699_v44, %v11810_v54  ;;  %v2163_v41 = vsub.f32 0.0, %v12416_v1  ;;  %v12425_v56 = vadd.f32 %v9711_v6, %v11810_v54 }
 0x304   : > { %v2131_v39 = vpop.f32.mrb[9].mxu1  ;;  %v10394_v30 = vpop.eup %10393  ;;  %v2220_v58 = vadd.f32 1.0, %v10392_v23  ;;  %10413 = vpow2.f32 %v2178_v37  ;;  %v12428_v22 = vadd.f32 %v11810_v54, %v2083_v17  ;;  %v2208_v52 = vmul.f32 1.442695, %v2165_v25 }
 0x305   : > { %v9700_v11 = vpop.f32.mrb[10].mxu0  ;;  %v9712_v13 = vpop.f32.mrb[10].mxu1  ;;  %v2232_v20 = vadd.f32 1.0, %v10394_v30  ;;  %10415 = vpow2.f32 %v2202_v40  ;;  %v12431_v57 = vadd.f32 %v11810_v54, %v2131_v39  ;;  %v2156_v24 = vsub.f32 0.0, %v12420_v31 }
 0x306   : > { %v10396_v42 = vpop.eup %10395  ;;  %v2086_v4 = vpop.f32.mrb[11].mxu0  ;;  %10417 = vrcp.f32 %v2220_v58  ;;  %v12435_v55 = vadd.f32 %v9700_v11, %v11810_v54  ;;  %v2180_v34 = vmul.f32 1.442695, %v2151_v59  ;;  %v2168_v18 = vsub.f32 0.0, %v12425_v56 }
 0x307   : > { %v10398_v47 = vpop.eup %10397  ;;  %v2218_v14 = vadd.f32 1.0, %v10396_v42  ;;  %v2134_v0 = vpop.f32.mrb[11].mxu1  ;;  %10419 = vrcp.f32 %v2232_v20  ;;  %v12439_v12 = vadd.f32 %v9712_v13, %v11810_v54  ;;  %v2154_v3 = vsub.f32 0.0, %v12428_v22 }
 0x308   : > { %v10400_v15 = vpop.eup %10399  ;;  %v2230_v32 = vadd.f32 1.0, %v10398_v47  ;;  %v12443_v37 = vadd.f32 %v11810_v54, %v2086_v4  ;;  %v2204_v6 = vmul.f32 1.442695, %v2163_v41  ;;  %v2166_v23 = vsub.f32 0.0, %v12431_v57 }
 0x309   : > { %v10402_v26 = vpop.eup %10401  ;;  %v2221_v7 = vadd.f32 1.0, %v10400_v15  ;;  %10421 = vrcp.f32 %v2218_v14  ;;  %v12447_v40 = vadd.f32 %v11810_v54, %v2134_v0  ;;  %v2190_v39 = vmul.f32 1.442695, %v2156_v24 }
 0x30a   : > { %v10404_v38 = vpop.eup %10403  ;;  %v2233_v61 = vadd.f32 1.0, %v10402_v26  ;;  %10423 = vrcp.f32 %v2230_v32  ;;  %v2157_v30 = vsub.f32 0.0, %v12435_v55  ;;  %v2214_v11 = vmul.f32 1.442695, %v2168_v18 }
 0x30b   : > { %v10406_v21 = vpop.eup %10405  ;;  %10425 = vrcp.f32 %v2221_v7  ;;  %v2219_v53 = vadd.f32 1.0, %v10404_v38  ;;  %v2169_v13 = vsub.f32 0.0, %v12439_v12  ;;  %v2186_v20 = vmul.f32 1.442695, %v2154_v3 }
 0x30c   : > { %v10408_v29 = vpop.eup %10407  ;;  %10427 = vrcp.f32 %v2233_v61  ;;  %v2231_v60 = vadd.f32 1.0, %v10406_v21  ;;  %v2155_v4 = vsub.f32 0.0, %v12443_v37  ;;  %v2210_v54 = vmul.f32 1.442695, %v2166_v23 }
 0x30d   : > { %v10410_v10 = vpop.eup %10409  ;;  %v2224_v36 = vadd.f32 1.0, %v10408_v29  ;;  %v2167_v14 = vsub.f32 0.0, %v12447_v40  ;;  %v2192_v15 = vmul.f32 1.442695, %v2157_v30  ;;  %v2216_v26 = vmul.f32 1.442695, %v2169_v13 }
 0x30e   : > { %v2236_v50 = vadd.f32 1.0, %v10410_v10  ;;  %v10412_v48 = vpop.eup %10411  ;;  %v2188_v38 = vmul.f32 1.442695, %v2155_v4 }
 0x30f   : > { %10429 = vrcp.f32 %v2224_v36  ;;  %v10414_v27 = vpop.eup %10413  ;;  %v2225_v16 = vadd.f32 1.0, %v10412_v48  ;;  %v2212_v29 = vmul.f32 1.442695, %v2167_v14 }
 0x310   : > { %10431 = vrcp.f32 %v2236_v50  ;;  %v10416_v44 = vpop.eup %10415 }
 0x311   : > { %10433 = vrcp.f32 %v2219_v53  ;;  %v12449_v17 = vpop.eup %10417  ;;  %v2222_v53 = vadd.f32 1.0, %v10414_v27  ;;  %v2234_v50 = vadd.f32 1.0, %v10416_v44 }
 0x312   : > { %10435 = vrcp.f32 %v2231_v60  ;;  %v12452_v58 = vpop.eup %10419 }
 0x313   : > { %10437 = vrcp.f32 %v2225_v16  ;;  %v10422_v42 = vpop.eup %10421 }
 0x314   : > { %10439 = vpow2.f32 %v2208_v52  ;;  %v10424_v47 = vpop.eup %10423  ;;  %v2266_v21 = vmul.f32 %v10422_v42, %v12364_v46 }
 0x315   : > { %10441 = vpow2.f32 %v2180_v34  ;;  %v12457_v0 = vpop.eup %10425  ;;  %v2278_v41 = vmul.f32 %v10424_v47, %v12367_v19 }
 0x316   : > { %10443 = vpow2.f32 %v2204_v6  ;;  %v12459_v32 = vpop.eup %10427 }
 0x317   : > { %10445 = vpow2.f32 %v2190_v39 }
 0x318   : > { %10447 = vpow2.f32 %v2214_v11 }
 0x319   : > { %v10430_v7 = vpop.eup %10429  ;;  %10449 = vpow2.f32 %v2186_v20 }
 0x31a   : > { %v10432_v61 = vpop.eup %10431  ;;  %v2272_v25 = vmul.f32 %v10430_v7, %v12390_v5  ;;  %10451 = vpow2.f32 %v2210_v54 }
 0x31b   : > { %v10434_v59 = vpop.eup %10433  ;;  %v2284_v10 = vmul.f32 %v10432_v61, %v12393_v2  ;;  %10453 = vpow2.f32 %v2192_v15 }
 0x31c   : > { %v10436_v36 = vpop.eup %10435  ;;  %v2290_v60 = vmax.f32 %v2266_v21, %v2272_v25  ;;  %10455 = vpow2.f32 %v2216_v26  ;;  %v2267_v46 = vmul.f32 %v10434_v59, %v12380_v62 }
 0x31d   : > { %v10438_v52 = vpop.eup %10437  ;;  %v2296_v24 = vmax.f32 %v2278_v41, %v2284_v10  ;;  %10457 = vpow2.f32 %v2188_v38  ;;  %v2279_v61 = vmul.f32 %v10436_v36, %v12383_v49  ;;  %v2268_v49 = vmul.f32 %v12449_v17, %v12358_v9 }
 0x31e   : > { %v10440_v48 = vpop.eup %10439  ;;  %2303 = vst.msk [vmem:[#allocation4] sm:$0xff] %vm1749_vm3, %v2290_v60  ;;  %v2273_v5 = vmul.f32 %v10438_v52, %v12404_v35  ;;  %10459 = vpow2.f32 %v2212_v29 }
 0x31f   : > { %v10442_v19 = vpop.eup %10441  ;;  %2309 = vst.msk [vmem:[#allocation4 + $0x30] sm:$0xff] %vm1749_vm3, %v2296_v24  ;;  %10461 = vrcp.f32 %v2222_v53  ;;  %v2237_v2 = vadd.f32 1.0, %v10440_v48 }
 0x320   : > { %v10444_v34 = vpop.eup %10443  ;;  %10463 = vrcp.f32 %v2234_v50  ;;  %v2291_v18 = vmax.f32 %v2267_v46, %v2273_v5  ;;  %v2223_v27 = vadd.f32 1.0, %v10442_v19 }
 0x321   : > { %v10446_v16 = vpop.eup %10445  ;;  %10465 = vrcp.f32 %v2237_v2  ;;  %v2235_v3 = vadd.f32 1.0, %v10444_v34 }
 0x322   : > { %v10448_v44 = vpop.eup %10447  ;;  %2304 = vst.msk [vmem:[#allocation4 + $0x8] sm:$0xff] %vm1749_vm3, %v2291_v18  ;;  %10467 = vrcp.f32 %v2223_v27  ;;  %v2228_v62 = vadd.f32 1.0, %v10446_v16 }
 0x323   : > { %v10450_v6 = vpop.eup %10449  ;;  %10469 = vrcp.f32 %v2235_v3  ;;  %v2240_v35 = vadd.f32 1.0, %v10448_v44 }
 0x324   : > { %v10452_v23 = vpop.eup %10451  ;;  %10471 = vrcp.f32 %v2228_v62  ;;  %v2226_v39 = vadd.f32 1.0, %v10450_v6 }
 0x325   : > { %v10454_v30 = vpop.eup %10453  ;;  %10473 = vrcp.f32 %v2240_v35  ;;  %v2238_v11 = vadd.f32 1.0, %v10452_v23 }
 0x326   : > { %v10456_v13 = vpop.eup %10455  ;;  %10475 = vrcp.f32 %v2226_v39  ;;  %v2229_v42 = vadd.f32 1.0, %v10454_v30 }
 0x327   : > { %v10458_v20 = vpop.eup %10457  ;;  %10477 = vrcp.f32 %v2238_v11  ;;  %v2241_v4 = vadd.f32 1.0, %v10456_v13 }
 0x328   : > { %v10460_v47 = vpop.eup %10459  ;;  %10479 = vrcp.f32 %v2229_v42  ;;  %v2227_v54 = vadd.f32 1.0, %v10458_v20 }
 0x329   : > { %v10462_v14 = vpop.eup %10461  ;;  %10481 = vrcp.f32 %v2241_v4  ;;  %v2239_v15 = vadd.f32 1.0, %v10460_v47 }
 0x32a   : > { %v10464_v26 = vpop.eup %10463  ;;  %10483 = vrcp.f32 %v2227_v54  ;;  %v2270_v10 = vmul.f32 %v10462_v14, %v12396_v63  ;;  %v2280_v63 = vmul.f32 %v12452_v58, %v12361_v33 }
 0x32b   : > { %v10466_v7 = vpop.eup %10465  ;;  %10485 = vrcp.f32 %v2239_v15  ;;  %v2282_v50 = vmul.f32 %v10464_v26, %v12399_v43 }
 0x32c   : > { %v10468_v38 = vpop.eup %10467  ;;  %v2285_v21 = vmul.f32 %v10466_v7, %v12410_v45 }
 0x32d   : > { %v10470_v25 = vpop.eup %10469  ;;  %v2271_v43 = vmul.f32 %v10468_v38, %v12413_v8 }
 0x32e   : > { %v10472_v29 = vpop.eup %10471  ;;  %v2297_v59 = vmax.f32 %v2279_v61, %v2285_v21  ;;  %v2283_v9 = vmul.f32 %v10470_v25, %v12416_v1 }
 0x32f   : > { %v10474_v41 = vpop.eup %10473  ;;  %v2276_v53 = vmul.f32 %v10472_v29, %v12420_v31 }
 0x330   : > { %v10476_v60 = vpop.eup %10475  ;;  %2310 = vst.msk [vmem:[#allocation4 + $0x38] sm:$0xff] %vm1749_vm3, %v2297_v59  ;;  %v2288_v52 = vmul.f32 %v10474_v41, %v12425_v56 }
 0x331   : > { %v10478_v24 = vpop.eup %10477  ;;  %v2294_v45 = vmax.f32 %v2270_v10, %v2276_v53  ;;  %v2274_v36 = vmul.f32 %v10476_v60, %v12428_v22 }
 0x332   : > { %v10480_v48 = vpop.eup %10479  ;;  %v2300_v46 = vmax.f32 %v2282_v50, %v2288_v52  ;;  %v2286_v31 = vmul.f32 %v10478_v24, %v12431_v57  ;;  %v2269_v57 = vmul.f32 %v12457_v0, %v12372_v51  ;;  %v2315_v51 = vld [vmem:[#allocation4] ss:$2 sm:$0xff] }
 0x333   : > { %v10482_v5 = vpop.eup %10481  ;;  %2307 = vst.msk [vmem:[#allocation4 + $0x20] sm:$0xff] %vm1749_vm3, %v2294_v45  ;;  %v2292_v56 = vmax.f32 %v2268_v49, %v2274_v36  ;;  %v2277_v19 = vmul.f32 %v10480_v48, %v12435_v55  ;;  %v2281_v55 = vmul.f32 %v12459_v32, %v12375_v28 }
 0x334   : > { %v10484_v2 = vpop.eup %10483  ;;  %2313 = vst.msk [vmem:[#allocation4 + $0x50] sm:$0xff] %vm1749_vm3, %v2300_v46  ;;  %v2298_v22 = vmax.f32 %v2280_v63, %v2286_v31  ;;  %v2289_v17 = vmul.f32 %v10482_v5, %v12439_v12 }
 0x335   : > { %v10486_v33 = vpop.eup %10485  ;;  %2305 = vst.msk [vmem:[#allocation4 + $0x10] sm:$0xff] %vm1749_vm3, %v2292_v56  ;;  %v2295_v8 = vmax.f32 %v2271_v43, %v2277_v19  ;;  %v2275_v58 = vmul.f32 %v10484_v2, %v12443_v37  ;;  %v2327_v37 = vld [vmem:[#allocation4 + $0x1] ss:$2 sm:$0xff] }
 0x336   : > { %2311 = vst.msk [vmem:[#allocation4 + $0x40] sm:$0xff] %vm1749_vm3, %v2298_v22  ;;  %v2301_v1 = vmax.f32 %v2283_v9, %v2289_v17  ;;  %v2287_v34 = vmul.f32 %v10486_v33, %v12447_v40  ;;  %v2338_v35 = vmax.f32 %v2315_v51, %v2327_v37 }
 0x337   : > { %2308 = vst.msk [vmem:[#allocation4 + $0x28] sm:$0xff] %vm1749_vm3, %v2295_v8  ;;  %v2293_v12 = vmax.f32 %v2269_v57, %v2275_v58  ;;  %v2321_v0 = vld [vmem:[#allocation4 + $0x30] ss:$2 sm:$0xff]  ;;  %v2333_v27 = vld [vmem:[#allocation4 + $0x31] ss:$2 sm:$0xff] }
 0x338   : > { %2314 = vst.msk [vmem:[#allocation4 + $0x58] sm:$0xff] %vm1749_vm3, %v2301_v1  ;;  %v2299_v18 = vmax.f32 %v2281_v55, %v2287_v34  ;;  %v2341_v13 = vmax.f32 %v2321_v0, %v2333_v27 }
 0x339   : > { %2306 = vst.msk [vmem:[#allocation4 + $0x18] sm:$0xff] %vm1749_vm3, %v2293_v12 }
 0x33a   : > { %2312 = vst.msk [vmem:[#allocation4 + $0x48] sm:$0xff] %vm1749_vm3, %v2299_v18 }
 0x33e   : > { %v2319_v28 = vld [vmem:[#allocation4 + $0x20] ss:$2 sm:$0x3f]  ;;  %v2331_v32 = vld [vmem:[#allocation4 + $0x21] ss:$2 sm:$0x3f] }
 0x33f   : > { %v2340_v16 = vmax.f32 %v2319_v28, %v2331_v32  ;;  %v2325_v3 = vld [vmem:[#allocation4 + $0x50] ss:$2 sm:$0x3f]  ;;  %v2337_v44 = vld [vmem:[#allocation4 + $0x51] ss:$2 sm:$0x3f] }
 0x340   : > { %v2343_v40 = vmax.f32 %v2325_v3, %v2337_v44  ;;  %v2317_v62 = vld [vmem:[#allocation4 + $0x10] ss:$2 sm:$0xff]  ;;  %v2329_v6 = vld [vmem:[#allocation4 + $0x11] ss:$2 sm:$0xff] }
 0x341   : > { %v2345_v23 = vpack.c.bf16 %v2340_v16, %v2340_v16  ;;  %v2339_v39 = vmax.f32 %v2317_v62, %v2329_v6  ;;  %v2323_v30 = vld [vmem:[#allocation4 + $0x40] ss:$2 sm:$0xff]  ;;  %v2335_v11 = vld [vmem:[#allocation4 + $0x41] ss:$2 sm:$0xff] }
 0x342   : > { %v2347_v42 = vpack.c.bf16 %v2343_v40, %v2343_v40  ;;  %v2342_v20 = vmax.f32 %v2323_v30, %v2335_v11 }
 0x343   : > { %2351 = vst.msk [vmem:[#allocation2 + $0x148] sm:$0x7] %vm1845_vm4, %v2345_v23  ;;  %v2344_v4 = vpack.c.bf16 %v2339_v39, %v2338_v35 }
 0x344   : > { %2353 = vst.msk [vmem:[#allocation2 + $0x158] sm:$0x7] %vm1845_vm4, %v2347_v42  ;;  %v2346_v47 = vpack.c.bf16 %v2342_v20, %v2341_v13 }
 0x345   : > { %2349 = vst.msk [vmem:[#allocation2 + $0x140] sm:$0xff] %vm1749_vm3, %v2344_v4 }
 0x346   : > { %2352 = vst.msk [vmem:[#allocation2 + $0x150] sm:$0xff] %vm1749_vm3, %v2346_v47 }
 0x347   : > { %10713 = dma.done.wait [#allocation9], 12800 }
 0x348   : > { %10714 = vsyncadd [#allocation9], 4294954496  ;;  %v12508_v54 = vld [vmem:[%s14537_s4] ss:$0 sm:$0xff]  ;;  %s12510_s21 = smov 0  }
 0x349   : > { %14613 = vst [vmem:[#allocation17_spill] sm:$0xff] %v12508_v54 }
 0x34a LB: >> { %v14568_v14 = vmov 0.0   ;;  %v3376_v15 = vld [vmem:[#allocation7 + $0x120] sm:$0xff]  ;;  %s8826_s19 = smul.u32 96, %s10743_s21  ;;  %vm10747_vm5 = vmmov 0   ;;  %v3377_v38 = vld [vmem:[#allocation7 + $0x128] sm:$0xff]  ;;  %v3370_v25 = vld [vmem:[#allocation7 + $0xf0] sm:$0xff]  ;;  %s10743_s21 = sphi %s12510_s21, %s2365_s21  }
 0x34b   : >> { %9713 = vmatprep.subr.bf16.mxu1 %v14568_v14  ;;  %v3368_v26 = vld [vmem:[#allocation7 + $0xe0] sm:$0xff]  ;;  %9721 = vmatprep.mubr.msk.bf16.mxu1 %vm10747_vm5, %v14568_v14  ;;  %v3369_v61 = vld [vmem:[#allocation7 + $0xe8] sm:$0xff]  ;;  %vm2553_vm6 = vsmask.f32 6400  ;;  %vm2407_vm7 = vsmask.f32 7424 }
 0x34c   : >> { %9714 = vmatpush3.bf16.msra.mxu1 %v3376_v15  ;;  %v3360_v7 = vld [vmem:[#allocation7 + $0xa0] sm:$0xff]  ;;  %8876 = vmatprep.subr.bf16.mxu0 %v3368_v26  ;;  %v3361_v21 = vld [vmem:[#allocation7 + $0xa8] sm:$0xff]  ;;  %s12520_s23 = scalar_lea.vmem [#allocation2], %s8826_s19  ;;  %v3378_v10 = vld [vmem:[#allocation7 + $0x130] sm:$0xff]  ;;  %s10748_s22 = smov 64   ;;  %vm2534_vm8 = vcmask 1046528  }
 0x34d   : >> { %9715 = vmatprep.subr.bf16.mxu1 %v14568_v14  ;;  %8877 = vmatpush3.bf16.msra.mxu0 %v3360_v7  ;;  %v12523_v29 = vld [vmem:[%s12520_s23 + $0x18] sm:$0x3f]  ;;  %v12526_v59 = vld [vmem:[%s12520_s23 + $0x10] sm:$0xfe]  ;;  %v12529_v41 = vld [vmem:[%s12520_s23 + $0x20] sm:$0xfe] }
 0x34e   : >> { %8878 = vmatprep.subr.bf16.mxu0 %v3369_v61  ;;  %v3068_v53 = vshrl.u32 %v12523_v29, 16  ;;  %v3071_v60 = vshll.u32 %v12523_v29, 16  ;;  %v3060_v50 = vshrl.u32 %v12526_v59, 16  ;;  %v3063_v52 = vshll.u32 %v12526_v59, 16  ;;  %v12536_v24 = vld [vmem:[%s12520_s23 + $0x28] sm:$0x3f] }
 0x34f   : >> { %v3077_v49 = vshrl.u32 %v12529_v41, 16  ;;  %v3080_v45 = vshll.u32 %v12529_v41, 16  ;;  %v3085_v36 = vshrl.u32 %v12536_v24, 16  ;;  %v3088_v48 = vshll.u32 %v12536_v24, 16  ;;  %v8526_v63 = vld [vmem:[%s12520_s23 + $0x10] sm:$0xff]  ;;  %v8528_v46 = vld [vmem:[%s12520_s23 + $0x20] sm:$0xff] }
 0x350   : >> { %9716 = vmatpush3.bf16.msra.mxu1 %v3377_v38  ;;  %v3362_v31 = vld [vmem:[#allocation7 + $0xb0] sm:$0xff]  ;;  %v3070_v5 = vrot.slane %v3068_v53, 1  ;;  %v3073_v43 = vrot.slane %v3071_v60, 2  ;;  %v3062_v56 = vrot.slane %v3060_v50, 1  ;;  %v3065_v19 = vrot.slane %v3063_v52, 2  ;;  %v3371_v34 = vld [vmem:[#allocation7 + $0xf8] sm:$0xff] }
 0x351   : >> { %9717 = vmatprep.subr.bf16.mxu1 %v14568_v14  ;;  %v12546_v2 = vld [vmem:[%s12520_s23 + $0x18] sm:$0x1f]  ;;  %8879 = vmatpush3.bf16.msra.mxu0 %v3361_v21  ;;  %v3079_v9 = vrot.slane %v3077_v49, 1  ;;  %v3082_v22 = vrot.slane %v3080_v45, 2  ;;  %v3087_v17 = vrot.slane %v3085_v36, 1  ;;  %v3090_v33 = vrot.slane %v3088_v48, 2 }
 0x352   : >> { %v12549_v57 = vld [vmem:[%s12520_s23 + $0x28] sm:$0x1f]  ;;  %8880 = vmatprep.subr.bf16.mxu0 %v3370_v25  ;;  %v3074_v8 = vor.u32 %v3073_v43, %v3070_v5  ;;  %v3066_v58 = vor.u32 %v3065_v19, %v3062_v56  ;;  %v2916_v55 = vshrl.u32 %v8526_v63, 16  ;;  %v2918_v1 = vshll.u32 %v8526_v63, 16  ;;  %v3379_v0 = vld [vmem:[#allocation7 + $0x138] sm:$0xff]  ;;  %v8530_v3 = vld [vmem:[%s12520_s23 + $0x30] sm:$0xff] }
 0x353   : >> { %v3083_v12 = vor.u32 %v3082_v22, %v3079_v9  ;;  %v12551_v18 = vor.u32 %v3090_v33, %v3087_v17  ;;  %v2923_v51 = vshll.u32 %v12546_v2, 16  ;;  %v2931_v37 = vshrl.u32 %v8528_v46, 16  ;;  %v12560_v44 = vld [vmem:[%s12520_s23 + $0x30] sm:$0xfe]  ;;  %v12567_v35 = vld [vmem:[%s12520_s23 + $0x38] sm:$0x1f] }
 0x354   : >> { %9718 = vmatpush3.bf16.msra.mxu1 %v3378_v10  ;;  %3163 = vrot.lane.b32.xlu1 %v3074_v8, %s10748_s22  ;;  %v3075_v27 = vsel %vm2553_vm6, %v3066_v58, %v3074_v8  ;;  %v2920_v28 = vrot.slane %v2918_v1, 1  ;;  %v2933_v32 = vshll.u32 %v8528_v46, 16  ;;  %v2938_v16 = vshll.u32 %v12549_v57, 16  ;;  %v3363_v23 = vld [vmem:[#allocation7 + $0xb8] sm:$0xff]  ;;  %v12575_v42 = vld [vmem:[%s12520_s23 + $0x40] sm:$0xfe] }
 0x355   : >> { %9719 = vmatprep.subr.bf16.mxu1 %v14568_v14  ;;  %8881 = vmatpush3.bf16.msra.mxu0 %v3362_v31  ;;  %v3092_v40 = vsel %vm2553_vm6, %v3083_v12, %v12551_v18  ;;  %v2925_v62 = vrot.slane %v2923_v51, 1  ;;  %v2927_v6 = vshrl.u32 %v12546_v2, 16  ;;  %v12572_v13 = vld [vmem:[%s12520_s23 + $0x38] sm:$0x3f]  ;;  %v2942_v20 = vshrl.u32 %v12549_v57, 16  ;;  %v3372_v26 = vld [vmem:[#allocation7 + $0x100] sm:$0xff] }
 0x356   : >> { %3161 = vrot.lane.b32.xlu0 %v3075_v27, %s10748_s22  ;;  %8882 = vmatprep.subr.bf16.mxu0 %v3371_v34  ;;  %v12569_v39 = vor.u32 %v2920_v28, %v2916_v55  ;;  %v2935_v30 = vrot.slane %v2933_v32, 1  ;;  %v2940_v11 = vrot.slane %v2938_v16, 1  ;;  %v2946_v4 = vshrl.u32 %v8530_v3, 16  ;;  %v12587_v25 = vld [vmem:[%s12520_s23 + $0x48] sm:$0x3f]  ;;  %v2863_v10 = vld [vmem:[#allocation7 + $0x40] sm:$0xff] }
 0x357   : >> { %v2948_v47 = vshll.u32 %v8530_v3, 16  ;;  %v3094_v15 = vshrl.u32 %v12560_v44, 16  ;;  %v2953_v61 = vshll.u32 %v12567_v35, 16  ;;  %v3097_v21 = vshll.u32 %v12560_v44, 16  ;;  %v3364_v63 = vld [vmem:[#allocation7 + $0xc0] sm:$0xff]  ;;  %v3373_v17 = vld [vmem:[#allocation7 + $0x108] sm:$0xff] }
 0x358   : >> { %9720 = vmatpush3.bf16.msra.mxu1 %v3379_v0  ;;  %3165 = vrot.lane.b32.xlu1 %v3092_v40, %s10748_s22  ;;  %v2926_v7 = vsel %vm2407_vm7, %v12569_v39, %v2925_v62  ;;  %v12582_v38 = vor.u32 %v2935_v30, %v2931_v37  ;;  %v2929_v53 = vor.u32 %v2927_v6, %v2925_v62  ;;  %v3102_v52 = vshrl.u32 %v12572_v13, 16  ;;  %v8532_v43 = vld [vmem:[%s12520_s23 + $0x40] sm:$0xff]  ;;  %v12604_v1 = vld [vmem:[%s12520_s23 + $0x48] sm:$0x1f]  ;;  %v3374_v27 = vld [vmem:[#allocation7 + $0x110] sm:$0xff]  ;;  %s8827_s29 = smul.u32 24, %s10743_s21 }
 0x359   : >> { %8883 = vmatpush3.bf16.msra.mxu0 %v3363_v23  ;;  %v2950_v60 = vrot.slane %v2948_v47, 1  ;;  %v3096_v50 = vrot.slane %v3094_v15, 1  ;;  %v3099_v45 = vrot.slane %v3097_v21, 2  ;;  %v3105_v36 = vshll.u32 %v12572_v13, 16  ;;  %8959 = vmatprep.subr.bf16.mxu1 %v2863_v10  ;;  %v3365_v34 = vld [vmem:[#allocation7 + $0xc8] sm:$0xff]  ;;  %v8534_v6 = vld [vmem:[%s12520_s23 + $0x50] sm:$0xff] }
 0x35a   : >> { %3005 = vrot.lane.b32.xlu0 %v2926_v7, %s10748_s22  ;;  %8884 = vmatprep.subr.bf16.mxu0 %v3372_v26  ;;  %v2941_v49 = vsel %vm2407_vm7, %v12582_v38, %v2940_v11  ;;  %v3111_v48 = vshrl.u32 %v12575_v42, 16  ;;  %v3104_v46 = vrot.slane %v3102_v52, 1  ;;  %v3114_v31 = vshll.u32 %v12575_v42, 16  ;;  %v3366_v23 = vld [vmem:[#allocation7 + $0xd0] sm:$0xff]  ;;  %v3375_v26 = vld [vmem:[#allocation7 + $0x118] sm:$0xff]  ;;  %s14447_s8 = scalar_lea.vmem [#allocation3], %s8827_s29 }
 0x35b   : >> { %v3119_v5 = vshrl.u32 %v12587_v25, 16  ;;  %v2944_v56 = vor.u32 %v2942_v20, %v2940_v11  ;;  %v2955_v19 = vrot.slane %v2953_v61, 1  ;;  %v3107_v9 = vrot.slane %v3105_v36, 2  ;;  %v12617_v11 = vld [vmem:[%s12520_s23 + $0x50] sm:$0xfe]  ;;  %v3367_v10 = vld [vmem:[#allocation7 + $0xd8] sm:$0xff] }
 0x35c   : >> { %3009 = vrot.lane.b32.xlu1 %v2941_v49, %s10748_s22  ;;  %v3122_v22 = vshll.u32 %v12587_v25, 16  ;;  %v12601_v33 = vor.u32 %v2950_v60, %v2946_v4  ;;  %v3113_v8 = vrot.slane %v3111_v48, 1  ;;  %v3116_v58 = vrot.slane %v3114_v31, 2  ;;  %v12620_v20 = vld [vmem:[%s12520_s23 + $0x58] sm:$0x3f]  ;;  %s2365_s21 = sadd.s32 1, %s10743_s21  }
 0x35d   : >> { %8885 = vmatpush3.bf16.msra.mxu0 %v3364_v63  ;;  %v3121_v55 = vrot.slane %v3119_v5, 1  ;;  %v3100_v12 = vor.u32 %v3099_v45, %v3096_v50  ;;  %v3108_v51 = vor.u32 %v3107_v9, %v3104_v46  ;;  %v2963_v0 = vshll.u32 %v8532_v43, 16  ;;  %v12630_v61 = vld [vmem:[%s12520_s23 + $0x58] sm:$0x1f]  ;;  %v12633_v21 = vld [vmem:[%s12520_s23 + $0x60] sm:$0xfe] }
 0x35e   : >> { %3007 = vrot.lane.b32.xlu0 %v2929_v53, %s10748_s22  ;;  %8886 = vmatprep.subr.bf16.mxu0 %v3373_v17  ;;  %v3124_v37 = vrot.slane %v3122_v22, 2  ;;  %v2961_v28 = vshrl.u32 %v8532_v43, 16  ;;  %v2968_v16 = vshll.u32 %v12604_v1, 16  ;;  %v2956_v3 = vsel %vm2407_vm7, %v12601_v33, %v2955_v19  ;;  %v12640_v49 = vld [vmem:[%s12520_s23 + $0x68] sm:$0x3f]  ;;  %v8536_v22 = vld [vmem:[%s12520_s23 + $0x60] sm:$0xff] }
 0x35f   : >> { %v2965_v32 = vrot.slane %v2963_v0, 1  ;;  %v3117_v40 = vor.u32 %v3116_v58, %v3113_v8  ;;  %v3109_v30 = vsel %vm2553_vm6, %v3100_v12, %v3108_v51  ;;  %v2957_v47 = vshrl.u32 %v12567_v35, 16  ;;  %p2362_p12 = scmp.ge.s32.totalorder %s2365_s21, 3  }
 0x360   : >> { %3011 = vrot.lane.b32.xlu1 %v2944_v56, %s10748_s22  ;;  %v12612_v62 = vor.u32 %v3124_v37, %v3121_v55  ;;  %v2970_v4 = vrot.slane %v2968_v16, 1  ;;  %v2978_v15 = vshll.u32 %v8534_v6, 16  ;;  %v3128_v53 = vshrl.u32 %v12617_v11, 16 }
 0x361   : >> { %8887 = vmatpush3.bf16.msra.mxu0 %v3365_v34  ;;  %v3131_v60 = vshll.u32 %v12617_v11, 16  ;;  %v3136_v50 = vshrl.u32 %v12620_v20, 16  ;;  %v3139_v52 = vshll.u32 %v12620_v20, 16  ;;  %v2972_v45 = vshrl.u32 %v12604_v1, 16 }
 0x362   : >> { %3167 = vrot.lane.b32.xlu0 %v12551_v18, %s10748_s22  ;;  %8888 = vmatprep.subr.bf16.mxu0 %v3374_v27  ;;  %v12623_v18 = vor.u32 %v2965_v32, %v2961_v28  ;;  %v3126_v7 = vsel %vm2553_vm6, %v3117_v40, %v12612_v62  ;;  %v2976_v36 = vshrl.u32 %v8534_v6, 16  ;;  %v2959_v63 = vor.u32 %v2957_v47, %v2955_v19  ;;  %v12659_v32 = vld [vmem:[%s12520_s23 + $0x68] sm:$0x1f]  ;;  %v12662_v40 = vld [vmem:[%s12520_s23] sm:$0xfe] }
 0x363   : >> { %v2980_v46 = vrot.slane %v2978_v15, 1  ;;  %v2983_v31 = vshll.u32 %v12630_v61, 16  ;;  %v3145_v5 = vshrl.u32 %v12633_v21, 16  ;;  %v3148_v43 = vshll.u32 %v12633_v21, 16  ;;  %v2371_v6 = vld [vmem:[%s12520_s23] sm:$0xff] }
 0x364   : >> { %3013 = vrot.lane.b32.xlu1 %v2956_v3, %s10748_s22  ;;  %v2971_v48 = vsel %vm2407_vm7, %v12623_v18, %v2970_v4  ;;  %v3153_v56 = vshrl.u32 %v12640_v49, 16  ;;  %v3156_v9 = vshll.u32 %v12640_v49, 16  ;;  %v3130_v17 = vrot.slane %v3128_v53, 1  ;;  %v12676_v53 = vld [vmem:[%s12520_s23 + $0x8] sm:$0x1f] }
 0x365   : >> { %8889 = vmatpush3.bf16.msra.mxu0 %v3366_v23  ;;  %v3133_v19 = vrot.slane %v3131_v60, 2  ;;  %v3138_v8 = vrot.slane %v3136_v50, 1  ;;  %v3141_v58 = vrot.slane %v3139_v52, 2  ;;  %v2974_v55 = vor.u32 %v2972_v45, %v2970_v4  ;;  %v2395_v23 = vld [vmem:[%s12520_s23 + $0x8] sm:$0x3f] }
 0x366   : >> { %3169 = vrot.lane.b32.xlu0 %v3109_v30, %s10748_s22  ;;  %8890 = vmatprep.subr.bf16.mxu0 %v3375_v26  ;;  %v12655_v34 = vor.u32 %v2980_v46, %v2976_v36  ;;  %v2985_v12 = vrot.slane %v2983_v31, 1  ;;  %v3147_v37 = vrot.slane %v3145_v5, 1  ;;  %v3150_v0 = vrot.slane %v3148_v43, 2 }
 0x367   : >> { %v3155_v27 = vrot.slane %v3153_v56, 1  ;;  %v3158_v28 = vrot.slane %v3156_v9, 2  ;;  %v3134_v16 = vor.u32 %v3133_v19, %v3130_v17  ;;  %v3142_v3 = vor.u32 %v3141_v58, %v3138_v8  ;;  %v12687_v56 = vld [vmem:[%s12520_s23 + $0x10] sm:$0xfe]  ;;  %v2396_v8 = vld [vmem:[%s12520_s23 + $0x18] sm:$0x3f] }
 0x368   : >> { %3173 = vrot.lane.b32.xlu1 %v3126_v7, %s10748_s22  ;;  %v2986_v30 = vsel %vm2407_vm7, %v12655_v34, %v2985_v12  ;;  %v2991_v4 = vshrl.u32 %v8536_v22, 16  ;;  %v2998_v15 = vshll.u32 %v12659_v32, 16  ;;  %v3151_v26 = vor.u32 %v3150_v0, %v3147_v37  ;;  %v8556_v0 = vld [vmem:[%s12520_s23 + $0x10] sm:$0xfc] }
 0x369   : >> { %8891 = vmatpush3.bf16.msra.mxu0 %v3367_v10  ;;  %v12672_v7 = vor.u32 %v3158_v28, %v3155_v27  ;;  %v2555_v10 = vshrl.u32 %v12662_v40, 16  ;;  %v2411_v60 = vshll.u32 %v2371_v6, 16  ;;  %v3143_v50 = vsel %vm2553_vm6, %v3134_v16, %v3142_v3 }
 0x36a   : >> { %3171 = vrot.lane.b32.xlu0 %v3108_v51, %s10748_s22  ;;  %9757 = vmatprep.subr.bf16.mxu0 %v14568_v14  ;;  %v2993_v51 = vshll.u32 %v8536_v22, 16  ;;  %v2558_v52 = vshll.u32 %v12662_v40, 16  ;;  %v2563_v45 = vshrl.u32 %v2395_v23, 16  ;;  %v2566_v36 = vshll.u32 %v2395_v23, 16 }
 0x36b   : >> { %v2416_v46 = vshll.u32 %v12676_v53, 16  ;;  %v3160_v31 = vsel %vm2553_vm6, %v3151_v26, %v12672_v7  ;;  %v2409_v5 = vshrl.u32 %v2371_v6, 16  ;;  %v2413_v43 = vrot.slane %v2411_v60, 1  ;;  %v8557_v26 = vld [vmem:[%s12520_s23 + $0x20] sm:$0xfc] }
 0x36c   : >> { %3017 = vrot.lane.b32.xlu1 %v2971_v48, %s10748_s22  ;;  %v2995_v47 = vrot.slane %v2993_v51, 1  ;;  %v2557_v9 = vrot.slane %v2555_v10, 1  ;;  %v2560_v22 = vrot.slane %v2558_v52, 2  ;;  %v2565_v17 = vrot.slane %v2563_v45, 1  ;;  %v12705_v52 = vld [vmem:[%s12520_s23 + $0x18] sm:$0x1f] }
 0x36d   : >> { %v2568_v19 = vrot.slane %v2566_v36, 2  ;;  %v2418_v51 = vrot.slane %v2416_v46, 1  ;;  %v2572_v37 = vshrl.u32 %v12687_v56, 16  ;;  %v2414_v27 = vor.u32 %v2413_v43, %v2409_v5 }
 0x36e   : >> { %3015 = vrot.lane.b32.xlu0 %v2959_v63, %s10748_s22  ;;  %v2996_v48 = vor.u32 %v2995_v47, %v2991_v4  ;;  %v2987_v63 = vshrl.u32 %v12630_v61, 16  ;;  %v2575_v28 = vshll.u32 %v12687_v56, 16  ;;  %v2580_v16 = vshrl.u32 %v2396_v8, 16 }
 0x36f   : >> { %v2583_v6 = vshll.u32 %v2396_v8, 16  ;;  %v2561_v23 = vor.u32 %v2560_v22, %v2557_v9  ;;  %v3197_v4 = vrot.slane %v8556_v0, 2  ;;  %v2574_v47 = vrot.slane %v2572_v37, 1  ;;  %v2397_v8 = vld [vmem:[%s12520_s23 + $0x28] sm:$0x3f] }
 0x370   : >> { %3019 = vrot.lane.b32.xlu1 %v2974_v55, %s10748_s22  ;;  %v2989_v55 = vor.u32 %v2987_v63, %v2985_v12  ;;  %v3002_v12 = vshrl.u32 %v12659_v32, 16  ;;  %v2577_v10 = vrot.slane %v2575_v28, 2  ;;  %v2582_v60 = vrot.slane %v2580_v16, 1  ;;  %v2864_v63 = vld [vmem:[#allocation7 + $0x48] sm:$0xff] }
 0x371   : >> { %v3201_v5 = vrot.slane %v12536_v24, 2  ;;  %v2420_v22 = vshrl.u32 %v12676_v53, 16  ;;  %v2435_v28 = vshrl.u32 %v12705_v52, 16  ;;  %v14618_v54 = vrot.slane %v12630_v61, 1 }
 0x372   : >> { %3175 = vrot.lane.b32.xlu0 %v12612_v62, %s10748_s22  ;;  %v3000_v62 = vrot.slane %v2998_v15, 1  ;;  %v3198_v15 = vrot.slane %v12523_v29, 2  ;;  %v3200_v29 = vrot.slane %v8557_v26, 2  ;;  %v2578_v43 = vor.u32 %v2577_v10, %v2574_v47 }
 0x373   : >> { %v2600_v47 = vshll.u32 %v2397_v8, 16  ;;  %v3041_v10 = vrot.slane %v12526_v59, 1  ;;  %vm6544_vm9 = vsmask.f32 4352 }
 0x374   : >> { %3021 = vrot.lane.b32.xlu1 %v2986_v30, %s10748_s22  ;;  %v3001_v58 = vsel %vm2407_vm7, %v2996_v48, %v3000_v62  ;;  %v12696_v30 = vor.u32 %v2568_v19, %v2565_v17  ;;  %v3199_v36 = vsel %vm1206_vm1, %v3197_v4, %v3198_v15  ;;  %v2855_v48 = vld [vmem:[#allocation7] sm:$0xff]  ;;  %v3004_v46 = vor.u32 %v3002_v12, %v3000_v62  ;;  %v2856_v19 = vld [vmem:[#allocation7 + $0x8] sm:$0xff]  ;;  %vm14441_vm10 = vmand %vm1205_vm0, %vm6544_vm9 }
 0x375   : >> { %9722 = vmatmul.mubr.msk.bf16.vlgmr.msra.gmra.mrb[0].mxu1 %vm1749_vm3, %v3199_v36  ;;  %v12721_v17 = vld [vmem:[%s12520_s23 + $0x20] sm:$0xfe]  ;;  %v3202_v62 = vsel %vm1206_vm1, %v3200_v29, %v3201_v5  ;;  %v2597_v12 = vshrl.u32 %v2397_v8, 16 }
 0x376   : >> { %3177 = vrot.lane.b32.xlu0 %v3143_v50, %s10748_s22  ;;  %v2585_v50 = vrot.slane %v2583_v6, 2  ;;  %v2570_v45 = vsel %vm2553_vm6, %v2561_v23, %v12696_v30  ;;  %9725 = vmatprep.mubr.msk.bf16.mxu1 %vm10747_vm5, %v14568_v14  ;;  %v8564_v24 = vcombine.low %v3198_v15, %v3202_v62  ;;  %v2589_v16 = vshrl.u32 %v12721_v17, 16  ;;  %v12736_v6 = vld [vmem:[%s12520_s23 + $0x30] sm:$0xfe]  ;;  %v2398_v23 = vld [vmem:[%s12520_s23 + $0x38] sm:$0x3f] }
 0x377   : >> { %8960 = vmatpush3.bf16.msra.mxu1 %v2855_v48  ;;  %v2592_v4 = vshll.u32 %v12721_v17, 16  ;;  %v3319_v26 = vunpack.c.h.b16 %v3202_v62  ;;  %v2609_v36 = vshll.u32 %v12736_v6, 16  ;;  %v3044_v48 = vrot.slane %v12529_v41, 1  ;;  %v2858_v41 = vld [vmem:[#allocation7 + $0x18] sm:$0xff]  ;;  %v2867_v62 = vld [vmem:[#allocation7 + $0x60] sm:$0xff] }
 0x378   : >> { %3181 = vrot.lane.b32.xlu1 %v3160_v31, %s10748_s22  ;;  %v2431_v31 = vshll.u32 %v12705_v52, 16  ;;  %v12717_v9 = vor.u32 %v2585_v50, %v2582_v60  ;;  %8961 = vmatprep.subr.bf16.mxu1 %v2864_v63  ;;  %v2866_v60 = vld [vmem:[#allocation7 + $0x58] sm:$0xff]  ;;  %v2614_v29 = vshrl.u32 %v2398_v23, 16  ;;  %v2617_v59 = vshll.u32 %v2398_v23, 16 }
 0x37a   : >> { %3179 = vrot.lane.b32.xlu0 %v3142_v3, %s10748_s22  ;;  %v2419_v3 = vsel %vm2407_vm7, %v2414_v27, %v2418_v51  ;;  %v2433_v37 = vrot.slane %v2431_v31, 1  ;;  %v2587_v0 = vsel %vm2553_vm6, %v2578_v43, %v12717_v9  ;;  %v2422_v27 = vor.u32 %v2420_v22, %v2418_v51 }
 0x37b   : >> { %8962 = vmatpush3.bf16.msra.mxu1 %v2856_v19  ;;  %v3322_v51 = vunpack.c.l.b16 %v3201_v5  ;;  %v2594_v31 = vrot.slane %v2592_v4, 2  ;;  %v2599_v5 = vrot.slane %v2597_v12, 1  ;;  %v2602_v43 = vrot.slane %v2600_v47, 2  ;;  %v12771_v47 = vld [vmem:[%s12520_s23 + $0x38] sm:$0x1f] }
 0x37c   : >> { %3025 = vrot.lane.b32.xlu1 %v3001_v58, %s10748_s22  ;;  %v12726_v58 = vld [vmem:[%s12520_s23 + $0x28] sm:$0x1f]  ;;  %v2434_v50 = vsel %vm2407_vm7, %v12569_v39, %v2433_v37  ;;  %v14557_v39 = vrot.slane %v12549_v57, 1  ;;  %v2437_v19 = vor.u32 %v2435_v28, %v2433_v37  ;;  %v2619_v23 = vrot.slane %v2617_v59, 2 }
 0x37d   : >> { %v2446_v15 = vshll.u32 %v12726_v58, 16  ;;  %9726 = vmatmul.mubr.msk.bf16.gmra.mrb[4].mxu1 %vm1749_vm3, %v8564_v24  ;;  %v3388_v22 = vpack.c.b16 %v3322_v51, %v3319_v26  ;;  %v8558_v24 = vld [vmem:[%s12520_s23 + $0x30] sm:$0xfc]  ;;  %v2603_v12 = vor.u32 %v2602_v43, %v2599_v5  ;;  %v3204_v28 = vrot.slane %v12572_v13, 2  ;;  %v2399_v59 = vld [vmem:[%s12520_s23 + $0x48] sm:$0x3f] }
 0x37e   : >> { %3023 = vrot.lane.b32.xlu0 %v2989_v55, %s10748_s22  ;;  %v2865_v55 = vld [vmem:[#allocation7 + $0x50] sm:$0xff]  ;;  %9729 = vmatprep.mubr.msk.bf16.mxu1 %vm10747_vm5, %v14568_v14  ;;  %v3203_v37 = vrot.slane %v8558_v24, 2  ;;  %v3207_v43 = vrot.slane %v12587_v25, 2 }
 0x37f   : >> { %8963 = vmatprep.subr.bf16.mxu1 %v2865_v55  ;;  %v12766_v8 = vrot.slane %v2446_v15, 1  ;;  %v2868_v15 = vld [vmem:[#allocation7 + $0x68] sm:$0xff] }
 0x380   : >> { %2498 = vrot.lane.b32.xlu1 %v2419_v3, %s10748_s22  ;;  %v3042_v3 = vrot.slane %v12546_v2, 1  ;;  %v13034_v2 = vld [vmem:[%s12520_s23 + $0x70] sm:$0xff] }
 0x382   : >> { %2656 = vrot.lane.b32.xlu0 %v2570_v45, %s10748_s22  ;;  %v2606_v45 = vshrl.u32 %v12736_v6, 16  ;;  %v12757_v63 = vsel %vm2534_vm8, %v3041_v10, %v3042_v3  ;;  %v2461_v10 = vshll.u32 %v12771_v47, 16 }
 0x384   : >> { %3027 = vrot.lane.b32.xlu1 %v3004_v46, %s10748_s22  ;;  %v2591_v46 = vrot.slane %v2589_v16, 1  ;;  %v2608_v55 = vrot.slane %v2606_v45, 1  ;;  %v2616_v16 = vrot.slane %v2614_v29, 1  ;;  %v14556_v29 = vrot.slane %v12567_v35, 1 }
 0x385   : >> { %9730 = vmatmul.mubr.msk.bf16.gmra.mrb[8].mxu1 %vm1749_vm3, %v3388_v22  ;;  %v3047_v22 = vrot.slane %v12560_v44, 1  ;;  %v2463_v24 = vrot.slane %v2461_v10, 1 }
 0x386   : >> { %3183 = vrot.lane.b32.xlu0 %v12672_v7, %s10748_s22  ;;  %v2857_v7 = vld [vmem:[#allocation7 + $0x10] sm:$0xff]  ;;  %v2595_v4 = vor.u32 %v2594_v31, %v2591_v46  ;;  %9733 = vmatprep.mubr.msk.bf16.mxu1 %vm10747_vm5, %v14568_v14  ;;  %v12783_v51 = vor.u32 %v2619_v23, %v2616_v16  ;;  %v3205_v46 = vsel %vm1206_vm1, %v3203_v37, %v3204_v28  ;;  %v2631_v16 = vshrl.u32 %v2399_v59, 16 }
 0x387   : >> { %8964 = vmatpush3.bf16.msra.mxu1 %v2857_v7  ;;  %v2859_v7 = vld [vmem:[#allocation7 + $0x20] sm:$0xff]  ;;  %v2869_v31 = vld [vmem:[#allocation7 + $0x70] sm:$0xff]  ;;  %v2634_v23 = vshll.u32 %v2399_v59, 16  ;;  %v12822_v44 = vsel %vm2534_vm8, %v3047_v22, %v14556_v29  ;;  %v2465_v37 = vshrl.u32 %v12771_v47, 16 }
 0x388   : >> { %2660 = vrot.lane.b32.xlu1 %v2587_v0, %s10748_s22  ;;  %8965 = vmatprep.subr.bf16.mxu1 %v2866_v60  ;;  %v2611_v0 = vrot.slane %v2609_v36, 2  ;;  %v8559_v60 = vld [vmem:[%s12520_s23 + $0x40] sm:$0xfc]  ;;  %v2604_v45 = vsel %vm2553_vm6, %v2595_v4, %v2603_v12  ;;  %v2400_v4 = vld [vmem:[%s12520_s23 + $0x58] sm:$0x3f]  ;;  %v2633_v22 = vrot.slane %v2631_v16, 1 }
 0x389   : >> { %v12790_v36 = vld [vmem:[%s12520_s23 + $0x40] sm:$0xfe]  ;;  %v3206_v5 = vrot.slane %v8559_v60, 2  ;;  %v2651_v59 = vshll.u32 %v2400_v4, 16  ;;  %v2467_v29 = vor.u32 %v2465_v37, %v2463_v24  ;;  %v14561_v37 = vrot.slane %v12630_v61, 1 }
 0x38a   : >> { %2658 = vrot.lane.b32.xlu0 %v12696_v30, %s10748_s22  ;;  %v12763_v30 = vsel %vm2534_vm8, %v3044_v48, %v14557_v39  ;;  %v2612_v26 = vor.u32 %v2611_v0, %v2608_v55  ;;  %v14555_v48 = vrot.slane %v12604_v1, 1  ;;  %v2623_v55 = vshrl.u32 %v12790_v36, 16  ;;  %v12815_v0 = vld [vmem:[%s12520_s23 + $0x50] sm:$0xfe] }
 0x38b   : >> { %8966 = vmatpush3.bf16.msra.mxu1 %v2858_v41  ;;  %v2626_v25 = vshll.u32 %v12790_v36, 16  ;;  %v2643_v10 = vshll.u32 %v12815_v0, 16  ;;  %v3208_v60 = vsel %vm1206_vm1, %v3206_v5, %v3207_v43  ;;  %v2653_v16 = vrot.slane %v2651_v59, 2 }
 0x38c   : >> { %2502 = vrot.lane.b32.xlu1 %v2434_v50, %s10748_s22  ;;  %8967 = vmatprep.subr.bf16.mxu1 %v2867_v62  ;;  %v3050_v50 = vrot.slane %v12575_v42, 1  ;;  %v12800_v42 = vld [vmem:[%s12520_s23 + $0x48] sm:$0x1f]  ;;  %v2621_v62 = vsel %vm2553_vm6, %v2612_v26, %v12783_v51  ;;  %v2640_v26 = vshrl.u32 %v12815_v0, 16  ;;  %v8567_v5 = vcombine.low %v3204_v28, %v3208_v60 }
 0x38d   : >> { %9734 = vmatmul.mubr.msk.bf16.gmra.mrb[12].mxu1 %vm1749_vm3, %v3205_v46  ;;  %v2625_v46 = vrot.slane %v2623_v55, 1  ;;  %v14560_v55 = vrot.slane %v12659_v32, 1  ;;  %v3340_v28 = vunpack.c.l.b16 %v3207_v43 }
 0x38e   : >> { %2500 = vrot.lane.b32.xlu0 %v2422_v27, %s10748_s22  ;;  %v2449_v27 = vsel %vm2407_vm7, %v12582_v38, %v12766_v8  ;;  %v12806_v41 = vsel %vm2534_vm8, %v3050_v50, %v14555_v48  ;;  %9737 = vmatprep.mubr.msk.bf16.mxu1 %vm10747_vm5, %v14568_v14  ;;  %v2862_v48 = vld [vmem:[#allocation7 + $0x38] sm:$0xff]  ;;  %v2642_v39 = vrot.slane %v2640_v26, 1  ;;  %v14559_v26 = vrot.slane %v12676_v53, 1 }
 0x38f   : >> { %8968 = vmatpush3.bf16.msra.mxu1 %v2859_v7  ;;  %v2861_v7 = vld [vmem:[#allocation7 + $0x30] sm:$0xff] }
 0x390   : >> { %2504 = vrot.lane.b32.xlu1 %v2437_v19, %s10748_s22  ;;  %8969 = vmatprep.subr.bf16.mxu1 %v2868_v15  ;;  %v2450_v19 = vshrl.u32 %v12726_v58, 16  ;;  %v2870_v15 = vld [vmem:[#allocation7 + $0x78] sm:$0xff] }
 0x392   : >> { %2662 = vrot.lane.b32.xlu0 %v12717_v9, %s10748_s22  ;;  %v2860_v9 = vld [vmem:[#allocation7 + $0x28] sm:$0xff]  ;;  %v2452_v50 = vor.u32 %v2450_v19, %v12766_v8  ;;  %v4437_v8 = vld [vmem:[#allocation7 + $0x180] sm:$0xff] }
 0x393   : >> { %8970 = vmatpush3.bf16.msra.mxu1 %v2860_v9  ;;  %v2648_v9 = vshrl.u32 %v2400_v4, 16  ;;  %v2645_v4 = vrot.slane %v2643_v10, 2  ;;  %v2538_v10 = vrot.slane %v12687_v56, 1  ;;  %v2480_v56 = vshrl.u32 %v12800_v42, 16 }
 0x394   : >> { %2506 = vrot.lane.b32.xlu1 %v2449_v27, %s10748_s22  ;;  %8971 = vmatprep.subr.bf16.mxu1 %v2869_v31  ;;  %v2476_v27 = vshll.u32 %v12800_v42, 16  ;;  %v2628_v31 = vrot.slane %v2626_v25, 2 }
 0x395   : >> { %v2650_v25 = vrot.slane %v2648_v9, 1  ;;  %9738 = vmatmul.mubr.msk.bf16.gmra.mrb[16].mxu1 %vm1749_vm3, %v8567_v5  ;;  %v12879_v9 = vld [vmem:[%s12520_s23 + $0x28] sm:$0x1f] }
 0x396   : >> { %2664 = vrot.lane.b32.xlu0 %v2604_v45, %s10748_s22  ;;  %v2464_v45 = vsel %vm2407_vm7, %v12601_v33, %v2463_v24  ;;  %v2478_v19 = vrot.slane %v2476_v27, 1  ;;  %v2646_v27 = vor.u32 %v2645_v4, %v2642_v39  ;;  %9741 = vmatprep.mubr.msk.bf16.mxu1 %vm10747_vm5, %v14568_v14 }
 0x397   : >> { %8972 = vmatpush3.bf16.msra.mxu1 %v2861_v7  ;;  %v12844_v7 = vld [vmem:[%s12520_s23 + $0x58] sm:$0x1f]  ;;  %v12862_v43 = vor.u32 %v2653_v16, %v2650_v25 }
 0x398   : >> { %2668 = vrot.lane.b32.xlu1 %v2621_v62, %s10748_s22  ;;  %v2636_v62 = vrot.slane %v2634_v23, 2  ;;  %8973 = vmatprep.subr.bf16.mxu1 %v2870_v15  ;;  %v2629_v23 = vor.u32 %v2628_v31, %v2625_v46  ;;  %v2479_v15 = vsel %vm2407_vm7, %v12623_v18, %v2478_v19  ;;  %v12889_v46 = vld [vmem:[%s12520_s23 + $0x30] sm:$0xfe] }
 0x399   : >> { %v8560_v31 = vld [vmem:[%s12520_s23 + $0x50] sm:$0xfc] }
 0x39a   : >> { %2666 = vrot.lane.b32.xlu0 %v2603_v12, %s10748_s22  ;;  %v3056_v12 = vrot.slane %v12633_v21, 1  ;;  %v2637_v24 = vor.u32 %v2636_v62, %v2633_v22  ;;  %v3337_v21 = vunpack.c.h.b16 %v3208_v60  ;;  %v12869_v60 = vld [vmem:[%s12520_s23 + $0x20] sm:$0xfe]  ;;  %v2655_v62 = vsel %vm2553_vm6, %v2646_v27, %v12862_v43 }
 0x39b   : >> { %8974 = vmatpush3.bf16.msra.mxu1 %v2862_v48  ;;  %v2535_v48 = vrot.slane %v12662_v40, 1  ;;  %v2491_v40 = vshll.u32 %v12844_v7, 16  ;;  %v4132_v4 = vshll.u32 %v12869_v60, 16  ;;  %v3210_v27 = vrot.slane %v12620_v20, 2 }
 0x39c   : >> { %2510 = vrot.lane.b32.xlu1 %v2464_v45, %s10748_s22  ;;  %v12849_v13 = vsel %vm2534_vm8, %v3056_v12, %v14560_v55  ;;  %9042 = vmatprep.subr.bf16.mxu1 %v4437_v8  ;;  %v2638_v39 = vsel %vm2553_vm6, %v2629_v23, %v2637_v24  ;;  %v8623_v45 = vld [vmem:[%s12520_s23 + $0x28] sm:$0x3f]  ;;  %v3397_v59 = vpack.c.b16 %v3340_v28, %v3337_v21  ;;  %v2495_v12 = vshrl.u32 %v12844_v7, 16  ;;  %v8624_v21 = vld [vmem:[%s12520_s23 + $0x38] sm:$0x3f] }
 0x39d   : >> { %v2493_v5 = vrot.slane %v2491_v40, 1  ;;  %v4129_v8 = vshrl.u32 %v12869_v60, 16  ;;  %v4137_v25 = vshrl.u32 %v8623_v45, 16  ;;  %v4140_v16 = vshll.u32 %v8623_v45, 16 }
 0x39e   : >> { %2508 = vrot.lane.b32.xlu0 %v2452_v50, %s10748_s22  ;;  %v12874_v50 = vsel %vm2534_vm8, %v2535_v48, %v14559_v26  ;;  %v3992_v23 = vshll.u32 %v12879_v9, 16  ;;  %v4146_v28 = vshrl.u32 %v12889_v46, 16  ;;  %v4149_v48 = vshll.u32 %v12889_v46, 16  ;;  %9742 = vmatmul.mubr.msk.bf16.gmra.mrb[20].mxu1 %vm1749_vm3, %v3397_v59 }
 0x39f   : >> { %v2482_v40 = vor.u32 %v2480_v56, %v2478_v19  ;;  %9745 = vmatprep.mubr.msk.bf16.mxu1 %vm10747_vm5, %v14568_v14  ;;  %v4157_v45 = vshll.u32 %v8624_v21, 16  ;;  %v4131_v59 = vrot.slane %v4129_v8, 1  ;;  %v4139_v26 = vrot.slane %v4137_v25, 1 }
 0x3a0   : >> { %2512 = vrot.lane.b32.xlu1 %v2467_v29, %s10748_s22  ;;  %v3053_v29 = vrot.slane %v12617_v11, 1  ;;  %v4142_v20 = vrot.slane %v4140_v16, 2  ;;  %v3994_v55 = vrot.slane %v3992_v23, 1  ;;  %v4151_v19 = vrot.slane %v4149_v48, 2 }
 0x3a1   : >> { %v2544_v25 = vrot.slane %v12736_v6, 1  ;;  %v14566_v16 = vrot.slane %v12771_v47, 1 }
 0x3a2   : >> { %2670 = vrot.lane.b32.xlu0 %v12783_v51, %s10748_s22  ;;  %v14558_v51 = vrot.slane %v12705_v52, 1  ;;  %v12884_v11 = vsel %vm2534_vm8, %v3053_v29, %v14561_v37  ;;  %v2494_v29 = vsel %vm2407_vm7, %v12655_v34, %v2493_v5  ;;  %v12919_v37 = vld [vmem:[%s12520_s23 + $0x38] sm:$0x1f]  ;;  %v3213_v34 = vrot.slane %v12640_v49, 2 }
 0x3a4   : >> { %2514 = vrot.lane.b32.xlu1 %v2479_v15, %s10748_s22  ;;  %v12895_v22 = vsel %vm2534_vm8, %v2538_v10, %v14558_v51  ;;  %v3209_v15 = vrot.slane %v8560_v31, 2  ;;  %v2497_v10 = vor.u32 %v2495_v12, %v2493_v5  ;;  %v8561_v51 = vld [vmem:[%s12520_s23 + $0x60] sm:$0xfc]  ;;  %v4134_v31 = vrot.slane %v4132_v4, 2 }
 0x3a5   : >> { %v2541_v5 = vrot.slane %v12721_v17, 1  ;;  %v14567_v12 = vrot.slane %v12726_v58, 1  ;;  %v4159_v4 = vrot.slane %v4157_v45, 2  ;;  %v4007_v17 = vshll.u32 %v12919_v37, 16 }
 0x3a6   : >> { %2672 = vrot.lane.b32.xlu0 %v2638_v39, %s10748_s22  ;;  %v4154_v39 = vshrl.u32 %v8624_v21, 16  ;;  %v3211_v56 = vsel %vm1206_vm1, %v3209_v15, %v3210_v27  ;;  %v4135_v23 = vor.u32 %v4134_v31, %v4131_v59  ;;  %v4143_v21 = vor.u32 %v4142_v20, %v4139_v26  ;;  %v8626_v20 = vld [vmem:[%s12520_s23 + $0x58] sm:$0x3f] }
 0x3a7   : >> { %v12930_v49 = vsel %vm2534_vm8, %v2541_v5, %v14567_v12  ;;  %9746 = vmatmul.mubr.msk.bf16.gmra.mrb[24].mxu1 %vm1749_vm3, %v3211_v56  ;;  %v3995_v26 = vsel %vm2407_vm7, %v12582_v38, %v3994_v55  ;;  %v4011_v59 = vshrl.u32 %v12919_v37, 16  ;;  %v8613_v5 = vld [vmem:[%s12520_s23 + $0x48] sm:$0x1f] }
 0x3a8   : >> { %2676 = vrot.lane.b32.xlu1 %v2655_v62, %s10748_s22  ;;  %v4148_v62 = vrot.slane %v4146_v28, 1  ;;  %v4156_v8 = vrot.slane %v4154_v39, 1  ;;  %9749 = vmatprep.mubr.msk.bf16.mxu1 %vm10747_vm5, %v14568_v14  ;;  %v4144_v15 = vsel %vm2553_vm6, %v4135_v23, %v4143_v21  ;;  %v8625_v39 = vld [vmem:[%s12520_s23 + $0x48] sm:$0x3f] }
 0x3a9   : >> { %v4171_v56 = vshrl.u32 %v8625_v39, 16 }
 0x3aa   : >> { %2674 = vrot.lane.b32.xlu0 %v2637_v24, %s10748_s22  ;;  %v3212_v24 = vrot.slane %v8561_v51, 2  ;;  %v12937_v51 = vsel %vm2534_vm8, %v2544_v25, %v14566_v16  ;;  %v4152_v28 = vor.u32 %v4151_v19, %v4148_v62  ;;  %v4160_v48 = vor.u32 %v4159_v4, %v4156_v8 }
 0x3ab   : >> { %v3358_v25 = vunpack.c.l.b16 %v3213_v34 }
 0x3ac   : >> { %2518 = vrot.lane.b32.xlu1 %v2494_v29, %s10748_s22  ;;  %v3214_v6 = vsel %vm1206_vm1, %v3212_v24, %v3213_v34  ;;  %v8619_v29 = vld [vmem:[%s12520_s23 + $0x40] sm:$0xfe]  ;;  %v4161_v38 = vsel %vm2553_vm6, %v4152_v28, %v4160_v48  ;;  %v4174_v24 = vshll.u32 %v8625_v39, 16  ;;  %v4191_v28 = vshll.u32 %v8626_v20, 16 }
 0x3ad   : >> { %v8570_v45 = vcombine.low %v3210_v27, %v3214_v6  ;;  %v4163_v31 = vshrl.u32 %v8619_v29, 16  ;;  %v4166_v19 = vshll.u32 %v8619_v29, 16  ;;  %v3355_v4 = vunpack.c.h.b16 %v3214_v6 }
 0x3ae   : >> { %2516 = vrot.lane.b32.xlu0 %v2482_v40, %s10748_s22  ;;  %v3996_v40 = vshrl.u32 %v12879_v9, 16  ;;  %v14565_v6 = vrot.slane %v12800_v42, 1  ;;  %v4173_v29 = vrot.slane %v4171_v56, 1  ;;  %v4176_v39 = vrot.slane %v4174_v24, 2 }
 0x3af   : >> { %9750 = vmatmul.mubr.msk.bf16.gmra.mrb[28].mxu1 %vm1749_vm3, %v8570_v45  ;;  %v4168_v34 = vrot.slane %v4166_v19, 2  ;;  %v14563_v19 = vrot.slane %v12844_v7, 1 }
 0x3b0   : >> { %2520 = vrot.lane.b32.xlu1 %v2497_v10, %s10748_s22  ;;  %v4009_v10 = vrot.slane %v4007_v17, 1  ;;  %v3998_v62 = vor.u32 %v3996_v40, %v3994_v55  ;;  %9753 = vmatprep.mubr.msk.bf16.mxu1 %vm10747_vm5, %v14568_v14  ;;  %v8605_v55 = vld [vmem:[%s12520_s23 + $0x50] sm:$0xff]  ;;  %v2547_v40 = vrot.slane %v12790_v36, 1  ;;  %v4193_v36 = vrot.slane %v4191_v28, 2 }
 0x3b1   : >> { %v4177_v24 = vor.u32 %v4176_v39, %v4173_v29 }
 0x3b2   : >> { %2678 = vrot.lane.b32.xlu0 %v12862_v43, %s10748_s22  ;;  %v8620_v43 = vld [vmem:[%s12520_s23 + $0x50] sm:$0xfe]  ;;  %v4010_v27 = vsel %vm2407_vm7, %v12601_v33, %v4009_v10  ;;  %v4013_v23 = vor.u32 %v4011_v59, %v4009_v10  ;;  %v4022_v33 = vshll.u32 %v8613_v5, 16  ;;  %v2550_v10 = vrot.slane %v12815_v0, 1 }
 0x3b3   : >> { %v4180_v8 = vshrl.u32 %v8620_v43, 16  ;;  %v4183_v17 = vshll.u32 %v8620_v43, 16  ;;  %v4032_v59 = vshll.u32 %v8605_v55, 16  ;;  %v3406_v43 = vpack.c.b16 %v3358_v25, %v3355_v4 }
 0x3b4   : >> { %4074 = vrot.lane.b32.xlu1 %v3995_v26, %s10748_s22  ;;  %v4188_v26 = vshrl.u32 %v8626_v20, 16  ;;  %v12976_v20 = vld [vmem:[%s12520_s23 + $0x58] sm:$0x1f]  ;;  %v4024_v0 = vrot.slane %v4022_v33, 1  ;;  %v8607_v33 = vld [vmem:[%s12520_s23 + $0x60] sm:$0xff] }
 0x3b5   : >> { %v4182_v45 = vrot.slane %v4180_v8, 1  ;;  %v12983_v8 = vsel %vm2534_vm8, %v2550_v10, %v14563_v19  ;;  %v4034_v4 = vrot.slane %v4032_v59, 1  ;;  %v4037_v25 = vshll.u32 %v12976_v20, 16  ;;  %v13004_v10 = vld [vmem:[%s12520_s23 + $0x68] sm:$0x1f] }
 0x3b6   : >> { %4230 = vrot.lane.b32.xlu0 %v4144_v15, %s10748_s22  ;;  %v4165_v15 = vrot.slane %v4163_v31, 1  ;;  %v4190_v31 = vrot.slane %v4188_v26, 1  ;;  %v4026_v26 = vshrl.u32 %v8613_v5, 16  ;;  %v4025_v28 = vsel %vm2407_vm7, %v12623_v18, %v4024_v0  ;;  %v8622_v18 = vld [vmem:[%s12520_s23 + $0x70] sm:$0xfe] }
 0x3b7   : >> { %9754 = vmatmul.mubr.msk.bf16.gmra.mrb[32].mxu1 %vm1749_vm3, %v3406_v43  ;;  %v4047_v59 = vshll.u32 %v8607_v33, 16  ;;  %v8628_v43 = vld [vmem:[%s12520_s23 + $0x78] sm:$0x3f] }
 0x3b8   : >> { %4234 = vrot.lane.b32.xlu1 %v4161_v38, %s10748_s22  ;;  %v12972_v38 = vsel %vm2534_vm8, %v2547_v40, %v14565_v6  ;;  %v4169_v56 = vor.u32 %v4168_v34, %v4165_v15  ;;  %v8621_v15 = vld [vmem:[%s12520_s23 + $0x60] sm:$0xfe]  ;;  %v4039_v34 = vrot.slane %v4037_v25, 1  ;;  %v4028_v5 = vor.u32 %v4026_v26, %v4024_v0 }
 0x3b9   : >> { %v4197_v39 = vshrl.u32 %v8621_v15, 16  ;;  %v4113_v0 = vrot.slane %v12889_v46, 1  ;;  %v4052_v26 = vshll.u32 %v13004_v10, 16 }
 0x3ba   : >> { %4232 = vrot.lane.b32.xlu0 %v4143_v21, %s10748_s22  ;;  %v4185_v21 = vrot.slane %v4183_v17, 2 }
 0x3bc   : >> { %4078 = vrot.lane.b32.xlu1 %v4010_v27, %s10748_s22  ;;  %v4030_v27 = vshrl.u32 %v8605_v55, 16  ;;  %v4186_v17 = vor.u32 %v4185_v21, %v4182_v45  ;;  %v4178_v55 = vsel %vm2553_vm6, %v4169_v56, %v4177_v24  ;;  %v4200_v45 = vshll.u32 %v8621_v15, 16 }
 0x3bd   : >> { %v4110_v21 = vrot.slane %v12869_v60, 1  ;;  %v4217_v15 = vshll.u32 %v8622_v18, 16 }
 0x3be   : >> { %4076 = vrot.lane.b32.xlu0 %v3998_v62, %s10748_s22  ;;  %v12988_v62 = vor.u32 %v4193_v36, %v4190_v31  ;;  %v12996_v40 = vor.u32 %v4034_v4, %v4030_v27  ;;  %v14562_v31 = vrot.slane %v12879_v9, 1 }
 0x3c0   : >> { %4080 = vrot.lane.b32.xlu1 %v4013_v23, %s10748_s22  ;;  %v8627_v23 = vld [vmem:[%s12520_s23 + $0x68] sm:$0x3f]  ;;  %v4195_v29 = vsel %vm2553_vm6, %v4186_v17, %v12988_v62  ;;  %v4040_v25 = vsel %vm2407_vm7, %v12996_v40, %v4039_v34  ;;  %v4045_v17 = vshrl.u32 %v8607_v33, 16  ;;  %v13022_v46 = vsel %vm2534_vm8, %v4110_v21, %v14562_v31 }
 0x3c1   : >> { %v4205_v56 = vshrl.u32 %v8627_v23, 16  ;;  %v4208_v27 = vshll.u32 %v8627_v23, 16  ;;  %v4049_v23 = vrot.slane %v4047_v59, 1  ;;  %v4202_v21 = vrot.slane %v4200_v45, 2  ;;  %v2871_v59 = vld [vmem:[#allocation7 + $0x80] sm:$0xff] }
 0x3c2   : >> { %4236 = vrot.lane.b32.xlu0 %v4160_v48, %s10748_s22  ;;  %v4041_v48 = vshrl.u32 %v12976_v20, 16  ;;  %v14564_v20 = vrot.slane %v12919_v37, 1  ;;  %v8527_v45 = vld [vmem:[%s12520_s23 + $0x18] sm:$0xf] }
 0x3c3   : >> { %v4207_v31 = vrot.slane %v4205_v56, 1  ;;  %v4210_v19 = vrot.slane %v4208_v27, 2  ;;  %v4219_v27 = vrot.slane %v4217_v15, 2  ;;  %v4056_v15 = vshrl.u32 %v13004_v10, 16 }
 0x3c4   : >> { %4082 = vrot.lane.b32.xlu1 %v4025_v28, %s10748_s22  ;;  %v4214_v28 = vshrl.u32 %v8622_v18, 16 }
 0x3c6   : >> { %4238 = vrot.lane.b32.xlu0 %v4178_v55, %s10748_s22  ;;  %v3164_v36 = vpop.permute.xlu1 %3163  ;;  %v4222_v55 = vshrl.u32 %v8628_v43, 16  ;;  %v4216_v56 = vrot.slane %v4214_v28, 1 }
 0x3c7   : >> { %v3250_v33 = vsel %vm1749_vm3, %v3042_v3, %v3164_v36  ;;  %v4054_v36 = vrot.slane %v4052_v26, 1  ;;  %v13052_v26 = vld [vmem:[%s12520_s23 + $0x78] sm:$0x1f] }
 0x3c8   : >> { %v3162_v4 = vpop.permute.xlu0 %3161  ;;  %4242 = vrot.lane.b32.xlu1 %v4195_v29, %s10748_s22  ;;  %v13031_v29 = vsel %vm2534_vm8, %v4113_v0, %v14564_v20  ;;  %v13042_v0 = vld [vmem:[%s12520_s23 + $0x10] sm:$0xff]  ;;  %v4211_v20 = vor.u32 %v4210_v19, %v4207_v31  ;;  %v4060_v19 = vshrl.u32 %v13034_v2, 16  ;;  %v4067_v31 = vshll.u32 %v13052_v26, 16 }
 0x3c9   : >> { %v3247_v60 = vsel %vm1749_vm3, %v12757_v63, %v3162_v4  ;;  %v4225_v63 = vshll.u32 %v8628_v43, 16  ;;  %v4199_v4 = vrot.slane %v4197_v39, 1  ;;  %v4043_v43 = vor.u32 %v4041_v48, %v4039_v34 }
 0x3ca   : >> { %3484 = vmatprep.mubr.bf16.mxu0 %v3247_v60  ;;  %4240 = vrot.lane.b32.xlu0 %v4177_v24, %s10748_s22  ;;  %v3166_v18 = vpop.permute.xlu1 %3165  ;;  %v4224_v34 = vrot.slane %v4222_v55, 1 }
 0x3cb   : >> { %v13038_v3 = vsel %vm1749_vm3, %v12763_v30, %v3166_v18  ;;  %v13049_v30 = vor.u32 %v4049_v23, %v4045_v17  ;;  %v4227_v48 = vrot.slane %v4225_v63, 2  ;;  %v2872_v17 = vld [vmem:[#allocation7 + $0x88] sm:$0xff]  ;;  %v4220_v23 = vor.u32 %v4219_v27, %v4216_v56  ;;  %v8672_v27 = vld [vmem:[%s12520_s23 + $0x30] sm:$0xfe] }
 0x3cc   : >> { %v3006_v24 = vpop.permute.xlu0 %3005  ;;  %v8563_v60 = vcombine.low %v3250_v33, %v13038_v3  ;;  %4086 = vrot.lane.b32.xlu1 %v4040_v25, %s10748_s22  ;;  %v4062_v33 = vshll.u32 %v13034_v2, 16  ;;  %v13056_v25 = vld [vmem:[%s12520_s23 + $0x20] sm:$0xff]  ;;  %v4058_v56 = vor.u32 %v4056_v15, %v4054_v36 }
 0x3cd   : >> { %v3216_v39 = vsel %vm1749_vm3, %v13042_v0, %v3006_v24  ;;  %v4203_v24 = vor.u32 %v4202_v21, %v4199_v4  ;;  %v8529_v4 = vld [vmem:[%s12520_s23 + $0x28] sm:$0xf]  ;;  %v4055_v10 = vsel %vm2407_vm7, %v13049_v30, %v4054_v36  ;;  %v13074_v21 = vor.u32 %v4227_v48, %v4224_v34 }
 0x3ce   : >> { %3485 = vmatmul.mubr.bf16.vlgmr.msra.gmra.mrb[0].mxu0 %v3216_v39  ;;  %4084 = vrot.lane.b32.xlu0 %v4028_v5, %s10748_s22  ;;  %v3010_v18 = vpop.permute.xlu1 %3009  ;;  %v14614_v48 = vrot.slane %v12549_v57, 1  ;;  %v3318_v36 = vunpack.c.h.b16 %v13038_v3 }
 0x3cf   : >> { %9758 = vmatpush3.bf16.msra.mxu0 %v2871_v59  ;;  %3492 = vmatprep.mubr.bf16.mxu0 %v8563_v60  ;;  %v13060_v28 = vsel %vm1749_vm3, %v13056_v25, %v3010_v18  ;;  %v4064_v59 = vrot.slane %v4062_v33, 1  ;;  %v4212_v60 = vsel %vm2553_vm6, %v4203_v24, %v4211_v20  ;;  %v8678_v18 = vld [vmem:[%s12520_s23 + $0x38] sm:$0x3f] }
 0x3d0   : >> { %v3008_v5 = vpop.permute.xlu0 %3007  ;;  %9759 = vmatprep.subr.bf16.mxu0 %v14568_v14  ;;  %4088 = vrot.lane.b32.xlu1 %v4043_v43, %s10748_s22  ;;  %v13077_v43 = vld [vmem:[%s12520_s23 + $0x30] sm:$0xff]  ;;  %v13090_v24 = vld [vmem:[%s12520_s23 + $0x38] sm:$0x1f]  ;;  %v3317_v3 = vunpack.c.h.b16 %v13060_v28 }
 0x3d1   : >> { %v3219_v55 = vsel %vm1749_vm3, %v8527_v45, %v3008_v5  ;;  %v2873_v45 = vld [vmem:[#allocation7 + $0x90] sm:$0xff]  ;;  %v4069_v5 = vrot.slane %v4067_v31, 1  ;;  %v13097_v57 = vor.u32 %v4064_v59, %v4060_v19  ;;  %v4934_v31 = vshrl.u32 %v8672_v27, 16 }
 0x3d2   : >> { %v8562_v63 = vcombine.low %v3219_v55, %v13060_v28  ;;  %4244 = vrot.lane.b32.xlu0 %v12988_v62, %s10748_s22  ;;  %v3012_v2 = vpop.permute.xlu1 %3011  ;;  %v4071_v62 = vshrl.u32 %v13052_v26, 16  ;;  %v4229_v26 = vsel %vm2553_vm6, %v4220_v23, %v13074_v21  ;;  %v8673_v55 = vld [vmem:[%s12520_s23 + $0x40] sm:$0xfe]  ;;  %v2874_v23 = vld [vmem:[#allocation7 + $0x98] sm:$0xff]  ;;  %v4797_v19 = vshll.u32 %v13090_v24, 16 }
 0x3d3   : >> { %9760 = vmatpush3.bf16.msra.mxu0 %v2872_v17  ;;  %v3224_v34 = vsel %vm1749_vm3, %v8529_v4, %v3012_v2  ;;  %v4792_v17 = vshll.u32 %v13077_v43, 16  ;;  %v4942_v2 = vshrl.u32 %v8678_v18, 16  ;;  %v4951_v6 = vshrl.u32 %v8673_v55, 16 }
 0x3d4   : >> { %v3168_v39 = vpop.permute.xlu0 %3167  ;;  %9761 = vmatprep.subr.bf16.mxu0 %v14568_v14  ;;  %4090 = vrot.lane.b32.xlu1 %v4055_v10, %s10748_s22  ;;  %v4937_v10 = vshll.u32 %v8672_v27, 16  ;;  %v4073_v59 = vor.u32 %v4071_v62, %v4069_v5  ;;  %v4070_v28 = vsel %vm2407_vm7, %v13097_v57, %v4069_v5  ;;  %v4936_v12 = vrot.slane %v4934_v31, 1 }
 0x3d5   : >> { %v3256_v33 = vsel %vm1749_vm3, %v14614_v48, %v3168_v39  ;;  %v4945_v39 = vshll.u32 %v8678_v18, 16  ;;  %v8679_v48 = vld [vmem:[%s12520_s23 + $0x48] sm:$0x3f]  ;;  %v4794_v27 = vrot.slane %v4792_v17, 1  ;;  %v4954_v18 = vshll.u32 %v8673_v55, 16 }
 0x3d6   : >> { %v3321_v15 = vunpack.c.l.b16 %v3256_v33  ;;  %3493 = vmatmul.mubr.bf16.gmra.mrb[4].mxu0 %v8562_v63  ;;  %4246 = vrot.lane.b32.xlu0 %v4212_v60, %s10748_s22  ;;  %v13100_v4 = vpop.permute.xlu1 %3013  ;;  %v3320_v33 = vunpack.c.l.b16 %v3224_v34  ;;  %v4959_v34 = vshrl.u32 %v8679_v48, 16  ;;  %v14615_v5 = vmov 0.0  }
 0x3d7   : >> { %9762 = vmatpush3.bf16.msra.mxu0 %v2873_v45  ;;  %v4790_v45 = vshrl.u32 %v13077_v43, 16  ;;  %v4947_v62 = vrot.slane %v4945_v39, 2  ;;  %v4799_v55 = vrot.slane %v4797_v19, 1 }
 0x3d8   : >> { %v3170_v63 = vpop.permute.xlu0 %3169  ;;  %v3387_v60 = vpack.c.b16 %v3321_v15, %v3318_v36  ;;  %9763 = vmatprep.subr.bf16.mxu0 %v14568_v14  ;;  %4250 = vrot.lane.b32.xlu1 %v4229_v26, %s10748_s22  ;;  %v4962_v36 = vshll.u32 %v8679_v48, 16  ;;  %v8656_v15 = vld [vmem:[%s12520_s23 + $0x40] sm:$0xff]  ;;  %v4939_v14 = vrot.slane %v4937_v10, 2  ;;  %v4944_v26 = vrot.slane %v4942_v2, 1 }
 0x3d9   : >> { %v14616_v48 = vrot.slane %v12567_v35, 1  ;;  %v4795_v31 = vor.u32 %v4794_v27, %v4790_v45  ;;  %v4953_v10 = vrot.slane %v4951_v6, 1  ;;  %v4807_v2 = vshll.u32 %v8656_v15, 16 }
 0x3da   : >> { %3500 = vmatprep.mubr.bf16.mxu0 %v3387_v60  ;;  %4248 = vrot.lane.b32.xlu0 %v4211_v20, %s10748_s22  ;;  %v3174_v16 = vpop.permute.xlu1 %3173  ;;  %v3386_v60 = vpack.c.b16 %v3320_v33, %v3317_v3  ;;  %v3259_v20 = vsel %vm1749_vm3, %v12822_v44, %v3170_v63  ;;  %v4964_v3 = vrot.slane %v4962_v36, 2  ;;  %v8667_v44 = vld [vmem:[%s12520_s23 + $0x48] sm:$0x1f]  ;;  %v4940_v63 = vor.u32 %v4939_v14, %v4936_v12  ;;  %v8531_v36 = vld [vmem:[%s12520_s23 + $0x38] sm:$0xf] }
 0x3db   : >> { %9764 = vmatpush3.bf16.msra.mxu0 %v2874_v23  ;;  %v3265_v43 = vsel %vm1749_vm3, %v12806_v41, %v3174_v16  ;;  %v4956_v41 = vrot.slane %v4954_v18, 2  ;;  %v4961_v16 = vrot.slane %v4959_v34, 1  ;;  %v4948_v35 = vor.u32 %v4947_v62, %v4944_v26  ;;  %v8674_v26 = vld [vmem:[%s12520_s23 + $0x50] sm:$0xfe] }
 0x3dc   : >> { %v3172_v17 = vpop.permute.xlu0 %3171  ;;  %9801 = vmatprep.subr.bf16.mxu0 %v14615_v5  ;;  %4094 = vrot.lane.b32.xlu1 %v4070_v28, %s10748_s22  ;;  %v4805_v6 = vshrl.u32 %v8656_v15, 16  ;;  %v4809_v45 = vrot.slane %v4807_v2, 1  ;;  %v4812_v27 = vshll.u32 %v8667_v44, 16  ;;  %v3336_v12 = vunpack.c.h.b16 %v3265_v43 }
 0x3dd   : >> { %v3262_v23 = vsel %vm1749_vm3, %v14616_v48, %v3172_v17  ;;  %v4957_v28 = vor.u32 %v4956_v41, %v4953_v10  ;;  %v13127_v18 = vor.u32 %v4964_v3, %v4961_v16  ;;  %v4949_v14 = vsel %vm2553_vm6, %v4940_v63, %v4948_v35  ;;  %v13137_v17 = vld [vmem:[%s12520_s23 + $0x30] sm:$0xff]  ;;  %v8680_v48 = vld [vmem:[%s12520_s23 + $0x58] sm:$0x3f]  ;;  %v13154_v10 = vld [vmem:[%s12520_s23 + $0x40] sm:$0xff] }
 0x3de   : >> { %v8566_v39 = vcombine.low %v3262_v23, %v3265_v43  ;;  %3501 = vmatmul.mubr.bf16.gmra.mrb[8].mxu0 %v3386_v60  ;;  %4092 = vrot.lane.b32.xlu0 %v4058_v56, %s10748_s22  ;;  %v3018_v33 = vpop.permute.xlu1 %3017  ;;  %v4800_v56 = vsel %vm2407_vm7, %v4795_v31, %v4799_v55  ;;  %v4801_v15 = vshrl.u32 %v13090_v24, 16  ;;  %v3226_v60 = vsel %vm1749_vm3, %v13137_v17, %v13100_v4  ;;  %v13150_v24 = vld [vmem:[%s12520_s23 + $0x58] sm:$0x1f]  ;;  %v8675_v31 = vld [vmem:[%s12520_s23 + $0x60] sm:$0xfe] }
 0x3df   : >> { %3508 = vmatprep.mubr.bf16.mxu0 %v3259_v20  ;;  %v13143_v43 = vor.u32 %v4809_v45, %v4805_v6  ;;  %v4814_v20 = vrot.slane %v4812_v27, 1  ;;  %v3231_v4 = vsel %vm1749_vm3, %v13154_v10, %v3018_v33  ;;  %v4816_v16 = vshrl.u32 %v8667_v44, 16  ;;  %v8681_v63 = vld [vmem:[%s12520_s23 + $0x68] sm:$0x3f] }
 0x3e0   : >> { %v3016_v19 = vpop.permute.xlu0 %3015  ;;  %4096 = vrot.lane.b32.xlu1 %v4073_v59, %s10748_s22  ;;  %v4968_v3 = vshrl.u32 %v8674_v26, 16  ;;  %v4971_v27 = vshll.u32 %v8674_v26, 16  ;;  %v4988_v44 = vshll.u32 %v8675_v31, 16 }
 0x3e1   : >> { %v3229_v2 = vsel %vm1749_vm3, %v8531_v36, %v3016_v19  ;;  %v4815_v33 = vsel %vm2407_vm7, %v13143_v43, %v4814_v20  ;;  %v4827_v19 = vshll.u32 %v13150_v24, 16  ;;  %v4985_v36 = vshrl.u32 %v8675_v31, 16 }
 0x3e2   : >> { %4252 = vrot.lane.b32.xlu0 %v13074_v21, %s10748_s22  ;;  %v3020_v34 = vpop.permute.xlu1 %3019  ;;  %v14617_v21 = vrot.slane %v12604_v1, 1  ;;  %v4966_v1 = vsel %vm2553_vm6, %v4957_v28, %v13127_v18  ;;  %v4979_v28 = vshll.u32 %v8680_v48, 16 }
 0x3e3   : >> { %v4829_v31 = vrot.slane %v4827_v19, 1 }
 0x3e4   : >> { %v3176_v59 = vpop.permute.xlu0 %3175  ;;  %4879 = vrot.lane.b32.xlu1 %v4800_v56, %s10748_s22  ;;  %v4976_v56 = vshrl.u32 %v8680_v48, 16  ;;  %v4973_v48 = vrot.slane %v4971_v27, 2 }
 0x3e5   : >> { %v3268_v62 = vsel %vm1749_vm3, %v14617_v21, %v3176_v59  ;;  %v8565_v59 = vcombine.low %v3229_v2, %v3231_v4  ;;  %v4993_v21 = vshrl.u32 %v8681_v63, 16 }
 0x3e6   : >> { %v3339_v23 = vunpack.c.l.b16 %v3268_v62  ;;  %3509 = vmatmul.mubr.bf16.gmra.mrb[12].mxu0 %v3226_v60  ;;  %5035 = vrot.lane.b32.xlu0 %v4949_v14, %s10748_s22  ;;  %v13159_v41 = vpop.permute.xlu1 %3021  ;;  %v4803_v14 = vor.u32 %v4801_v15, %v4799_v55  ;;  %v4818_v62 = vor.u32 %v4816_v16, %v4814_v20  ;;  %v4970_v60 = vrot.slane %v4968_v3, 1  ;;  %v13182_v16 = vld [vmem:[%s12520_s23 + $0x68] sm:$0x1f] }
 0x3e7   : >> { %3516 = vmatprep.mubr.bf16.mxu0 %v8566_v39  ;;  %v8533_v39 = vld [vmem:[%s12520_s23 + $0x48] sm:$0xf]  ;;  %v4987_v20 = vrot.slane %v4985_v36, 1  ;;  %v4990_v3 = vrot.slane %v4988_v44, 2 }
 0x3e8   : >> { %v13162_v6 = vpop.permute.xlu0 %3177  ;;  %v3396_v45 = vpack.c.b16 %v3339_v23, %v3336_v12  ;;  %5039 = vrot.lane.b32.xlu1 %v4966_v1, %s10748_s22  ;;  %v4996_v12 = vshll.u32 %v8681_v63, 16  ;;  %v4978_v23 = vrot.slane %v4976_v56, 1  ;;  %v4981_v1 = vrot.slane %v4979_v28, 2 }
 0x3e9   : >> { %v3234_v2 = vsel %vm1749_vm3, %v8533_v39, %v3020_v34  ;;  %v4995_v63 = vrot.slane %v4993_v21, 1  ;;  %v4842_v28 = vshll.u32 %v13182_v16, 16  ;;  %v4991_v36 = vor.u32 %v4990_v3, %v4987_v20  ;;  %v10563_v39 = vld [vmem:[%s12520_s23] sm:$0xff] }
 0x3ea   : >> { %5037 = vrot.lane.b32.xlu0 %v4948_v35, %s10748_s22  ;;  %v3182_v26 = vpop.permute.xlu1 %3181  ;;  %v4998_v34 = vrot.slane %v4996_v12, 2  ;;  %v3338_v27 = vunpack.c.l.b16 %v3234_v2  ;;  %v4982_v19 = vor.u32 %v4981_v1, %v4978_v23  ;;  %v4831_v12 = vshrl.u32 %v13150_v24, 16  ;;  %v8682_v23 = vld [vmem:[%s12520_s23 + $0x78] sm:$0x3f]  ;;  %v8677_v3 = vld [vmem:[%s12520_s23 + $0x80] sm:$0xfe] }
 0x3eb   : >> { %v13172_v55 = vsel %vm1749_vm3, %v12849_v13, %v3182_v26  ;;  %v4844_v26 = vrot.slane %v4842_v28, 1  ;;  %v13216_v1 = vld [vmem:[%s12520_s23 + $0x78] sm:$0x1f] }
 0x3ec   : >> { %v3180_v15 = vpop.permute.xlu0 %3179  ;;  %4883 = vrot.lane.b32.xlu1 %v4815_v33, %s10748_s22  ;;  %v4974_v33 = vor.u32 %v4973_v48, %v4970_v60  ;;  %v3271_v60 = vsel %vm1749_vm3, %v12884_v11, %v13162_v6  ;;  %v8676_v48 = vld [vmem:[%s12520_s23 + $0x70] sm:$0xfe]  ;;  %v4833_v20 = vor.u32 %v4831_v12, %v4829_v31  ;;  %v4846_v6 = vshrl.u32 %v13182_v16, 16  ;;  %v8535_v12 = vld [vmem:[%s12520_s23 + $0x58] sm:$0xf] }
 0x3ed   : >> { %v13178_v35 = vsel %vm1749_vm3, %v14618_v54, %v3180_v15  ;;  %v3335_v54 = vunpack.c.h.b16 %v3231_v4  ;;  %v4438_v15 = vld [vmem:[#allocation7 + $0x188] sm:$0xff]  ;;  %v4845_v11 = vsel %vm2407_vm7, %v13049_v30, %v4844_v26  ;;  %v5002_v28 = vshrl.u32 %v8676_v48, 16  ;;  %v4439_v30 = vld [vmem:[#allocation7 + $0x190] sm:$0xff] }
 0x3ee   : >> { %v8569_v13 = vcombine.low %v13178_v35, %v13172_v55  ;;  %3517 = vmatmul.mubr.bf16.gmra.mrb[16].mxu0 %v8565_v59  ;;  %4881 = vrot.lane.b32.xlu0 %v4803_v14, %s10748_s22  ;;  %v13187_v61 = vpop.permute.xlu1 %3025  ;;  %v4830_v14 = vsel %vm2407_vm7, %v12996_v40, %v4829_v31  ;;  %v4983_v40 = vsel %vm2553_vm6, %v4974_v33, %v4982_v19  ;;  %v5005_v33 = vshll.u32 %v8676_v48, 16  ;;  %v13242_v48 = vld [vmem:[%s12520_s23 + $0x50] sm:$0xff] }
 0x3ef   : >> { %3524 = vmatprep.mubr.bf16.mxu0 %v3396_v45  ;;  %v13197_v45 = vor.u32 %v4998_v34, %v4995_v63  ;;  %v3395_v21 = vpack.c.b16 %v3338_v27, %v3335_v54  ;;  %v8683_v63 = vld [vmem:[%s12520_s23 + $0x88] sm:$0x3f]  ;;  %v14619_v34 = vrot.slane %v12659_v32, 1  ;;  %v3354_v31 = vunpack.c.h.b16 %v13172_v55 }
 0x3f0   : >> { %v13189_v56 = vpop.permute.xlu0 %3023  ;;  %4885 = vrot.lane.b32.xlu1 %v4818_v62, %s10748_s22  ;;  %v4429_v62 = vld [vmem:[#allocation7 + $0x140] sm:$0xff]  ;;  %v4430_v27 = vld [vmem:[#allocation7 + $0x148] sm:$0xff]  ;;  %v5013_v16 = vshll.u32 %v8682_v23, 16 }
 0x3f1   : >> { %v5000_v24 = vsel %vm2553_vm6, %v4991_v36, %v13197_v45  ;;  %v3239_v35 = vsel %vm1749_vm3, %v8535_v12, %v13189_v56 }
 0x3f2   : >> { %5041 = vrot.lane.b32.xlu0 %v13127_v18, %s10748_s22  ;;  %v2499_v59 = vpop.permute.xlu1 %2498 }
 0x3f3   : >> { %v2712_v44 = vsel %vm1749_vm3, %v10563_v39, %v2499_v59  ;;  %v4857_v59 = vshll.u32 %v13216_v1, 16  ;;  %v5022_v39 = vshll.u32 %v8677_v3, 16 }
 0x3f4   : >> { %v2657_v4 = vpop.permute.xlu0 %2656  ;;  %4887 = vrot.lane.b32.xlu1 %v4830_v14, %s10748_s22  ;;  %v5010_v14 = vshrl.u32 %v8682_v23, 16  ;;  %v3236_v23 = vsel %vm1749_vm3, %v13242_v48, %v13159_v41 }
 0x3f5   : >> { %v2743_v18 = vsel %vm1749_vm3, %v12874_v50, %v2657_v4  ;;  %v5019_v4 = vshrl.u32 %v8677_v3, 16  ;;  %v4431_v3 = vld [vmem:[#allocation7 + $0x150] sm:$0xff] }
 0x3f6   : >> { %3525 = vmatmul.mubr.bf16.gmra.mrb[20].mxu0 %v3395_v21  ;;  %3766 = vmatprep.mubr.bf16.mxu1 %v2743_v18  ;;  %v13213_v50 = vpop.permute.xlu1 %3027  ;;  %v5030_v21 = vshll.u32 %v8683_v63, 16 }
 0x3f7   : >> { %3532 = vmatprep.mubr.bf16.mxu0 %v3271_v60  ;;  %3767 = vmatmul.mubr.bf16.vlgmr.msra.gmra.mrb[36].mxu1 %v2712_v44  ;;  %v5027_v44 = vshrl.u32 %v8683_v63, 16  ;;  %v4848_v60 = vor.u32 %v4846_v6, %v4844_v26  ;;  %v5007_v63 = vrot.slane %v5005_v33, 2  ;;  %v5012_v26 = vrot.slane %v5010_v14, 1 }
 0x3f8   : >> { %v3184_v2 = vpop.permute.xlu0 %3183  ;;  %9043 = vmatpush3.bf16.msra.mxu1 %v4429_v62  ;;  %5043 = vrot.lane.b32.xlu0 %v4983_v40, %s10748_s22  ;;  %v5015_v6 = vrot.slane %v5013_v16, 2  ;;  %v5032_v33 = vrot.slane %v5030_v21, 2  ;;  %v2374_v16 = vld [vmem:[%s12520_s23 + $0x18] sm:$0xf]  ;;  %v4441_v21 = vld [vmem:[#allocation7 + $0x1a0] sm:$0xff] }
 0x3f9   : >> { %v3280_v54 = vsel %vm1749_vm3, %v14619_v34, %v3184_v2  ;;  %9044 = vmatprep.subr.bf16.mxu1 %v4438_v15  ;;  %5047 = vrot.lane.b32.xlu1 %v5000_v24, %s10748_s22  ;;  %v14620_v15 = vrot.slane %v12676_v53, 1  ;;  %v2372_v2 = vld [vmem:[%s12520_s23 + $0x8] sm:$0xf]  ;;  %v4440_v53 = vld [vmem:[#allocation7 + $0x198] sm:$0xff]  ;;  %v13250_v34 = vrot.slane %v4857_v59, 1 }
 0x3fa   : >> { %v3357_v36 = vunpack.c.l.b16 %v3280_v54  ;;  %v2661_v32 = vpop.permute.xlu1 %2660  ;;  %v13253_v54 = vld [vmem:[%s12520_s23 + $0x80] sm:$0xff]  ;;  %v8537_v59 = vld [vmem:[%s12520_s23 + $0x68] sm:$0xf] }
 0x3fb   : >> { %v13235_v40 = vsel %vm1749_vm3, %v12895_v22, %v2661_v32  ;;  %v5004_v22 = vrot.slane %v5002_v28, 1  ;;  %v5029_v28 = vrot.slane %v5027_v44, 1  ;;  %v13276_v44 = vor.u32 %v5015_v6, %v5012_v26  ;;  %v4433_v26 = vld [vmem:[#allocation7 + $0x160] sm:$0xff]  ;;  %v4442_v6 = vld [vmem:[#allocation7 + $0x1a8] sm:$0xff] }
 0x3fc   : >> { %v13231_v18 = vpack.c.b16 %v3357_v36, %v3354_v31  ;;  %v2659_v62 = vpop.permute.xlu0 %2658  ;;  %9045 = vmatpush3.bf16.msra.mxu1 %v4430_v27  ;;  %5045 = vrot.lane.b32.xlu0 %v4982_v19, %s10748_s22  ;;  %v5024_v27 = vrot.slane %v5022_v39, 2  ;;  %v13261_v36 = vld [vmem:[%s12520_s23 + $0x88] sm:$0x1f] }
 0x3fd   : >> { %v2746_v24 = vsel %vm1749_vm3, %v14620_v15, %v2659_v62  ;;  %9046 = vmatprep.subr.bf16.mxu1 %v4439_v30  ;;  %4891 = vrot.lane.b32.xlu1 %v4845_v11, %s10748_s22  ;;  %v5021_v11 = vrot.slane %v5019_v4, 1  ;;  %v10565_v30 = vld [vmem:[%s12520_s23 + $0x60] sm:$0xff]  ;;  %v4432_v4 = vld [vmem:[#allocation7 + $0x158] sm:$0xff]  ;;  %v5008_v39 = vor.u32 %v5007_v63, %v5004_v22  ;;  %v13281_v62 = vor.u32 %v5032_v33, %v5029_v28 }
 0x3fe   : >> { %v8581_v19 = vcombine.low %v2746_v24, %v13235_v40  ;;  %3533 = vmatmul.mubr.bf16.gmra.mrb[24].mxu0 %v3236_v23  ;;  %v2503_v41 = vpop.permute.xlu1 %2502  ;;  %v13266_v55 = vsel %vm1749_vm3, %v10565_v30, %v13187_v61  ;;  %v4860_v61 = vsel %vm2407_vm7, %v13097_v57, %v13250_v34  ;;  %v4872_v15 = vshll.u32 %v13261_v36, 16 }
 0x3ff   : >> { %3540 = vmatprep.mubr.bf16.mxu0 %v8569_v13  ;;  %v2717_v14 = vsel %vm1749_vm3, %v13042_v0, %v2503_v41  ;;  %v4867_v0 = vshll.u32 %v13253_v54, 16  ;;  %v5025_v12 = vor.u32 %v5024_v27, %v5021_v11  ;;  %v8568_v24 = vcombine.low %v3239_v35, %v13266_v55  ;;  %v13313_v35 = vld [vmem:[%s12520_s23 + $0x48] sm:$0x1f] }
 0x400   : >> { %v2501_v31 = vpop.permute.xlu0 %2500  ;;  %3774 = vmatprep.mubr.bf16.mxu1 %v8581_v19  ;;  %9047 = vmatpush3.bf16.msra.mxu1 %v4431_v3  ;;  %v2813_v23 = vunpack.c.h.b16 %v2717_v14  ;;  %v3244_v57 = vsel %vm1749_vm3, %v8537_v59, %v13213_v50  ;;  %v14621_v22 = vrot.slane %v12705_v52, 1  ;;  %v5017_v50 = vsel %vm2553_vm6, %v5008_v39, %v13276_v44 }
 0x401   : >> { %v2715_v13 = vsel %vm1749_vm3, %v2372_v2, %v2501_v31  ;;  %9048 = vmatprep.subr.bf16.mxu1 %v4440_v53  ;;  %4889 = vrot.lane.b32.xlu0 %v4833_v20, %s10748_s22  ;;  %v4865_v20 = vshrl.u32 %v13253_v54, 16  ;;  %v4869_v53 = vrot.slane %v4867_v0, 1  ;;  %v8727_v54 = vld [vmem:[%s12520_s23 + $0x40] sm:$0xfe]  ;;  %v3353_v41 = vunpack.c.h.b16 %v13266_v55 }
 0x402   : >> { %v8580_v32 = vcombine.low %v2715_v13, %v2717_v14  ;;  %4893 = vrot.lane.b32.xlu1 %v4848_v60, %s10748_s22  ;;  %v2505_v56 = vpop.permute.xlu1 %2504  ;;  %v2814_v60 = vunpack.c.h.b16 %v13235_v40  ;;  %v3356_v11 = vunpack.c.l.b16 %v3244_v57  ;;  %v13306_v31 = vld [vmem:[%s12520_s23] sm:$0xfc]  ;;  %v4874_v30 = vrot.slane %v4872_v15, 1  ;;  %v2402_v13 = vld [vmem:[%s12520_s23 + $0x10] sm:$0xfc] }
 0x403   : >> { %v2720_v3 = vsel %vm1749_vm3, %v2374_v16, %v2505_v56  ;;  %v13310_v14 = vor.u32 %v4869_v53, %v4865_v20  ;;  %v4434_v16 = vld [vmem:[#allocation7 + $0x168] sm:$0xff]  ;;  %v4861_v0 = vshrl.u32 %v13216_v1, 16  ;;  %v4876_v59 = vshrl.u32 %v13261_v36, 16  ;;  %v4435_v53 = vld [vmem:[#allocation7 + $0x170] sm:$0xff] }
 0x404   : >> { %3775 = vmatmul.mubr.bf16.gmra.mrb[40].mxu1 %v8580_v32  ;;  %v2663_v2 = vpop.permute.xlu0 %2662  ;;  %v2816_v19 = vunpack.c.l.b16 %v2720_v3  ;;  %v5739_v32 = vshrl.u32 %v8727_v54, 16  ;;  %v2693_v39 = vrot.slane %v13306_v31, 2  ;;  %v3404_v20 = vpack.c.b16 %v3356_v11, %v3353_v41 }
 0x405   : >> { %v2752_v63 = vsel %vm1749_vm3, %v14621_v22, %v2663_v2  ;;  %9049 = vmatpush3.bf16.msra.mxu1 %v4432_v4  ;;  %5049 = vrot.lane.b32.xlu0 %v13197_v45, %s10748_s22  ;;  %v5034_v45 = vsel %vm2553_vm6, %v5025_v12, %v13281_v62  ;;  %v14622_v2 = vrot.slane %v12726_v58, 1  ;;  %v2696_v57 = vrot.slane %v2402_v13, 2  ;;  %v13337_v22 = vld [vmem:[%s12520_s23 + $0x18] sm:$0x3f] }
 0x406   : >> { %v2817_v40 = vunpack.c.l.b16 %v2752_v63  ;;  %3541 = vmatmul.mubr.bf16.gmra.mrb[28].mxu0 %v8568_v24  ;;  %9050 = vmatprep.subr.bf16.mxu1 %v4441_v21  ;;  %v13298_v52 = vpop.permute.xlu1 %2506  ;;  %v3668_v28 = vpack.c.b16 %v2816_v19, %v2813_v23  ;;  %v4443_v21 = vld [vmem:[#allocation7 + $0x1b0] sm:$0xff]  ;;  %v5602_v24 = vshll.u32 %v13313_v35, 16  ;;  %v8734_v23 = vld [vmem:[%s12520_s23 + $0x58] sm:$0x3f]  ;;  %v2697_v63 = vrot.slane %v13337_v22, 2 }
 0x407   : >> { %3548 = vmatprep.mubr.bf16.mxu0 %v13231_v18  ;;  %4895 = vrot.lane.b32.xlu1 %v4860_v61, %s10748_s22  ;;  %v8733_v18 = vld [vmem:[%s12520_s23 + $0x48] sm:$0x3f]  ;;  %v4878_v58 = vor.u32 %v4876_v59, %v4874_v30  ;;  %v5764_v41 = vshrl.u32 %v8734_v23, 16  ;;  %v5767_v11 = vshll.u32 %v8734_v23, 16 }
 0x408   : >> { %v3669_v27 = vpack.c.b16 %v2817_v40, %v2814_v60  ;;  %v2665_v33 = vpop.permute.xlu0 %2664  ;;  %v13322_v61 = vld [vmem:[%s12520_s23 + $0x8] sm:$0x3f]  ;;  %v5747_v12 = vshrl.u32 %v8733_v18, 16  ;;  %v5750_v15 = vshll.u32 %v8733_v18, 16  ;;  %v8728_v60 = vld [vmem:[%s12520_s23 + $0x50] sm:$0xfe]  ;;  %v4863_v40 = vor.u32 %v4861_v0, %v13250_v34 }
 0x409   : >> { %9051 = vmatpush3.bf16.msra.mxu1 %v4433_v26  ;;  %5051 = vrot.lane.b32.xlu0 %v5017_v50, %s10748_s22  ;;  %v2755_v55 = vsel %vm1749_vm3, %v12930_v49, %v2665_v33  ;;  %v2694_v56 = vrot.slane %v13322_v61, 2  ;;  %v5742_v49 = vshll.u32 %v8727_v54, 16  ;;  %v13344_v26 = vrot.slane %v5739_v32, 1  ;;  %v5242_v0 = vld [vmem:[#allocation7 + $0x220] sm:$0xff] }
 0x40a   : >> { %3782 = vmatprep.mubr.bf16.mxu1 %v3669_v27  ;;  %9052 = vmatprep.subr.bf16.mxu1 %v4442_v6  ;;  %v2669_v4 = vpop.permute.xlu1 %2668  ;;  %v4444_v6 = vld [vmem:[#allocation7 + $0x1b8] sm:$0xff]  ;;  %v5759_v54 = vshll.u32 %v8728_v60, 16  ;;  %v13351_v27 = vld [vmem:[%s12520_s23 + $0x50] sm:$0xff]  ;;  %v5749_v33 = vrot.slane %v5747_v12, 1  ;;  %v5752_v31 = vrot.slane %v5750_v15, 2  ;;  %v13354_v18 = vrot.slane %v5602_v24, 1 }
 0x40b   : >> { %5055 = vrot.lane.b32.xlu1 %v5034_v45, %s10748_s22  ;;  %v13328_v36 = vsel %vm1749_vm3, %v12937_v51, %v2669_v4  ;;  %v4875_v51 = vsel %vm2407_vm7, %v13310_v14, %v4874_v30  ;;  %v5756_v45 = vshrl.u32 %v8728_v60, 16  ;;  %v5744_v34 = vrot.slane %v5742_v49, 2  ;;  %v13371_v49 = vld [vmem:[%s12520_s23 + $0x58] sm:$0x1f]  ;;  %v4445_v12 = vld [vmem:[#allocation7 + $0x1c0] sm:$0xff] }
 0x40c   : >> { %3783 = vmatmul.mubr.bf16.gmra.mrb[44].mxu1 %v3668_v28  ;;  %v2667_v1 = vpop.permute.xlu0 %2666  ;;  %v2722_v30 = vsel %vm1749_vm3, %v13056_v25, %v13298_v52  ;;  %v13366_v13 = vsel %vm1206_vm1, %v2696_v57, %v2697_v63  ;;  %v5612_v59 = vshll.u32 %v13351_v27, 16  ;;  %v5761_v52 = vrot.slane %v5759_v54, 2  ;;  %v2378_v57 = vld [vmem:[%s12520_s23 + $0x38] sm:$0xf]  ;;  %v8729_v54 = vld [vmem:[%s12520_s23 + $0x60] sm:$0xfe] }
 0x40d   : >> { %3790 = vmatprep.mubr.bf16.mxu1 %v2755_v55  ;;  %v2758_v3 = vsel %vm1749_vm3, %v14622_v2, %v2667_v1  ;;  %9053 = vmatpush3.bf16.msra.mxu1 %v4434_v16  ;;  %v2376_v55 = vld [vmem:[%s12520_s23 + $0x28] sm:$0xf]  ;;  %v4436_v16 = vld [vmem:[#allocation7 + $0x178] sm:$0xff]  ;;  %v5758_v25 = vrot.slane %v5756_v45, 1  ;;  %v5766_v4 = vrot.slane %v5764_v41, 1  ;;  %v5745_v1 = vor.u32 %v5744_v34, %v13344_v26 }
 0x40e   : >> { %3549 = vmatmul.mubr.bf16.gmra.mrb[32].mxu0 %v3404_v20  ;;  %v8584_v19 = vcombine.low %v2758_v3, %v13328_v36  ;;  %9054 = vmatprep.subr.bf16.mxu1 %v4443_v21  ;;  %v2511_v50 = vpop.permute.xlu1 %2510  ;;  %v5769_v21 = vrot.slane %v5767_v11, 2  ;;  %v13376_v15 = vor.u32 %v5752_v31, %v5749_v33  ;;  %v5605_v24 = vsel %vm2407_vm7, %v13143_v43, %v13354_v18  ;;  %v4446_v45 = vld [vmem:[#allocation7 + $0x1c8] sm:$0xff] }
 0x40f   : >> { %9765 = vmatprep.mubr.msk.bf16.mxu0 %vm10747_vm5, %v14615_v5  ;;  %5053 = vrot.lane.b32.xlu0 %v13276_v44, %s10748_s22  ;;  %v2695_v44 = vsel %vm1206_vm1, %v2693_v39, %v2694_v56  ;;  %v2832_v39 = vunpack.c.h.b16 %v13328_v36  ;;  %v13384_v23 = vsel %vm1749_vm3, %v13137_v17, %v2511_v50  ;;  %v14623_v36 = vrot.slane %v12771_v47, 1  ;;  %v13422_v33 = vld [vmem:[%s12520_s23 + $0x68] sm:$0x1f] }
 0x410   : >> { %v2509_v28 = vpop.permute.xlu0 %2508  ;;  %4899 = vrot.lane.b32.xlu1 %v4875_v51, %s10748_s22  ;;  %v5610_v43 = vshrl.u32 %v13351_v27, 16  ;;  %v5614_v51 = vrot.slane %v5612_v59, 1  ;;  %v5762_v47 = vor.u32 %v5761_v52, %v5758_v25  ;;  %v2818_v50 = vunpack.c.l.b16 %v2697_v63  ;;  %v8735_v27 = vld [vmem:[%s12520_s23 + $0x68] sm:$0x3f]  ;;  %v8736_v52 = vld [vmem:[%s12520_s23 + $0x78] sm:$0x3f] }
 0x411   : >> { %9055 = vmatpush3.bf16.msra.mxu1 %v4435_v53  ;;  %v2725_v60 = vsel %vm1749_vm3, %v2376_v55, %v2509_v28  ;;  %v5617_v53 = vshll.u32 %v13371_v49, 16  ;;  %v8582_v41 = vcombine.low %v2694_v56, %v13366_v13  ;;  %v2815_v22 = vunpack.c.h.b16 %v13366_v13  ;;  %v8730_v13 = vld [vmem:[%s12520_s23 + $0x70] sm:$0xfe] }
 0x412   : >> { %9056 = vmatprep.subr.bf16.mxu1 %v4444_v6  ;;  %v2513_v32 = vpop.permute.xlu1 %2512  ;;  %v5754_v63 = vsel %vm2553_vm6, %v5745_v1, %v13376_v15  ;;  %v5606_v28 = vshrl.u32 %v13313_v35, 16  ;;  %v5615_v34 = vor.u32 %v5614_v51, %v5610_v43  ;;  %v5776_v55 = vshll.u32 %v8729_v54, 16  ;;  %v4448_v43 = vld [vmem:[#allocation7 + $0x1d8] sm:$0xff] }
 0x413   : >> { %4897 = vrot.lane.b32.xlu0 %v4863_v40, %s10748_s22  ;;  %v13400_v40 = vld [vmem:[%s12520_s23 + $0x60] sm:$0xff]  ;;  %v2730_v11 = vsel %vm1749_vm3, %v2378_v57, %v2513_v32  ;;  %v4447_v32 = vld [vmem:[#allocation7 + $0x1d0] sm:$0xff]  ;;  %v5781_v25 = vshrl.u32 %v8735_v27, 16  ;;  %v5790_v1 = vshrl.u32 %v8730_v13, 16 }
 0x414   : >> { %3791 = vmatmul.mubr.bf16.gmra.mrb[48].mxu1 %v2722_v30  ;;  %v2671_v20 = vpop.permute.xlu0 %2670  ;;  %4901 = vrot.lane.b32.xlu1 %v4878_v58, %s10748_s22  ;;  %v8583_v58 = vcombine.low %v2725_v60, %v13384_v23  ;;  %v5627_v61 = vshll.u32 %v13400_v40, 16  ;;  %v5621_v30 = vshrl.u32 %v13371_v49, 16  ;;  %v2834_v35 = vunpack.c.l.b16 %v2730_v11  ;;  %v2404_v11 = vld [vmem:[%s12520_s23 + $0x30] sm:$0xfc] }
 0x415   : >> { %3798 = vmatprep.mubr.bf16.mxu1 %v8584_v19  ;;  %v2764_v2 = vsel %vm1749_vm3, %v14623_v36, %v2671_v20  ;;  %9057 = vmatpush3.bf16.msra.mxu1 %v4436_v16  ;;  %v13397_v19 = vor.u32 %v5769_v21, %v5766_v4  ;;  %v2831_v16 = vunpack.c.h.b16 %v13384_v23  ;;  %v14624_v4 = vrot.slane %v12800_v42, 1 }
 0x416   : >> { %9766 = vmatmul.mubr.msk.bf16.vlgmr.msra.gmra.mrb[36].mxu0 %vm1749_vm3, %v2695_v44  ;;  %v2835_v3 = vunpack.c.l.b16 %v2764_v2  ;;  %9125 = vmatprep.subr.bf16.mxu1 %v5242_v0  ;;  %v13395_v17 = vpop.permute.xlu1 %2514  ;;  %v5773_v44 = vshrl.u32 %v8729_v54, 16  ;;  %v5784_v49 = vshll.u32 %v8735_v27, 16  ;;  %v5629_v20 = vrot.slane %v5627_v61, 1 }
 0x417   : >> { %9802 = vmatpush3.bf16.msra.mxu0 %v4445_v12  ;;  %9769 = vmatprep.mubr.msk.bf16.mxu0 %vm10747_vm5, %v14615_v5  ;;  %v5771_v31 = vsel %vm2553_vm6, %v5762_v47, %v13397_v19  ;;  %v5632_v12 = vshll.u32 %v13422_v33, 16  ;;  %v5793_v42 = vshll.u32 %v8730_v13, 16  ;;  %v5798_v36 = vshrl.u32 %v8736_v52, 16  ;;  %v10569_v13 = vld [vmem:[%s12520_s23 + $0x38] sm:$0x3f] }
 0x418   : >> { %v3678_v26 = vpack.c.b16 %v2835_v3, %v2832_v39  ;;  %9803 = vmatprep.subr.bf16.mxu0 %v14615_v5  ;;  %v13406_v6 = vpop.permute.xlu0 %2672  ;;  %5057 = vrot.lane.b32.xlu0 %v13281_v62, %s10748_s22  ;;  %v5619_v62 = vrot.slane %v5617_v53, 1  ;;  %v5625_v39 = vshrl.u32 %v13400_v40, 16  ;;  %v5801_v2 = vshll.u32 %v8736_v52, 16  ;;  %v8715_v40 = vld [vmem:[%s12520_s23 + $0x70] sm:$0xff] }
 0x419   : >> { %5684 = vrot.lane.b32.xlu1 %v5605_v24, %s10748_s22  ;;  %v3670_v24 = vpack.c.b16 %v2818_v50, %v2815_v22  ;;  %v3677_v3 = vpack.c.b16 %v2834_v35, %v2831_v16  ;;  %v5608_v51 = vor.u32 %v5606_v28, %v13354_v18  ;;  %v5775_v47 = vrot.slane %v5773_v44, 1 }
 0x41a   : >> { %v2677_v56 = vpop.permute.xlu1 %2676  ;;  %v5620_v23 = vsel %vm2407_vm7, %v5615_v34, %v5619_v62  ;;  %v5623_v53 = vor.u32 %v5621_v30, %v5619_v62  ;;  %v5783_v50 = vrot.slane %v5781_v25, 1  ;;  %v13461_v54 = vrot.slane %v5632_v12, 1 }
 0x41b   : >> { %9804 = vmatpush3.bf16.msra.mxu0 %v4446_v45  ;;  %v13432_v59 = vsel %vm1749_vm3, %v12983_v8, %v2677_v56  ;;  %v5786_v45 = vrot.slane %v5784_v49, 2  ;;  %v5630_v18 = vor.u32 %v5629_v20, %v5625_v39  ;;  %v5792_v22 = vrot.slane %v5790_v1, 1  ;;  %v13472_v56 = vld [vmem:[%s12520_s23 + $0x28] sm:$0x3f] }
 0x41c   : >> { %3799 = vmatmul.mubr.bf16.gmra.mrb[52].mxu1 %v8583_v58  ;;  %v2675_v0 = vpop.permute.xlu0 %2674  ;;  %9805 = vmatprep.subr.bf16.mxu0 %v14615_v5  ;;  %v2403_v58 = vld [vmem:[%s12520_s23 + $0x20] sm:$0xfc]  ;;  %v5803_v28 = vrot.slane %v5801_v2, 2  ;;  %v5642_v34 = vshll.u32 %v8715_v40, 16  ;;  %v2850_v62 = vunpack.c.h.b16 %v13432_v59  ;;  %v14625_v30 = vrot.slane %v12844_v7, 1 }
 0x41d   : >> { %3806 = vmatprep.mubr.bf16.mxu1 %v3678_v26  ;;  %v13439_v21 = vsel %vm1749_vm3, %v14624_v4, %v2675_v0  ;;  %5840 = vrot.lane.b32.xlu0 %v5754_v63, %s10748_s22  ;;  %v5778_v26 = vrot.slane %v5776_v55, 2  ;;  %v5795_v63 = vrot.slane %v5793_v42, 2  ;;  %v2699_v61 = vrot.slane %v2403_v58, 2 }
 0x41e   : >> { %9770 = vmatmul.mubr.msk.bf16.gmra.mrb[40].mxu0 %vm1749_vm3, %v8582_v41  ;;  %v8587_v8 = vcombine.low %v13439_v21, %v13432_v59  ;;  %5844 = vrot.lane.b32.xlu1 %v5771_v31, %s10748_s22  ;;  %v13450_v60 = vpop.permute.xlu1 %2518  ;;  %v2767_v41 = vsel %vm1749_vm3, %v12972_v38, %v13406_v6  ;;  %v2700_v38 = vrot.slane %v13472_v56, 2  ;;  %v13477_v31 = vld [vmem:[%s12520_s23 + $0x78] sm:$0x1f]  ;;  %v2702_v55 = vrot.slane %v2404_v11, 2 }
 0x41f   : >> { %9773 = vmatprep.mubr.msk.bf16.mxu0 %vm10747_vm5, %v14615_v5  ;;  %9806 = vmatpush3.bf16.msra.mxu0 %v4447_v32  ;;  %v2703_v16 = vrot.slane %v10569_v13, 2  ;;  %v5779_v35 = vor.u32 %v5778_v26, %v5775_v47  ;;  %v5787_v32 = vor.u32 %v5786_v45, %v5783_v50  ;;  %v5635_v25 = vsel %vm2407_vm7, %v5630_v18, %v13461_v54  ;;  %v13519_v47 = vld [vmem:[%s12520_s23 + $0x88] sm:$0x1f]  ;;  %v8738_v11 = vld [vmem:[%s12520_s23 + $0x98] sm:$0x3f] }
 0x420   : >> { %v13453_v57 = vpop.permute.xlu0 %2516  ;;  %9807 = vmatprep.subr.bf16.mxu0 %v14615_v5  ;;  %v5796_v7 = vor.u32 %v5795_v63, %v5792_v22  ;;  %v5640_v49 = vshrl.u32 %v8715_v40, 16  ;;  %v5644_v39 = vrot.slane %v5642_v34, 1  ;;  %v5647_v12 = vshll.u32 %v13477_v31, 16  ;;  %v8732_v40 = vld [vmem:[%s12520_s23 + $0x90] sm:$0xfe] }
 0x421   : >> { %5842 = vrot.lane.b32.xlu0 %v13376_v15, %s10748_s22  ;;  %v5800_v15 = vrot.slane %v5798_v36, 1  ;;  %v2732_v42 = vsel %vm1749_vm3, %v13154_v10, %v13395_v17  ;;  %v2380_v36 = vld [vmem:[%s12520_s23 + $0x48] sm:$0xf]  ;;  %v13510_v2 = vsel %vm1206_vm1, %v2702_v55, %v2703_v16  ;;  %v5636_v17 = vshrl.u32 %v13422_v33, 16 }
 0x422   : >> { %5688 = vrot.lane.b32.xlu1 %v5620_v23, %s10748_s22  ;;  %v13468_v27 = vpop.permute.xlu1 %2520  ;;  %v2701_v23 = vsel %vm1206_vm1, %v2699_v61, %v2700_v38  ;;  %v5651_v50 = vshrl.u32 %v13477_v31, 16  ;;  %v2735_v33 = vsel %vm1749_vm3, %v2380_v36, %v13453_v57  ;;  %v13533_v18 = vsel %vm1749_vm3, %v13242_v48, %v13450_v60  ;;  %v2382_v57 = vld [vmem:[%s12520_s23 + $0x58] sm:$0xf] }
 0x423   : >> { %9808 = vmatpush3.bf16.msra.mxu0 %v4448_v43  ;;  %v13492_v4 = vor.u32 %v5803_v28, %v5800_v15  ;;  %v8737_v43 = vld [vmem:[%s12520_s23 + $0x88] sm:$0x3f]  ;;  %v5662_v59 = vshll.u32 %v13519_v47, 16  ;;  %v5824_v21 = vshrl.u32 %v8732_v40, 16  ;;  %v5827_v60 = vshll.u32 %v8732_v40, 16 }
 0x424   : >> { %3807 = vmatmul.mubr.bf16.gmra.mrb[56].mxu1 %v3677_v3  ;;  %v2679_v6 = vpop.permute.xlu0 %2678  ;;  %9845 = vmatprep.subr.bf16.mxu0 %v14615_v5  ;;  %v5788_v3 = vsel %vm2553_vm6, %v5779_v35, %v5787_v32  ;;  %v5815_v63 = vshrl.u32 %v8737_v43, 16  ;;  %v5818_v48 = vshll.u32 %v8737_v43, 16  ;;  %v5832_v28 = vshrl.u32 %v8738_v11, 16  ;;  %v13575_v36 = vld [vmem:[%s12520_s23 + $0x98] sm:$0x1f] }
 0x425   : >> { %3814 = vmatprep.mubr.bf16.mxu1 %v2767_v41  ;;  %v2776_v44 = vsel %vm1749_vm3, %v14625_v30, %v2679_v6  ;;  %5686 = vrot.lane.b32.xlu0 %v5608_v51, %s10748_s22  ;;  %v5805_v10 = vsel %vm2553_vm6, %v5796_v7, %v13492_v4  ;;  %v5835_v34 = vshll.u32 %v8738_v11, 16  ;;  %v8585_v61 = vcombine.low %v2700_v38, %v13510_v2 }
 0x426   : >> { %9774 = vmatmul.mubr.msk.bf16.gmra.mrb[44].mxu0 %vm1749_vm3, %v3670_v24  ;;  %v2853_v0 = vunpack.c.l.b16 %v2776_v44  ;;  %5690 = vrot.lane.b32.xlu1 %v5623_v53, %s10748_s22  ;;  %v13490_v52 = vpop.permute.xlu1 %4074  ;;  %v8731_v24 = vld [vmem:[%s12520_s23 + $0x80] sm:$0xfe]  ;;  %v5649_v53 = vrot.slane %v5647_v12, 1  ;;  %v2836_v6 = vunpack.c.l.b16 %v2703_v16  ;;  %v5638_v30 = vor.u32 %v5636_v17, %v13461_v54  ;;  %v8719_v44 = vld [vmem:[%s12520_s23 + $0x90] sm:$0xff]  ;;  %v13583_v17 = vld [vmem:[%s12520_s23 + $0x58] sm:$0x1f] }
 0x427   : >> { %9777 = vmatprep.mubr.msk.bf16.mxu0 %vm10747_vm5, %v14615_v5  ;;  %v5807_v45 = vshrl.u32 %v8731_v24, 16  ;;  %v5810_v41 = vshll.u32 %v8731_v24, 16  ;;  %v2740_v55 = vsel %vm1749_vm3, %v2382_v57, %v13468_v27  ;;  %v5820_v56 = vrot.slane %v5818_v48, 2 }
 0x428   : >> { %v13495_v20 = vpack.c.b16 %v2853_v0, %v2850_v62  ;;  %v13497_v1 = vpop.permute.xlu0 %4230  ;;  %v8586_v62 = vcombine.low %v2735_v33, %v13533_v18  ;;  %v5653_v13 = vor.u32 %v5651_v50, %v5649_v53  ;;  %v13567_v38 = vrot.slane %v5662_v59, 1  ;;  %v13614_v59 = vld [vmem:[%s12520_s23 + $0x48] sm:$0x1f] }
 0x429   : >> { %5846 = vrot.lane.b32.xlu0 %v13397_v19, %s10748_s22  ;;  %v5645_v19 = vor.u32 %v5644_v39, %v5640_v49  ;;  %v5809_v35 = vrot.slane %v5807_v45, 1  ;;  %v5812_v0 = vrot.slane %v5810_v41, 2  ;;  %v5826_v16 = vrot.slane %v5824_v21, 1 }
 0x42a   : >> { %5692 = vrot.lane.b32.xlu1 %v5635_v25, %s10748_s22  ;;  %v4235_v51 = vpop.permute.xlu1 %4234  ;;  %v5817_v25 = vrot.slane %v5815_v63, 1  ;;  %v5829_v54 = vrot.slane %v5827_v60, 2  ;;  %v5834_v49 = vrot.slane %v5832_v28, 1  ;;  %v5837_v27 = vrot.slane %v5835_v34, 2  ;;  %v2405_v34 = vld [vmem:[%s12520_s23 + $0x40] sm:$0xfc] }
 0x42b   : >> { %v13524_v26 = vsel %vm1749_vm3, %v13031_v29, %v4235_v51  ;;  %v14626_v29 = vrot.slane %v12879_v9, 1  ;;  %v5672_v39 = vshll.u32 %v8719_v44, 16  ;;  %v2852_v12 = vunpack.c.l.b16 %v2740_v55  ;;  %v10570_v51 = vld [vmem:[%s12520_s23 + $0x50] sm:$0xfe] }
 0x42c   : >> { %3815 = vmatmul.mubr.bf16.gmra.mrb[60].mxu1 %v2732_v42  ;;  %v4233_v58 = vpop.permute.xlu0 %4232  ;;  %v2833_v42 = vunpack.c.h.b16 %v13510_v2  ;;  %v4387_v24 = vunpack.c.h.b16 %v13524_v26  ;;  %v5813_v2 = vor.u32 %v5812_v0, %v5809_v35  ;;  %v5821_v40 = vor.u32 %v5820_v56, %v5817_v25  ;;  %v2406_v35 = vld [vmem:[%s12520_s23 + $0x50] sm:$0xfc]  ;;  %v10574_v25 = vld [vmem:[%s12520_s23 + $0x20] sm:$0xff] }
 0x42d   : >> { %3822 = vmatprep.mubr.bf16.mxu1 %v8587_v8  ;;  %v13541_v22 = vsel %vm1749_vm3, %v14626_v29, %v4233_v58  ;;  %5848 = vrot.lane.b32.xlu0 %v5788_v3, %s10748_s22  ;;  %v5650_v8 = vsel %vm2407_vm7, %v5645_v19, %v5649_v53  ;;  %v14627_v3 = vrot.slane %v12919_v37, 1  ;;  %v4120_v19 = vrot.slane %v13583_v17, 1 }
 0x42e   : >> { %9778 = vmatmul.mubr.msk.bf16.gmra.mrb[48].mxu0 %vm1749_vm3, %v2701_v23  ;;  %v8636_v15 = vcombine.low %v13541_v22, %v13524_v26  ;;  %5852 = vrot.lane.b32.xlu1 %v5805_v10, %s10748_s22  ;;  %v13552_v9 = vpop.permute.xlu1 %4078  ;;  %v4119_v10 = vrot.slane %v10570_v51, 1  ;;  %v5665_v37 = vsel %vm2407_vm7, %v13310_v14, %v13567_v38  ;;  %v5830_v50 = vor.u32 %v5829_v54, %v5826_v16  ;;  %v8600_v16 = vld [vmem:[%s12520_s23 + $0x28] sm:$0xf]  ;;  %v5234_v54 = vld [vmem:[#allocation7 + $0x1e0] sm:$0xff] }
 0x42f   : >> { %9781 = vmatprep.mubr.msk.bf16.mxu0 %vm10747_vm5, %v14615_v5  ;;  %v13596_v45 = vor.u32 %v5837_v27, %v5834_v49  ;;  %v5674_v41 = vrot.slane %v5672_v39, 1  ;;  %v5677_v11 = vshll.u32 %v13575_v36, 16  ;;  %v3679_v63 = vpack.c.b16 %v2836_v6, %v2833_v42  ;;  %v10575_v27 = vld [vmem:[%s12520_s23 + $0x58] sm:$0x3f] }
 0x430   : >> { %v13559_v31 = vpop.permute.xlu0 %4076  ;;  %v4121_v14 = vsel %vm2534_vm8, %v4119_v10, %v4120_v19  ;;  %v4316_v57 = vsel %vm1749_vm3, %v13022_v46, %v13497_v1  ;;  %v5822_v48 = vsel %vm2553_vm6, %v5813_v2, %v5821_v40  ;;  %v4117_v21 = vrot.slane %v13614_v59, 1  ;;  %v5245_v10 = vld [vmem:[#allocation7 + $0x238] sm:$0xff] }
 0x431   : >> { %5850 = vrot.lane.b32.xlu0 %v5787_v32, %s10748_s22  ;;  %v2849_v32 = vunpack.c.h.b16 %v13533_v18  ;;  %v5839_v60 = vsel %vm2553_vm6, %v5830_v50, %v13596_v45  ;;  %v2705_v6 = vrot.slane %v2405_v34, 2  ;;  %v5666_v55 = vshrl.u32 %v13519_v47, 16  ;;  %v5246_v50 = vld [vmem:[#allocation7 + $0x240] sm:$0xff]  ;;  %v5248_v34 = vld [vmem:[#allocation7 + $0x250] sm:$0xff] }
 0x432   : >> { %5696 = vrot.lane.b32.xlu1 %v5650_v8, %s10748_s22  ;;  %v13569_v7 = vpop.permute.xlu1 %4080  ;;  %v5681_v0 = vshrl.u32 %v13575_v36, 16  ;;  %v4285_v56 = vsel %vm1749_vm3, %v10574_v25, %v13490_v52  ;;  %v2708_v47 = vrot.slane %v2406_v35, 2  ;;  %v2709_v39 = vrot.slane %v10575_v27, 2  ;;  %v8602_v36 = vld [vmem:[%s12520_s23 + $0x38] sm:$0xf]  ;;  %v5240_v35 = vld [vmem:[#allocation7 + $0x210] sm:$0xff] }
 0x433   : >> { %v3686_v33 = vpack.c.b16 %v2852_v12, %v2849_v32  ;;  %v5243_v32 = vld [vmem:[#allocation7 + $0x228] sm:$0xff]  ;;  %v5668_v12 = vor.u32 %v5666_v55, %v13567_v38  ;;  %v4288_v52 = vsel %vm1749_vm3, %v8600_v16, %v13559_v31  ;;  %v4293_v26 = vsel %vm1749_vm3, %v8602_v36, %v13569_v7 }
 0x434   : >> { %3823 = vmatmul.mubr.bf16.gmra.mrb[64].mxu1 %v8586_v62  ;;  %v4237_v23 = vpop.permute.xlu0 %4236  ;;  %v5235_v38 = vld [vmem:[#allocation7 + $0x1e8] sm:$0xff]  ;;  %v2710_v31 = vsel %vm1206_vm1, %v2708_v47, %v2709_v39  ;;  %v2854_v7 = vunpack.c.l.b16 %v2709_v39  ;;  %v13702_v39 = vld [vmem:[%s12520_s23 + $0x50] sm:$0xff] }
 0x435   : >> { %3830 = vmatprep.mubr.bf16.mxu1 %v13495_v20  ;;  %v4325_v43 = vsel %vm1749_vm3, %v14627_v3, %v4237_v23  ;;  %5694 = vrot.lane.b32.xlu0 %v5638_v30, %s10748_s22  ;;  %v5670_v20 = vshrl.u32 %v8719_v44, 16  ;;  %v10573_v30 = vld [vmem:[%s12520_s23 + $0x48] sm:$0x3f]  ;;  %v5244_v3 = vld [vmem:[#allocation7 + $0x230] sm:$0xff] }
 0x436   : >> { %9782 = vmatmul.mubr.msk.bf16.gmra.mrb[52].mxu0 %vm1749_vm3, %v8585_v61  ;;  %v4390_v53 = vunpack.c.l.b16 %v4325_v43  ;;  %5698 = vrot.lane.b32.xlu1 %v5653_v13, %s10748_s22  ;;  %v13594_v58 = vpop.permute.xlu1 %4082  ;;  %v2706_v44 = vrot.slane %v10573_v30, 2  ;;  %v10577_v43 = vld [vmem:[%s12520_s23 + $0x40] sm:$0xfe] }
 0x437   : >> { %9785 = vmatprep.mubr.msk.bf16.mxu0 %vm10747_vm5, %v14615_v5  ;;  %v5675_v28 = vor.u32 %v5674_v41, %v5670_v20  ;;  %v4116_v51 = vrot.slane %v10577_v43, 1 }
 0x438   : >> { %v13599_v18 = vpack.c.b16 %v4390_v53, %v4387_v24  ;;  %v13601_v29 = vpop.permute.xlu0 %4238  ;;  %v2707_v49 = vsel %vm1206_vm1, %v2705_v6, %v2706_v44  ;;  %v10576_v24 = vld [vmem:[%s12520_s23 + $0x30] sm:$0xff]  ;;  %v8588_v22 = vcombine.low %v2706_v44, %v2710_v31  ;;  %v4389_v53 = vunpack.c.l.b16 %v4293_v26  ;;  %v10579_v6 = vld [vmem:[%s12520_s23 + $0x40] sm:$0xff]  ;;  %v8604_v44 = vld [vmem:[%s12520_s23 + $0x48] sm:$0xf] }
 0x439   : >> { %5854 = vrot.lane.b32.xlu0 %v13492_v4, %s10748_s22  ;;  %v5679_v4 = vrot.slane %v5677_v11, 1  ;;  %v4290_v23 = vsel %vm1749_vm3, %v10576_v24, %v13552_v9  ;;  %v4118_v20 = vsel %vm2534_vm8, %v4116_v51, %v4117_v21  ;;  %v4295_v30 = vsel %vm1749_vm3, %v10579_v6, %v13594_v58  ;;  %v5250_v58 = vld [vmem:[#allocation7 + $0x260] sm:$0xff] }
 0x43a   : >> { %5700 = vrot.lane.b32.xlu1 %v5665_v37, %s10748_s22  ;;  %v4243_v8 = vpop.permute.xlu1 %4242  ;;  %v8635_v9 = vcombine.low %v4288_v52, %v4290_v23  ;;  %v4386_v2 = vunpack.c.h.b16 %v4290_v23  ;;  %v5237_v37 = vld [vmem:[#allocation7 + $0x1f8] sm:$0xff]  ;;  %v10582_v26 = vld [vmem:[%s12520_s23 + $0x60] sm:$0xfe] }
 0x43b   : >> { %v13621_v46 = vsel %vm1749_vm3, %v4121_v14, %v4243_v8  ;;  %v5680_v13 = vsel %vm2407_vm7, %v5675_v28, %v5679_v4  ;;  %v5683_v42 = vor.u32 %v5681_v0, %v5679_v4  ;;  %v5247_v14 = vld [vmem:[#allocation7 + $0x248] sm:$0xff]  ;;  %v8606_v52 = vld [vmem:[%s12520_s23 + $0x58] sm:$0xf] }
 0x43c   : >> { %3831 = vmatmul.mubr.bf16.gmra.mrb[68].mxu1 %v3686_v33  ;;  %v4241_v62 = vpop.permute.xlu0 %4240  ;;  %v4328_v33 = vsel %vm1749_vm3, %v4118_v20, %v13601_v29  ;;  %v5239_v29 = vld [vmem:[#allocation7 + $0x208] sm:$0xff]  ;;  %v4405_v27 = vunpack.c.h.b16 %v13621_v46  ;;  %v5241_v23 = vld [vmem:[#allocation7 + $0x218] sm:$0xff] }
 0x43d   : >> { %4553 = vmatprep.mubr.bf16.mxu1 %v4316_v57  ;;  %v13626_v1 = vsel %vm1749_vm3, %v4117_v21, %v4241_v62  ;;  %5856 = vrot.lane.b32.xlu0 %v5822_v48, %s10748_s22  ;;  %v8629_v57 = vld [vmem:[%s12520_s23 + $0x20] sm:$0xfc]  ;;  %v8630_v62 = vld [vmem:[%s12520_s23 + $0x30] sm:$0xfc] }
 0x43e   : >> { %9786 = vmatmul.mubr.msk.bf16.gmra.mrb[56].mxu0 %vm1749_vm3, %v3679_v63  ;;  %v8639_v61 = vcombine.low %v13626_v1, %v13621_v46  ;;  %5860 = vrot.lane.b32.xlu1 %v5839_v60, %s10748_s22  ;;  %v4266_v8 = vrot.slane %v8629_v57, 2  ;;  %v10578_v60 = vld [vmem:[%s12520_s23 + $0x28] sm:$0x3f]  ;;  %v4087_v55 = vpop.permute.xlu1 %4086  ;;  %v4269_v25 = vrot.slane %v8630_v62, 2  ;;  %v6047_v1 = vld [vmem:[#allocation7 + $0x2c0] sm:$0xff] }
 0x43f   : >> { %9789 = vmatprep.mubr.msk.bf16.mxu0 %vm10747_vm5, %v14615_v5  ;;  %v4267_v28 = vrot.slane %v10578_v60, 2  ;;  %v8631_v62 = vld [vmem:[%s12520_s23 + $0x40] sm:$0xfc] }
 0x440   : >> { %v4085_v41 = vpop.permute.xlu0 %4084 }
 0x441   : >> { %5858 = vrot.lane.b32.xlu0 %v5821_v40, %s10748_s22  ;;  %v2851_v40 = vunpack.c.h.b16 %v2710_v31  ;;  %v4268_v0 = vsel %vm1206_vm1, %v4266_v8, %v4267_v28  ;;  %v4298_v17 = vsel %vm1749_vm3, %v8604_v44, %v4085_v41 }
 0x442   : >> { %5704 = vrot.lane.b32.xlu1 %v5680_v13, %s10748_s22  ;;  %v4089_v24 = vpop.permute.xlu1 %4088 }
 0x443   : >> { %v3688_v11 = vpack.c.b16 %v2854_v7, %v2851_v40  ;;  %v5252_v40 = vld [vmem:[#allocation7 + $0x270] sm:$0xff] }
 0x444   : >> { %4554 = vmatmul.mubr.bf16.vlgmr.msra.gmra.mrb[72].mxu1 %v4285_v56  ;;  %v4245_v4 = vpop.permute.xlu0 %4244  ;;  %v10580_v56 = vld [vmem:[%s12520_s23 + $0x38] sm:$0x3f] }
 0x445   : >> { %4561 = vmatprep.mubr.bf16.mxu1 %v8636_v15  ;;  %9126 = vmatpush3.bf16.msra.mxu1 %v5234_v54  ;;  %v5236_v15 = vld [vmem:[#allocation7 + $0x1f0] sm:$0xff]  ;;  %v4337_v13 = vsel %vm1749_vm3, %v4120_v19, %v4245_v4  ;;  %v4270_v16 = vrot.slane %v10580_v56, 2  ;;  %v5249_v54 = vld [vmem:[#allocation7 + $0x258] sm:$0xff]  ;;  %v4300_v19 = vsel %vm1749_vm3, %v13702_v39, %v4087_v55 }
 0x446   : >> { %9790 = vmatmul.mubr.msk.bf16.gmra.mrb[60].mxu0 %vm1749_vm3, %v2707_v49  ;;  %9127 = vmatprep.subr.bf16.mxu1 %v5243_v32  ;;  %v4408_v32 = vunpack.c.l.b16 %v4337_v13 }
 0x447   : >> { %9793 = vmatprep.mubr.msk.bf16.mxu0 %vm10747_vm5, %v14615_v5  ;;  %5702 = vrot.lane.b32.xlu0 %v5668_v12, %s10748_s22  ;;  %v4271_v46 = vsel %vm1206_vm1, %v4269_v25, %v4270_v16 }
 0x448   : >> { %5706 = vrot.lane.b32.xlu1 %v5683_v42, %s10748_s22  ;;  %v13678_v63 = vpop.f32.mrb[0].mxu1  ;;  %v4247_v12 = vpop.permute.xlu0 %4246  ;;  %v4465_v31 = vpack.c.b16 %v4408_v32, %v4405_v27  ;;  %v4388_v20 = vunpack.c.h.b16 %v4271_v46  ;;  %v8608_v27 = vld [vmem:[%s12520_s23 + $0x68] sm:$0xf] }
 0x449   : >> { %9128 = vmatpush3.bf16.msra.mxu1 %v5235_v38  ;;  %v9723_v48 = vpop.f32.mrb[1].mxu1  ;;  %v5251_v38 = vld [vmem:[#allocation7 + $0x268] sm:$0xff] }
 0x44a   : >> { %9129 = vmatprep.subr.bf16.mxu1 %v5244_v3  ;;  %v13681_v59 = vpop.f32.mrb[2].mxu1  ;;  %v4303_v3 = vsel %vm1749_vm3, %v8606_v52, %v4089_v24  ;;  %v10588_v52 = vld [vmem:[%s12520_s23 + $0x58] sm:$0x3f] }
 0x44b   : >> { %5862 = vrot.lane.b32.xlu0 %v13596_v45, %s10748_s22  ;;  %v4455_v45 = vpack.c.b16 %v4389_v53, %v4386_v2  ;;  %v9724_v21 = vpop.f32.mrb[3].mxu1  ;;  %v4404_v2 = vunpack.c.h.b16 %v4300_v19  ;;  %v4407_v53 = vunpack.c.l.b16 %v4303_v3  ;;  %v4276_v24 = vrot.slane %v10588_v52, 2 }
 0x44c   : >> { %4562 = vmatmul.mubr.bf16.gmra.mrb[76].mxu1 %v8635_v9  ;;  %v8637_v9 = vcombine.low %v4267_v28, %v4271_v46  ;;  %v4249_v51 = vpop.permute.xlu0 %4248 }
 0x44d   : >> { %4569 = vmatprep.mubr.bf16.mxu1 %v13599_v18  ;;  %9130 = vmatpush3.bf16.msra.mxu1 %v5236_v15  ;;  %v5238_v18 = vld [vmem:[#allocation7 + $0x200] sm:$0xff]  ;;  %v10583_v15 = vld [vmem:[%s12520_s23 + $0x68] sm:$0x1f]  ;;  %v4464_v48 = vpack.c.b16 %v4407_v53, %v4404_v2 }
 0x44e   : >> { %9794 = vmatmul.mubr.msk.bf16.gmra.mrb[64].mxu0 %vm1749_vm3, %v8588_v22  ;;  %9131 = vmatprep.subr.bf16.mxu1 %v5245_v10  ;;  %v4122_v22 = vrot.slane %v10582_v26, 1  ;;  %v4123_v43 = vrot.slane %v10583_v15, 1  ;;  %v8610_v26 = vld [vmem:[%s12520_s23 + $0x78] sm:$0xf] }
 0x44f   : >> { %9797 = vmatprep.mubr.msk.bf16.mxu0 %vm10747_vm5, %v14615_v5 }
 0x450   : >> { %v13697_v49 = vpop.f32.mrb[4].mxu1  ;;  %v4093_v21 = vpop.permute.xlu0 %4092  ;;  %v4343_v44 = vsel %vm1749_vm3, %v4123_v43, %v4249_v51 }
 0x451   : >> { %9132 = vmatpush3.bf16.msra.mxu1 %v5237_v37  ;;  %v9727_v47 = vpop.f32.mrb[5].mxu1 }
 0x452   : >> { %9133 = vmatprep.subr.bf16.mxu1 %v5246_v50  ;;  %v13709_v42 = vpop.f32.mrb[6].mxu1  ;;  %v4391_v50 = vunpack.c.l.b16 %v4270_v16  ;;  %v8632_v16 = vld [vmem:[%s12520_s23 + $0x50] sm:$0xfc] }
 0x453   : >> { %v9728_v36 = vpop.f32.mrb[7].mxu1 }
 0x454   : >> { %4570 = vmatmul.mubr.bf16.gmra.mrb[80].mxu1 %v4455_v45  ;;  %v4091_v45 = vpop.permute.xlu1 %4090  ;;  %v4457_v8 = vpack.c.b16 %v4391_v50, %v4388_v20  ;;  %v4253_v56 = vpop.permute.xlu0 %4252  ;;  %v10591_v50 = vld [vmem:[%s12520_s23 + $0x38] sm:$0x1f] }
 0x455   : >> { %4577 = vmatprep.mubr.bf16.mxu1 %v4328_v33  ;;  %9134 = vmatpush3.bf16.msra.mxu1 %v5238_v18  ;;  %v10584_v33 = vld [vmem:[%s12520_s23 + $0x70] sm:$0xfe] }
 0x456   : >> { %9798 = vmatmul.mubr.msk.bf16.gmra.mrb[68].mxu0 %vm1749_vm3, %v3688_v11  ;;  %9135 = vmatprep.subr.bf16.mxu1 %v5247_v14  ;;  %v4124_v11 = vsel %vm2534_vm8, %v4122_v22, %v4123_v43  ;;  %v4125_v18 = vrot.slane %v10584_v33, 1  ;;  %v10585_v14 = vld [vmem:[%s12520_s23 + $0x78] sm:$0x1f] }
 0x457   : >> { %9809 = vmatprep.mubr.msk.bf16.mxu0 %vm10747_vm5, %v14615_v5  ;;  %v4126_v57 = vrot.slane %v10585_v14, 1  ;;  %v4340_v60 = vsel %vm1749_vm3, %v4124_v11, %v4247_v12  ;;  %v4275_v12 = vrot.slane %v8632_v16, 2  ;;  %v8633_v16 = vld [vmem:[%s12520_s23 + $0x60] sm:$0xfc] }
 0x458   : >> { %v13720_v10 = vpop.f32.mrb[8].mxu1  ;;  %v5036_v3 = vpop.permute.xlu0 %5035 }
 0x459   : >> { %9136 = vmatpush3.bf16.msra.mxu1 %v5239_v29  ;;  %v9731_v7 = vpop.f32.mrb[9].mxu1  ;;  %v5253_v29 = vld [vmem:[#allocation7 + $0x278] sm:$0xff]  ;;  %v4127_v28 = vsel %vm2534_vm8, %v4125_v18, %v4126_v57  ;;  %v4277_v43 = vsel %vm1206_vm1, %v4275_v12, %v4276_v24  ;;  %v10594_v12 = vld [vmem:[%s12520_s23 + $0x68] sm:$0x3f] }
 0x45a   : >> { %9137 = vmatprep.subr.bf16.mxu1 %v5248_v34  ;;  %v13723_v37 = vpop.f32.mrb[10].mxu1  ;;  %v4251_v34 = vpop.permute.xlu1 %4250  ;;  %v10590_v7 = vld [vmem:[%s12520_s23 + $0x30] sm:$0xfe]  ;;  %v4279_v52 = vrot.slane %v10594_v12, 2 }
 0x45b   : >> { %v9732_v41 = vpop.f32.mrb[11].mxu1  ;;  %v4346_v55 = vsel %vm1749_vm3, %v4127_v28, %v4251_v34  ;;  %v4915_v20 = vrot.slane %v10590_v7, 1  ;;  %v10592_v28 = vld [vmem:[%s12520_s23 + $0x40] sm:$0xfe] }
 0x45c   : >> { %4578 = vmatmul.mubr.bf16.gmra.mrb[84].mxu1 %v4295_v30  ;;  %v8642_v47 = vcombine.low %v4343_v44, %v4346_v55  ;;  %v4423_v46 = vunpack.c.h.b16 %v4346_v55  ;;  %v5038_v41 = vpop.permute.xlu0 %5037  ;;  %v4918_v34 = vrot.slane %v10592_v28, 1  ;;  %v6049_v28 = vld [vmem:[#allocation7 + $0x2d0] sm:$0xff] }
 0x45d   : >> { %4585 = vmatprep.mubr.bf16.mxu1 %v8639_v61  ;;  %9138 = vmatpush3.bf16.msra.mxu1 %v5240_v35  ;;  %v8638_v61 = vcombine.low %v4298_v17, %v4300_v19  ;;  %v4272_v35 = vrot.slane %v8631_v62, 2  ;;  %v4349_v19 = vsel %vm1749_vm3, %v4126_v57, %v4253_v56  ;;  %v10593_v62 = vld [vmem:[%s12520_s23 + $0x48] sm:$0x1f] }
 0x45e   : >> { %9810 = vmatmul.mubr.msk.bf16.vlgmr.msra.gmra.mrb[72].mxu0 %vm1749_vm3, %v4268_v0  ;;  %9139 = vmatprep.subr.bf16.mxu1 %v5249_v54  ;;  %v10586_v0 = vld [vmem:[%s12520_s23 + $0x48] sm:$0x3f]  ;;  %v13748_v54 = vld [vmem:[%s12520_s23 + $0x60] sm:$0xff]  ;;  %v4095_v17 = vpop.permute.xlu1 %4094 }
 0x45f   : >> { %9846 = vmatpush3.bf16.msra.mxu0 %v5250_v58  ;;  %9813 = vmatprep.mubr.msk.bf16.mxu0 %vm10747_vm5, %v14615_v5  ;;  %v4273_v25 = vrot.slane %v10586_v0, 2  ;;  %v4305_v58 = vsel %vm1749_vm3, %v13748_v54, %v4091_v45  ;;  %v4916_v45 = vrot.slane %v10591_v50, 1 }
 0x460   : >> { %9847 = vmatprep.subr.bf16.mxu0 %v14615_v5  ;;  %v13734_v4 = vpop.f32.mrb[12].mxu1  ;;  %v4882_v55 = vpop.permute.xlu0 %4881 }
 0x461   : >> { %9140 = vmatpush3.bf16.msra.mxu1 %v5241_v23  ;;  %v9735_v6 = vpop.f32.mrb[13].mxu1  ;;  %v4274_v32 = vsel %vm1206_vm1, %v4272_v35, %v4273_v25 }
 0x462   : >> { %9208 = vmatprep.subr.bf16.mxu1 %v6047_v1  ;;  %v13738_v30 = vpop.f32.mrb[14].mxu1  ;;  %v4308_v1 = vsel %vm1749_vm3, %v8608_v27, %v4093_v21  ;;  %v4097_v22 = vpop.permute.xlu1 %4096  ;;  %v4919_v6 = vrot.slane %v10593_v62, 1  ;;  %v5124_v27 = vsel %vm1749_vm3, %v4916_v45, %v5038_v41 }
 0x463   : >> { %9848 = vmatpush3.bf16.msra.mxu0 %v5251_v38  ;;  %v9736_v13 = vpop.f32.mrb[15].mxu1  ;;  %v4313_v53 = vsel %vm1749_vm3, %v8610_v26, %v4097_v22  ;;  %v6039_v22 = vld [vmem:[#allocation7 + $0x280] sm:$0xff] }
 0x464   : >> { %4586 = vmatmul.mubr.bf16.gmra.mrb[88].mxu1 %v8638_v61  ;;  %9849 = vmatprep.subr.bf16.mxu0 %v14615_v5  ;;  %v13760_v61 = vld [vmem:[%s12520_s23 + $0x70] sm:$0xff]  ;;  %v4425_v18 = vunpack.c.l.b16 %v4313_v53  ;;  %v4920_v0 = vsel %vm2534_vm8, %v4918_v34, %v4919_v6  ;;  %v6048_v53 = vld [vmem:[#allocation7 + $0x2c8] sm:$0xff] }
 0x465   : >> { %4593 = vmatprep.mubr.bf16.mxu1 %v4465_v31  ;;  %v4310_v38 = vsel %vm1749_vm3, %v13760_v61, %v4095_v17  ;;  %v4426_v31 = vunpack.c.l.b16 %v4349_v19 }
 0x466   : >> { %9814 = vmatmul.mubr.msk.bf16.gmra.mrb[76].mxu0 %vm1749_vm3, %v8637_v9  ;;  %v8641_v51 = vcombine.low %v4308_v1, %v4310_v38  ;;  %v4422_v33 = vunpack.c.h.b16 %v4310_v38  ;;  %v4880_v21 = vpop.permute.xlu1 %4879 }
 0x467   : >> { %9817 = vmatprep.mubr.msk.bf16.mxu0 %vm10747_vm5, %v14615_v5  ;;  %9850 = vmatpush3.bf16.msra.mxu0 %v5252_v40  ;;  %v4474_v2 = vpack.c.b16 %v4426_v31, %v4423_v46  ;;  %v8640_v40 = vcombine.low %v4273_v25, %v4277_v43  ;;  %v10595_v46 = vld [vmem:[%s12520_s23 + $0x30] sm:$0xff]  ;;  %v8655_v31 = vld [vmem:[%s12520_s23 + $0x38] sm:$0xf] }
 0x468   : >> { %9851 = vmatprep.subr.bf16.mxu0 %v14615_v5  ;;  %v13756_v23 = vpop.f32.mrb[16].mxu1  ;;  %v4473_v44 = vpack.c.b16 %v4425_v18, %v4422_v33  ;;  %v5090_v1 = vsel %vm1749_vm3, %v10595_v46, %v4880_v21  ;;  %v5093_v50 = vsel %vm1749_vm3, %v8655_v31, %v4882_v55  ;;  %v6040_v21 = vld [vmem:[#allocation7 + $0x288] sm:$0xff]  ;;  %v6041_v55 = vld [vmem:[#allocation7 + $0x290] sm:$0xff]  ;;  %v6042_v46 = vld [vmem:[#allocation7 + $0x298] sm:$0xff] }
 0x469   : >> { %v9739_v36 = vpop.f32.mrb[17].mxu1  ;;  %v10600_v31 = vld [vmem:[%s12520_s23 + $0x60] sm:$0xfe] }
 0x46a   : >> { %v13764_v9 = vpop.f32.mrb[18].mxu1  ;;  %v5040_v56 = vpop.permute.xlu1 %5039  ;;  %v8634_v36 = vld [vmem:[%s12520_s23 + $0x70] sm:$0xfc] }
 0x46b   : >> { %9852 = vmatpush3.bf16.msra.mxu0 %v5253_v29  ;;  %v9740_v15 = vpop.f32.mrb[19].mxu1  ;;  %v4409_v29 = vunpack.c.l.b16 %v4276_v24  ;;  %v5127_v17 = vsel %vm1749_vm3, %v4920_v0, %v5040_v56  ;;  %v5042_v24 = vpop.permute.xlu0 %5041  ;;  %v10599_v0 = vld [vmem:[%s12520_s23 + $0x58] sm:$0x1f] }
 0x46c   : >> { %4594 = vmatmul.mubr.bf16.gmra.mrb[92].mxu1 %v4464_v48  ;;  %9889 = vmatprep.subr.bf16.mxu0 %v14615_v5  ;;  %v4406_v48 = vunpack.c.h.b16 %v4277_v43  ;;  %v8691_v38 = vcombine.low %v5124_v27, %v5127_v17  ;;  %v5130_v26 = vsel %vm1749_vm3, %v4919_v6, %v5042_v24  ;;  %v4281_v43 = vrot.slane %v8634_v36, 2 }
 0x46d   : >> { %4601 = vmatprep.mubr.bf16.mxu1 %v4340_v60  ;;  %v4917_v60 = vsel %vm2534_vm8, %v4915_v20, %v4916_v45  ;;  %v5192_v20 = vunpack.c.h.b16 %v5127_v17  ;;  %v13808_v45 = vld [vmem:[%s12520_s23 + $0x40] sm:$0xff]  ;;  %v5195_v33 = vunpack.c.l.b16 %v5130_v26  ;;  %v4922_v56 = vrot.slane %v10599_v0, 1  ;;  %v10601_v26 = vld [vmem:[%s12520_s23 + $0x68] sm:$0x1f]  ;;  %v8659_v0 = vld [vmem:[%s12520_s23 + $0x58] sm:$0xf] }
 0x46e   : >> { %9818 = vmatmul.mubr.msk.bf16.gmra.mrb[80].mxu0 %vm1749_vm3, %v4457_v8  ;;  %v4466_v13 = vpack.c.b16 %v4409_v29, %v4406_v48  ;;  %v5121_v35 = vsel %vm1749_vm3, %v4917_v60, %v5036_v3  ;;  %v4884_v3 = vpop.permute.xlu1 %4883  ;;  %v8657_v48 = vld [vmem:[%s12520_s23 + $0x48] sm:$0xf] }
 0x46f   : >> { %9821 = vmatprep.mubr.msk.bf16.mxu0 %vm10747_vm5, %v14615_v5  ;;  %v5095_v41 = vsel %vm1749_vm3, %v13808_v45, %v4884_v3  ;;  %v5044_v18 = vpop.permute.xlu0 %5043  ;;  %v5261_v62 = vpack.c.b16 %v5195_v33, %v5192_v20  ;;  %v4924_v3 = vrot.slane %v10600_v31, 1  ;;  %v8684_v33 = vld [vmem:[%s12520_s23 + $0x30] sm:$0xfc] }
 0x470   : >> { %v8690_v34 = vcombine.low %v5093_v50, %v5095_v41  ;;  %v5191_v17 = vunpack.c.h.b16 %v5095_v41  ;;  %v6052_v41 = vld [vmem:[#allocation7 + $0x2e8] sm:$0xff] }
 0x471   : >> { %v13774_v11 = vpop.f32.mrb[20].mxu1 }
 0x472   : >> { %v9743_v14 = vpop.f32.mrb[21].mxu1  ;;  %v4886_v29 = vpop.permute.xlu1 %4885 }
 0x473   : >> { %v13776_v57 = vpop.f32.mrb[22].mxu1  ;;  %v5098_v6 = vsel %vm1749_vm3, %v8657_v48, %v4886_v29 }
 0x474   : >> { %4602 = vmatmul.mubr.bf16.gmra.mrb[96].mxu1 %v4305_v58  ;;  %v9744_v8 = vpop.f32.mrb[23].mxu1 }
 0x475   : >> { %4609 = vmatprep.mubr.bf16.mxu1 %v8642_v47 }
 0x476   : >> { %9822 = vmatmul.mubr.msk.bf16.gmra.mrb[84].mxu0 %vm1749_vm3, %v4274_v32  ;;  %v4278_v32 = vrot.slane %v8633_v16, 2  ;;  %v5046_v16 = vpop.permute.xlu0 %5045  ;;  %v4888_v12 = vpop.permute.xlu1 %4887 }
 0x477   : >> { %9825 = vmatprep.mubr.msk.bf16.mxu0 %vm10747_vm5, %v14615_v5  ;;  %v5136_v48 = vsel %vm1749_vm3, %v4922_v56, %v5046_v16  ;;  %v6045_v16 = vld [vmem:[#allocation7 + $0x2b0] sm:$0xff] }
 0x478   : >> { %v4280_v15 = vsel %vm1206_vm1, %v4278_v32, %v4279_v52 }
 0x47a   : >> { %v13786_v25 = vpop.f32.mrb[24].mxu1  ;;  %v5048_v50 = vpop.permute.xlu1 %5047 }
 0x47b   : >> { %v9747_v58 = vpop.f32.mrb[25].mxu1 }
 0x47c   : >> { %4610 = vmatmul.mubr.bf16.gmra.mrb[100].mxu1 %v8641_v51  ;;  %v13789_v47 = vpop.f32.mrb[26].mxu1  ;;  %v10596_v51 = vld [vmem:[%s12520_s23 + $0x78] sm:$0x3f] }
 0x47d   : >> { %4617 = vmatprep.mubr.bf16.mxu1 %v4474_v2  ;;  %v9748_v19 = vpop.f32.mrb[27].mxu1  ;;  %v4282_v2 = vrot.slane %v10596_v51, 2  ;;  %v6050_v58 = vld [vmem:[#allocation7 + $0x2d8] sm:$0xff]  ;;  %v4890_v51 = vpop.permute.xlu0 %4889 }
 0x47e   : >> { %9826 = vmatmul.mubr.msk.bf16.gmra.mrb[88].mxu0 %vm1749_vm3, %v8640_v40  ;;  %v5194_v19 = vunpack.c.l.b16 %v5098_v6  ;;  %v5100_v6 = vsel %vm1749_vm3, %v13702_v39, %v4888_v12 }
 0x47f   : >> { %9829 = vmatprep.mubr.msk.bf16.mxu0 %vm10747_vm5, %v14615_v5  ;;  %v4283_v60 = vsel %vm1206_vm1, %v4281_v43, %v4282_v2  ;;  %v4427_v36 = vunpack.c.l.b16 %v4282_v2 }
 0x480   : >> { %v4424_v24 = vunpack.c.h.b16 %v4283_v60  ;;  %v5260_v43 = vpack.c.b16 %v5194_v19, %v5191_v17 }
 0x482   : >> { %v13804_v40 = vpop.f32.mrb[28].mxu1 }
 0x483   : >> { %v9751_v7 = vpop.f32.mrb[29].mxu1 }
 0x484   : >> { %4618 = vmatmul.mubr.bf16.gmra.mrb[104].mxu1 %v4473_v44  ;;  %v13812_v14 = vpop.f32.mrb[30].mxu1  ;;  %v8643_v44 = vcombine.low %v4279_v52, %v4283_v60  ;;  %v6043_v7 = vld [vmem:[#allocation7 + $0x2a0] sm:$0xff] }
 0x485   : >> { %5358 = vmatprep.mubr.bf16.mxu1 %v5121_v35  ;;  %v9752_v8 = vpop.f32.mrb[31].mxu1 }
 0x486   : >> { %9830 = vmatmul.mubr.msk.bf16.gmra.mrb[92].mxu0 %vm1749_vm3, %v4466_v13  ;;  %v10598_v13 = vld [vmem:[%s12520_s23 + $0x50] sm:$0xfe]  ;;  %v10602_v8 = vld [vmem:[%s12520_s23 + $0x38] sm:$0x3f] }
 0x487   : >> { %9833 = vmatprep.mubr.msk.bf16.mxu0 %vm10747_vm5, %v14615_v5  ;;  %v4921_v35 = vrot.slane %v10598_v13, 1  ;;  %v5072_v60 = vrot.slane %v10602_v8, 2  ;;  %v4892_v13 = vpop.permute.xlu1 %4891  ;;  %v10605_v8 = vld [vmem:[%s12520_s23 + $0x78] sm:$0x1f] }
 0x48a   : >> { %v13822_v27 = vpop.f32.mrb[32].mxu1 }
 0x48b   : >> { %v9755_v32 = vpop.f32.mrb[33].mxu1 }
 0x48c   : >> { %5359 = vmatmul.mubr.bf16.vlgmr.msra.gmra.mrb[108].mxu1 %v5090_v1  ;;  %v13824_v52 = vpop.f32.mrb[34].mxu1 }
 0x48d   : >> { %5366 = vmatprep.mubr.bf16.mxu1 %v8691_v38  ;;  %9209 = vmatpush3.bf16.msra.mxu1 %v6039_v22  ;;  %v9756_v1 = vpop.f32.mrb[35].mxu1  ;;  %v4923_v38 = vsel %vm2534_vm8, %v4921_v35, %v4922_v56  ;;  %v4925_v22 = vrot.slane %v10601_v26, 1  ;;  %v5103_v26 = vsel %vm1749_vm3, %v8659_v0, %v4890_v51  ;;  %v13866_v51 = vld [vmem:[#allocation7 + $0x308] sm:$0xff] }
 0x48e   : >> { %9834 = vmatmul.mubr.msk.bf16.gmra.mrb[96].mxu0 %vm1749_vm3, %v4280_v15  ;;  %9210 = vmatprep.subr.bf16.mxu1 %v6048_v53  ;;  %v6051_v15 = vld [vmem:[#allocation7 + $0x2e0] sm:$0xff]  ;;  %v4475_v53 = vpack.c.b16 %v4427_v36, %v4424_v24  ;;  %v5133_v2 = vsel %vm1749_vm3, %v4923_v38, %v5044_v18  ;;  %v6044_v18 = vld [vmem:[#allocation7 + $0x2a8] sm:$0xff]  ;;  %v5105_v38 = vsel %vm1749_vm3, %v13748_v54, %v4892_v13 }
 0x48f   : >> { %9837 = vmatprep.mubr.msk.bf16.mxu0 %vm10747_vm5, %v14615_v5  ;;  %v4926_v20 = vsel %vm2534_vm8, %v4924_v3, %v4925_v22  ;;  %v10603_v24 = vld [vmem:[%s12520_s23 + $0x48] sm:$0x3f]  ;;  %v13848_v1 = vld [vmem:[#allocation7 + $0x300] sm:$0xff]  ;;  %v8693_v54 = vcombine.low %v5103_v26, %v5105_v38 }
 0x490   : >> { %v5139_v29 = vsel %vm1749_vm3, %v4926_v20, %v5048_v50  ;;  %v5075_v36 = vrot.slane %v10603_v24, 2 }
 0x491   : >> { %9211 = vmatpush3.bf16.msra.mxu1 %v6040_v21  ;;  %v5071_v21 = vrot.slane %v8684_v33, 2  ;;  %v5210_v12 = vunpack.c.h.b16 %v5139_v29 }
 0x492   : >> { %9212 = vmatprep.subr.bf16.mxu1 %v6049_v28  ;;  %v5050_v28 = vpop.permute.xlu0 %5049 }
 0x493   : >> { %v5142_v56 = vsel %vm1749_vm3, %v4925_v22, %v5050_v28  ;;  %v5073_v19 = vsel %vm1206_vm1, %v5071_v21, %v5072_v60  ;;  %v4928_v28 = vrot.slane %v10605_v8, 1 }
 0x494   : >> { %5367 = vmatmul.mubr.bf16.gmra.mrb[112].mxu1 %v8690_v34  ;;  %v6053_v34 = vld [vmem:[#allocation7 + $0x2f0] sm:$0xff]  ;;  %v5213_v22 = vunpack.c.l.b16 %v5142_v56  ;;  %v5196_v56 = vunpack.c.l.b16 %v5075_v36 }
 0x495   : >> { %5374 = vmatprep.mubr.bf16.mxu1 %v5261_v62  ;;  %9213 = vmatpush3.bf16.msra.mxu1 %v6041_v55  ;;  %v8685_v62 = vld [vmem:[%s12520_s23 + $0x40] sm:$0xfc]  ;;  %v8694_v55 = vcombine.low %v5136_v48, %v5139_v29 }
 0x496   : >> { %9838 = vmatmul.mubr.msk.bf16.gmra.mrb[100].mxu0 %vm1749_vm3, %v8643_v44  ;;  %9214 = vmatprep.subr.bf16.mxu1 %v6050_v58  ;;  %v5074_v32 = vrot.slane %v8685_v62, 2  ;;  %v5270_v50 = vpack.c.b16 %v5213_v22, %v5210_v12  ;;  %v5209_v62 = vunpack.c.h.b16 %v5105_v38 }
 0x497   : >> { %9841 = vmatprep.mubr.msk.bf16.mxu0 %vm10747_vm5, %v14615_v5 }
 0x499   : >> { %9215 = vmatpush3.bf16.msra.mxu1 %v6042_v46  ;;  %v6054_v46 = vld [vmem:[#allocation7 + $0x2f8] sm:$0xff] }
 0x49a   : >> { %9216 = vmatprep.subr.bf16.mxu1 %v6051_v15  ;;  %v5052_v15 = vpop.permute.xlu0 %5051 }
 0x49c   : >> { %5375 = vmatmul.mubr.bf16.gmra.mrb[116].mxu1 %v5260_v43  ;;  %v8661_v43 = vld [vmem:[%s12520_s23 + $0x68] sm:$0xf] }
 0x49d   : >> { %5382 = vmatprep.mubr.bf16.mxu1 %v5133_v2  ;;  %9217 = vmatpush3.bf16.msra.mxu1 %v6043_v7  ;;  %v6046_v2 = vld [vmem:[#allocation7 + $0x2b8] sm:$0xff] }
 0x49e   : >> { %9842 = vmatmul.mubr.msk.bf16.gmra.mrb[104].mxu0 %vm1749_vm3, %v4475_v53  ;;  %9218 = vmatprep.subr.bf16.mxu1 %v6052_v41  ;;  %v4894_v53 = vpop.permute.xlu1 %4893 }
 0x49f   : >> { %9853 = vmatprep.mubr.msk.bf16.mxu0 %vm10747_vm5, %v14615_v5  ;;  %v5108_v41 = vsel %vm1749_vm3, %v8661_v43, %v4894_v53 }
 0x4a1   : >> { %v8892_v44 = vpop.f32.mrb[0].mxu0  ;;  %9219 = vmatpush3.bf16.msra.mxu1 %v6044_v18  ;;  %v10604_v18 = vld [vmem:[%s12520_s23 + $0x70] sm:$0xfe] }
 0x4a2   : >> { %v8893_v35 = vpop.f32.mrb[1].mxu0  ;;  %9220 = vmatprep.subr.bf16.mxu1 %v6053_v34  ;;  %v4927_v21 = vrot.slane %v10604_v18, 1  ;;  %v5054_v34 = vpop.permute.xlu0 %5053 }
 0x4a3   : >> { %v8894_v58 = vadd.f32 %v8893_v35, %v8892_v44  ;;  %v8895_v17 = vpop.f32.mrb[2].mxu0  ;;  %v5212_v44 = vunpack.c.l.b16 %v5108_v41  ;;  %v4896_v35 = vpop.permute.xlu1 %4895 }
 0x4a4   : >> { %v8896_v39 = vpop.f32.mrb[3].mxu0  ;;  %5383 = vmatmul.mubr.bf16.gmra.mrb[120].mxu1 %v5100_v6 }
 0x4a5   : >> { %v13853_v31 = vadd.f32 %v8894_v58, %v13678_v63  ;;  %v8897_v3 = vadd.f32 %v8896_v39, %v8895_v17  ;;  %5390 = vmatprep.mubr.bf16.mxu1 %v8694_v55  ;;  %9221 = vmatpush3.bf16.msra.mxu1 %v6045_v16  ;;  %v5076_v63 = vsel %vm1206_vm1, %v5074_v32, %v5075_v36  ;;  %v10606_v17 = vld [vmem:[%s12520_s23 + $0x80] sm:$0xfe]  ;;  %v10607_v32 = vld [vmem:[%s12520_s23 + $0x88] sm:$0x1f] }
 0x4a6   : >> { %9854 = vmatmul.mubr.msk.bf16.vlgmr.msra.gmra.mrb[108].mxu0 %vm1749_vm3, %v5073_v19  ;;  %9222 = vmatprep.subr.bf16.mxu1 %v6054_v46  ;;  %v8692_v33 = vcombine.low %v5072_v60, %v5076_v63  ;;  %v13874_v60 = vld [vmem:[#allocation7 + $0x310] sm:$0xff]  ;;  %v5193_v0 = vunpack.c.h.b16 %v5076_v63  ;;  %v4929_v58 = vsel %vm2534_vm8, %v4927_v21, %v4928_v28  ;;  %v4930_v19 = vrot.slane %v10606_v17, 1  ;;  %v13890_v46 = vld [vmem:[#allocation7 + $0x318] sm:$0xff] }
 0x4a7   : >> { %v13859_v7 = vadd.f32 %v8897_v3, %v13681_v59  ;;  %9890 = vmatpush3.bf16.msra.mxu0 %v13848_v1  ;;  %9857 = vmatprep.mubr.msk.bf16.mxu0 %vm10747_vm5, %v14615_v5  ;;  %v5269_v24 = vpack.c.b16 %v5212_v44, %v5209_v62  ;;  %v5145_v38 = vsel %vm1749_vm3, %v4929_v58, %v5052_v15  ;;  %v5056_v43 = vpop.permute.xlu1 %5055 }
 0x4a8   : >> { %9891 = vmatprep.subr.bf16.mxu0 %v14615_v5  ;;  %v5262_v12 = vpack.c.b16 %v5196_v56, %v5193_v0  ;;  %v5148_v15 = vsel %vm1749_vm3, %v4928_v28, %v5054_v34  ;;  %v8663_v34 = vld [vmem:[%s12520_s23 + $0x78] sm:$0xf]  ;;  %v10609_v0 = vld [vmem:[%s12520_s23 + $0x68] sm:$0x3f] }
 0x4a9   : >> { %v8898_v20 = vpop.f32.mrb[4].mxu0  ;;  %9223 = vmatpush3.bf16.msra.mxu1 %v6046_v2  ;;  %v8686_v2 = vld [vmem:[%s12520_s23 + $0x50] sm:$0xfc]  ;;  %v5081_v56 = vrot.slane %v10609_v0, 2 }
 0x4aa   : >> { %v8899_v59 = vpop.f32.mrb[5].mxu0  ;;  %10053 = vmatprep.subr.bf16.mxu1 %v14615_v5  ;;  %v5077_v41 = vrot.slane %v8686_v2, 2 }
 0x4ab   : >> { %v8900_v48 = vadd.f32 %v8899_v59, %v8898_v20  ;;  %v8901_v29 = vpop.f32.mrb[6].mxu0  ;;  %9892 = vmatpush3.bf16.msra.mxu0 %v13866_v51  ;;  %v10608_v59 = vld [vmem:[%s12520_s23 + $0x58] sm:$0x3f]  ;;  %v4900_v8 = vpop.permute.xlu1 %4899 }
 0x4ac   : >> { %v8902_v6 = vpop.f32.mrb[7].mxu0  ;;  %5391 = vmatmul.mubr.bf16.gmra.mrb[124].mxu1 %v8693_v54  ;;  %9893 = vmatprep.subr.bf16.mxu0 %v14615_v5 }
 0x4ad   : >> { %v13877_v55 = vadd.f32 %v8900_v48, %v13697_v49  ;;  %v8903_v13 = vadd.f32 %v8902_v6, %v8901_v29  ;;  %5398 = vmatprep.mubr.bf16.mxu1 %v5270_v50  ;;  %v4931_v49 = vrot.slane %v10607_v32, 1  ;;  %v8687_v48 = vld [vmem:[%s12520_s23 + $0x60] sm:$0xfc]  ;;  %v5110_v29 = vsel %vm1749_vm3, %v13760_v61, %v4896_v35 }
 0x4ae   : >> { %9858 = vmatmul.mubr.msk.bf16.gmra.mrb[112].mxu0 %vm1749_vm3, %v8692_v33  ;;  %v13916_v61 = vld [vmem:[%s12520_s23 + $0x80] sm:$0xff] }
 0x4af   : >> { %v13881_v16 = vadd.f32 %v8903_v13, %v13709_v42  ;;  %9861 = vmatprep.mubr.msk.bf16.mxu0 %vm10747_vm5, %v14615_v5  ;;  %9894 = vmatpush3.bf16.msra.mxu0 %v13874_v60  ;;  %v4898_v42 = vpop.permute.xlu0 %4897  ;;  %v4932_v22 = vsel %vm2534_vm8, %v4930_v19, %v4931_v49  ;;  %v5080_v13 = vrot.slane %v8687_v48, 2  ;;  %v5115_v35 = vsel %vm1749_vm3, %v13916_v61, %v4900_v8 }
 0x4b0   : >> { %9895 = vmatprep.subr.bf16.mxu0 %v14615_v5  ;;  %v5151_v20 = vsel %vm1749_vm3, %v4932_v22, %v5056_v43  ;;  %v5227_v48 = vunpack.c.h.b16 %v5115_v35 }
 0x4b1   : >> { %v8904_v36 = vpop.f32.mrb[8].mxu0  ;;  %v8697_v21 = vcombine.low %v5148_v15, %v5151_v20  ;;  %v5228_v17 = vunpack.c.h.b16 %v5151_v20  ;;  %v10611_v20 = vld [vmem:[%s12520_s23 + $0x40] sm:$0xfe] }
 0x4b2   : >> { %v8905_v39 = vpop.f32.mrb[9].mxu0 }
 0x4b3   : >> { %v8906_v3 = vadd.f32 %v8905_v39, %v8904_v36  ;;  %v8907_v26 = vpop.f32.mrb[10].mxu0  ;;  %9896 = vmatpush3.bf16.msra.mxu0 %v13890_v46  ;;  %v5058_v33 = vpop.permute.xlu0 %5057  ;;  %v8665_v39 = vld [vmem:[%s12520_s23 + $0x88] sm:$0xf] }
 0x4b4   : >> { %v8908_v53 = vpop.f32.mrb[11].mxu0  ;;  %5399 = vmatmul.mubr.bf16.gmra.mrb[128].mxu1 %v5269_v24  ;;  %v5113_v24 = vsel %vm1749_vm3, %v8663_v34, %v4898_v42 }
 0x4b5   : >> { %v13897_v63 = vadd.f32 %v8906_v3, %v13720_v10  ;;  %v8909_v54 = vadd.f32 %v8908_v53, %v8907_v26  ;;  %5406 = vmatprep.mubr.bf16.mxu1 %v5145_v38  ;;  %v5078_v10 = vrot.slane %v10608_v59, 2  ;;  %v8696_v3 = vcombine.low %v5113_v24, %v5115_v35  ;;  %v10612_v59 = vld [vmem:[%s12520_s23 + $0x48] sm:$0x1f] }
 0x4b6   : >> { %9862 = vmatmul.mubr.msk.bf16.gmra.mrb[116].mxu0 %vm1749_vm3, %v5262_v12  ;;  %v4902_v12 = vpop.permute.xlu1 %4901 }
 0x4b7   : >> { %v13903_v50 = vadd.f32 %v8909_v54, %v13723_v37  ;;  %9865 = vmatprep.mubr.msk.bf16.mxu0 %vm10747_vm5, %v14615_v5  ;;  %v5154_v37 = vsel %vm1749_vm3, %v4931_v49, %v5058_v33  ;;  %v5079_v44 = vsel %vm1206_vm1, %v5077_v41, %v5078_v10  ;;  %v5841_v19 = vpop.permute.xlu0 %5840  ;;  %v5118_v42 = vsel %vm1749_vm3, %v8665_v39, %v4902_v12 }
 0x4b8   : >> { %v5231_v36 = vunpack.c.l.b16 %v5154_v37  ;;  %v5720_v41 = vrot.slane %v10611_v20, 1 }
 0x4b9   : >> { %v8910_v18 = vpop.f32.mrb[12].mxu0 }
 0x4ba   : >> { %v8911_v28 = vpop.f32.mrb[13].mxu0  ;;  %v5279_v22 = vpack.c.b16 %v5231_v36, %v5228_v17  ;;  %v5685_v33 = vpop.permute.xlu1 %5684 }
 0x4bb   : >> { %v8912_v62 = vadd.f32 %v8911_v28, %v8910_v18  ;;  %v8913_v6 = vpop.f32.mrb[14].mxu0  ;;  %v5843_v2 = vpop.permute.xlu0 %5842  ;;  %v5230_v18 = vunpack.c.l.b16 %v5118_v42  ;;  %v5214_v28 = vunpack.c.l.b16 %v5081_v56 }
 0x4bc   : >> { %v8914_v58 = vpop.f32.mrb[15].mxu0  ;;  %5407 = vmatmul.mubr.bf16.gmra.mrb[132].mxu1 %v5110_v29 }
 0x4bd   : >> { %v13921_v32 = vadd.f32 %v8912_v62, %v13734_v4  ;;  %v8915_v49 = vadd.f32 %v8914_v58, %v8913_v6  ;;  %5414 = vmatprep.mubr.bf16.mxu1 %v8697_v21  ;;  %v5082_v4 = vsel %vm1206_vm1, %v5080_v13, %v5081_v56  ;;  %v10613_v62 = vld [vmem:[%s12520_s23 + $0x50] sm:$0xfe] }
 0x4be   : >> { %9866 = vmatmul.mubr.msk.bf16.gmra.mrb[120].mxu0 %vm1749_vm3, %v5079_v44  ;;  %v8695_v53 = vcombine.low %v5078_v10, %v5082_v4  ;;  %v5211_v10 = vunpack.c.h.b16 %v5082_v4  ;;  %v5723_v6 = vrot.slane %v10613_v62, 1  ;;  %v10614_v44 = vld [vmem:[%s12520_s23 + $0x58] sm:$0x1f]  ;;  %v5845_v17 = vpop.permute.xlu1 %5844 }
 0x4bf   : >> { %v13927_v38 = vadd.f32 %v8915_v49, %v13738_v30  ;;  %9869 = vmatprep.mubr.msk.bf16.mxu0 %vm10747_vm5, %v14615_v5  ;;  %v5721_v30 = vrot.slane %v10612_v59, 1  ;;  %v5724_v13 = vrot.slane %v10614_v44, 1  ;;  %v5687_v0 = vpop.permute.xlu0 %5686 }
 0x4c0   : >> { %v5271_v56 = vpack.c.b16 %v5214_v28, %v5211_v10  ;;  %v8710_v28 = vld [vmem:[%s12520_s23 + $0x48] sm:$0xf] }
 0x4c1   : >> { %v8916_v26 = vpop.f32.mrb[16].mxu0  ;;  %v5722_v37 = vsel %vm2534_vm8, %v5720_v41, %v5721_v30  ;;  %v5725_v12 = vsel %vm2534_vm8, %v5723_v6, %v5724_v13 }
 0x4c2   : >> { %v8917_v43 = vpop.f32.mrb[17].mxu0 }
 0x4c3   : >> { %v8918_v54 = vadd.f32 %v8917_v43, %v8916_v26  ;;  %v8919_v15 = vpop.f32.mrb[18].mxu0  ;;  %v5847_v20 = vpop.permute.xlu0 %5846 }
 0x4c4   : >> { %v8920_v29 = vpop.f32.mrb[19].mxu0  ;;  %5415 = vmatmul.mubr.bf16.gmra.mrb[136].mxu1 %v8696_v3 }
 0x4c5   : >> { %v13936_v21 = vadd.f32 %v8918_v54, %v13756_v23  ;;  %v8921_v8 = vadd.f32 %v8920_v29, %v8919_v15  ;;  %5422 = vmatprep.mubr.bf16.mxu1 %v5279_v22  ;;  %v5278_v23 = vpack.c.b16 %v5230_v18, %v5227_v48  ;;  %v8688_v22 = vld [vmem:[%s12520_s23 + $0x70] sm:$0xfc]  ;;  %v5932_v15 = vsel %vm1749_vm3, %v5725_v12, %v5845_v17  ;;  %v10615_v48 = vld [vmem:[%s12520_s23 + $0x78] sm:$0x3f]  ;;  %v5689_v18 = vpop.permute.xlu1 %5688 }
 0x4c6   : >> { %9870 = vmatmul.mubr.msk.bf16.gmra.mrb[124].mxu0 %vm1749_vm3, %v8695_v53  ;;  %v5084_v29 = vrot.slane %v10615_v48, 2 }
 0x4c7   : >> { %v13940_v34 = vadd.f32 %v8921_v8, %v13764_v9  ;;  %9873 = vmatprep.mubr.msk.bf16.mxu0 %vm10747_vm5, %v14615_v5  ;;  %v5926_v9 = vsel %vm1749_vm3, %v5722_v37, %v5841_v19  ;;  %v5929_v19 = vsel %vm1749_vm3, %v5721_v30, %v5843_v2  ;;  %v8689_v8 = vld [vmem:[%s12520_s23 + $0x80] sm:$0xfc]  ;;  %v5895_v30 = vsel %vm1749_vm3, %v13808_v45, %v5685_v33  ;;  %v13973_v62 = vpop.permute.xlu0 %5848  ;;  %v10617_v33 = vld [vmem:[%s12520_s23 + $0x50] sm:$0xff] }
 0x4c8   : >> { %v8746_v10 = vcombine.low %v5929_v19, %v5932_v15  ;;  %v5935_v37 = vsel %vm1749_vm3, %v5724_v13, %v5847_v20  ;;  %v5997_v45 = vunpack.c.h.b16 %v5932_v15 }
 0x4c9   : >> { %v8922_v58 = vpop.f32.mrb[20].mxu0 }
 0x4ca   : >> { %v8923_v35 = vpop.f32.mrb[21].mxu0  ;;  %v8975_v49 = vpop.f32.mrb[36].mxu1 }
 0x4cb   : >> { %v8924_v24 = vadd.f32 %v8923_v35, %v8922_v58  ;;  %v8925_v36 = vpop.f32.mrb[22].mxu0  ;;  %v8976_v39 = vpop.f32.mrb[37].mxu1  ;;  %v5086_v58 = vrot.slane %v8689_v8, 2 }
 0x4cc   : >> { %v8977_v4 = vadd.f32 %v8976_v39, %v8975_v49  ;;  %v8926_v3 = vpop.f32.mrb[23].mxu0  ;;  %v8978_v26 = vpop.f32.mrb[38].mxu1  ;;  %5423 = vmatmul.mubr.bf16.gmra.mrb[140].mxu1 %v5278_v23  ;;  %v8712_v39 = vld [vmem:[%s12520_s23 + $0x58] sm:$0xf] }
 0x4cd   : >> { %v13951_v42 = vadd.f32 %v8924_v24, %v13774_v11  ;;  %v8927_v43 = vadd.f32 %v8926_v3, %v8925_v36  ;;  %v8979_v53 = vpop.f32.mrb[39].mxu1  ;;  %6163 = vmatprep.mubr.bf16.mxu1 %v5926_v9  ;;  %v5083_v11 = vrot.slane %v8688_v22, 2  ;;  %v5691_v35 = vpop.permute.xlu1 %5690  ;;  %v5898_v24 = vsel %vm1749_vm3, %v8710_v28, %v5687_v0 }
 0x4ce   : >> { %v8980_v54 = vadd.f32 %v8979_v53, %v8978_v26  ;;  %9874 = vmatmul.mubr.msk.bf16.gmra.mrb[128].mxu0 %vm1749_vm3, %v5271_v56  ;;  %v13957_v41 = vadd.f32 %v8977_v4, %v13853_v31  ;;  %v5900_v56 = vsel %vm1749_vm3, %v10617_v33, %v5689_v18  ;;  %v6000_v36 = vunpack.c.l.b16 %v5935_v37 }
 0x4cf   : >> { %v13960_v59 = vadd.f32 %v8927_v43, %v13776_v57  ;;  %9877 = vmatprep.mubr.msk.bf16.mxu0 %vm10747_vm5, %v14615_v5  ;;  %v5085_v23 = vsel %vm1206_vm1, %v5083_v11, %v5084_v29  ;;  %v8745_v26 = vcombine.low %v5898_v24, %v5900_v56  ;;  %v10618_v11 = vld [vmem:[%s12520_s23 + $0x60] sm:$0xfe]  ;;  %v5996_v28 = vunpack.c.h.b16 %v5900_v56 }
 0x4d0   : >> { %v13967_v2 = vadd.f32 %v8980_v54, %v13859_v7  ;;  %v10616_v7 = vld [vmem:[%s12520_s23 + $0x88] sm:$0x3f]  ;;  %v6066_v54 = vpack.c.b16 %v6000_v36, %v5997_v45  ;;  %v5726_v48 = vrot.slane %v10618_v11, 1 }
 0x4d1   : >> { %v8928_v31 = vpop.f32.mrb[24].mxu0  ;;  %v5087_v17 = vrot.slane %v10616_v7, 2  ;;  %v13993_v0 = vpop.permute.xlu1 %5692 }
 0x4d2   : >> { %v8929_v57 = vpop.f32.mrb[25].mxu0 }
 0x4d3   : >> { %v8930_v6 = vadd.f32 %v8929_v57, %v8928_v31  ;;  %v8931_v44 = vpop.f32.mrb[26].mxu0  ;;  %v10619_v31 = vld [vmem:[%s12520_s23 + $0x68] sm:$0x1f] }
 0x4d4   : >> { %v8932_v49 = vpop.f32.mrb[27].mxu0  ;;  %6164 = vmatmul.mubr.bf16.vlgmr.msra.gmra.mrb[144].mxu1 %v5895_v30 }
 0x4d5   : >> { %v13980_v9 = vadd.f32 %v8930_v6, %v13786_v25  ;;  %v8933_v13 = vadd.f32 %v8932_v49, %v8931_v44  ;;  %6171 = vmatprep.mubr.bf16.mxu1 %v8746_v10  ;;  %10057 = vmatpush3.bf16.msra.mxu1 %v13848_v1  ;;  %v5088_v25 = vsel %vm1206_vm1, %v5086_v58, %v5087_v17  ;;  %v13995_v1 = vpop.permute.xlu0 %5850  ;;  %v5727_v10 = vrot.slane %v10619_v31, 1  ;;  %v5853_v56 = vpop.permute.xlu1 %5852  ;;  %v8740_v31 = vld [vmem:[%s12520_s23 + $0x50] sm:$0xfc] }
 0x4d6   : >> { %9878 = vmatmul.mubr.msk.bf16.gmra.mrb[132].mxu0 %vm1749_vm3, %v5085_v23  ;;  %10054 = vmatprep.subr.bf16.mxu1 %v14615_v5  ;;  %v8698_v20 = vcombine.low %v5084_v29, %v5088_v25  ;;  %v5232_v23 = vunpack.c.l.b16 %v5087_v17 }
 0x4d7   : >> { %v13988_v12 = vadd.f32 %v8933_v13, %v13789_v47  ;;  %v8981_v4 = vpop.f32.mrb[40].mxu1  ;;  %9881 = vmatprep.mubr.msk.bf16.mxu0 %vm10747_vm5, %v14615_v5  ;;  %v5903_v47 = vsel %vm1749_vm3, %v8712_v39, %v5691_v35  ;;  %v10620_v35 = vld [vmem:[%s12520_s23 + $0x70] sm:$0xfe] }
 0x4d8   : >> { %v8982_v3 = vpop.f32.mrb[41].mxu1  ;;  %v5729_v49 = vrot.slane %v10620_v35, 1  ;;  %v8714_v35 = vld [vmem:[%s12520_s23 + $0x68] sm:$0xf] }
 0x4d9   : >> { %v8983_v22 = vadd.f32 %v8982_v3, %v8981_v4  ;;  %v8934_v43 = vpop.f32.mrb[28].mxu0  ;;  %v8984_v53 = vpop.f32.mrb[42].mxu1  ;;  %10058 = vmatpush3.bf16.msra.mxu1 %v13866_v51  ;;  %v5999_v51 = vunpack.c.l.b16 %v5903_v47 }
 0x4da   : >> { %v8935_v19 = vpop.f32.mrb[29].mxu0  ;;  %v8985_v15 = vpop.f32.mrb[43].mxu1  ;;  %10055 = vmatprep.subr.bf16.mxu1 %v14615_v5 }
 0x4db   : >> { %v8936_v18 = vadd.f32 %v8935_v19, %v8934_v43  ;;  %v8986_v8 = vadd.f32 %v8985_v15, %v8984_v53  ;;  %v8937_v30 = vpop.f32.mrb[30].mxu0  ;;  %v14003_v57 = vadd.f32 %v8983_v22, %v13877_v55  ;;  %v5229_v55 = vunpack.c.h.b16 %v5088_v25  ;;  %v14013_v58 = vpop.permute.xlu0 %5694  ;;  %v8739_v53 = vld [vmem:[%s12520_s23 + $0x40] sm:$0xfc] }
 0x4dc   : >> { %v8938_v37 = vpop.f32.mrb[31].mxu0  ;;  %6172 = vmatmul.mubr.bf16.gmra.mrb[148].mxu1 %v8745_v26  ;;  %v6065_v33 = vpack.c.b16 %v5999_v51, %v5996_v28  ;;  %v5876_v11 = vrot.slane %v8739_v53, 2 }
 0x4dd   : >> { %v14006_v6 = vadd.f32 %v8936_v18, %v13804_v40  ;;  %v8939_v29 = vadd.f32 %v8938_v37, %v8937_v30  ;;  %6179 = vmatprep.mubr.bf16.mxu1 %v6066_v54  ;;  %v14009_v44 = vadd.f32 %v8986_v8, %v13881_v16  ;;  %10059 = vmatpush3.bf16.msra.mxu1 %v13874_v60  ;;  %v10621_v60 = vld [vmem:[%s12520_s23 + $0x78] sm:$0x1f] }
 0x4de   : >> { %9882 = vmatmul.mubr.msk.bf16.gmra.mrb[136].mxu0 %vm1749_vm3, %v8698_v20  ;;  %10056 = vmatprep.subr.bf16.mxu1 %v14615_v5  ;;  %v5728_v16 = vsel %vm2534_vm8, %v5726_v48, %v5727_v10  ;;  %v5730_v45 = vrot.slane %v10621_v60, 1  ;;  %v5280_v4 = vpack.c.b16 %v5232_v23, %v5229_v55  ;;  %v5941_v20 = vsel %vm1749_vm3, %v5727_v10, %v13995_v1  ;;  %v10622_v48 = vld [vmem:[%s12520_s23 + $0x48] sm:$0x3f]  ;;  %v10623_v10 = vld [vmem:[%s12520_s23 + $0x60] sm:$0xff] }
 0x4df   : >> { %v14017_v7 = vadd.f32 %v8939_v29, %v13812_v14  ;;  %v8987_v40 = vpop.f32.mrb[44].mxu1  ;;  %9885 = vmatprep.mubr.msk.bf16.mxu0 %vm10747_vm5, %v14615_v5  ;;  %v5938_v25 = vsel %vm1749_vm3, %v5728_v16, %v13973_v62  ;;  %v5855_v19 = vpop.permute.xlu0 %5854  ;;  %v5877_v18 = vrot.slane %v10622_v48, 2  ;;  %v5905_v37 = vsel %vm1749_vm3, %v10623_v10, %v13993_v0  ;;  %v10627_v10 = vld [vmem:[%s12520_s23 + $0x88] sm:$0x1f] }
 0x4e0   : >> { %v8988_v17 = vpop.f32.mrb[45].mxu1  ;;  %v5731_v43 = vsel %vm2534_vm8, %v5729_v49, %v5730_v45  ;;  %v5947_v49 = vsel %vm1749_vm3, %v5730_v45, %v5855_v19  ;;  %v10625_v45 = vld [vmem:[%s12520_s23 + $0x70] sm:$0xff] }
 0x4e1   : >> { %v8989_v13 = vadd.f32 %v8988_v17, %v8987_v40  ;;  %v8940_v24 = vpop.f32.mrb[32].mxu0  ;;  %v8990_v36 = vpop.f32.mrb[46].mxu1  ;;  %10060 = vmatpush3.bf16.msra.mxu1 %v13890_v46  ;;  %v5878_v16 = vsel %vm1206_vm1, %v5876_v11, %v5877_v18  ;;  %v5879_v17 = vrot.slane %v8740_v31, 2  ;;  %v10626_v31 = vld [vmem:[%s12520_s23 + $0x80] sm:$0xfe] }
 0x4e2   : >> { %v8941_v14 = vpop.f32.mrb[33].mxu0  ;;  %v8991_v39 = vpop.f32.mrb[47].mxu1 }
 0x4e3   : >> { %v8942_v3 = vadd.f32 %v8941_v14, %v8940_v24  ;;  %v8992_v26 = vadd.f32 %v8991_v39, %v8990_v36  ;;  %v8943_v22 = vpop.f32.mrb[34].mxu0  ;;  %v14030_v54 = vadd.f32 %v8989_v13, %v13897_v63  ;;  %v5944_v63 = vsel %vm1749_vm3, %v5731_v43, %v5853_v56  ;;  %v14049_v28 = vpop.permute.xlu0 %5856  ;;  %v10624_v56 = vld [vmem:[%s12520_s23 + $0x58] sm:$0x3f] }
 0x4e4   : >> { %v8944_v47 = vpop.f32.mrb[35].mxu0  ;;  %6180 = vmatmul.mubr.bf16.gmra.mrb[152].mxu1 %v6065_v33  ;;  %v5880_v0 = vrot.slane %v10624_v56, 2  ;;  %v6015_v14 = vunpack.c.h.b16 %v5944_v63  ;;  %v5908_v39 = vsel %vm1749_vm3, %v8714_v35, %v14013_v58 }
 0x4e5   : >> { %v14033_v46 = vadd.f32 %v8942_v3, %v13822_v27  ;;  %v8945_v15 = vadd.f32 %v8944_v47, %v8943_v22  ;;  %6187 = vmatprep.mubr.bf16.mxu1 %v5938_v25  ;;  %v14036_v62 = vadd.f32 %v8992_v26, %v13903_v50  ;;  %v5697_v50 = vpop.permute.xlu1 %5696  ;;  %v6018_v25 = vunpack.c.l.b16 %v5947_v49  ;;  %v10628_v49 = vld [vmem:[%s12520_s23 + $0x90] sm:$0xfe] }
 0x4e6   : >> { %9886 = vmatmul.mubr.msk.bf16.gmra.mrb[140].mxu0 %vm1749_vm3, %v5280_v4  ;;  %v5910_v4 = vsel %vm1749_vm3, %v10625_v45, %v5697_v50 }
 0x4e7   : >> { %v14044_v8 = vadd.f32 %v8945_v15, %v13824_v52  ;;  %v8993_v27 = vpop.f32.mrb[48].mxu1  ;;  %9897 = vmatprep.mubr.msk.bf16.mxu0 %vm10747_vm5, %v14615_v5  ;;  %v8749_v52 = vcombine.low %v5941_v20, %v5944_v63  ;;  %v8748_v43 = vcombine.low %v5908_v39, %v5910_v4  ;;  %v5859_v53 = vpop.permute.xlu0 %5858  ;;  %v6075_v15 = vpack.c.b16 %v6018_v25, %v6015_v14 }
 0x4e8   : >> { %v8994_v30 = vpop.f32.mrb[49].mxu1 }
 0x4e9   : >> { %v8995_v1 = vadd.f32 %v8994_v30, %v8993_v27  ;;  %v8996_v51 = vpop.f32.mrb[50].mxu1  ;;  %v3873_v29 = vpop.f32.mrb[36].mxu0 }
 0x4ea   : >> { %v14055_v55 = vadd.f32 %v3873_v29, %v13957_v41  ;;  %v8997_v23 = vpop.f32.mrb[51].mxu1  ;;  %v9767_v40 = vpop.f32.mrb[37].mxu0  ;;  %v6014_v29 = vunpack.c.h.b16 %v5910_v4 }
 0x4eb   : >> { %v8998_v60 = vadd.f32 %v8997_v23, %v8996_v51  ;;  %v3876_v33 = vpop.f32.mrb[38].mxu0  ;;  %v5699_v13 = vpop.permute.xlu1 %5698  ;;  %v14062_v24 = vadd.f32 %v8995_v1, %v13921_v32  ;;  %v8716_v32 = vld [vmem:[%s12520_s23 + $0x78] sm:$0xf]  ;;  %v5732_v1 = vrot.slane %v10626_v31, 1 }
 0x4ec   : >> { %v14065_v41 = vadd.f32 %v3876_v33, %v13967_v2  ;;  %v9768_v36 = vpop.f32.mrb[39].mxu0  ;;  %6188 = vmatmul.mubr.bf16.gmra.mrb[156].mxu1 %v5905_v37  ;;  %v5881_v2 = vsel %vm1206_vm1, %v5879_v17, %v5880_v0  ;;  %v5913_v20 = vsel %vm1749_vm3, %v8716_v32, %v5699_v13  ;;  %v5733_v37 = vrot.slane %v10627_v10, 1 }
 0x4ed   : >> { %6195 = vmatprep.mubr.bf16.mxu1 %v8749_v52  ;;  %v14072_v3 = vadd.f32 %v8998_v60, %v13927_v38  ;;  %v8747_v27 = vcombine.low %v5877_v18, %v5881_v2  ;;  %v6017_v23 = vunpack.c.l.b16 %v5913_v20  ;;  %v5998_v40 = vunpack.c.h.b16 %v5881_v2  ;;  %v10629_v60 = vld [vmem:[%s12520_s23 + $0x98] sm:$0x1f] }
 0x4ee   : >> { %9898 = vmatmul.mubr.msk.bf16.vlgmr.msra.gmra.mrb[144].mxu0 %vm1749_vm3, %v5878_v16  ;;  %v6001_v16 = vunpack.c.l.b16 %v5880_v0  ;;  %v5736_v33 = vrot.slane %v10629_v60, 1 }
 0x4ef   : >> { %v8999_v26 = vpop.f32.mrb[52].mxu1  ;;  %9901 = vmatprep.mubr.msk.bf16.mxu0 %vm10747_vm5, %v14615_v5  ;;  %v14079_v22 = vpop.permute.xlu1 %5700  ;;  %v6074_v56 = vpack.c.b16 %v6017_v23, %v6014_v29 }
 0x4f0   : >> { %v9000_v58 = vpop.f32.mrb[53].mxu1  ;;  %v6067_v25 = vpack.c.b16 %v6001_v16, %v5998_v40  ;;  %v8718_v40 = vld [vmem:[%s12520_s23 + $0x88] sm:$0xf] }
 0x4f1   : >> { %v9001_v47 = vadd.f32 %v9000_v58, %v8999_v26  ;;  %v9002_v19 = vpop.f32.mrb[54].mxu1  ;;  %v3881_v38 = vpop.f32.mrb[40].mxu0 }
 0x4f2   : >> { %v14083_v63 = vadd.f32 %v3881_v38, %v14003_v57  ;;  %v9003_v11 = vpop.f32.mrb[55].mxu1  ;;  %v9771_v48 = vpop.f32.mrb[41].mxu0 }
 0x4f3   : >> { %v9004_v50 = vadd.f32 %v9003_v11, %v9002_v19  ;;  %v3884_v30 = vpop.f32.mrb[42].mxu0  ;;  %v14088_v51 = vadd.f32 %v9001_v47, %v13936_v21  ;;  %v5734_v21 = vsel %vm2534_vm8, %v5732_v1, %v5733_v37  ;;  %v5861_v17 = vpop.permute.xlu1 %5860  ;;  %v10630_v11 = vld [vmem:[%s12520_s23 + $0x68] sm:$0x3f] }
 0x4f4   : >> { %v14091_v52 = vadd.f32 %v3884_v30, %v14009_v44  ;;  %v9772_v57 = vpop.f32.mrb[43].mxu0  ;;  %6196 = vmatmul.mubr.bf16.gmra.mrb[160].mxu1 %v8748_v43  ;;  %v5735_v44 = vrot.slane %v10628_v49, 1  ;;  %v5950_v32 = vsel %vm1749_vm3, %v5734_v21, %v14049_v28  ;;  %v8741_v43 = vld [vmem:[%s12520_s23 + $0x60] sm:$0xfc]  ;;  %v5953_v28 = vsel %vm1749_vm3, %v5733_v37, %v5859_v53 }
 0x4f5   : >> { %6203 = vmatprep.mubr.bf16.mxu1 %v6075_v15  ;;  %v14094_v18 = vadd.f32 %v9004_v50, %v13940_v34  ;;  %v5703_v34 = vpop.permute.xlu0 %5702  ;;  %v5882_v20 = vrot.slane %v8741_v43, 2  ;;  %v5915_v53 = vsel %vm1749_vm3, %v13916_v61, %v14079_v22 }
 0x4f6   : >> { %9902 = vmatmul.mubr.msk.bf16.gmra.mrb[148].mxu0 %vm1749_vm3, %v8747_v27  ;;  %v5737_v58 = vsel %vm2534_vm8, %v5735_v44, %v5736_v33  ;;  %v10631_v44 = vld [vmem:[%s12520_s23 + $0x78] sm:$0x3f] }
 0x4f7   : >> { %v9005_v35 = vpop.f32.mrb[56].mxu1  ;;  %9905 = vmatprep.mubr.msk.bf16.mxu0 %vm10747_vm5, %v14615_v5  ;;  %v5956_v15 = vsel %vm1749_vm3, %v5737_v58, %v5861_v17  ;;  %v5705_v50 = vpop.permute.xlu1 %5704  ;;  %v5886_v61 = vrot.slane %v10631_v44, 2 }
 0x4f8   : >> { %v9006_v13 = vpop.f32.mrb[57].mxu1  ;;  %v8752_v10 = vcombine.low %v5953_v28, %v5956_v15  ;;  %v6033_v17 = vunpack.c.h.b16 %v5956_v15  ;;  %v8744_v15 = vld [vmem:[%s12520_s23 + $0x90] sm:$0xfc] }
 0x4f9   : >> { %v9007_v36 = vadd.f32 %v9006_v13, %v9005_v35  ;;  %v9008_v14 = vpop.f32.mrb[58].mxu1  ;;  %v3889_v39 = vpop.f32.mrb[44].mxu0  ;;  %v10632_v13 = vld [vmem:[%s12520_s23 + $0x90] sm:$0xff] }
 0x4fa   : >> { %v14103_v0 = vadd.f32 %v3889_v39, %v14030_v54  ;;  %v9009_v45 = vpop.f32.mrb[59].mxu1  ;;  %v9775_v4 = vpop.f32.mrb[45].mxu0 }
 0x4fb   : >> { %v9010_v26 = vadd.f32 %v9009_v45, %v9008_v14  ;;  %v3892_v2 = vpop.f32.mrb[46].mxu0  ;;  %v14110_v47 = vadd.f32 %v9007_v36, %v13951_v42  ;;  %v5883_v42 = vrot.slane %v10630_v11, 2  ;;  %v5707_v39 = vpop.permute.xlu1 %5706 }
 0x4fc   : >> { %v14113_v19 = vadd.f32 %v3892_v2, %v14036_v62  ;;  %v9776_v54 = vpop.f32.mrb[47].mxu0  ;;  %6204 = vmatmul.mubr.bf16.gmra.mrb[164].mxu1 %v6074_v56  ;;  %v5863_v62 = vpop.permute.xlu0 %5862  ;;  %v5918_v56 = vsel %vm1749_vm3, %v8718_v40, %v5703_v34 }
 0x4fd   : >> { %6211 = vmatprep.mubr.bf16.mxu1 %v5950_v32  ;;  %v14116_v38 = vadd.f32 %v9010_v26, %v13960_v59  ;;  %v8742_v59 = vld [vmem:[%s12520_s23 + $0x70] sm:$0xfc]  ;;  %v5884_v23 = vsel %vm1206_vm1, %v5882_v20, %v5883_v42  ;;  %v5959_v16 = vsel %vm1749_vm3, %v5736_v33, %v5863_v62  ;;  %v5920_v33 = vsel %vm1749_vm3, %v10632_v13, %v5705_v50 }
 0x4fe   : >> { %9906 = vmatmul.mubr.msk.bf16.gmra.mrb[152].mxu0 %vm1749_vm3, %v6067_v25  ;;  %v5885_v49 = vrot.slane %v8742_v59, 2  ;;  %v6036_v36 = vunpack.c.l.b16 %v5959_v16  ;;  %v8751_v4 = vcombine.low %v5918_v56, %v5920_v33  ;;  %v6032_v62 = vunpack.c.h.b16 %v5920_v33  ;;  %v8743_v33 = vld [vmem:[%s12520_s23 + $0x80] sm:$0xfc] }
 0x4ff   : >> { %v9011_v48 = vpop.f32.mrb[60].mxu1  ;;  %9909 = vmatprep.mubr.msk.bf16.mxu0 %vm10747_vm5, %v14615_v5 }
 0x500   : >> { %v9012_v27 = vpop.f32.mrb[61].mxu1  ;;  %v5887_v45 = vsel %vm1206_vm1, %v5885_v49, %v5886_v61  ;;  %v6084_v2 = vpack.c.b16 %v6036_v36, %v6033_v17 }
 0x501   : >> { %v9013_v30 = vadd.f32 %v9012_v27, %v9011_v48  ;;  %v9014_v31 = vpop.f32.mrb[62].mxu1  ;;  %v3897_v1 = vpop.f32.mrb[48].mxu0  ;;  %v8750_v28 = vcombine.low %v5883_v42, %v5887_v45  ;;  %v6016_v42 = vunpack.c.h.b16 %v5887_v45 }
 0x502   : >> { %v14129_v37 = vadd.f32 %v3897_v1, %v14062_v24  ;;  %v9015_v29 = vpop.f32.mrb[63].mxu1  ;;  %v9779_v57 = vpop.f32.mrb[49].mxu0  ;;  %v6019_v1 = vunpack.c.l.b16 %v5886_v61 }
 0x503   : >> { %v9016_v35 = vadd.f32 %v9015_v29, %v9014_v31  ;;  %v3900_v21 = vpop.f32.mrb[50].mxu0  ;;  %v14136_v22 = vadd.f32 %v9013_v30, %v13980_v9  ;;  %v8720_v9 = vld [vmem:[%s12520_s23 + $0x98] sm:$0xf] }
 0x504   : >> { %v14139_v24 = vadd.f32 %v3900_v21, %v14072_v3  ;;  %v9780_v60 = vpop.f32.mrb[51].mxu0  ;;  %6212 = vmatmul.mubr.bf16.gmra.mrb[168].mxu1 %v5915_v53  ;;  %v10633_v30 = vld [vmem:[%s12520_s23 + $0x98] sm:$0x3f]  ;;  %v6076_v21 = vpack.c.b16 %v6019_v1, %v6016_v42 }
 0x505   : >> { %6219 = vmatprep.mubr.bf16.mxu1 %v8752_v10  ;;  %v14145_v14 = vadd.f32 %v9016_v35, %v13988_v12  ;;  %v5923_v12 = vsel %vm1749_vm3, %v8720_v9, %v5707_v39  ;;  %v5892_v53 = vrot.slane %v10633_v30, 2  ;;  %v10634_v9 = vld [vmem:[%s12520_s23 + $0x88] sm:$0x3f] }
 0x506   : >> { %9910 = vmatmul.mubr.msk.bf16.gmra.mrb[156].mxu0 %vm1749_vm3, %v5884_v23  ;;  %v6035_v59 = vunpack.c.l.b16 %v5923_v12 }
 0x507   : >> { %v9017_v3 = vpop.f32.mrb[64].mxu1  ;;  %9913 = vmatprep.mubr.msk.bf16.mxu0 %vm10747_vm5, %v14615_v5  ;;  %v6037_v13 = vunpack.c.l.b16 %v5892_v53 }
 0x508   : >> { %v9018_v34 = vpop.f32.mrb[65].mxu1 }
 0x509   : >> { %v9019_v25 = vadd.f32 %v9018_v34, %v9017_v3  ;;  %v9020_v32 = vpop.f32.mrb[66].mxu1  ;;  %v3905_v26 = vpop.f32.mrb[52].mxu0 }
 0x50a   : >> { %v14154_v58 = vadd.f32 %v3905_v26, %v14088_v51  ;;  %v9021_v43 = vpop.f32.mrb[67].mxu1  ;;  %v9783_v54 = vpop.f32.mrb[53].mxu0  ;;  %v5891_v51 = vrot.slane %v8744_v15, 2 }
 0x50b   : >> { %v9022_v20 = vadd.f32 %v9021_v43, %v9020_v32  ;;  %v3908_v11 = vpop.f32.mrb[54].mxu0  ;;  %v14158_v48 = vadd.f32 %v9019_v25, %v14006_v6  ;;  %v6083_v6 = vpack.c.b16 %v6035_v59, %v6032_v62 }
 0x50c   : >> { %v14161_v27 = vadd.f32 %v3908_v11, %v14094_v18  ;;  %v9784_v50 = vpop.f32.mrb[55].mxu0  ;;  %6220 = vmatmul.mubr.bf16.gmra.mrb[172].mxu1 %v8751_v4  ;;  %v5893_v40 = vsel %vm1206_vm1, %v5891_v51, %v5892_v53 }
 0x50d   : >> { %6227 = vmatprep.mubr.bf16.mxu1 %v6084_v2  ;;  %v3828_v31 = vadd.f32 %v9022_v20, %v14017_v7  ;;  %v6034_v56 = vunpack.c.h.b16 %v5893_v40 }
 0x50e   : >> { %9914 = vmatmul.mubr.msk.bf16.gmra.mrb[160].mxu0 %vm1749_vm3, %v8750_v28 }
 0x50f   : >> { %v9023_v10 = vpop.f32.mrb[68].mxu1  ;;  %9917 = vmatprep.mubr.msk.bf16.mxu0 %vm10747_vm5, %v14615_v5  ;;  %v6085_v39 = vpack.c.b16 %v6037_v13, %v6034_v56 }
 0x510   : >> { %v9024_v18 = vpop.f32.mrb[69].mxu1 }
 0x511   : >> { %v9025_v29 = vadd.f32 %v9024_v18, %v9023_v10  ;;  %v9026_v57 = vpop.f32.mrb[70].mxu1  ;;  %v3913_v23 = vpop.f32.mrb[56].mxu0 }
 0x512   : >> { %v14170_v16 = vadd.f32 %v3913_v23, %v14110_v47  ;;  %v9027_v7 = vpop.f32.mrb[71].mxu1  ;;  %v9787_v35 = vpop.f32.mrb[57].mxu0 }
 0x513   : >> { %v9028_v49 = vadd.f32 %v9027_v7, %v9026_v57  ;;  %v3916_v44 = vpop.f32.mrb[58].mxu0  ;;  %v3833_v61 = vadd.f32 %v9025_v29, %v14033_v46  ;;  %v5888_v46 = vrot.slane %v8743_v33, 2 }
 0x514   : >> { %v14174_v60 = vadd.f32 %v3916_v44, %v14116_v38  ;;  %v9788_v17 = vpop.f32.mrb[59].mxu0  ;;  %6228 = vmatmul.mubr.bf16.gmra.mrb[176].mxu1 %v6083_v6  ;;  %v5889_v38 = vrot.slane %v10634_v9, 2 }
 0x515   : >> { %9929 = vmatprep.mubr.msk.bf16.mxu1 %vm10747_vm5, %v14615_v5  ;;  %v3836_v47 = vadd.f32 %v9028_v49, %v14044_v8 }
 0x516   : >> { %9918 = vmatmul.mubr.msk.bf16.gmra.mrb[164].mxu0 %vm1749_vm3, %v6076_v21  ;;  %v5890_v2 = vsel %vm1206_vm1, %v5888_v46, %v5889_v38  ;;  %v8753_v59 = vcombine.low %v5889_v38, %v5893_v40 }
 0x517   : >> { %v9058_v36 = vpop.f32.mrb[72].mxu1  ;;  %9921 = vmatprep.mubr.msk.bf16.mxu0 %vm10747_vm5, %v14615_v5 }
 0x518   : >> { %v9059_v3 = vpop.f32.mrb[73].mxu1 }
 0x519   : >> { %v3921_v45 = vpop.f32.mrb[60].mxu0  ;;  %v9060_v34 = vadd.f32 %v9059_v3, %v9058_v36  ;;  %v9061_v4 = vpop.f32.mrb[74].mxu1 }
 0x51a   : >> { %v14185_v25 = vadd.f32 %v3921_v45, %v14136_v22  ;;  %v9791_v32 = vpop.f32.mrb[61].mxu0  ;;  %v9062_v26 = vpop.f32.mrb[75].mxu1 }
 0x51b   : >> { %v3924_v8 = vpop.f32.mrb[62].mxu0  ;;  %v9063_v12 = vadd.f32 %v9062_v26, %v9061_v4 }
 0x51c   : >> { %v14189_v43 = vadd.f32 %v3924_v8, %v14145_v14  ;;  %v9792_v54 = vpop.f32.mrb[63].mxu0  ;;  %9930 = vmatmul.mubr.msk.bf16.vlgmr.msra.gmra.mrb[180].mxu1 %vm1749_vm3, %v6085_v39 }
 0x51e   : >> { %9922 = vmatmul.mubr.msk.bf16.gmra.mrb[168].mxu0 %vm1749_vm3, %v5890_v2 }
 0x51f   : >> { %v9064_v28 = vpop.f32.mrb[76].mxu1  ;;  %9925 = vmatprep.mubr.msk.bf16.mxu0 %vm10747_vm5, %v14615_v5 }
 0x520   : >> { %v9065_v22 = vpop.f32.mrb[77].mxu1 }
 0x521   : >> { %v3929_v15 = vpop.f32.mrb[64].mxu0  ;;  %v9066_v20 = vadd.f32 %v9065_v22, %v9064_v28  ;;  %v9067_v11 = vpop.f32.mrb[78].mxu1 }
 0x522   : >> { %v14196_v62 = vadd.f32 %v3929_v15, %v14158_v48  ;;  %v9795_v50 = vpop.f32.mrb[65].mxu0  ;;  %v9068_v14 = vpop.f32.mrb[79].mxu1 }
 0x523   : >> { %v3932_v30 = vpop.f32.mrb[66].mxu0  ;;  %v9069_v53 = vadd.f32 %v9068_v14, %v9067_v11 }
 0x524   : >> { %v14198_v51 = vadd.f32 %v3932_v30, %v3828_v31  ;;  %v9796_v42 = vpop.f32.mrb[67].mxu0 }
 0x526   : >> { %9926 = vmatmul.mubr.msk.bf16.gmra.mrb[172].mxu0 %vm1749_vm3, %v8753_v59 }
 0x527   : >> { %v9070_v1 = vpop.f32.mrb[80].mxu1 }
 0x528   : >> { %v9071_v10 = vpop.f32.mrb[81].mxu1 }
 0x529   : >> { %v3937_v5 = vpop.f32.mrb[68].mxu0  ;;  %v9072_v6 = vadd.f32 %v9071_v10, %v9070_v1  ;;  %v9073_v18 = vpop.f32.mrb[82].mxu1 }
 0x52a   : >> { %v14201_v29 = vadd.f32 %v3937_v5, %v3833_v61  ;;  %v9799_v57 = vpop.f32.mrb[69].mxu0  ;;  %v9074_v48 = vpop.f32.mrb[83].mxu1 }
 0x52b   : >> { %v3940_v23 = vpop.f32.mrb[70].mxu0  ;;  %v9075_v7 = vadd.f32 %v9074_v48, %v9073_v18 }
 0x52c   : >> { %v14203_v40 = vadd.f32 %v3940_v23, %v3836_v47  ;;  %v9800_v35 = vpop.f32.mrb[71].mxu0 }
 0x52f   : >> { %v9076_v21 = vpop.f32.mrb[84].mxu1 }
 0x530   : >> { %v9077_v31 = vpop.f32.mrb[85].mxu1 }
 0x531   : >> { %v4660_v49 = vpop.f32.mrb[72].mxu0  ;;  %v9078_v44 = vadd.f32 %v9077_v31, %v9076_v21  ;;  %v9079_v17 = vpop.f32.mrb[86].mxu1 }
 0x532   : >> { %v4661_v56 = vadd.f32 %v9060_v34, %v4660_v49  ;;  %v9811_v13 = vpop.f32.mrb[73].mxu0  ;;  %v9080_v33 = vpop.f32.mrb[87].mxu1 }
 0x533   : >> { %v4663_v36 = vpop.f32.mrb[74].mxu0  ;;  %v9081_v46 = vadd.f32 %v9080_v33, %v9079_v17 }
 0x534   : >> { %v14206_v61 = vadd.f32 %v4661_v56, %v14055_v55  ;;  %v4664_v9 = vadd.f32 %v9063_v12, %v4663_v36  ;;  %v9812_v38 = vpop.f32.mrb[75].mxu0 }
 0x536   : >> { %v14209_v39 = vadd.f32 %v4664_v9, %v14065_v41 }
 0x537   : >> { %v9082_v47 = vpop.f32.mrb[88].mxu1 }
 0x538   : >> { %v9083_v3 = vpop.f32.mrb[89].mxu1 }
 0x539   : >> { %v4668_v45 = vpop.f32.mrb[76].mxu0  ;;  %v9084_v4 = vadd.f32 %v9083_v3, %v9082_v47  ;;  %v9085_v32 = vpop.f32.mrb[90].mxu1 }
 0x53a   : >> { %v4669_v26 = vadd.f32 %v9066_v20, %v4668_v45  ;;  %v9815_v8 = vpop.f32.mrb[77].mxu0  ;;  %v9086_v34 = vpop.f32.mrb[91].mxu1 }
 0x53b   : >> { %v4671_v2 = vpop.f32.mrb[78].mxu0  ;;  %v9087_v54 = vadd.f32 %v9086_v34, %v9085_v32 }
 0x53c   : >> { %v14212_v28 = vadd.f32 %v4669_v26, %v14083_v63  ;;  %v4672_v55 = vadd.f32 %v9069_v53, %v4671_v2  ;;  %v9816_v22 = vpop.f32.mrb[79].mxu0 }
 0x53e   : >> { %v14215_v12 = vadd.f32 %v4672_v55, %v14091_v52 }
 0x53f   : >> { %v9088_v41 = vpop.f32.mrb[92].mxu1 }
 0x540   : >> { %v9089_v15 = vpop.f32.mrb[93].mxu1 }
 0x541   : >> { %v9090_v11 = vadd.f32 %v9089_v15, %v9088_v41  ;;  %v4676_v50 = vpop.f32.mrb[80].mxu0  ;;  %v9091_v59 = vpop.f32.mrb[94].mxu1 }
 0x542   : >> { %v4677_v14 = vadd.f32 %v9072_v6, %v4676_v50  ;;  %v9819_v30 = vpop.f32.mrb[81].mxu0  ;;  %v9092_v20 = vpop.f32.mrb[95].mxu1 }
 0x543   : >> { %v9093_v42 = vadd.f32 %v9092_v20, %v9091_v59  ;;  %v4679_v1 = vpop.f32.mrb[82].mxu0 }
 0x544   : >> { %v14218_v10 = vadd.f32 %v4677_v14, %v14103_v0  ;;  %v4680_v63 = vadd.f32 %v9075_v7, %v4679_v1  ;;  %v9820_v5 = vpop.f32.mrb[83].mxu0 }
 0x546   : >> { %v14221_v53 = vadd.f32 %v4680_v63, %v14113_v19 }
 0x547   : >> { %v9094_v52 = vpop.f32.mrb[96].mxu1 }
 0x548   : >> { %v9095_v18 = vpop.f32.mrb[97].mxu1 }
 0x549   : >> { %v4684_v57 = vpop.f32.mrb[84].mxu0  ;;  %v9096_v48 = vadd.f32 %v9095_v18, %v9094_v52  ;;  %v9097_v23 = vpop.f32.mrb[98].mxu1 }
 0x54a   : >> { %v4685_v35 = vadd.f32 %v9078_v44, %v4684_v57  ;;  %v9823_v21 = vpop.f32.mrb[85].mxu0  ;;  %v9098_v6 = vpop.f32.mrb[99].mxu1 }
 0x54b   : >> { %v4687_v31 = vpop.f32.mrb[86].mxu0  ;;  %v9099_v49 = vadd.f32 %v9098_v6, %v9097_v23 }
 0x54c   : >> { %v14224_v17 = vadd.f32 %v4685_v35, %v14129_v37  ;;  %v4688_v0 = vadd.f32 %v9081_v46, %v4687_v31  ;;  %v9824_v56 = vpop.f32.mrb[87].mxu0 }
 0x54e   : >> { %v14227_v7 = vadd.f32 %v4688_v0, %v14139_v24 }
 0x54f   : >> { %v9100_v19 = vpop.f32.mrb[100].mxu1 }
 0x550   : >> { %v9101_v13 = vpop.f32.mrb[101].mxu1 }
 0x551   : >> { %v4692_v33 = vpop.f32.mrb[88].mxu0  ;;  %v9102_v36 = vadd.f32 %v9101_v13, %v9100_v19  ;;  %v9103_v9 = vpop.f32.mrb[102].mxu1 }
 0x552   : >> { %v4693_v38 = vadd.f32 %v9084_v4, %v4692_v33  ;;  %v9827_v47 = vpop.f32.mrb[89].mxu0  ;;  %v9104_v44 = vpop.f32.mrb[103].mxu1 }
 0x553   : >> { %v4695_v3 = vpop.f32.mrb[90].mxu0  ;;  %v9105_v45 = vadd.f32 %v9104_v44, %v9103_v9 }
 0x554   : >> { %v14230_v32 = vadd.f32 %v4693_v38, %v14154_v58  ;;  %v4696_v37 = vadd.f32 %v9087_v54, %v4695_v3  ;;  %v9828_v26 = vpop.f32.mrb[91].mxu0 }
 0x556   : >> { %v14233_v46 = vadd.f32 %v4696_v37, %v14161_v27 }
 0x557   : >> { %v9106_v24 = vpop.f32.mrb[104].mxu1 }
 0x558   : >> { %v9107_v8 = vpop.f32.mrb[105].mxu1 }
 0x559   : >> { %v9108_v34 = vadd.f32 %v9107_v8, %v9106_v24  ;;  %v4700_v2 = vpop.f32.mrb[92].mxu0  ;;  %v9109_v55 = vpop.f32.mrb[106].mxu1 }
 0x55a   : >> { %v4701_v22 = vadd.f32 %v9090_v11, %v4700_v2  ;;  %v9831_v41 = vpop.f32.mrb[93].mxu0  ;;  %v9110_v4 = vpop.f32.mrb[107].mxu1 }
 0x55b   : >> { %v9111_v15 = vadd.f32 %v9110_v4, %v9109_v55  ;;  %v4703_v50 = vpop.f32.mrb[94].mxu0 }
 0x55c   : >> { %v14236_v59 = vadd.f32 %v4701_v22, %v14170_v16  ;;  %v4704_v58 = vadd.f32 %v9093_v42, %v4703_v50  ;;  %v9832_v14 = vpop.f32.mrb[95].mxu0 }
 0x55e   : >> { %v14239_v54 = vadd.f32 %v4704_v58, %v14174_v60 }
 0x55f   : >> { %v9141_v27 = vpop.f32.mrb[108].mxu1 }
 0x560   : >> { %v9142_v30 = vpop.f32.mrb[109].mxu1 }
 0x561   : >> { %v4708_v20 = vpop.f32.mrb[96].mxu0  ;;  %v9143_v1 = vadd.f32 %v9142_v30, %v9141_v27  ;;  %v9144_v63 = vpop.f32.mrb[110].mxu1 }
 0x562   : >> { %v4709_v5 = vadd.f32 %v9096_v48, %v4708_v20  ;;  %v9835_v52 = vpop.f32.mrb[97].mxu0  ;;  %v9145_v11 = vpop.f32.mrb[111].mxu1 }
 0x563   : >> { %v4711_v18 = vpop.f32.mrb[98].mxu0  ;;  %v9146_v57 = vadd.f32 %v9145_v11, %v9144_v63 }
 0x564   : >> { %v14242_v23 = vadd.f32 %v4709_v5, %v14185_v25  ;;  %v4712_v16 = vadd.f32 %v9099_v49, %v4711_v18  ;;  %v9836_v35 = vpop.f32.mrb[99].mxu0 }
 0x566   : >> { %v14245_v42 = vadd.f32 %v4712_v16, %v14189_v43 }
 0x567   : >> { %v9147_v60 = vpop.f32.mrb[112].mxu1 }
 0x568   : >> { %v9148_v21 = vpop.f32.mrb[113].mxu1 }
 0x569   : >> { %v4716_v6 = vpop.f32.mrb[100].mxu0  ;;  %v9149_v31 = vadd.f32 %v9148_v21, %v9147_v60  ;;  %v9150_v0 = vpop.f32.mrb[114].mxu1 }
 0x56a   : >> { %v4717_v56 = vadd.f32 %v9102_v36, %v4716_v6  ;;  %v9839_v19 = vpop.f32.mrb[101].mxu0  ;;  %v9151_v48 = vpop.f32.mrb[115].mxu1 }
 0x56b   : >> { %v4719_v13 = vpop.f32.mrb[102].mxu0  ;;  %v9152_v33 = vadd.f32 %v9151_v48, %v9150_v0 }
 0x56c   : >> { %v14248_v9 = vadd.f32 %v4717_v56, %v14196_v62  ;;  %v4720_v25 = vadd.f32 %v9105_v45, %v4719_v13  ;;  %v9840_v38 = vpop.f32.mrb[103].mxu0 }
 0x56e   : >> { %v14251_v49 = vadd.f32 %v4720_v25, %v14198_v51 }
 0x56f   : >> { %v9153_v43 = vpop.f32.mrb[116].mxu1 }
 0x570   : >> { %v9154_v47 = vpop.f32.mrb[117].mxu1 }
 0x571   : >> { %v4724_v44 = vpop.f32.mrb[104].mxu0  ;;  %v9155_v3 = vadd.f32 %v9154_v47, %v9153_v43  ;;  %v9156_v37 = vpop.f32.mrb[118].mxu1 }
 0x572   : >> { %v4725_v26 = vadd.f32 %v9108_v34, %v4724_v44  ;;  %v9843_v24 = vpop.f32.mrb[105].mxu0  ;;  %v9157_v36 = vpop.f32.mrb[119].mxu1 }
 0x573   : >> { %v4727_v8 = vpop.f32.mrb[106].mxu0  ;;  %v9158_v2 = vadd.f32 %v9157_v36, %v9156_v37 }
 0x574   : >> { %v14254_v55 = vadd.f32 %v4725_v26, %v14201_v29  ;;  %v4728_v62 = vadd.f32 %v9111_v15, %v4727_v8  ;;  %v9844_v22 = vpop.f32.mrb[107].mxu0 }
 0x576   : >> { %v14257_v45 = vadd.f32 %v4728_v62, %v14203_v40 }
 0x577   : >> { %v9159_v51 = vpop.f32.mrb[120].mxu1 }
 0x578   : >> { %v9160_v41 = vpop.f32.mrb[121].mxu1 }
 0x579   : >> { %v5465_v4 = vpop.f32.mrb[108].mxu0  ;;  %v9161_v50 = vadd.f32 %v9160_v41, %v9159_v51  ;;  %v9162_v58 = vpop.f32.mrb[122].mxu1 }
 0x57a   : >> { %v5466_v14 = vadd.f32 %v9143_v1, %v5465_v4  ;;  %v9855_v27 = vpop.f32.mrb[109].mxu0  ;;  %v9163_v34 = vpop.f32.mrb[123].mxu1 }
 0x57b   : >> { %v5468_v30 = vpop.f32.mrb[110].mxu0  ;;  %v9164_v20 = vadd.f32 %v9163_v34, %v9162_v58 }
 0x57c   : >> { %v14260_v63 = vadd.f32 %v5466_v14, %v14206_v61  ;;  %v5469_v29 = vadd.f32 %v9146_v57, %v5468_v30  ;;  %v9856_v5 = vpop.f32.mrb[111].mxu0 }
 0x57e   : >> { %v14263_v15 = vadd.f32 %v5469_v29, %v14209_v39 }
 0x57f   : >> { %v9165_v40 = vpop.f32.mrb[124].mxu1 }
 0x580   : >> { %v9166_v52 = vpop.f32.mrb[125].mxu1 }
 0x581   : >> { %v5473_v11 = vpop.f32.mrb[112].mxu0  ;;  %v9167_v18 = vadd.f32 %v9166_v52, %v9165_v40  ;;  %v9168_v16 = vpop.f32.mrb[126].mxu1 }
 0x582   : >> { %v5474_v35 = vadd.f32 %v9149_v31, %v5473_v11  ;;  %v9859_v60 = vpop.f32.mrb[113].mxu0  ;;  %v9169_v1 = vpop.f32.mrb[127].mxu1 }
 0x583   : >> { %v5476_v21 = vpop.f32.mrb[114].mxu0  ;;  %v9170_v6 = vadd.f32 %v9169_v1, %v9168_v16 }
 0x584   : >> { %v14266_v0 = vadd.f32 %v5474_v35, %v14212_v28  ;;  %v5477_v61 = vadd.f32 %v9152_v33, %v5476_v21  ;;  %v9860_v56 = vpop.f32.mrb[115].mxu0 }
 0x586   : >> { %v14269_v57 = vadd.f32 %v5477_v61, %v14215_v12 }
 0x587   : >> { %v9171_v39 = vpop.f32.mrb[128].mxu1 }
 0x588   : >> { %v9172_v19 = vpop.f32.mrb[129].mxu1 }
 0x589   : >> { %v9173_v48 = vadd.f32 %v9172_v19, %v9171_v39  ;;  %v5481_v13 = vpop.f32.mrb[116].mxu0  ;;  %v9174_v25 = vpop.f32.mrb[130].mxu1 }
 0x58a   : >> { %v5482_v38 = vadd.f32 %v9155_v3, %v5481_v13  ;;  %v9863_v43 = vpop.f32.mrb[117].mxu0  ;;  %v9175_v31 = vpop.f32.mrb[131].mxu1 }
 0x58b   : >> { %v9176_v47 = vadd.f32 %v9175_v31, %v9174_v25  ;;  %v5484_v44 = vpop.f32.mrb[118].mxu0 }
 0x58c   : >> { %v14272_v37 = vadd.f32 %v5482_v38, %v14218_v10  ;;  %v5485_v28 = vadd.f32 %v9158_v2, %v5484_v44  ;;  %v9864_v26 = vpop.f32.mrb[119].mxu0 }
 0x58e   : >> { %v14275_v33 = vadd.f32 %v5485_v28, %v14221_v53 }
 0x58f   : >> { %v9177_v12 = vpop.f32.mrb[132].mxu1 }
 0x590   : >> { %v9178_v24 = vpop.f32.mrb[133].mxu1 }
 0x591   : >> { %v5489_v36 = vpop.f32.mrb[120].mxu0  ;;  %v9179_v8 = vadd.f32 %v9178_v24, %v9177_v12  ;;  %v9180_v62 = vpop.f32.mrb[134].mxu1 }
 0x592   : >> { %v5490_v22 = vadd.f32 %v9161_v50, %v5489_v36  ;;  %v9867_v51 = vpop.f32.mrb[121].mxu0  ;;  %v9181_v3 = vpop.f32.mrb[135].mxu1 }
 0x593   : >> { %v5492_v41 = vpop.f32.mrb[122].mxu0  ;;  %v9182_v4 = vadd.f32 %v9181_v3, %v9180_v62 }
 0x594   : >> { %v14278_v58 = vadd.f32 %v5490_v22, %v14224_v17  ;;  %v5493_v10 = vadd.f32 %v9164_v20, %v5492_v41  ;;  %v9868_v14 = vpop.f32.mrb[123].mxu0 }
 0x596   : >> { %v14281_v2 = vadd.f32 %v5493_v10, %v14227_v7 }
 0x597   : >> { %v9183_v53 = vpop.f32.mrb[136].mxu1 }
 0x598   : >> { %v9184_v27 = vpop.f32.mrb[137].mxu1 }
 0x599   : >> { %v5497_v34 = vpop.f32.mrb[124].mxu0  ;;  %v9185_v30 = vadd.f32 %v9184_v27, %v9183_v53  ;;  %v9186_v29 = vpop.f32.mrb[138].mxu1 }
 0x59a   : >> { %v5498_v5 = vadd.f32 %v9167_v18, %v5497_v34  ;;  %v9871_v40 = vpop.f32.mrb[125].mxu0  ;;  %v9187_v50 = vpop.f32.mrb[139].mxu1 }
 0x59b   : >> { %v5500_v52 = vpop.f32.mrb[126].mxu0  ;;  %v9188_v11 = vadd.f32 %v9187_v50, %v9186_v29 }
 0x59c   : >> { %v14284_v16 = vadd.f32 %v5498_v5, %v14230_v32  ;;  %v5501_v17 = vadd.f32 %v9170_v6, %v5500_v52  ;;  %v9872_v35 = vpop.f32.mrb[127].mxu0 }
 0x59e   : >> { %v14287_v20 = vadd.f32 %v5501_v17, %v14233_v46 }
 0x59f   : >> { %v9189_v7 = vpop.f32.mrb[140].mxu1 }
 0x5a0   : >> { %v9190_v60 = vpop.f32.mrb[141].mxu1 }
 0x5a1   : >> { %v9191_v1 = vadd.f32 %v9190_v60, %v9189_v7  ;;  %v5505_v21 = vpop.f32.mrb[128].mxu0  ;;  %v9192_v61 = vpop.f32.mrb[142].mxu1 }
 0x5a2   : >> { %v5506_v56 = vadd.f32 %v9173_v48, %v5505_v21  ;;  %v9875_v39 = vpop.f32.mrb[129].mxu0  ;;  %v9193_v18 = vpop.f32.mrb[143].mxu1 }
 0x5a3   : >> { %v9194_v19 = vadd.f32 %v9193_v18, %v9192_v61  ;;  %v5508_v13 = vpop.f32.mrb[130].mxu0 }
 0x5a4   : >> { %v14290_v25 = vadd.f32 %v5506_v56, %v14236_v59  ;;  %v5509_v32 = vadd.f32 %v9176_v47, %v5508_v13  ;;  %v9876_v38 = vpop.f32.mrb[131].mxu0 }
 0x5a6   : >> { %v14293_v6 = vadd.f32 %v5509_v32, %v14239_v54 }
 0x5a7   : >> { %v9224_v46 = vpop.f32.mrb[144].mxu1 }
 0x5a8   : >> { %v9225_v43 = vpop.f32.mrb[145].mxu1 }
 0x5a9   : >> { %v5513_v31 = vpop.f32.mrb[132].mxu0  ;;  %v9226_v44 = vadd.f32 %v9225_v43, %v9224_v46  ;;  %v9227_v28 = vpop.f32.mrb[146].mxu1 }
 0x5aa   : >> { %v5514_v26 = vadd.f32 %v9179_v8, %v5513_v31  ;;  %v9879_v12 = vpop.f32.mrb[133].mxu0  ;;  %v9228_v48 = vpop.f32.mrb[147].mxu1 }
 0x5ab   : >> { %v5516_v24 = vpop.f32.mrb[134].mxu0  ;;  %v9229_v36 = vadd.f32 %v9228_v48, %v9227_v28 }
 0x5ac   : >> { %v14296_v62 = vadd.f32 %v5514_v26, %v14242_v23  ;;  %v5517_v59 = vadd.f32 %v9182_v4, %v5516_v24  ;;  %v9880_v22 = vpop.f32.mrb[135].mxu0  ;;  %v14628_v26 = vld [vmem:[#allocation17_spill] sm:$0xff] }
 0x5ae   : >> { %v14299_v47 = vadd.f32 %v5517_v59, %v14245_v42 }
 0x5af   : >> { %v9230_v54 = vpop.f32.mrb[148].mxu1 }
 0x5b0   : >> { %v9231_v51 = vpop.f32.mrb[149].mxu1 }
 0x5b1   : >> { %v5521_v3 = vpop.f32.mrb[136].mxu0  ;;  %v9232_v41 = vadd.f32 %v9231_v51, %v9230_v54  ;;  %v9233_v10 = vpop.f32.mrb[150].mxu1 }
 0x5b2   : >> { %v5522_v14 = vadd.f32 %v9185_v30, %v5521_v3  ;;  %v9883_v53 = vpop.f32.mrb[137].mxu0  ;;  %v9234_v8 = vpop.f32.mrb[151].mxu1 }
 0x5b3   : >> { %v5524_v27 = vpop.f32.mrb[138].mxu0  ;;  %v9235_v34 = vadd.f32 %v9234_v8, %v9233_v10 }
 0x5b4   : >> { %v14302_v29 = vadd.f32 %v5522_v14, %v14248_v9  ;;  %v5525_v23 = vadd.f32 %v9188_v11, %v5524_v27  ;;  %v9884_v5 = vpop.f32.mrb[139].mxu0 }
 0x5b6   : >> { %v14305_v4 = vadd.f32 %v5525_v23, %v14251_v49 }
 0x5b7   : >> { %v9236_v42 = vpop.f32.mrb[152].mxu1 }
 0x5b8   : >> { %v9237_v40 = vpop.f32.mrb[153].mxu1 }
 0x5b9   : >> { %v5529_v50 = vpop.f32.mrb[140].mxu0  ;;  %v9238_v52 = vadd.f32 %v9237_v40, %v9236_v42  ;;  %v9239_v17 = vpop.f32.mrb[154].mxu1 }
 0x5ba   : >> { %v5530_v35 = vadd.f32 %v9191_v1, %v5529_v50  ;;  %v9887_v7 = vpop.f32.mrb[141].mxu0  ;;  %v9240_v30 = vpop.f32.mrb[155].mxu1 }
 0x5bb   : >> { %v5532_v60 = vpop.f32.mrb[142].mxu0  ;;  %v9241_v21 = vadd.f32 %v9240_v30, %v9239_v17 }
 0x5bc   : >> { %v14308_v61 = vadd.f32 %v5530_v35, %v14254_v55  ;;  %v5533_v9 = vadd.f32 %v9194_v19, %v5532_v60  ;;  %v9888_v56 = vpop.f32.mrb[143].mxu0 }
 0x5be   : >> { %v14311_v11 = vadd.f32 %v5533_v9, %v14257_v45 }
 0x5bf   : >> { %v9242_v49 = vpop.f32.mrb[156].mxu1 }
 0x5c0   : >> { %v9243_v39 = vpop.f32.mrb[157].mxu1 }
 0x5c1   : >> { %v6270_v18 = vpop.f32.mrb[144].mxu0  ;;  %v14313_v13 = vadd.f32 %v9243_v39, %v9242_v49  ;;  %v9245_v32 = vpop.f32.mrb[158].mxu1 }
 0x5c2   : >> { %v6271_v38 = vadd.f32 %v9226_v44, %v6270_v18  ;;  %v9899_v1 = vpop.f32.mrb[145].mxu0  ;;  %v9246_v46 = vpop.f32.mrb[159].mxu1 }
 0x5c3   : >> { %v6273_v43 = vpop.f32.mrb[146].mxu0  ;;  %v14315_v31 = vadd.f32 %v9246_v46, %v9245_v32 }
 0x5c4   : >> { %v6341_v55 = vadd.f32 %v6271_v38, %v14260_v63  ;;  %v6274_v28 = vadd.f32 %v9229_v36, %v6273_v43  ;;  %v9900_v19 = vpop.f32.mrb[147].mxu0 }
 0x5c6   : >> { %v14319_v12 = vadd.f32 %v14628_v26, %v6341_v55  ;;  %v6342_v45 = vadd.f32 %v6274_v28, %v14263_v15 }
 0x5c7   : >> { %v9248_v48 = vpop.f32.mrb[160].mxu1 }
 0x5c8   : >> { %v6383_v24 = vsub.f32 0.0, %v14319_v12  ;;  %v14324_v59 = vadd.f32 %v14628_v26, %v6342_v45  ;;  %v9249_v44 = vpop.f32.mrb[161].mxu1 }
 0x5c9   : >> { %v6278_v22 = vpop.f32.mrb[148].mxu0  ;;  %v14326_v54 = vadd.f32 %v9249_v44, %v9248_v48  ;;  %v9251_v51 = vpop.f32.mrb[162].mxu1 }
 0x5ca   : >> { %v6279_v3 = vadd.f32 %v9232_v41, %v6278_v22  ;;  %v9903_v63 = vpop.f32.mrb[149].mxu0  ;;  %v9252_v36 = vpop.f32.mrb[163].mxu1  ;;  %v6401_v53 = vmul.f32 1.442695, %v6383_v24  ;;  %v6384_v15 = vsub.f32 0.0, %v14324_v59 }
 0x5cb   : >> { %v6281_v10 = vpop.f32.mrb[150].mxu0  ;;  %v14328_v14 = vadd.f32 %v9252_v36, %v9251_v51 }
 0x5cc   : >> { %v6343_v8 = vadd.f32 %v6279_v3, %v14266_v0  ;;  %v6282_v27 = vadd.f32 %v9235_v34, %v6281_v10  ;;  %v9904_v23 = vpop.f32.mrb[151].mxu0  ;;  %10487 = vpow2.f32 %v6401_v53  ;;  %v6403_v41 = vmul.f32 1.442695, %v6384_v15 }
 0x5ce   : >> { %v14333_v5 = vadd.f32 %v14628_v26, %v6343_v8  ;;  %v6344_v42 = vadd.f32 %v6282_v27, %v14269_v57  ;;  %10489 = vpow2.f32 %v6403_v41 }
 0x5cf   : >> { %v9254_v40 = vpop.f32.mrb[164].mxu1 }
 0x5d0   : >> { %v6385_v50 = vsub.f32 0.0, %v14333_v5  ;;  %v14338_v17 = vadd.f32 %v14628_v26, %v6344_v42  ;;  %v9255_v35 = vpop.f32.mrb[165].mxu1 }
 0x5d1   : >> { %v14340_v7 = vadd.f32 %v9255_v35, %v9254_v40  ;;  %v6286_v30 = vpop.f32.mrb[152].mxu0  ;;  %v9257_v0 = vpop.f32.mrb[166].mxu1 }
 0x5d2   : >> { %v6386_v34 = vsub.f32 0.0, %v14338_v17  ;;  %v6287_v60 = vadd.f32 %v9238_v52, %v6286_v30  ;;  %v9907_v9 = vpop.f32.mrb[153].mxu0  ;;  %v9258_v56 = vpop.f32.mrb[167].mxu1  ;;  %v6405_v49 = vmul.f32 1.442695, %v6385_v50 }
 0x5d3   : >> { %v14343_v57 = vadd.f32 %v9258_v56, %v9257_v0  ;;  %v6289_v39 = vpop.f32.mrb[154].mxu0 }
 0x5d4   : >> { %v6407_v18 = vmul.f32 1.442695, %v6386_v34  ;;  %v6345_v32 = vadd.f32 %v6287_v60, %v14272_v37  ;;  %v6290_v38 = vadd.f32 %v9241_v21, %v6289_v39  ;;  %v9908_v1 = vpop.f32.mrb[155].mxu0 }
 0x5d6   : >> { %10491 = vpow2.f32 %v6407_v18  ;;  %v14347_v46 = vadd.f32 %v14628_v26, %v6345_v32  ;;  %v6346_v43 = vadd.f32 %v6290_v38, %v14275_v33  ;;  %v10488_v21 = vpop.eup %10487 }
 0x5d7   : >> { %10493 = vpow2.f32 %v6405_v49  ;;  %v9260_v52 = vpop.f32.mrb[168].mxu1  ;;  %v6437_v8 = vadd.f32 1.0, %v10488_v21 }
 0x5d8   : >> { %v6387_v55 = vsub.f32 0.0, %v14347_v46  ;;  %v14352_v28 = vadd.f32 %v14628_v26, %v6346_v43  ;;  %v9261_v19 = vpop.f32.mrb[169].mxu1  ;;  %v10490_v27 = vpop.eup %10489 }
 0x5d9   : >> { %v6294_v45 = vpop.f32.mrb[156].mxu0  ;;  %v14354_v48 = vadd.f32 %v9261_v19, %v9260_v52  ;;  %v9263_v37 = vpop.f32.mrb[170].mxu1 }
 0x5da   : >> { %v6409_v24 = vmul.f32 1.442695, %v6387_v55  ;;  %v6388_v44 = vsub.f32 0.0, %v14352_v28  ;;  %v6295_v22 = vadd.f32 %v14313_v13, %v6294_v45  ;;  %v9911_v51 = vpop.f32.mrb[157].mxu0  ;;  %v9264_v33 = vpop.f32.mrb[171].mxu1 }
 0x5db   : >> { %v6297_v3 = vpop.f32.mrb[158].mxu0  ;;  %v14358_v63 = vadd.f32 %v9264_v33, %v9263_v37 }
 0x5dc   : >> { %10495 = vpow2.f32 %v6409_v24  ;;  %v6411_v36 = vmul.f32 1.442695, %v6388_v44  ;;  %v6347_v10 = vadd.f32 %v6295_v22, %v14278_v58  ;;  %v6298_v53 = vadd.f32 %v14315_v31, %v6297_v3  ;;  %v9912_v15 = vpop.f32.mrb[159].mxu0 }
 0x5dd   : >> { %v6438_v31 = vadd.f32 1.0, %v10490_v27 }
 0x5de   : >> { %10497 = vpow2.f32 %v6411_v36  ;;  %v14363_v23 = vadd.f32 %v14628_v26, %v6347_v10  ;;  %v6348_v13 = vadd.f32 %v6298_v53, %v14281_v2 }
 0x5df   : >> { %v9266_v42 = vpop.f32.mrb[172].mxu1  ;;  %10499 = vrcp.f32 %v6437_v8 }
 0x5e0   : >> { %v10492_v40 = vpop.eup %10491  ;;  %v6389_v41 = vsub.f32 0.0, %v14363_v23  ;;  %v14368_v50 = vadd.f32 %v14628_v26, %v6348_v13  ;;  %v9267_v35 = vpop.f32.mrb[173].mxu1 }
 0x5e1   : >> { %v10494_v58 = vpop.eup %10493  ;;  %v6440_v30 = vadd.f32 1.0, %v10492_v40  ;;  %v6302_v0 = vpop.f32.mrb[160].mxu0  ;;  %v14370_v34 = vadd.f32 %v9267_v35, %v9266_v42 }
 0x5e2   : >> { %v9269_v60 = vpop.f32.mrb[174].mxu1  ;;  %v6413_v9 = vmul.f32 1.442695, %v6389_v41  ;;  %v6390_v56 = vsub.f32 0.0, %v14368_v50  ;;  %v6303_v2 = vadd.f32 %v14326_v54, %v6302_v0  ;;  %v9915_v49 = vpop.f32.mrb[161].mxu0  ;;  %v6439_v38 = vadd.f32 1.0, %v10494_v58 }
 0x5e3   : >> { %v9270_v39 = vpop.f32.mrb[175].mxu1  ;;  %10501 = vrcp.f32 %v6440_v30  ;;  %v6305_v18 = vpop.f32.mrb[162].mxu0 }
 0x5e4   : >> { %v14374_v32 = vadd.f32 %v9270_v39, %v9269_v60  ;;  %v6349_v1 = vadd.f32 %v6303_v2, %v14284_v16  ;;  %v9916_v43 = vpop.f32.mrb[163].mxu0  ;;  %10503 = vrcp.f32 %v6438_v31  ;;  %v6306_v52 = vadd.f32 %v14328_v14, %v6305_v18 }
 0x5e5   : >> { %10505 = vpow2.f32 %v6413_v9  ;;  %v6415_v19 = vmul.f32 1.442695, %v6390_v56 }
 0x5e6   : >> { %v10496_v55 = vpop.eup %10495  ;;  %v14379_v45 = vadd.f32 %v14628_v26, %v6349_v1  ;;  %v6350_v37 = vadd.f32 %v6306_v52, %v14287_v20  ;;  %10507 = vrcp.f32 %v6439_v38 }
 0x5e7   : >> { %v6441_v54 = vadd.f32 1.0, %v10496_v55  ;;  %v9272_v21 = vpop.f32.mrb[176].mxu1 }
 0x5e8   : >> { %v10498_v24 = vpop.eup %10497  ;;  %v6391_v44 = vsub.f32 0.0, %v14379_v45  ;;  %v9273_v22 = vpop.f32.mrb[177].mxu1  ;;  %v14384_v51 = vadd.f32 %v14628_v26, %v6350_v37 }
 0x5e9   : >> { %10509 = vrcp.f32 %v6441_v54  ;;  %v6442_v16 = vadd.f32 1.0, %v10498_v24  ;;  %v9274_v14 = vadd.f32 %v9273_v22, %v9272_v21  ;;  %v6310_v33 = vpop.f32.mrb[164].mxu0  ;;  %v9275_v3 = vpop.f32.mrb[178].mxu1 }
 0x5ea   : >> { %10511 = vpow2.f32 %v6415_v19  ;;  %v6417_v36 = vmul.f32 1.442695, %v6391_v44  ;;  %v6311_v10 = vadd.f32 %v14340_v7, %v6310_v33  ;;  %v9919_v53 = vpop.f32.mrb[165].mxu0  ;;  %v9276_v20 = vpop.f32.mrb[179].mxu1  ;;  %v6392_v8 = vsub.f32 0.0, %v14384_v51 }
 0x5eb   : >> { %v10500_v15 = vpop.eup %10499  ;;  %10513 = vrcp.f32 %v6442_v16  ;;  %v9277_v27 = vadd.f32 %v9276_v20, %v9275_v3  ;;  %v6313_v13 = vpop.f32.mrb[166].mxu0 }
 0x5ec   : >> { %10515 = vpow2.f32 %v6417_v36  ;;  %v6351_v42 = vadd.f32 %v6311_v10, %v14290_v25  ;;  %v6314_v40 = vadd.f32 %v14343_v57, %v6313_v13  ;;  %v9920_v41 = vpop.f32.mrb[167].mxu0  ;;  %v6419_v58 = vmul.f32 1.442695, %v6392_v8 }
 0x5ed   : >> { %v10502_v35 = vpop.eup %10501  ;;  %v6473_v31 = vmul.f32 %v10500_v15, %v14319_v12 }
 0x5ee   : >> { %v6476_v7 = vmul.f32 %v10502_v35, %v14338_v17  ;;  %v14393_v30 = vadd.f32 %v14628_v26, %v6351_v42  ;;  %v6352_v0 = vadd.f32 %v6314_v40, %v14293_v6  ;;  %v10504_v60 = vpop.eup %10503  ;;  %10517 = vpow2.f32 %v6419_v58 }
 0x5ef   : >> { %v6334_v9 = vpop.f32.mrb[180].mxu1  ;;  %v10506_v56 = vpop.eup %10505  ;;  %v6474_v54 = vmul.f32 %v10504_v60, %v14324_v59 }
 0x5f0   : >> { %v6491_v2 = vmax.f32 %v6473_v31, %v6476_v7  ;;  %v6393_v25 = vsub.f32 0.0, %v14393_v30  ;;  %v14398_v57 = vadd.f32 %v14628_v26, %v6352_v0  ;;  %v6335_v49 = vadd.f32 %v9274_v14, %v6334_v9  ;;  %v9931_v39 = vpop.f32.mrb[181].mxu1  ;;  %v10508_v17 = vpop.eup %10507 }
 0x5f1   : >> { %v6318_v12 = vpop.f32.mrb[168].mxu0  ;;  %v6337_v18 = vpop.f32.mrb[182].mxu1  ;;  %v6443_v37 = vadd.f32 1.0, %v10506_v56 }
 0x5f2   : >> { %6500 = vst [vmem:[#allocation5] sm:$0xff] %v6491_v2  ;;  %v6421_v38 = vmul.f32 1.442695, %v6393_v25  ;;  %v6394_v1 = vsub.f32 0.0, %v14398_v57  ;;  %v6357_v6 = vadd.f32 %v6335_v49, %v14308_v61  ;;  %v6319_v43 = vadd.f32 %v14354_v48, %v6318_v12  ;;  %v9923_v52 = vpop.f32.mrb[169].mxu0  ;;  %v9932_v55 = vpop.f32.mrb[183].mxu1 }
 0x5f3   : >> { %v10510_v19 = vpop.eup %10509  ;;  %v6338_v21 = vadd.f32 %v9277_v27, %v6337_v18  ;;  %v6321_v24 = vpop.f32.mrb[170].mxu0  ;;  %v6475_v48 = vmul.f32 %v10508_v17, %v14333_v5 }
 0x5f4   : >> { %v10512_v44 = vpop.eup %10511  ;;  %v6477_v22 = vmul.f32 %v10510_v19, %v14347_v46  ;;  %10519 = vpow2.f32 %v6421_v38  ;;  %v6423_v16 = vmul.f32 1.442695, %v6394_v1  ;;  %v14406_v14 = vadd.f32 %v14628_v26, %v6357_v6  ;;  %v9924_v33 = vpop.f32.mrb[171].mxu0 }
 0x5f5   : >> { %v10514_v61 = vpop.eup %10513  ;;  %v6353_v3 = vadd.f32 %v6319_v43, %v14296_v62  ;;  %v6358_v36 = vadd.f32 %v6338_v21, %v14311_v11  ;;  %v6322_v59 = vadd.f32 %v14358_v63, %v6321_v24  ;;  %v6444_v15 = vadd.f32 1.0, %v10512_v44  ;;  %v6546_v21 = vld [vmem:[%s14447_s8] sm:$0x1f] }
 0x5f6   : >> { %v10516_v10 = vpop.eup %10515  ;;  %v6492_v53 = vmax.f32 %v6474_v54, %v6477_v22  ;;  %v6478_v20 = vmul.f32 %v10514_v61, %v14352_v28  ;;  %10521 = vpow2.f32 %v6423_v16  ;;  %v6399_v46 = vsub.f32 0.0, %v14406_v14 }
 0x5f7   : >> { %v14415_v8 = vadd.f32 %v14628_v26, %v6353_v3  ;;  %v14418_v27 = vadd.f32 %v14628_v26, %v6358_v36  ;;  %v6354_v62 = vadd.f32 %v6322_v59, %v14299_v47  ;;  %10523 = vrcp.f32 %v6443_v37 }
 0x5f8   : >> { %6501 = vst [vmem:[#allocation5 + $0x8] sm:$0xff] %v6492_v53  ;;  %v6493_v11 = vmax.f32 %v6475_v48, %v6478_v20  ;;  %v6433_v5 = vmul.f32 1.442695, %v6399_v46  ;;  %v10518_v63 = vpop.eup %10517  ;;  %v6445_v13 = vadd.f32 1.0, %v10516_v10 }
 0x5f9   : >> { %v6395_v28 = vsub.f32 0.0, %v14415_v8  ;;  %v6400_v42 = vsub.f32 0.0, %v14418_v27  ;;  %v14424_v40 = vadd.f32 %v14628_v26, %v6354_v62  ;;  %v6326_v41 = vpop.f32.mrb[172].mxu0  ;;  %v6446_v35 = vadd.f32 1.0, %v10518_v63 }
 0x5fa   : >> { %6502 = vst [vmem:[#allocation5 + $0x10] sm:$0xff] %v6493_v11  ;;  %10525 = vpow2.f32 %v6433_v5  ;;  %v6327_v47 = vadd.f32 %v14370_v34, %v6326_v41  ;;  %v9927_v58 = vpop.f32.mrb[173].mxu0 }
 0x5fb   : >> { %10527 = vrcp.f32 %v6444_v15  ;;  %v6435_v31 = vmul.f32 1.442695, %v6400_v42  ;;  %v6396_v7 = vsub.f32 0.0, %v14424_v40  ;;  %v6329_v0 = vpop.f32.mrb[174].mxu0  ;;  %v6425_v60 = vmul.f32 1.442695, %v6395_v28 }
 0x5fc   : >> { %10529 = vrcp.f32 %v6446_v35  ;;  %v6355_v9 = vadd.f32 %v6327_v47, %v14302_v29  ;;  %v6330_v56 = vadd.f32 %v14374_v32, %v6329_v0  ;;  %v9928_v2 = vpop.f32.mrb[175].mxu0 }
 0x5fd   : >> { %10531 = vrcp.f32 %v6445_v13  ;;  %v6427_v25 = vmul.f32 1.442695, %v6396_v7 }
 0x5fe   : >> { %v10520_v49 = vpop.eup %10519  ;;  %10533 = vpow2.f32 %v6435_v31  ;;  %v14432_v34 = vadd.f32 %v14628_v26, %v6355_v9  ;;  %v6356_v39 = vadd.f32 %v6330_v56, %v14305_v4 }
 0x5ff   : >> { %v6509_v12 = vld [vmem:[#allocation5] ss:$2 sm:$0xff]  ;;  %v6521_v18 = vld [vmem:[#allocation5 + $0x1] ss:$2 sm:$0xff]  ;;  %v6447_v17 = vadd.f32 1.0, %v10520_v49  ;;  %10535 = vpow2.f32 %v6427_v25 }
 0x600   : >> { %v10522_v38 = vpop.eup %10521  ;;  %10537 = vpow2.f32 %v6425_v60  ;;  %v6397_v29 = vsub.f32 0.0, %v14432_v34  ;;  %v14437_v32 = vadd.f32 %v14628_v26, %v6356_v39  ;;  %v6532_v1 = vmax.f32 %v6509_v12, %v6521_v18  ;;  %v6549_v18 = vld [vmem:[%s14447_s8 + $0x8] sm:$0x1f] }
 0x601   : >> { %v6511_v6 = vld [vmem:[#allocation5 + $0x10] ss:$2 sm:$0x1]  ;;  %v6523_v43 = vld [vmem:[#allocation5 + $0x11] ss:$2 sm:$0x1]  ;;  %10539 = vrcp.f32 %v6447_v17  ;;  %v10524_v52 = vpop.eup %10523 }
 0x602   : >> { %v6533_v55 = vmax.f32 %v6511_v6, %v6523_v43  ;;  %v6448_v4 = vadd.f32 1.0, %v10522_v38  ;;  %v6429_v19 = vmul.f32 1.442695, %v6397_v29  ;;  %v6398_v54 = vsub.f32 0.0, %v14437_v32 }
 0x603   : >> { %v6479_v36 = vmul.f32 %v10524_v52, %v14363_v23 }
 0x604   : >> { %v10526_v24 = vpop.eup %10525  ;;  %v6538_v44 = vpack.c.bf16 %v6533_v55, %v6532_v1  ;;  %10541 = vrcp.f32 %v6448_v4  ;;  %v6431_v22 = vmul.f32 1.442695, %v6398_v54 }
 0x605   : >> { %v10528_v16 = vpop.eup %10527  ;;  %10543 = vpow2.f32 %v6429_v19  ;;  %v6453_v48 = vadd.f32 1.0, %v10526_v24 }
 0x606   : >> { %v10530_v33 = vpop.eup %10529  ;;  %v6547_v61 = vsel %vm14441_vm10, %v6538_v44, %v6546_v21  ;;  %10545 = vpow2.f32 %v6431_v22  ;;  %v6480_v11 = vmul.f32 %v10528_v16, %v14368_v50 }
 0x607   : >> { %v10532_v3 = vpop.eup %10531  ;;  %6548 = vst [vmem:[%s14447_s8] sm:$0x1f] %v6547_v61  ;;  %v6482_v59 = vmul.f32 %v10530_v33, %v14384_v51  ;;  %10547 = vrcp.f32 %v6453_v48 }
 0x608   : >> { %v10534_v10 = vpop.eup %10533  ;;  %v6481_v51 = vmul.f32 %v10532_v3, %v14379_v45 }
 0x609   : >> { %v10536_v53 = vpop.eup %10535  ;;  %v6494_v20 = vmax.f32 %v6479_v36, %v6482_v59  ;;  %v6454_v63 = vadd.f32 1.0, %v10534_v10 }
 0x60a   : >> { %v10538_v46 = vpop.eup %10537  ;;  %v6450_v15 = vadd.f32 1.0, %v10536_v53 }
 0x60b   : >> { %v10540_v62 = vpop.eup %10539  ;;  %6503 = vst [vmem:[#allocation5 + $0x18] sm:$0xff] %v6494_v20  ;;  %v6449_v13 = vadd.f32 1.0, %v10538_v46 }
 0x60c   : >> { %v6483_v5 = vmul.f32 %v10540_v62, %v14393_v30  ;;  %10549 = vrcp.f32 %v6450_v15 }
 0x60d   : >> { %10551 = vrcp.f32 %v6454_v63 }
 0x60e   : >> { %v10542_v28 = vpop.eup %10541  ;;  %v6495_v42 = vmax.f32 %v6480_v11, %v6483_v5  ;;  %10553 = vrcp.f32 %v6449_v13 }
 0x60f   : >> { %v10544_v23 = vpop.eup %10543  ;;  %v6484_v41 = vmul.f32 %v10542_v28, %v14398_v57 }
 0x610   : >> { %v10546_v35 = vpop.eup %10545  ;;  %6504 = vst [vmem:[#allocation5 + $0x20] sm:$0xff] %v6495_v42  ;;  %v6451_v47 = vadd.f32 1.0, %v10544_v23 }
 0x611   : >> { %v6496_v58 = vmax.f32 %v6481_v51, %v6484_v41  ;;  %v6452_v31 = vadd.f32 1.0, %v10546_v35  ;;  %v10548_v50 = vpop.eup %10547 }
 0x612   : >> { %10555 = vrcp.f32 %v6451_v47  ;;  %v6489_v7 = vmul.f32 %v10548_v50, %v14406_v14 }
 0x613   : >> { %6505 = vst [vmem:[#allocation5 + $0x28] sm:$0xff] %v6496_v58  ;;  %10557 = vrcp.f32 %v6452_v31 }
 0x616   : >> { %v10550_v30 = vpop.eup %10549 }
 0x617   : >> { %v6486_v0 = vmul.f32 %v10550_v30, %v14424_v40  ;;  %v6513_v45 = vld [vmem:[#allocation5 + $0x18] ss:$2 sm:$0xff]  ;;  %v6525_v60 = vld [vmem:[#allocation5 + $0x19] ss:$2 sm:$0xff]  ;;  %v10552_v9 = vpop.eup %10551 }
 0x618   : >> { %v10554_v25 = vpop.eup %10553  ;;  %v6534_v49 = vmax.f32 %v6513_v45, %v6525_v60  ;;  %v6490_v29 = vmul.f32 %v10552_v9, %v14418_v27 }
 0x619   : >> { %v6498_v57 = vmax.f32 %v6486_v0, %v6489_v7  ;;  %v6485_v40 = vmul.f32 %v10554_v25, %v14415_v8 }
 0x61a   : >> { %v6515_v56 = vld [vmem:[#allocation5 + $0x28] ss:$2 sm:$0x1]  ;;  %v6527_v2 = vld [vmem:[#allocation5 + $0x29] ss:$2 sm:$0x1] }
 0x61b   : >> { %v6535_v39 = vmax.f32 %v6515_v56, %v6527_v2  ;;  %6507 = vst [vmem:[#allocation5 + $0x38] sm:$0xff] %v6498_v57 }
 0x61c   : >> { %v10556_v12 = vpop.eup %10555 }
 0x61d   : >> { %v10558_v17 = vpop.eup %10557  ;;  %v6539_v38 = vpack.c.bf16 %v6535_v39, %v6534_v49  ;;  %v6487_v14 = vmul.f32 %v10556_v12, %v14432_v34  ;;  %v6552_v34 = vld [vmem:[%s14447_s8 + $0x10] sm:$0x1f] }
 0x61e   : >> { %v6488_v1 = vmul.f32 %v10558_v17, %v14437_v32 }
 0x61f   : >> { %v6550_v6 = vsel %vm14441_vm10, %v6539_v38, %v6549_v18  ;;  %v6499_v43 = vmax.f32 %v6487_v14, %v6490_v29 }
 0x620   : >> { %6551 = vst [vmem:[%s14447_s8 + $0x8] sm:$0x1f] %v6550_v6  ;;  %v6497_v52 = vmax.f32 %v6485_v40, %v6488_v1 }
 0x621   : >> { %6508 = vst [vmem:[#allocation5 + $0x40] sm:$0xff] %v6499_v43 }
 0x622   : >> { %6506 = vst [vmem:[#allocation5 + $0x30] sm:$0xff] %v6497_v52 }
 0x628   : >> { %v6519_v55 = vld [vmem:[#allocation5 + $0x40] ss:$2 sm:$0x1]  ;;  %v6531_v4 = vld [vmem:[#allocation5 + $0x41] ss:$2 sm:$0x1] }
 0x629   : >> { %v6517_v19 = vld [vmem:[#allocation5 + $0x30] ss:$2 sm:$0xff]  ;;  %v6529_v27 = vld [vmem:[#allocation5 + $0x31] ss:$2 sm:$0xff]  ;;  %v6537_v54 = vmax.f32 %v6519_v55, %v6531_v4  ;;  %2364 = sbr.rel (!%p2362_p12) target bundleno = 842 (0x34a), region = 256 }
 0x62a   : >> { %v6536_v21 = vmax.f32 %v6517_v19, %v6529_v27 }
 0x62c   : >> { %v6540_v24 = vpack.c.bf16 %v6537_v54, %v6536_v21 }
 0x62e   : >> { %v6553_v8 = vsel %vm14441_vm10, %v6540_v24, %v6552_v34 }
 0x62f   : >> { %6554 = vst [vmem:[%s14447_s8 + $0x10] sm:$0x1f] %v6553_v8 }
 0x630   : > { %10715 = dma.done.wait [#allocation9 + $0x1], 25600 }
 0x631   : > { %10716 = vsyncadd [#allocation9 + $0x1], 4294941696  ;;  %v6850_v32 = vld [vmem:[#allocation8 + $0x180] sm:$0xff]  ;;  %v6851_v33 = vld [vmem:[#allocation8 + $0x188] sm:$0xff]  ;;  %vm8251_vm11 = vcmask 261120   ;;  %s8828_s16 = sshll.u32 %s10813_s28, 6 }
 0x632   : > { %v6866_v44 = vld [vmem:[#allocation8 + $0x200] sm:$0xff]  ;;  %9291 = vmatprep.subr.bf16.mxu0 %v6850_v32  ;;  %v6867_v61 = vld [vmem:[#allocation8 + $0x208] sm:$0xff]  ;;  %v6852_v3 = vld [vmem:[#allocation8 + $0x190] sm:$0xff]  ;;  %s8280_s20 = sshll.u32 %s11155_s18, 4  ;;  %vm8263_vm12 = vcmask 254976   ;;  %s14484_s21 = scalar_lea.hbm %s14540_s7, %s8828_s16  ;;  %s14486_s20 = int_to_ptr.vmem [resolvable:$true] %s8280_s20 }
 0x633   : > { %v6842_v22 = vld [vmem:[#allocation8 + $0x140] sm:$0xff]  ;;  %9319 = vmatprep.subr.bf16.mxu1 %v6866_v44  ;;  %v6843_v37 = vld [vmem:[#allocation8 + $0x148] sm:$0xff]  ;;  %v6868_v36 = vld [vmem:[#allocation8 + $0x210] sm:$0xff]  ;;  %s14492_s28 = scalar_lea.sflag [#allocation11], %s217_s13  ;;  %s10661_s19 = scalar_lea.vmem %s14486_s20, 64 }
 0x634   : > { %v6858_v16 = vld [vmem:[#allocation8 + $0x1c0] sm:$0xff]  ;;  %9292 = vmatpush3.bf16.msra.mxu0 %v6842_v22  ;;  %v6859_v48 = vld [vmem:[#allocation8 + $0x1c8] sm:$0xff]  ;;  %v6844_v26 = vld [vmem:[#allocation8 + $0x150] sm:$0xff]  ;;  %p10662_p13 = scmp.ne.s32.totalorder %s14486_s20, %s10661_s19  ;;  %s10749_s23 = smov [#allocation10]  }
 0x635   : > { %9320 = vmatpush3.bf16.msra.mxu1 %v6858_v16  ;;  %9293 = vmatprep.subr.bf16.mxu0 %v6851_v33  ;;  %v6860_v59 = vld [vmem:[#allocation8 + $0x1d0] sm:$0xff]  ;;  %v6853_v10 = vld [vmem:[#allocation8 + $0x198] sm:$0xff]  ;;  %v6854_v15 = vld [vmem:[#allocation8 + $0x1a0] sm:$0xff]  ;;  %s10665_s22 = sshll.u32 %s10749_s23, 4  ;;  %s10666_s22 = int_to_ptr.vmem [resolvable:$false] %s10665_s22 }
 0x636   : > { %9321 = vmatprep.subr.bf16.mxu1 %v6867_v61  ;;  %v6869_v53 = vld [vmem:[#allocation8 + $0x218] sm:$0xff]  ;;  %v6870_v62 = vld [vmem:[#allocation8 + $0x220] sm:$0xff]  ;;  %v6725_v11 = vld [vmem:[#allocation3 + $0x8] sm:$0x1f]  ;;  %p10663_p0 = pnand %p10662_p13, %p10830_p5  ;;  %s10667_s29 = scalar_lea.vmem %s10666_s22, 128 }
 0x637   : > { %v6845_v20 = vld [vmem:[#allocation8 + $0x158] sm:$0xff]  ;;  %v6726_v5 = vld [vmem:[#allocation3 + $0x10] sm:$0x1f]  ;;  %v6742_v63 = vshrl.u32 %v6725_v11, 16  ;;  %v6744_v13 = vshll.u32 %v6725_v11, 16  ;;  %v6846_v0 = vld [vmem:[#allocation8 + $0x160] sm:$0xff]  ;;  %p10668_p2 = scmp.lt.s32.totalorder %s14486_s20, %s10666_s22  ;;  %p10669_p3 = scmp.lt.s32.totalorder %s10667_s29, %s10661_s19 }
 0x638   : > { %9294 = vmatpush3.bf16.msra.mxu0 %v6843_v37  ;;  %v6861_v46 = vld [vmem:[#allocation8 + $0x1d8] sm:$0xff]  ;;  %v6733_v28 = vld [vmem:[#allocation3 + $0x8] sm:$0x3e]  ;;  %v6749_v42 = vshrl.u32 %v6726_v5, 16  ;;  %v6751_v23 = vshll.u32 %v6726_v5, 16  ;;  %v6862_v45 = vld [vmem:[#allocation8 + $0x1e0] sm:$0xff]  ;;  %p10664_p1 = pneg %p10663_p0 }
 0x639   : > { %9322 = vmatpush3.bf16.msra.mxu1 %v6859_v48  ;;  %9295 = vmatprep.subr.bf16.mxu0 %v6852_v3  ;;  %v6734_v51 = vld [vmem:[#allocation3 + $0x10] sm:$0x3e]  ;;  %v6778_v41 = vshrl.u32 %v6733_v28, 16  ;;  %v6781_v35 = vshll.u32 %v6733_v28, 16  ;;  %v6746_v47 = vrot.slane %v6744_v13, 1  ;;  %v6855_v56 = vld [vmem:[#allocation8 + $0x1a8] sm:$0xff]  ;;  %p10670_p4 = por %p10669_p3, %p10668_p2 }
 0x63a   : > { %9323 = vmatprep.subr.bf16.mxu1 %v6868_v36  ;;  %v6786_v58 = vshrl.u32 %v6734_v51, 16  ;;  %v6789_v31 = vshll.u32 %v6734_v51, 16  ;;  %v6753_v50 = vrot.slane %v6751_v23, 1  ;;  %v6871_v2 = vld [vmem:[#allocation8 + $0x228] sm:$0xff]  ;;  %v6856_v29 = vld [vmem:[#allocation8 + $0x1b0] sm:$0xff]  ;;  %v6857_v55 = vld [vmem:[#allocation8 + $0x1b8] sm:$0xff] }
 0x63b   : > { %v6780_v30 = vrot.slane %v6778_v41, 1  ;;  %v6783_v7 = vrot.slane %v6781_v35, 2  ;;  %v6747_v60 = vor.u32 %v6746_v47, %v6742_v63  ;;  %v6847_v18 = vld [vmem:[#allocation8 + $0x168] sm:$0xff]  ;;  %v6872_v14 = vld [vmem:[#allocation8 + $0x230] sm:$0xff]  ;;  %v6727_v43 = vld [vmem:[#allocation3 + $0x18] sm:$0x1f]  ;;  %p10671_p7 = pnand %p10670_p4, %p10664_p1 }
 0x63c   : > { %9296 = vmatpush3.bf16.msra.mxu0 %v6844_v26  ;;  %v6788_v57 = vrot.slane %v6786_v58, 1  ;;  %v6791_v9 = vrot.slane %v6789_v31, 2  ;;  %v6754_v25 = vor.u32 %v6753_v50, %v6749_v42  ;;  %v6863_v17 = vld [vmem:[#allocation8 + $0x1e8] sm:$0xff]  ;;  %v6848_v40 = vld [vmem:[#allocation8 + $0x170] sm:$0xff]  ;;  %v6728_v52 = vld [vmem:[#allocation3 + $0x20] sm:$0x1f] }
 0x63d   : > { %9324 = vmatpush3.bf16.msra.mxu1 %v6860_v59  ;;  %9297 = vmatprep.subr.bf16.mxu0 %v6853_v10  ;;  %v6784_v49 = vor.u32 %v6783_v7, %v6780_v30  ;;  %v6864_v1 = vld [vmem:[#allocation8 + $0x1f0] sm:$0xff]  ;;  %v6729_v6 = vld [vmem:[#allocation3 + $0x8] sm:$0x1e]  ;;  %v6873_v4 = vld [vmem:[#allocation8 + $0x238] sm:$0xff]  ;;  %v6758_v27 = vshll.u32 %v6727_v43, 16  ;;  %v6765_v54 = vshll.u32 %v6728_v52, 16 }
 0x63e   : > { %9325 = vmatprep.subr.bf16.mxu1 %v6869_v53  ;;  %v6792_v39 = vor.u32 %v6791_v9, %v6788_v57  ;;  %v8766_v12 = vcombine.low %v6747_v60, %v6754_v25  ;;  %v6730_v19 = vld [vmem:[#allocation3 + $0x10] sm:$0x1e]  ;;  %v6735_v21 = vld [vmem:[#allocation3 + $0x18] sm:$0x3e]  ;;  %v6756_v34 = vshrl.u32 %v6727_v43, 16  ;;  %v6763_v24 = vshrl.u32 %v6728_v52, 16 }
 0x63f   : > { %v6736_v8 = vld [vmem:[#allocation3 + $0x20] sm:$0x3e]  ;;  %v6794_v32 = vshrl.u32 %v6735_v21, 16  ;;  %v6797_v44 = vshll.u32 %v6735_v21, 16  ;;  %v6760_v22 = vrot.slane %v6758_v27, 1  ;;  %v6767_v16 = vrot.slane %v6765_v54, 1 }
 0x640   : > { %9298 = vmatpush3.bf16.msra.mxu0 %v6845_v20  ;;  %v8768_v38 = vcombine.low %v6784_v49, %v6792_v39  ;;  %6934 = vmatprep.mubr.bf16.mxu0 %v8766_v12  ;;  %v6802_v33 = vshrl.u32 %v6736_v8, 16  ;;  %v6805_v61 = vshll.u32 %v6736_v8, 16  ;;  %v6773_v37 = vrot.slane %v6729_v6, 1  ;;  %v6849_v10 = vld [vmem:[#allocation8 + $0x178] sm:$0xff]  ;;  %v6564_v63 = vld [vmem:[#allocation3] sm:$0x1f] }
 0x641   : > { %9326 = vmatpush3.bf16.msra.mxu1 %v6861_v46  ;;  %9299 = vmatprep.subr.bf16.mxu0 %v6854_v15  ;;  %v6774_v48 = vrot.slane %v6730_v19, 1  ;;  %v6796_v3 = vrot.slane %v6794_v32, 1  ;;  %v6799_v36 = vrot.slane %v6797_v44, 2  ;;  %v6865_v53 = vld [vmem:[#allocation8 + $0x1f8] sm:$0xff]  ;;  %v6761_v20 = vor.u32 %v6760_v22, %v6756_v34  ;;  %v6874_v15 = vld [vmem:[#allocation8 + $0x240] sm:$0xff]  ;;  %v6875_v50 = vld [vmem:[#allocation8 + $0x248] sm:$0xff] }
 0x642   : > { %9327 = vmatprep.subr.bf16.mxu1 %v6870_v62  ;;  %6983 = vmatprep.mubr.bf16.mxu1 %v8768_v38  ;;  %v6804_v26 = vrot.slane %v6802_v33, 1  ;;  %v6807_v59 = vrot.slane %v6805_v61, 2  ;;  %v6768_v46 = vor.u32 %v6767_v16, %v6763_v24  ;;  %v6688_v62 = vld [vmem:[#allocation8 + $0x40] sm:$0xff]  ;;  %v10635_v13 = vld [vmem:[#allocation3 + $0x8] ss:$8 sps:$4 sm:$0xff]   ;;  %v6583_v23 = vshll.u32 %v6564_v63, 16 }
 0x643   : > { %v6800_v11 = vor.u32 %v6799_v36, %v6796_v3  ;;  %v8767_v28 = vcombine.low %v6773_v37, %v6774_v48  ;;  %v6565_v42 = vld [vmem:[#allocation3 + $0x8] sm:$0x1f]  ;;  %v6731_v51 = vld [vmem:[#allocation3 + $0x18] sm:$0x1e]  ;;  %v6732_v41 = vld [vmem:[#allocation3 + $0x20] sm:$0x1e] }
 0x644   : > { %9300 = vmatpush3.bf16.msra.mxu0 %v6846_v0  ;;  %v6808_v5 = vor.u32 %v6807_v59, %v6804_v26  ;;  %v6590_v35 = vshll.u32 %v6565_v42, 16  ;;  %v6680_v47 = vld [vmem:[#allocation8] sm:$0xff]  ;;  %v8771_v58 = vcombine.low %v6761_v20, %v6768_v46  ;;  %v6581_v31 = vshrl.u32 %v6564_v63, 16  ;;  %v6689_v30 = vld [vmem:[#allocation8 + $0x48] sm:$0xff]  ;;  %v6876_v49 = vld [vmem:[#allocation8 + $0x250] sm:$0xff] }
 0x645   : > { %9328 = vmatpush3.bf16.msra.mxu1 %v6862_v45  ;;  %9301 = vmatprep.subr.bf16.mxu0 %v6855_v56  ;;  %v6585_v0 = vrot.slane %v6583_v23, 1  ;;  %v6588_v45 = vshrl.u32 %v6565_v42, 16  ;;  %v6775_v57 = vrot.slane %v6731_v51, 1  ;;  %v6776_v9 = vrot.slane %v6732_v41, 1  ;;  %v6737_v56 = vld [vmem:[#allocation3 + $0x8] sm:$0x3c] }
 0x646   : > { %9329 = vmatprep.subr.bf16.mxu1 %v6871_v2  ;;  %v8773_v7 = vcombine.low %v6800_v11, %v6808_v5  ;;  %v6592_v60 = vrot.slane %v6590_v35, 1  ;;  %v6738_v2 = vld [vmem:[#allocation3 + $0x10] sm:$0x3c]  ;;  %v6681_v25 = vld [vmem:[#allocation8 + $0x8] sm:$0xff]  ;;  %v6691_v6 = vld [vmem:[#allocation8 + $0x58] sm:$0xff] }
 0x647   : > { %v6690_v39 = vld [vmem:[#allocation8 + $0x50] sm:$0xff]  ;;  %v6586_v12 = vor.u32 %v6585_v0, %v6581_v31  ;;  %v6814_v38 = vrot.slane %v6738_v2, 2  ;;  %v6692_v19 = vld [vmem:[#allocation8 + $0x60] sm:$0xff]  ;;  %v6879_v54 = vld [vmem:[#allocation8 + $0x268] sm:$0xff] }
 0x648   : > { %9302 = vmatpush3.bf16.msra.mxu0 %v6847_v18  ;;  %v6593_v18 = vor.u32 %v6592_v60, %v6588_v45  ;;  %v6684_v27 = vld [vmem:[#allocation8 + $0x20] sm:$0xff]  ;;  %v6693_v21 = vld [vmem:[#allocation8 + $0x68] sm:$0xff]  ;;  %v6566_v34 = vld [vmem:[#allocation3 + $0x10] sm:$0x1f] }
 0x649   : > { %9330 = vmatpush3.bf16.msra.mxu1 %v6863_v17  ;;  %9303 = vmatprep.subr.bf16.mxu0 %v6856_v29  ;;  %v6813_v17 = vrot.slane %v6737_v56, 2  ;;  %v10636_v29 = vld [vmem:[#allocation3 + $0x18] ss:$8 sps:$4 sm:$0xff]   ;;  %v6573_v32 = vld [vmem:[#allocation3 + $0x8] sm:$0x3e]  ;;  %v6597_v22 = vshll.u32 %v6566_v34, 16 }
 0x64a   : > { %9331 = vmatprep.subr.bf16.mxu1 %v6872_v14  ;;  %v8772_v14 = vcombine.low %v6775_v57, %v6776_v9  ;;  %v8776_v43 = vcombine.low %v6586_v12, %v6593_v18  ;;  %v6567_v24 = vld [vmem:[#allocation3 + $0x18] sm:$0x1f]  ;;  %v6572_v8 = vld [vmem:[#allocation3] sm:$0x3e]  ;;  %v6685_v44 = vld [vmem:[#allocation8 + $0x28] sm:$0xff]  ;;  %v6625_v3 = vshrl.u32 %v6573_v32, 16 }
 0x64b   : > { %v8769_v52 = vcombine.low %v6813_v17, %v6814_v38  ;;  %v6604_v16 = vshll.u32 %v6567_v24, 16  ;;  %v6880_v33 = vld [vmem:[#allocation8 + $0x270] sm:$0xff]  ;;  %v6617_v37 = vshrl.u32 %v6572_v8, 16  ;;  %v6620_v48 = vshll.u32 %v6572_v8, 16  ;;  %v6739_v26 = vld [vmem:[#allocation3 + $0x18] sm:$0x3c] }
 0x64c   : > { %9304 = vmatpush3.bf16.msra.mxu0 %v6848_v40  ;;  %v6682_v40 = vld [vmem:[#allocation8 + $0x10] sm:$0xff]  ;;  %v6628_v36 = vshll.u32 %v6573_v32, 16  ;;  %v6740_v59 = vld [vmem:[#allocation3 + $0x20] sm:$0x3c]  ;;  %v6599_v20 = vrot.slane %v6597_v22, 1  ;;  %v6602_v46 = vshrl.u32 %v6567_v24, 16 }
 0x64d   : > { %9332 = vmatpush3.bf16.msra.mxu1 %v6864_v1  ;;  %9305 = vmatprep.subr.bf16.mxu0 %v6857_v55  ;;  %v6877_v1 = vld [vmem:[#allocation8 + $0x258] sm:$0xff]  ;;  %v6694_v61 = vld [vmem:[#allocation8 + $0x70] sm:$0xff]  ;;  %v6619_v5 = vrot.slane %v6617_v37, 1  ;;  %v6622_v63 = vrot.slane %v6620_v48, 2  ;;  %v6815_v42 = vrot.slane %v6739_v26, 2  ;;  %v6816_v23 = vrot.slane %v6740_v59, 2 }
 0x64e   : > { %9333 = vmatprep.subr.bf16.mxu1 %v6873_v4  ;;  %v6683_v55 = vld [vmem:[#allocation8 + $0x18] sm:$0xff]  ;;  %v6878_v4 = vld [vmem:[#allocation8 + $0x260] sm:$0xff]  ;;  %v7221_v51 = vld [vmem:[#allocation3 + $0x10] sm:$0x1f] }
 0x64f   : > { %v6695_v11 = vld [vmem:[#allocation8 + $0x78] sm:$0xff]  ;;  %v6704_v31 = vld [vmem:[#allocation8 + $0xc0] sm:$0xff]  ;;  %v7240_v0 = vshll.u32 %v7221_v51, 16  ;;  %v8774_v57 = vcombine.low %v6815_v42, %v6816_v23  ;;  %v6709_v22 = vld [vmem:[#allocation8 + $0xe8] sm:$0xff] }
 0x650   : > { %9306 = vmatpush3.bf16.msra.mxu0 %v6849_v10  ;;  %v6686_v10 = vld [vmem:[#allocation8 + $0x30] sm:$0xff]  ;;  %v7222_v41 = vld [vmem:[#allocation3 + $0x18] sm:$0x1f]  ;;  %v10637_v60 = vld [vmem:[#allocation3] ss:$8 sps:$4 sm:$0xff]  }
 0x651   : > { %9334 = vmatpush3.bf16.msra.mxu1 %v6865_v53  ;;  %9933 = vmatprep.subr.bf16.mxu0 %v6874_v15  ;;  %v6595_v53 = vshrl.u32 %v6566_v34, 16  ;;  %v6687_v35 = vld [vmem:[#allocation8 + $0x38] sm:$0xff]  ;;  %v7247_v45 = vshll.u32 %v7222_v41, 16  ;;  %v6696_v9 = vld [vmem:[#allocation8 + $0x80] sm:$0xff]  ;;  %v7242_v18 = vrot.slane %v7240_v0, 1  ;;  %v7245_v17 = vshrl.u32 %v7222_v41, 16 }
 0x652   : > { %9357 = vmatprep.subr.bf16.mxu1 %v6688_v62  ;;  %v6881_v62 = vld [vmem:[#allocation8 + $0x278] sm:$0xff]  ;;  %v7338_v56 = vld [vmem:[#allocation8 + $0x280] sm:$0xff]  ;;  %v7224_v48 = vld [vmem:[#allocation3 + $0x28] sm:$0x1f] }
 0x653   : > { %6935 = vmatmul.mubr.bf16.vlgmr.msra.gmra.mrb[0].mxu0 %v10635_v13  ;;  %v6627_v13 = vrot.slane %v6625_v3, 1  ;;  %v7249_v38 = vrot.slane %v7247_v45, 1  ;;  %v7341_v34 = vld [vmem:[#allocation8 + $0x298] sm:$0xff]  ;;  %v6708_v24 = vld [vmem:[#allocation8 + $0xe0] sm:$0xff]  ;;  %v6702_v23 = vld [vmem:[#allocation8 + $0xb0] sm:$0xff] }
 0x654   : > { %6984 = vmatmul.mubr.bf16.vlgmr.msra.gmra.mrb[0].mxu1 %v8767_v28  ;;  %9934 = vmatpush3.bf16.msra.mxu0 %v6874_v15  ;;  %v6606_v15 = vrot.slane %v6604_v16, 1  ;;  %v6630_v28 = vrot.slane %v6628_v36, 2  ;;  %v7350_v8 = vld [vmem:[#allocation8 + $0x2e0] sm:$0xff]  ;;  %v7351_v16 = vld [vmem:[#allocation8 + $0x2e8] sm:$0xff]  ;;  %v7229_v45 = vld [vmem:[#allocation3 + $0x10] sm:$0x3e] }
 0x655   : > { %9358 = vmatpush3.bf16.msra.mxu1 %v6680_v47  ;;  %9935 = vmatprep.subr.bf16.mxu0 %v6875_v50  ;;  %v6600_v47 = vor.u32 %v6599_v20, %v6595_v53  ;;  %v6700_v32 = vld [vmem:[#allocation8 + $0xa0] sm:$0xff]  ;;  %v7343_v53 = vld [vmem:[#allocation8 + $0x2a8] sm:$0xff] }
 0x656   : > { %9359 = vmatprep.subr.bf16.mxu1 %v6689_v30  ;;  %6942 = vmatprep.mubr.bf16.mxu0 %v8771_v58  ;;  %v6607_v58 = vor.u32 %v6606_v15, %v6602_v46  ;;  %v6623_v30 = vor.u32 %v6622_v63, %v6619_v5  ;;  %v7223_v37 = vld [vmem:[#allocation3 + $0x20] sm:$0x1f]  ;;  %v7261_v46 = vshll.u32 %v7224_v48, 16  ;;  %v6710_v15 = vld [vmem:[#allocation8 + $0xf0] sm:$0xff]  ;;  %v6569_v5 = vld [vmem:[#allocation3 + $0x8] sm:$0x1e] }
 0x657   : > { %6991 = vmatprep.mubr.bf16.mxu1 %v8773_v7  ;;  %v6631_v7 = vor.u32 %v6630_v28, %v6627_v13  ;;  %v7254_v20 = vshll.u32 %v7223_v37, 16  ;;  %v7252_v41 = vshrl.u32 %v7223_v37, 16  ;;  %v6613_v0 = vrot.slane %v6569_v5, 1  ;;  %v6717_v5 = vld [vmem:[#allocation8 + $0x128] sm:$0xff] }
 0x658   : > { %9936 = vmatpush3.bf16.msra.mxu0 %v6875_v50  ;;  %v7346_v50 = vld [vmem:[#allocation8 + $0x2c0] sm:$0xff]  ;;  %v8781_v2 = vcombine.low %v6600_v47, %v6607_v58  ;;  %v7259_v47 = vshrl.u32 %v7224_v48, 16  ;;  %v7263_v58 = vrot.slane %v7261_v46, 1  ;;  %v7357_v46 = vld [vmem:[#allocation8 + $0x318] sm:$0xff] }
 0x659   : > { %9360 = vmatpush3.bf16.msra.mxu1 %v6681_v25  ;;  %9937 = vmatprep.subr.bf16.mxu0 %v6876_v49  ;;  %v7238_v25 = vshrl.u32 %v7221_v51, 16  ;;  %v8778_v12 = vcombine.low %v6623_v30, %v6631_v7  ;;  %v7344_v51 = vld [vmem:[#allocation8 + $0x2b0] sm:$0xff]  ;;  %v6703_v30 = vld [vmem:[#allocation8 + $0xb8] sm:$0xff] }
 0x65a   : > { %9361 = vmatprep.subr.bf16.mxu1 %v6690_v39  ;;  %v7347_v39 = vld [vmem:[#allocation8 + $0x2c8] sm:$0xff] }
 0x65b   : > { %6943 = vmatmul.mubr.bf16.gmra.mrb[4].mxu0 %v10636_v29  ;;  %v6697_v29 = vld [vmem:[#allocation8 + $0x88] sm:$0xff] }
 0x65c   : > { %6992 = vmatmul.mubr.bf16.gmra.mrb[4].mxu1 %v8772_v14  ;;  %9938 = vmatpush3.bf16.msra.mxu0 %v6876_v49  ;;  %v6705_v49 = vld [vmem:[#allocation8 + $0xc8] sm:$0xff] }
 0x65d   : > { %9362 = vmatpush3.bf16.msra.mxu1 %v6682_v40  ;;  %9939 = vmatprep.subr.bf16.mxu0 %v6877_v1  ;;  %v7339_v14 = vld [vmem:[#allocation8 + $0x288] sm:$0xff]  ;;  %v6706_v40 = vld [vmem:[#allocation8 + $0xd0] sm:$0xff] }
 0x65e   : > { %9363 = vmatprep.subr.bf16.mxu1 %v6691_v6  ;;  %7101 = vmatprep.mubr.bf16.mxu1 %v8776_v43  ;;  %v7243_v6 = vor.u32 %v7242_v18, %v7238_v25  ;;  %v7250_v43 = vor.u32 %v7249_v38, %v7245_v17  ;;  %v6571_v18 = vld [vmem:[#allocation3 + $0x18] sm:$0x1e]  ;;  %v7274_v17 = vshrl.u32 %v7229_v45, 16  ;;  %v7277_v38 = vshll.u32 %v7229_v45, 16 }
 0x65f   : > { %9949 = vmatprep.mubr.bf16.mxu0 %v8769_v52  ;;  %v10638_v52 = vld [vmem:[#allocation3 + $0x10] ss:$8 sps:$4 sm:$0xff]  }
 0x660   : > { %9940 = vmatpush3.bf16.msra.mxu0 %v6877_v1  ;;  %v7348_v1 = vld [vmem:[#allocation8 + $0x2d0] sm:$0xff]  ;;  %v6719_v45 = vld [vmem:[#allocation8 + $0x138] sm:$0xff] }
 0x661   : > { %9364 = vmatpush3.bf16.msra.mxu1 %v6683_v55  ;;  %9941 = vmatprep.subr.bf16.mxu0 %v6878_v4  ;;  %v6698_v55 = vld [vmem:[#allocation8 + $0x90] sm:$0xff] }
 0x662   : > { %9365 = vmatprep.subr.bf16.mxu1 %v6692_v19  ;;  %v6707_v19 = vld [vmem:[#allocation8 + $0xd8] sm:$0xff] }
 0x664   : > { %9942 = vmatpush3.bf16.msra.mxu0 %v6878_v4  ;;  %v7340_v4 = vld [vmem:[#allocation8 + $0x290] sm:$0xff] }
 0x665   : > { %9366 = vmatpush3.bf16.msra.mxu1 %v6684_v27  ;;  %9943 = vmatprep.subr.bf16.mxu0 %v6879_v54  ;;  %v7349_v27 = vld [vmem:[#allocation8 + $0x2d8] sm:$0xff] }
 0x666   : > { %9367 = vmatprep.subr.bf16.mxu1 %v6693_v21  ;;  %v6699_v21 = vld [vmem:[#allocation8 + $0x98] sm:$0xff] }
 0x668   : > { %9944 = vmatpush3.bf16.msra.mxu0 %v6879_v54  ;;  %v8786_v54 = vcombine.low %v7243_v6, %v7250_v43  ;;  %v7354_v6 = vld [vmem:[#allocation8 + $0x300] sm:$0xff] }
 0x669   : > { %9368 = vmatpush3.bf16.msra.mxu1 %v6685_v44  ;;  %9945 = vmatprep.subr.bf16.mxu0 %v6880_v33  ;;  %v7342_v44 = vld [vmem:[#allocation8 + $0x2a0] sm:$0xff] }
 0x66a   : > { %9369 = vmatprep.subr.bf16.mxu1 %v6694_v61  ;;  %v6575_v61 = vld [vmem:[#allocation3 + $0x18] sm:$0x3e] }
 0x66b   : > { %v6641_v26 = vshrl.u32 %v6575_v61, 16  ;;  %v6644_v59 = vshll.u32 %v6575_v61, 16 }
 0x66c   : > { %9946 = vmatpush3.bf16.msra.mxu0 %v6880_v33  ;;  %v6574_v33 = vld [vmem:[#allocation3 + $0x10] sm:$0x3e] }
 0x66d   : > { %9370 = vmatpush3.bf16.msra.mxu1 %v6686_v10  ;;  %9947 = vmatprep.subr.bf16.mxu0 %v6881_v62  ;;  %v6633_v3 = vshrl.u32 %v6574_v33, 16  ;;  %v6636_v36 = vshll.u32 %v6574_v33, 16  ;;  %v6701_v10 = vld [vmem:[#allocation8 + $0xa8] sm:$0xff]  ;;  %v6643_v28 = vrot.slane %v6641_v26, 1  ;;  %v6646_v42 = vrot.slane %v6644_v59, 2  ;;  %v7356_v26 = vld [vmem:[#allocation8 + $0x310] sm:$0xff] }
 0x66e   : > { %9371 = vmatprep.subr.bf16.mxu1 %v6695_v11  ;;  %v6568_v11 = vld [vmem:[#allocation3] sm:$0x1e]  ;;  %v6715_v59 = vld [vmem:[#allocation8 + $0x118] sm:$0xff] }
 0x66f   : > { %v6635_v63 = vrot.slane %v6633_v3, 1  ;;  %v6638_v13 = vrot.slane %v6636_v36, 2  ;;  %v6612_v7 = vrot.slane %v6568_v11, 1  ;;  %v6647_v25 = vor.u32 %v6646_v42, %v6643_v28  ;;  %v10640_v36 = vld [vmem:[#allocation3 + $0x20] ss:$8 sps:$4 sm:$0xff]  }
 0x670   : > { %9948 = vmatpush3.bf16.msra.mxu0 %v6881_v62  ;;  %v7352_v62 = vld [vmem:[#allocation8 + $0x2f0] sm:$0xff]  ;;  %v7358_v11 = vld [vmem:[#allocation8 + $0x320] sm:$0xff]  ;;  %v7232_v28 = vld [vmem:[#allocation3 + $0x28] sm:$0x3e] }
 0x671   : > { %9372 = vmatpush3.bf16.msra.mxu1 %v6687_v35  ;;  %9385 = vmatprep.subr.bf16.mxu0 %v6704_v31  ;;  %v7256_v35 = vrot.slane %v7254_v20, 1  ;;  %v6711_v31 = vld [vmem:[#allocation8 + $0xf8] sm:$0xff]  ;;  %v7359_v42 = vld [vmem:[#allocation8 + $0x328] sm:$0xff] }
 0x672   : > { %9423 = vmatprep.subr.bf16.mxu1 %v7346_v50  ;;  %v7353_v50 = vld [vmem:[#allocation8 + $0x2f8] sm:$0xff] }
 0x673   : > { %9950 = vmatmul.mubr.bf16.vlgmr.msra.gmra.mrb[8].mxu0 %v8774_v57  ;;  %v7345_v57 = vld [vmem:[#allocation8 + $0x2b8] sm:$0xff] }
 0x674   : > { %7102 = vmatmul.mubr.bf16.vlgmr.msra.gmra.mrb[8].mxu1 %v10637_v60  ;;  %9386 = vmatpush3.bf16.msra.mxu0 %v6696_v9  ;;  %v7230_v60 = vld [vmem:[#allocation3 + $0x18] sm:$0x3e]  ;;  %v6639_v9 = vor.u32 %v6638_v13, %v6635_v63  ;;  %v7367_v63 = vld [vmem:[#allocation8 + $0x368] sm:$0xff]  ;;  %v7231_v13 = vld [vmem:[#allocation3 + $0x20] sm:$0x3e] }
 0x675   : > { %9424 = vmatpush3.bf16.msra.mxu1 %v7338_v56  ;;  %9387 = vmatprep.subr.bf16.mxu0 %v6705_v49  ;;  %v6712_v56 = vld [vmem:[#allocation8 + $0x100] sm:$0xff]  ;;  %v6570_v49 = vld [vmem:[#allocation3 + $0x10] sm:$0x1e] }
 0x676   : > { %9425 = vmatprep.subr.bf16.mxu1 %v7347_v39  ;;  %7109 = vmatprep.mubr.bf16.mxu1 %v8781_v2  ;;  %v7362_v2 = vld [vmem:[#allocation8 + $0x340] sm:$0xff]  ;;  %v7257_v39 = vor.u32 %v7256_v35, %v7252_v41  ;;  %v8783_v43 = vcombine.low %v6639_v9, %v6647_v25  ;;  %v7298_v41 = vshrl.u32 %v7232_v28, 16  ;;  %v7301_v35 = vshll.u32 %v7232_v28, 16 }
 0x677   : > { %7150 = vmatprep.mubr.bf16.mxu0 %v8778_v12  ;;  %v7264_v12 = vor.u32 %v7263_v58, %v7259_v47  ;;  %v6718_v47 = vld [vmem:[#allocation8 + $0x130] sm:$0xff]  ;;  %v7675_v28 = vld [vmem:[#allocation8 + $0x3e0] sm:$0xff] }
 0x678   : > { %9388 = vmatpush3.bf16.msra.mxu0 %v6697_v29  ;;  %v7282_v29 = vshrl.u32 %v7230_v60, 16  ;;  %v7368_v58 = vld [vmem:[#allocation8 + $0x370] sm:$0xff] }
 0x679   : > { %9426 = vmatpush3.bf16.msra.mxu1 %v7339_v14  ;;  %9389 = vmatprep.subr.bf16.mxu0 %v6706_v40  ;;  %v7285_v14 = vshll.u32 %v7230_v60, 16  ;;  %v8777_v40 = vcombine.low %v6612_v7, %v6613_v0  ;;  %v6579_v7 = vld [vmem:[#allocation3 + $0x18] sm:$0x3c]  ;;  %v7360_v0 = vld [vmem:[#allocation8 + $0x330] sm:$0xff] }
 0x67a   : > { %9427 = vmatprep.subr.bf16.mxu1 %v7348_v1  ;;  %v10639_v1 = vld [vmem:[#allocation3 + $0x10] ss:$8 sps:$4 sm:$0xff]  }
 0x67b   : > { %v7369_v60 = vld [vmem:[#allocation8 + $0x378] sm:$0xff] }
 0x67c   : > { %7110 = vmatmul.mubr.bf16.gmra.mrb[12].mxu1 %v10638_v52  ;;  %9390 = vmatpush3.bf16.msra.mxu0 %v6698_v55  ;;  %v6614_v52 = vrot.slane %v6570_v49, 1  ;;  %v6615_v55 = vrot.slane %v6571_v18, 1  ;;  %v7233_v18 = vld [vmem:[#allocation3 + $0x10] sm:$0x3c] }
 0x67d   : > { %9428 = vmatpush3.bf16.msra.mxu1 %v7340_v4  ;;  %9391 = vmatprep.subr.bf16.mxu0 %v6707_v19  ;;  %v8791_v4 = vcombine.low %v7257_v39, %v7264_v12  ;;  %v6713_v19 = vld [vmem:[#allocation8 + $0x108] sm:$0xff]  ;;  %v6655_v12 = vrot.slane %v6579_v7, 2  ;;  %v7685_v7 = vld [vmem:[#allocation8 + $0x430] sm:$0xff] }
 0x67e   : > { %9429 = vmatprep.subr.bf16.mxu1 %v7349_v27  ;;  %7430 = vmatprep.mubr.bf16.mxu1 %v8786_v54  ;;  %v7363_v27 = vld [vmem:[#allocation8 + $0x348] sm:$0xff]  ;;  %v7276_v54 = vrot.slane %v7274_v17, 1  ;;  %v8782_v3 = vcombine.low %v6614_v52, %v6615_v55  ;;  %v7234_v17 = vld [vmem:[#allocation3 + $0x18] sm:$0x3c]  ;;  %v7309_v52 = vrot.slane %v7233_v18, 2 }
 0x67f   : > { %v7310_v55 = vrot.slane %v7234_v17, 2  ;;  %v7377_v18 = vld [vmem:[#allocation8 + $0x3b8] sm:$0xff] }
 0x680   : > { %9392 = vmatpush3.bf16.msra.mxu0 %v6699_v21  ;;  %v7279_v21 = vrot.slane %v7277_v38, 2  ;;  %v7554_v38 = vld [vmem:[#allocation3 + $0x18] sm:$0x1f] }
 0x681   : > { %9430 = vmatpush3.bf16.msra.mxu1 %v7341_v34  ;;  %9393 = vmatprep.subr.bf16.mxu0 %v6708_v24  ;;  %v7284_v34 = vrot.slane %v7282_v29, 1  ;;  %v7287_v24 = vrot.slane %v7285_v14, 2  ;;  %v7555_v29 = vld [vmem:[#allocation3 + $0x20] sm:$0x1f]  ;;  %v7361_v14 = vld [vmem:[#allocation8 + $0x338] sm:$0xff] }
 0x682   : > { %9431 = vmatprep.subr.bf16.mxu1 %v7350_v8  ;;  %v6576_v8 = vld [vmem:[#allocation3] sm:$0x3c]  ;;  %v7280_v33 = vor.u32 %v7279_v21, %v7276_v54  ;;  %v7686_v17 = vld [vmem:[#allocation8 + $0x438] sm:$0xff] }
 0x683   : > { %v7288_v61 = vor.u32 %v7287_v24, %v7284_v34  ;;  %v6652_v37 = vrot.slane %v6576_v8, 2  ;;  %v7227_v21 = vld [vmem:[#allocation3 + $0x20] sm:$0x1e]  ;;  %v7228_v34 = vld [vmem:[#allocation3 + $0x28] sm:$0x1e] }
 0x684   : > { %9394 = vmatpush3.bf16.msra.mxu0 %v6700_v32  ;;  %v6577_v32 = vld [vmem:[#allocation3 + $0x8] sm:$0x3c]  ;;  %v7671_v24 = vld [vmem:[#allocation8 + $0x3c0] sm:$0xff] }
 0x685   : > { %9432 = vmatpush3.bf16.msra.mxu1 %v7342_v44  ;;  %9395 = vmatprep.subr.bf16.mxu0 %v6709_v22  ;;  %v7355_v44 = vld [vmem:[#allocation8 + $0x308] sm:$0xff]  ;;  %v6714_v22 = vld [vmem:[#allocation8 + $0x110] sm:$0xff]  ;;  %v6653_v48 = vrot.slane %v6577_v32, 2  ;;  %v7571_v32 = vshrl.u32 %v7554_v38, 16 }
 0x686   : > { %9433 = vmatprep.subr.bf16.mxu1 %v7351_v16  ;;  %v7364_v16 = vld [vmem:[#allocation8 + $0x350] sm:$0xff] }
 0x687   : > { %v8779_v20 = vcombine.low %v6652_v37, %v6653_v48  ;;  %v7271_v48 = vrot.slane %v7227_v21, 1 }
 0x688   : > { %9396 = vmatpush3.bf16.msra.mxu0 %v6701_v10  ;;  %v7365_v10 = vld [vmem:[#allocation8 + $0x358] sm:$0xff] }
 0x689   : > { %9434 = vmatpush3.bf16.msra.mxu1 %v7343_v53  ;;  %9397 = vmatprep.subr.bf16.mxu0 %v6710_v15  ;;  %v8788_v53 = vcombine.low %v7280_v33, %v7288_v61  ;;  %v6716_v15 = vld [vmem:[#allocation8 + $0x120] sm:$0xff]  ;;  %v7578_v61 = vshrl.u32 %v7555_v29, 16 }
 0x68a   : > { %9435 = vmatprep.subr.bf16.mxu1 %v7352_v62  ;;  %v7366_v62 = vld [vmem:[#allocation8 + $0x360] sm:$0xff] }
 0x68c   : > { %9398 = vmatpush3.bf16.msra.mxu0 %v6702_v23  ;;  %v7290_v23 = vshrl.u32 %v7231_v13, 16 }
 0x68d   : > { %9436 = vmatpush3.bf16.msra.mxu1 %v7344_v51  ;;  %9399 = vmatprep.subr.bf16.mxu0 %v6711_v31  ;;  %v7293_v51 = vshll.u32 %v7231_v13, 16  ;;  %v7225_v31 = vld [vmem:[#allocation3 + $0x10] sm:$0x1e]  ;;  %v7683_v13 = vld [vmem:[#allocation8 + $0x420] sm:$0xff] }
 0x68e   : > { %9437 = vmatprep.subr.bf16.mxu1 %v7353_v50  ;;  %v7226_v50 = vld [vmem:[#allocation3 + $0x18] sm:$0x1e]  ;;  %v7269_v25 = vrot.slane %v7225_v31, 1 }
 0x68f   : > { %v7295_v9 = vrot.slane %v7293_v51, 2  ;;  %v7270_v49 = vrot.slane %v7226_v50, 1  ;;  %v7556_v51 = vld [vmem:[#allocation3 + $0x28] sm:$0x1f] }
 0x690   : > { %9400 = vmatpush3.bf16.msra.mxu0 %v6703_v30  ;;  %v6578_v30 = vld [vmem:[#allocation3 + $0x10] sm:$0x3c]  ;;  %v7587_v31 = vshll.u32 %v7556_v51, 16 }
 0x691   : > { %9438 = vmatpush3.bf16.msra.mxu1 %v7345_v57  ;;  %9953 = vmatprep.subr.bf16.mxu0 %v6712_v56  ;;  %v7292_v57 = vrot.slane %v7290_v23, 1  ;;  %v6654_v39 = vrot.slane %v6578_v30, 2  ;;  %v7684_v23 = vld [vmem:[#allocation8 + $0x428] sm:$0xff]  ;;  %v7376_v30 = vld [vmem:[#allocation8 + $0x3b0] sm:$0xff] }
 0x692   : > { %9451 = vmatprep.subr.bf16.mxu1 %v7362_v2  ;;  %v7303_v2 = vrot.slane %v7301_v35, 2  ;;  %v7562_v35 = vld [vmem:[#allocation3 + $0x18] sm:$0x3e] }
 0x693   : > { %7151 = vmatmul.mubr.bf16.vlgmr.msra.gmra.mrb[12].mxu0 %v8777_v40  ;;  %v7296_v40 = vor.u32 %v7295_v9, %v7292_v57  ;;  %v8784_v54 = vcombine.low %v6654_v39, %v6655_v12  ;;  %v7235_v9 = vld [vmem:[#allocation3 + $0x20] sm:$0x3c] }
 0x694   : > { %7431 = vmatmul.mubr.bf16.vlgmr.msra.gmra.mrb[16].mxu1 %v10639_v1  ;;  %9954 = vmatpush3.bf16.msra.mxu0 %v6712_v56  ;;  %v7300_v56 = vrot.slane %v7298_v41, 1  ;;  %v7557_v41 = vld [vmem:[#allocation3 + $0x30] sm:$0x1f] }
 0x695   : > { %9452 = vmatpush3.bf16.msra.mxu1 %v7354_v6  ;;  %9955 = vmatprep.subr.bf16.mxu0 %v6713_v19  ;;  %v7370_v6 = vld [vmem:[#allocation8 + $0x380] sm:$0xff]  ;;  %v7594_v50 = vshll.u32 %v7557_v41, 16  ;;  %v7592_v39 = vshrl.u32 %v7557_v41, 16 }
 0x696   : > { %9453 = vmatprep.subr.bf16.mxu1 %v7363_v27  ;;  %7158 = vmatprep.mubr.bf16.mxu0 %v8783_v43  ;;  %v7304_v1 = vor.u32 %v7303_v2, %v7300_v56  ;;  %v7679_v43 = vld [vmem:[#allocation8 + $0x400] sm:$0xff]  ;;  %v8787_v27 = vcombine.low %v7269_v25, %v7270_v49  ;;  %v7236_v56 = vld [vmem:[#allocation3 + $0x28] sm:$0x3c]  ;;  %v7677_v2 = vld [vmem:[#allocation8 + $0x3f0] sm:$0xff]  ;;  %v7585_v25 = vshrl.u32 %v7556_v51, 16  ;;  %v7589_v49 = vrot.slane %v7587_v31, 1 }
 0x697   : > { %7438 = vmatprep.mubr.bf16.mxu1 %v8791_v4  ;;  %v7573_v4 = vshll.u32 %v7554_v38, 16  ;;  %v7596_v12 = vrot.slane %v7594_v50, 1  ;;  %v8007_v51 = vld [vmem:[#allocation8 + $0x518] sm:$0xff]  ;;  %v7699_v41 = vld [vmem:[#allocation8 + $0x4a0] sm:$0xff]  ;;  %v7700_v31 = vld [vmem:[#allocation8 + $0x4a8] sm:$0xff] }
 0x698   : > { %9956 = vmatpush3.bf16.msra.mxu0 %v6713_v19  ;;  %v7580_v19 = vshll.u32 %v7555_v29, 16  ;;  %v8793_v8 = vcombine.low %v7296_v40, %v7304_v1  ;;  %v7311_v1 = vrot.slane %v7235_v9, 2  ;;  %v7564_v50 = vld [vmem:[#allocation3 + $0x28] sm:$0x3e] }
 0x699   : > { %9454 = vmatpush3.bf16.msra.mxu1 %v7355_v44  ;;  %9957 = vmatprep.subr.bf16.mxu0 %v6714_v22  ;;  %v7371_v44 = vld [vmem:[#allocation8 + $0x388] sm:$0xff]  ;;  %v7575_v33 = vrot.slane %v7573_v4, 1  ;;  %v7590_v4 = vor.u32 %v7589_v49, %v7585_v25 }
 0x69a   : > { %9455 = vmatprep.subr.bf16.mxu1 %v7364_v16  ;;  %v8789_v16 = vcombine.low %v7309_v52, %v7310_v55  ;;  %v7582_v37 = vrot.slane %v7580_v19, 1  ;;  %v7888_v52 = vld [vmem:[#allocation3 + $0x28] sm:$0x1f]  ;;  %v7678_v55 = vld [vmem:[#allocation8 + $0x3f8] sm:$0xff]  ;;  %v7597_v19 = vor.u32 %v7596_v12, %v7592_v39  ;;  %v7701_v12 = vld [vmem:[#allocation8 + $0x4b0] sm:$0xff] }
 0x69b   : > { %7159 = vmatmul.mubr.bf16.gmra.mrb[16].mxu0 %v8782_v3  ;;  %v7272_v3 = vrot.slane %v7228_v34, 1  ;;  %v8009_v25 = vld [vmem:[#allocation8 + $0x528] sm:$0xff] }
 0x69c   : > { %7439 = vmatmul.mubr.bf16.gmra.mrb[20].mxu1 %v10640_v36  ;;  %9958 = vmatpush3.bf16.msra.mxu0 %v6714_v22  ;;  %v7680_v22 = vld [vmem:[#allocation8 + $0x408] sm:$0xff] }
 0x69d   : > { %9456 = vmatpush3.bf16.msra.mxu1 %v7356_v26  ;;  %9959 = vmatprep.subr.bf16.mxu0 %v6715_v59  ;;  %v7672_v36 = vld [vmem:[#allocation8 + $0x3c8] sm:$0xff]  ;;  %v7372_v26 = vld [vmem:[#allocation8 + $0x390] sm:$0xff] }
 0x69e   : > { %9457 = vmatprep.subr.bf16.mxu1 %v7365_v10  ;;  %7479 = vmatprep.mubr.bf16.mxu1 %v8788_v53  ;;  %v7576_v10 = vor.u32 %v7575_v33, %v7571_v32  ;;  %v7583_v53 = vor.u32 %v7582_v37, %v7578_v61  ;;  %v8801_v33 = vcombine.low %v7590_v4, %v7597_v19  ;;  %v7696_v37 = vld [vmem:[#allocation8 + $0x488] sm:$0xff] }
 0x69f   : > { %9969 = vmatprep.mubr.bf16.mxu0 %v8779_v20  ;;  %v8792_v20 = vcombine.low %v7271_v48, %v7272_v3  ;;  %v8013_v48 = vld [vmem:[#allocation8 + $0x548] sm:$0xff] }
 0x6a0   : > { %9960 = vmatpush3.bf16.msra.mxu0 %v6715_v59  ;;  %v7681_v59 = vld [vmem:[#allocation8 + $0x410] sm:$0xff] }
 0x6a1   : > { %9458 = vmatpush3.bf16.msra.mxu1 %v7357_v46  ;;  %9961 = vmatprep.subr.bf16.mxu0 %v6716_v15  ;;  %v7673_v46 = vld [vmem:[#allocation8 + $0x3d0] sm:$0xff] }
 0x6a2   : > { %9459 = vmatprep.subr.bf16.mxu1 %v7366_v62  ;;  %v7682_v62 = vld [vmem:[#allocation8 + $0x418] sm:$0xff] }
 0x6a4   : > { %9962 = vmatpush3.bf16.msra.mxu0 %v6716_v15  ;;  %v7373_v15 = vld [vmem:[#allocation8 + $0x398] sm:$0xff] }
 0x6a5   : > { %9460 = vmatpush3.bf16.msra.mxu1 %v7358_v11  ;;  %9963 = vmatprep.subr.bf16.mxu0 %v6717_v5  ;;  %v8796_v11 = vcombine.low %v7576_v10, %v7583_v53  ;;  %v7688_v10 = vld [vmem:[#allocation8 + $0x448] sm:$0xff] }
 0x6a6   : > { %9461 = vmatprep.subr.bf16.mxu1 %v7367_v63  ;;  %v7374_v63 = vld [vmem:[#allocation8 + $0x3a0] sm:$0xff]  ;;  %v8005_v53 = vld [vmem:[#allocation8 + $0x508] sm:$0xff] }
 0x6a8   : > { %9964 = vmatpush3.bf16.msra.mxu0 %v6717_v5  ;;  %v7674_v5 = vld [vmem:[#allocation8 + $0x3d8] sm:$0xff] }
 0x6a9   : > { %9462 = vmatpush3.bf16.msra.mxu1 %v7359_v42  ;;  %9965 = vmatprep.subr.bf16.mxu0 %v6718_v47  ;;  %v7375_v42 = vld [vmem:[#allocation8 + $0x3a8] sm:$0xff] }
 0x6aa   : > { %9463 = vmatprep.subr.bf16.mxu1 %v7368_v58  ;;  %v7676_v58 = vld [vmem:[#allocation8 + $0x3e8] sm:$0xff] }
 0x6ac   : > { %9966 = vmatpush3.bf16.msra.mxu0 %v6718_v47  ;;  %v7563_v47 = vld [vmem:[#allocation3 + $0x20] sm:$0x3e] }
 0x6ad   : > { %9464 = vmatpush3.bf16.msra.mxu1 %v7360_v0  ;;  %9967 = vmatprep.subr.bf16.mxu0 %v6719_v45  ;;  %v7607_v0 = vshrl.u32 %v7562_v35, 16  ;;  %v7618_v57 = vshll.u32 %v7563_v47, 16 }
 0x6ae   : > { %9465 = vmatprep.subr.bf16.mxu1 %v7369_v60  ;;  %v7615_v60 = vshrl.u32 %v7563_v47, 16  ;;  %v7691_v47 = vld [vmem:[#allocation8 + $0x460] sm:$0xff] }
 0x6af   : > { %v7609_v38 = vrot.slane %v7607_v0, 1  ;;  %v7620_v40 = vrot.slane %v7618_v57, 2  ;;  %v7889_v0 = vld [vmem:[#allocation3 + $0x30] sm:$0x1f]  ;;  %v7626_v57 = vshll.u32 %v7564_v50, 16 }
 0x6b0   : > { %9968 = vmatpush3.bf16.msra.mxu0 %v6719_v45  ;;  %v7610_v45 = vshll.u32 %v7562_v35, 16  ;;  %v8016_v35 = vld [vmem:[#allocation8 + $0x560] sm:$0xff]  ;;  %v7920_v49 = vshll.u32 %v7889_v0, 16 }
 0x6b1   : > { %9466 = vmatpush3.bf16.msra.mxu1 %v7361_v14  ;;  %9973 = vmatprep.subr.bf16.mxu0 %v7370_v6  ;;  %v7617_v14 = vrot.slane %v7615_v60, 1  ;;  %v7623_v60 = vshrl.u32 %v7564_v50, 16  ;;  %v8030_v50 = vld [vmem:[#allocation8 + $0x5d0] sm:$0xff] }
 0x6b2   : > { %9489 = vmatprep.subr.bf16.mxu1 %v7679_v43  ;;  %v7612_v29 = vrot.slane %v7610_v45, 2  ;;  %v7887_v43 = vld [vmem:[#allocation3 + $0x20] sm:$0x1f]  ;;  %v7890_v45 = vld [vmem:[#allocation3 + $0x38] sm:$0x1f] }
 0x6b3   : > { %9970 = vmatmul.mubr.bf16.vlgmr.msra.gmra.mrb[8].mxu0 %v8784_v54  ;;  %v8012_v54 = vld [vmem:[#allocation8 + $0x540] sm:$0xff]  ;;  %v7621_v34 = vor.u32 %v7620_v40, %v7617_v14  ;;  %v7904_v61 = vshrl.u32 %v7887_v43, 16  ;;  %v7927_v39 = vshll.u32 %v7890_v45, 16  ;;  %v7628_v14 = vrot.slane %v7626_v57, 2  ;;  %v10644_v57 = vld [vmem:[#allocation3 + $0x30] ss:$8 sps:$4 sm:$0xff]  }
 0x6b4   : > { %7480 = vmatmul.mubr.bf16.vlgmr.msra.gmra.mrb[24].mxu1 %v8787_v27  ;;  %9974 = vmatpush3.bf16.msra.mxu0 %v7370_v6  ;;  %v7312_v6 = vrot.slane %v7236_v56, 2  ;;  %v7695_v27 = vld [vmem:[#allocation8 + $0x480] sm:$0xff]  ;;  %v7613_v21 = vor.u32 %v7612_v29, %v7609_v38  ;;  %v7625_v29 = vrot.slane %v7623_v60, 1  ;;  %v7925_v4 = vshrl.u32 %v7890_v45, 16 }
 0x6b5   : > { %9490 = vmatpush3.bf16.msra.mxu1 %v7671_v24  ;;  %9975 = vmatprep.subr.bf16.mxu0 %v7371_v44  ;;  %v7906_v24 = vshll.u32 %v7887_v43, 16  ;;  %v7559_v38 = vld [vmem:[#allocation3 + $0x20] sm:$0x1e]  ;;  %v8010_v43 = vld [vmem:[#allocation8 + $0x530] sm:$0xff]  ;;  %v7929_v19 = vrot.slane %v7927_v39, 1  ;;  %v8023_v39 = vld [vmem:[#allocation8 + $0x598] sm:$0xff] }
 0x6b6   : > { %9491 = vmatprep.subr.bf16.mxu1 %v7680_v22  ;;  %7487 = vmatprep.mubr.bf16.mxu1 %v8793_v8  ;;  %v7913_v8 = vshll.u32 %v7888_v52, 16  ;;  %v8794_v32 = vcombine.low %v7311_v1, %v7312_v6  ;;  %v7687_v22 = vld [vmem:[#allocation8 + $0x440] sm:$0xff]  ;;  %v8798_v3 = vcombine.low %v7613_v21, %v7621_v34  ;;  %v7693_v6 = vld [vmem:[#allocation8 + $0x470] sm:$0xff]  ;;  %v7603_v34 = vrot.slane %v7559_v38, 1 }
 0x6b7   : > { %9989 = vmatprep.mubr.bf16.mxu0 %v8789_v16  ;;  %v8004_v16 = vld [vmem:[#allocation8 + $0x500] sm:$0xff]  ;;  %v7897_v38 = vld [vmem:[#allocation3 + $0x30] sm:$0x3e] }
 0x6b8   : > { %9976 = vmatpush3.bf16.msra.mxu0 %v7371_v44  ;;  %v10641_v44 = vld [vmem:[#allocation3 + $0x18] ss:$8 sps:$4 sm:$0xff]  }
 0x6b9   : > { %9492 = vmatpush3.bf16.msra.mxu1 %v7672_v36  ;;  %9977 = vmatprep.subr.bf16.mxu0 %v7372_v26  ;;  %v7908_v36 = vrot.slane %v7906_v24, 1  ;;  %v7895_v24 = vld [vmem:[#allocation3 + $0x20] sm:$0x3e] }
 0x6ba   : > { %9493 = vmatprep.subr.bf16.mxu1 %v7681_v59  ;;  %v7915_v59 = vrot.slane %v7913_v8, 1  ;;  %v7896_v8 = vld [vmem:[#allocation3 + $0x28] sm:$0x3e] }
 0x6bc   : > { %7488 = vmatmul.mubr.bf16.gmra.mrb[28].mxu1 %v8792_v20  ;;  %9978 = vmatpush3.bf16.msra.mxu0 %v7372_v26  ;;  %v7911_v26 = vshrl.u32 %v7888_v52, 16  ;;  %v7697_v20 = vld [vmem:[#allocation8 + $0x490] sm:$0xff]  ;;  %v7918_v52 = vshrl.u32 %v7889_v0, 16 }
 0x6bd   : > { %9494 = vmatpush3.bf16.msra.mxu1 %v7673_v46  ;;  %9979 = vmatprep.subr.bf16.mxu0 %v7373_v15  ;;  %v8014_v46 = vld [vmem:[#allocation8 + $0x550] sm:$0xff] }
 0x6be   : > { %9495 = vmatprep.subr.bf16.mxu1 %v7682_v62  ;;  %7763 = vmatprep.mubr.bf16.mxu1 %v8796_v11  ;;  %v7916_v62 = vor.u32 %v7915_v59, %v7911_v26  ;;  %v10642_v11 = vld [vmem:[#allocation3 + $0x28] ss:$8 sps:$4 sm:$0xff]   ;;  %v7948_v26 = vshrl.u32 %v7896_v8, 16  ;;  %v7951_v59 = vshll.u32 %v7896_v8, 16 }
 0x6c0   : > { %9980 = vmatpush3.bf16.msra.mxu0 %v7373_v15  ;;  %v7909_v15 = vor.u32 %v7908_v36, %v7904_v61  ;;  %v7930_v61 = vor.u32 %v7929_v19, %v7925_v4  ;;  %v7943_v36 = vshll.u32 %v7895_v24, 16  ;;  %v7709_v4 = vld [vmem:[#allocation8 + $0x4f0] sm:$0xff] }
 0x6c1   : > { %9496 = vmatpush3.bf16.msra.mxu1 %v7674_v5  ;;  %9981 = vmatprep.subr.bf16.mxu0 %v7374_v63  ;;  %v7689_v5 = vld [vmem:[#allocation8 + $0x450] sm:$0xff] }
 0x6c2   : > { %9497 = vmatprep.subr.bf16.mxu1 %v7683_v13  ;;  %v7698_v13 = vld [vmem:[#allocation8 + $0x498] sm:$0xff]  ;;  %v8034_v19 = vld [vmem:[#allocation8 + $0x5f0] sm:$0xff] }
 0x6c4   : > { %9982 = vmatpush3.bf16.msra.mxu0 %v7374_v63  ;;  %v8006_v63 = vld [vmem:[#allocation8 + $0x510] sm:$0xff] }
 0x6c5   : > { %9498 = vmatpush3.bf16.msra.mxu1 %v7675_v28  ;;  %9983 = vmatprep.subr.bf16.mxu0 %v7375_v42  ;;  %v8015_v28 = vld [vmem:[#allocation8 + $0x558] sm:$0xff] }
 0x6c6   : > { %9499 = vmatprep.subr.bf16.mxu1 %v7684_v23  ;;  %v7690_v23 = vld [vmem:[#allocation8 + $0x458] sm:$0xff] }
 0x6c8   : > { %9984 = vmatpush3.bf16.msra.mxu0 %v7375_v42  ;;  %v8806_v42 = vcombine.low %v7909_v15, %v7916_v62  ;;  %v8020_v15 = vld [vmem:[#allocation8 + $0x580] sm:$0xff] }
 0x6c9   : > { %9500 = vmatpush3.bf16.msra.mxu1 %v7676_v58  ;;  %9985 = vmatprep.subr.bf16.mxu0 %v7376_v30  ;;  %v8008_v58 = vld [vmem:[#allocation8 + $0x520] sm:$0xff] }
 0x6ca   : > { %9501 = vmatprep.subr.bf16.mxu1 %v7685_v7  ;;  %v8017_v7 = vld [vmem:[#allocation8 + $0x568] sm:$0xff] }
 0x6cc   : > { %9986 = vmatpush3.bf16.msra.mxu0 %v7376_v30  ;;  %v7565_v30 = vld [vmem:[#allocation3 + $0x30] sm:$0x3e] }
 0x6cd   : > { %9502 = vmatpush3.bf16.msra.mxu1 %v7677_v2  ;;  %9987 = vmatprep.subr.bf16.mxu0 %v7377_v18  ;;  %v7631_v9 = vshrl.u32 %v7565_v30, 16  ;;  %v7634_v56 = vshll.u32 %v7565_v30, 16  ;;  %v7692_v2 = vld [vmem:[#allocation8 + $0x468] sm:$0xff] }
 0x6ce   : > { %9503 = vmatprep.subr.bf16.mxu1 %v7686_v17  ;;  %v7558_v17 = vld [vmem:[#allocation3 + $0x18] sm:$0x1e] }
 0x6cf   : > { %v7633_v40 = vrot.slane %v7631_v9, 1  ;;  %v7636_v1 = vrot.slane %v7634_v56, 2  ;;  %v7602_v21 = vrot.slane %v7558_v17, 1  ;;  %v8022_v9 = vld [vmem:[#allocation8 + $0x590] sm:$0xff]  ;;  %v7706_v56 = vld [vmem:[#allocation8 + $0x4d8] sm:$0xff]  ;;  %v8024_v17 = vld [vmem:[#allocation8 + $0x5a0] sm:$0xff] }
 0x6d0   : > { %9988 = vmatpush3.bf16.msra.mxu0 %v7377_v18  ;;  %v8018_v18 = vld [vmem:[#allocation8 + $0x570] sm:$0xff] }
 0x6d1   : > { %9504 = vmatpush3.bf16.msra.mxu1 %v7678_v55  ;;  %9517 = vmatprep.subr.bf16.mxu0 %v7695_v27  ;;  %v7922_v55 = vrot.slane %v7920_v49, 1  ;;  %v7702_v27 = vld [vmem:[#allocation8 + $0x4b8] sm:$0xff] }
 0x6d2   : > { %9555 = vmatprep.subr.bf16.mxu1 %v8012_v54  ;;  %v8019_v54 = vld [vmem:[#allocation8 + $0x578] sm:$0xff] }
 0x6d3   : > { %9990 = vmatmul.mubr.bf16.vlgmr.msra.gmra.mrb[8].mxu0 %v8794_v32  ;;  %v7629_v32 = vor.u32 %v7628_v14, %v7625_v29  ;;  %v7898_v29 = vld [vmem:[#allocation3 + $0x38] sm:$0x3e]  ;;  %v7708_v14 = vld [vmem:[#allocation8 + $0x4e8] sm:$0xff] }
 0x6d4   : > { %7764 = vmatmul.mubr.bf16.vlgmr.msra.gmra.mrb[32].mxu1 %v10641_v44  ;;  %9518 = vmatpush3.bf16.msra.mxu0 %v7687_v22  ;;  %v7694_v44 = vld [vmem:[#allocation8 + $0x478] sm:$0xff] }
 0x6d5   : > { %9556 = vmatpush3.bf16.msra.mxu1 %v8004_v16  ;;  %9519 = vmatprep.subr.bf16.mxu0 %v7696_v37  ;;  %v8011_v22 = vld [vmem:[#allocation8 + $0x538] sm:$0xff]  ;;  %v7637_v16 = vor.u32 %v7636_v1, %v7633_v40  ;;  %v7703_v37 = vld [vmem:[#allocation8 + $0x4c0] sm:$0xff]  ;;  %v8033_v40 = vld [vmem:[#allocation8 + $0x5e8] sm:$0xff]  ;;  %v7956_v1 = vshrl.u32 %v7897_v38, 16 }
 0x6d6   : > { %9557 = vmatprep.subr.bf16.mxu1 %v8013_v48  ;;  %7771 = vmatprep.mubr.bf16.mxu1 %v8801_v33  ;;  %v7923_v33 = vor.u32 %v7922_v55, %v7918_v52  ;;  %v8028_v48 = vld [vmem:[#allocation8 + $0x5c0] sm:$0xff]  ;;  %v7967_v52 = vshll.u32 %v7898_v29, 16  ;;  %v8025_v55 = vld [vmem:[#allocation8 + $0x5a8] sm:$0xff] }
 0x6d7   : > { %7812 = vmatprep.mubr.bf16.mxu0 %v8798_v3  ;;  %v7940_v3 = vshrl.u32 %v7895_v24, 16  ;;  %v8803_v62 = vcombine.low %v7629_v32, %v7637_v16  ;;  %v7958_v24 = vrot.slane %v7956_v1, 1  ;;  %v7710_v16 = vld [vmem:[#allocation8 + $0x4f8] sm:$0xff] }
 0x6d8   : > { %9520 = vmatpush3.bf16.msra.mxu0 %v7688_v10  ;;  %v8797_v10 = vcombine.low %v7602_v21, %v7603_v34  ;;  %v7568_v21 = vld [vmem:[#allocation3 + $0x28] sm:$0x3c]  ;;  %v7569_v34 = vld [vmem:[#allocation3 + $0x30] sm:$0x3c] }
 0x6d9   : > { %9558 = vmatpush3.bf16.msra.mxu1 %v8005_v53  ;;  %9521 = vmatprep.subr.bf16.mxu0 %v7697_v20  ;;  %v10643_v53 = vld [vmem:[#allocation3 + $0x20] ss:$8 sps:$4 sm:$0xff]  }
 0x6da   : > { %9559 = vmatprep.subr.bf16.mxu1 %v8014_v46  ;;  %v7560_v20 = vld [vmem:[#allocation3 + $0x28] sm:$0x1e]  ;;  %v7561_v46 = vld [vmem:[#allocation3 + $0x30] sm:$0x1e] }
 0x6dc   : > { %7772 = vmatmul.mubr.bf16.gmra.mrb[36].mxu1 %v10642_v11  ;;  %9522 = vmatpush3.bf16.msra.mxu0 %v7689_v5  ;;  %v8811_v11 = vcombine.low %v7923_v33, %v7930_v61  ;;  %v7704_v5 = vld [vmem:[#allocation8 + $0x4c8] sm:$0xff]  ;;  %v8035_v33 = vld [vmem:[#allocation8 + $0x5f8] sm:$0xff]  ;;  %v7899_v61 = vld [vmem:[#allocation3 + $0x20] sm:$0x3c] }
 0x6dd   : > { %9560 = vmatpush3.bf16.msra.mxu1 %v8006_v63  ;;  %9523 = vmatprep.subr.bf16.mxu0 %v7698_v13  ;;  %v8029_v63 = vld [vmem:[#allocation8 + $0x5c8] sm:$0xff]  ;;  %v7942_v13 = vrot.slane %v7940_v3, 1 }
 0x6de   : > { %9561 = vmatprep.subr.bf16.mxu1 %v8015_v28  ;;  %8096 = vmatprep.mubr.bf16.mxu1 %v8806_v42  ;;  %v7945_v28 = vrot.slane %v7943_v36, 2  ;;  %v7950_v42 = vrot.slane %v7948_v26, 1  ;;  %v7644_v36 = vrot.slane %v7568_v21, 2  ;;  %v7645_v26 = vrot.slane %v7569_v34, 2 }
 0x6e0   : > { %9524 = vmatpush3.bf16.msra.mxu0 %v7690_v23  ;;  %v7953_v23 = vrot.slane %v7951_v59, 2  ;;  %v7946_v30 = vor.u32 %v7945_v28, %v7942_v13  ;;  %v7894_v13 = vld [vmem:[#allocation3 + $0x38] sm:$0x1e] }
 0x6e1   : > { %9562 = vmatpush3.bf16.msra.mxu1 %v8007_v51  ;;  %9525 = vmatprep.subr.bf16.mxu0 %v7699_v41  ;;  %v7604_v51 = vrot.slane %v7560_v20, 1  ;;  %v7605_v41 = vrot.slane %v7561_v46, 1  ;;  %v7975_v20 = vrot.slane %v7899_v61, 2 }
 0x6e2   : > { %9563 = vmatprep.subr.bf16.mxu1 %v8016_v35  ;;  %v7566_v35 = vld [vmem:[#allocation3 + $0x18] sm:$0x3c] }
 0x6e3   : > { %v7642_v0 = vrot.slane %v7566_v35, 2  ;;  %v8802_v60 = vcombine.low %v7604_v51, %v7605_v41  ;;  %v7938_v51 = vrot.slane %v7894_v13, 1  ;;  %v8038_v41 = vld [vmem:[#allocation8 + $0x610] sm:$0xff] }
 0x6e4   : > { %9526 = vmatpush3.bf16.msra.mxu0 %v7691_v47  ;;  %v7567_v47 = vld [vmem:[#allocation3 + $0x20] sm:$0x3c] }
 0x6e5   : > { %9564 = vmatpush3.bf16.msra.mxu1 %v8008_v58  ;;  %9527 = vmatprep.subr.bf16.mxu0 %v7700_v31  ;;  %v8021_v58 = vld [vmem:[#allocation8 + $0x588] sm:$0xff]  ;;  %v7705_v31 = vld [vmem:[#allocation8 + $0x4d0] sm:$0xff]  ;;  %v7643_v45 = vrot.slane %v7567_v47, 2  ;;  %v8039_v47 = vld [vmem:[#allocation8 + $0x618] sm:$0xff] }
 0x6e6   : > { %9565 = vmatprep.subr.bf16.mxu1 %v8017_v7  ;;  %v7954_v7 = vor.u32 %v7953_v23, %v7950_v42  ;;  %v8037_v42 = vld [vmem:[#allocation8 + $0x608] sm:$0xff] }
 0x6e7   : > { %v8799_v49 = vcombine.low %v7642_v0, %v7643_v45 }
 0x6e8   : > { %9528 = vmatpush3.bf16.msra.mxu0 %v7692_v2  ;;  %v8031_v2 = vld [vmem:[#allocation8 + $0x5d8] sm:$0xff] }
 0x6e9   : > { %9566 = vmatpush3.bf16.msra.mxu1 %v8009_v25  ;;  %9529 = vmatprep.subr.bf16.mxu0 %v7701_v12  ;;  %v8808_v25 = vcombine.low %v7946_v30, %v7954_v7  ;;  %v7707_v12 = vld [vmem:[#allocation8 + $0x4e0] sm:$0xff]  ;;  %v8042_v7 = vld [vmem:[#allocation8 + $0x630] sm:$0xff] }
 0x6ea   : > { %9567 = vmatprep.subr.bf16.mxu1 %v8018_v18  ;;  %v8032_v18 = vld [vmem:[#allocation8 + $0x5e0] sm:$0xff] }
 0x6ec   : > { %9530 = vmatpush3.bf16.msra.mxu0 %v7693_v6  ;;  %v7959_v6 = vshll.u32 %v7897_v38, 16  ;;  %v8043_v38 = vld [vmem:[#allocation8 + $0x638] sm:$0xff] }
 0x6ed   : > { %9568 = vmatpush3.bf16.msra.mxu1 %v8010_v43  ;;  %9531 = vmatprep.subr.bf16.mxu0 %v7702_v27  ;;  %v7964_v43 = vshrl.u32 %v7898_v29, 16  ;;  %v7891_v27 = vld [vmem:[#allocation3 + $0x20] sm:$0x1e] }
 0x6ee   : > { %9569 = vmatprep.subr.bf16.mxu1 %v8019_v54  ;;  %v7892_v54 = vld [vmem:[#allocation3 + $0x28] sm:$0x1e]  ;;  %v7961_v8 = vrot.slane %v7959_v6, 2 }
 0x6ef   : > { %v7966_v32 = vrot.slane %v7964_v43, 1  ;;  %v7936_v3 = vrot.slane %v7892_v54, 1 }
 0x6f0   : > { %9532 = vmatpush3.bf16.msra.mxu0 %v7694_v44  ;;  %v7969_v44 = vrot.slane %v7967_v52, 2  ;;  %v7962_v59 = vor.u32 %v7961_v8, %v7958_v24 }
 0x6f1   : > { %9570 = vmatpush3.bf16.msra.mxu1 %v8011_v22  ;;  %9993 = vmatprep.subr.bf16.mxu0 %v7703_v37  ;;  %v8026_v22 = vld [vmem:[#allocation8 + $0x5b0] sm:$0xff] }
 0x6f2   : > { %9583 = vmatprep.subr.bf16.mxu1 %v8028_v48  ;;  %v7935_v48 = vrot.slane %v7891_v27, 1 }
 0x6f3   : > { %7813 = vmatmul.mubr.bf16.vlgmr.msra.gmra.mrb[20].mxu0 %v8797_v10  ;;  %v7970_v10 = vor.u32 %v7969_v44, %v7966_v32 }
 0x6f4   : > { %8097 = vmatmul.mubr.bf16.vlgmr.msra.gmra.mrb[40].mxu1 %v10643_v53  ;;  %9994 = vmatpush3.bf16.msra.mxu0 %v7703_v37  ;;  %v7900_v37 = vld [vmem:[#allocation3 + $0x28] sm:$0x3c]  ;;  %v8027_v53 = vld [vmem:[#allocation8 + $0x5b8] sm:$0xff] }
 0x6f5   : > { %9584 = vmatpush3.bf16.msra.mxu1 %v8020_v15  ;;  %9995 = vmatprep.subr.bf16.mxu0 %v7704_v5  ;;  %v7976_v46 = vrot.slane %v7900_v37, 2  ;;  %v8036_v15 = vld [vmem:[#allocation8 + $0x600] sm:$0xff] }
 0x6f6   : > { %9585 = vmatprep.subr.bf16.mxu1 %v8029_v63  ;;  %7820 = vmatprep.mubr.bf16.mxu0 %v8803_v62  ;;  %v8807_v62 = vcombine.low %v7935_v48, %v7936_v3  ;;  %v7893_v63 = vld [vmem:[#allocation3 + $0x30] sm:$0x1e] }
 0x6f7   : > { %8104 = vmatprep.mubr.bf16.mxu1 %v8811_v11  ;;  %v8804_v11 = vcombine.low %v7644_v36, %v7645_v26  ;;  %v8809_v28 = vcombine.low %v7975_v20, %v7976_v46  ;;  %v7937_v23 = vrot.slane %v7893_v63, 1 }
 0x6f8   : > { %9996 = vmatpush3.bf16.msra.mxu0 %v7704_v5  ;;  %v8813_v5 = vcombine.low %v7962_v59, %v7970_v10 }
 0x6f9   : > { %9586 = vmatpush3.bf16.msra.mxu1 %v8021_v58  ;;  %9997 = vmatprep.subr.bf16.mxu0 %v7705_v31  ;;  %v8812_v35 = vcombine.low %v7937_v23, %v7938_v51  ;;  %v8040_v58 = vld [vmem:[#allocation8 + $0x620] sm:$0xff] }
 0x6fa   : > { %9587 = vmatprep.subr.bf16.mxu1 %v8030_v50 }
 0x6fb   : > { %7821 = vmatmul.mubr.bf16.gmra.mrb[24].mxu0 %v8802_v60 }
 0x6fc   : > { %8105 = vmatmul.mubr.bf16.gmra.mrb[44].mxu1 %v10644_v57  ;;  %9998 = vmatpush3.bf16.msra.mxu0 %v7705_v31  ;;  %v8041_v31 = vld [vmem:[#allocation8 + $0x628] sm:$0xff] }
 0x6fd   : > { %9588 = vmatpush3.bf16.msra.mxu1 %v8022_v9  ;;  %9999 = vmatprep.subr.bf16.mxu0 %v7706_v56 }
 0x6fe   : > { %9589 = vmatprep.subr.bf16.mxu1 %v8031_v2  ;;  %8145 = vmatprep.mubr.bf16.mxu1 %v8808_v25  ;;  %v7901_v2 = vld [vmem:[#allocation3 + $0x30] sm:$0x3c]  ;;  %v7902_v25 = vld [vmem:[#allocation3 + $0x38] sm:$0x3c] }
 0x6ff   : > { %10009 = vmatprep.mubr.bf16.mxu0 %v8799_v49  ;;  %v7977_v29 = vrot.slane %v7901_v2, 2 }
 0x700   : > { %10000 = vmatpush3.bf16.msra.mxu0 %v7706_v56 }
 0x701   : > { %9590 = vmatpush3.bf16.msra.mxu1 %v8023_v39  ;;  %10001 = vmatprep.subr.bf16.mxu0 %v7707_v12 }
 0x702   : > { %9591 = vmatprep.subr.bf16.mxu1 %v8032_v18 }
 0x704   : > { %10002 = vmatpush3.bf16.msra.mxu0 %v7707_v12 }
 0x705   : > { %9592 = vmatpush3.bf16.msra.mxu1 %v8024_v17  ;;  %10003 = vmatprep.subr.bf16.mxu0 %v7708_v14 }
 0x706   : > { %9593 = vmatprep.subr.bf16.mxu1 %v8033_v40 }
 0x708   : > { %10004 = vmatpush3.bf16.msra.mxu0 %v7708_v14  ;;  %v7978_v14 = vrot.slane %v7902_v25, 2 }
 0x709   : > { %9594 = vmatpush3.bf16.msra.mxu1 %v8025_v55  ;;  %10005 = vmatprep.subr.bf16.mxu0 %v7709_v4 }
 0x70a   : > { %9595 = vmatprep.subr.bf16.mxu1 %v8034_v19  ;;  %v8814_v43 = vcombine.low %v7977_v29, %v7978_v14 }
 0x70c   : > { %10006 = vmatpush3.bf16.msra.mxu0 %v7709_v4 }
 0x70d   : > { %9596 = vmatpush3.bf16.msra.mxu1 %v8026_v22  ;;  %10007 = vmatprep.subr.bf16.mxu0 %v7710_v16 }
 0x70e   : > { %9597 = vmatprep.subr.bf16.mxu1 %v8035_v33 }
 0x710   : > { %10008 = vmatpush3.bf16.msra.mxu0 %v7710_v16 }
 0x711   : > { %9598 = vmatpush3.bf16.msra.mxu1 %v8027_v53  ;;  %10013 = vmatprep.subr.bf16.mxu0 %v8036_v15 }
 0x713   : > { %10010 = vmatmul.mubr.bf16.vlgmr.msra.gmra.mrb[8].mxu0 %v8804_v11 }
 0x714   : > { %8146 = vmatmul.mubr.bf16.vlgmr.msra.gmra.mrb[48].mxu1 %v8807_v62  ;;  %10014 = vmatpush3.bf16.msra.mxu0 %v8036_v15 }
 0x715   : > { %8153 = vmatprep.mubr.bf16.mxu1 %v8813_v5  ;;  %10015 = vmatprep.subr.bf16.mxu0 %v8037_v42 }
 0x716   : > { %10029 = vmatprep.mubr.bf16.mxu0 %v8809_v28 }
 0x718   : > { %10016 = vmatpush3.bf16.msra.mxu0 %v8037_v42 }
 0x719   : > { %10017 = vmatprep.subr.bf16.mxu0 %v8038_v41 }
 0x71c   : > { %8154 = vmatmul.mubr.bf16.gmra.mrb[52].mxu1 %v8812_v35  ;;  %10018 = vmatpush3.bf16.msra.mxu0 %v8038_v41 }
 0x71d   : > { %10019 = vmatprep.subr.bf16.mxu0 %v8039_v47 }
 0x720   : > { %10020 = vmatpush3.bf16.msra.mxu0 %v8039_v47 }
 0x721   : > { %10021 = vmatprep.subr.bf16.mxu0 %v8040_v58 }
 0x724   : > { %10022 = vmatpush3.bf16.msra.mxu0 %v8040_v58 }
 0x725   : > { %10023 = vmatprep.subr.bf16.mxu0 %v8041_v31 }
 0x726   : > { %v9307_v50 = vpop.f32.mrb[0].mxu0 }
 0x727   : > { %v9335_v30 = vpop.f32.mrb[0].mxu1  ;;  %v9308_v0 = vpop.f32.mrb[1].mxu0 }
 0x728   : > { %v9336_v45 = vpop.f32.mrb[1].mxu1  ;;  %v9309_v60 = vadd.f32 %v9308_v0, %v9307_v50  ;;  %v9310_v9 = vpop.f32.mrb[2].mxu0  ;;  %10024 = vmatpush3.bf16.msra.mxu0 %v8041_v31 }
 0x729   : > { %v9337_v57 = vadd.f32 %v9336_v45, %v9335_v30  ;;  %v9338_v56 = vpop.f32.mrb[2].mxu1  ;;  %v9311_v49 = vpop.f32.mrb[3].mxu0  ;;  %10025 = vmatprep.subr.bf16.mxu0 %v8042_v7 }
 0x72a   : > { %v9339_v39 = vpop.f32.mrb[3].mxu1  ;;  %v9312_v18 = vadd.f32 %v9311_v49, %v9310_v9 }
 0x72b   : > { %v6986_v12 = vadd.f32 %v9337_v57, %v9309_v60  ;;  %v9340_v17 = vadd.f32 %v9339_v39, %v9338_v56 }
 0x72c   : > { %10026 = vmatpush3.bf16.msra.mxu0 %v8042_v7 }
 0x72d   : > { %v6989_v40 = vadd.f32 %v9340_v17, %v9312_v18  ;;  %10027 = vmatprep.subr.bf16.mxu0 %v8043_v38 }
 0x72e   : > { %v9313_v1 = vpop.f32.mrb[4].mxu0 }
 0x72f   : > { %v9341_v6 = vpop.f32.mrb[4].mxu1  ;;  %v9314_v52 = vpop.f32.mrb[5].mxu0 }
 0x730   : > { %v9342_v55 = vpop.f32.mrb[5].mxu1  ;;  %10028 = vmatpush3.bf16.msra.mxu0 %v8043_v38  ;;  %v9315_v4 = vadd.f32 %v9314_v52, %v9313_v1  ;;  %v9316_v27 = vpop.f32.mrb[6].mxu0 }
 0x731   : > { %v9343_v19 = vadd.f32 %v9342_v55, %v9341_v6  ;;  %v9344_v54 = vpop.f32.mrb[6].mxu1  ;;  %v9317_v21 = vpop.f32.mrb[7].mxu0 }
 0x732   : > { %v9345_v34 = vpop.f32.mrb[7].mxu1  ;;  %v9318_v8 = vadd.f32 %v9317_v21, %v9316_v27 }
 0x733   : > { %v6994_v24 = vadd.f32 %v9343_v19, %v9315_v4  ;;  %v9346_v32 = vadd.f32 %v9345_v34, %v9344_v54  ;;  %10030 = vmatmul.mubr.bf16.vlgmr.msra.gmra.mrb[8].mxu0 %v8814_v43 }
 0x735   : > { %v6997_v44 = vadd.f32 %v9346_v32, %v9318_v8 }
 0x747   : > { %v9373_v22 = vpop.f32.mrb[8].mxu1 }
 0x748   : > { %v9374_v16 = vpop.f32.mrb[9].mxu1 }
 0x749   : > { %v9375_v33 = vadd.f32 %v9374_v16, %v9373_v22  ;;  %v9376_v61 = vpop.f32.mrb[10].mxu1 }
 0x74a   : > { %v9377_v37 = vpop.f32.mrb[11].mxu1 }
 0x74b   : > { %v10067_v48 = vadd.f32 %v9375_v33, %v6986_v12  ;;  %v9378_v3 = vadd.f32 %v9377_v37, %v9376_v61 }
 0x74d   : > { %v10079_v36 = vadd.f32 %v9378_v3, %v6989_v40 }
 0x74f   : > { %v9379_v26 = vpop.f32.mrb[12].mxu1 }
 0x750   : > { %v9380_v59 = vpop.f32.mrb[13].mxu1 }
 0x751   : > { %v9381_v10 = vadd.f32 %v9380_v59, %v9379_v26  ;;  %v9382_v53 = vpop.f32.mrb[14].mxu1 }
 0x752   : > { %v9383_v20 = vpop.f32.mrb[15].mxu1 }
 0x753   : > { %v10061_v46 = vadd.f32 %v9381_v10, %v6994_v24  ;;  %v9384_v15 = vadd.f32 %v9383_v20, %v9382_v53 }
 0x755   : > { %v10073_v62 = vadd.f32 %v9384_v15, %v6997_v44 }
 0x766   : > { %v9401_v11 = vpop.f32.mrb[12].mxu0 }
 0x767   : > { %v9439_v5 = vpop.f32.mrb[16].mxu1  ;;  %v9402_v63 = vpop.f32.mrb[13].mxu0 }
 0x768   : > { %v9440_v13 = vpop.f32.mrb[17].mxu1  ;;  %v9403_v28 = vadd.f32 %v9402_v63, %v9401_v11  ;;  %v9404_v42 = vpop.f32.mrb[14].mxu0 }
 0x769   : > { %v9441_v23 = vadd.f32 %v9440_v13, %v9439_v5  ;;  %v9442_v51 = vpop.f32.mrb[18].mxu1  ;;  %v9405_v41 = vpop.f32.mrb[15].mxu0 }
 0x76a   : > { %v9443_v35 = vpop.f32.mrb[19].mxu1  ;;  %v10068_v47 = vadd.f32 %v10067_v48, %v9403_v28  ;;  %v9406_v58 = vadd.f32 %v9405_v41, %v9404_v42 }
 0x76b   : > { %v9444_v31 = vadd.f32 %v9443_v35, %v9442_v51 }
 0x76c   : > { %v10080_v50 = vadd.f32 %v10079_v36, %v9406_v58 }
 0x76e   : > { %v9407_v30 = vpop.f32.mrb[16].mxu0 }
 0x76f   : > { %v9445_v7 = vpop.f32.mrb[20].mxu1  ;;  %v9408_v0 = vpop.f32.mrb[17].mxu0 }
 0x770   : > { %v9446_v45 = vpop.f32.mrb[21].mxu1  ;;  %v9409_v60 = vadd.f32 %v9408_v0, %v9407_v30  ;;  %v9410_v57 = vpop.f32.mrb[18].mxu0 }
 0x771   : > { %v9447_v9 = vadd.f32 %v9446_v45, %v9445_v7  ;;  %v9448_v56 = vpop.f32.mrb[22].mxu1  ;;  %v9411_v2 = vpop.f32.mrb[19].mxu0 }
 0x772   : > { %v9449_v25 = vpop.f32.mrb[23].mxu1  ;;  %v10062_v49 = vadd.f32 %v10061_v46, %v9409_v60  ;;  %v9412_v39 = vadd.f32 %v9411_v2, %v9410_v57 }
 0x773   : > { %v9450_v12 = vadd.f32 %v9449_v25, %v9448_v56 }
 0x774   : > { %v10074_v18 = vadd.f32 %v10073_v62, %v9412_v39 }
 0x787   : > { %v9467_v17 = vpop.f32.mrb[24].mxu1 }
 0x788   : > { %v9468_v38 = vpop.f32.mrb[25].mxu1 }
 0x789   : > { %v9469_v29 = vadd.f32 %v9468_v38, %v9467_v17  ;;  %v9470_v14 = vpop.f32.mrb[26].mxu1 }
 0x78a   : > { %v9471_v40 = vpop.f32.mrb[27].mxu1 }
 0x78b   : > { %v7482_v1 = vadd.f32 %v9469_v29, %v9441_v23  ;;  %v9472_v6 = vadd.f32 %v9471_v40, %v9470_v14 }
 0x78d   : > { %v10069_v43 = vadd.f32 %v10068_v47, %v7482_v1  ;;  %v7485_v52 = vadd.f32 %v9472_v6, %v9444_v31 }
 0x78f   : > { %v10081_v55 = vadd.f32 %v10080_v50, %v7485_v52  ;;  %v9473_v4 = vpop.f32.mrb[28].mxu1 }
 0x790   : > { %v9474_v19 = vpop.f32.mrb[29].mxu1 }
 0x791   : > { %v9475_v27 = vadd.f32 %v9474_v19, %v9473_v4  ;;  %v9476_v54 = vpop.f32.mrb[30].mxu1 }
 0x792   : > { %v9477_v21 = vpop.f32.mrb[31].mxu1 }
 0x793   : > { %v7490_v34 = vadd.f32 %v9475_v27, %v9447_v9  ;;  %v9478_v24 = vadd.f32 %v9477_v21, %v9476_v54 }
 0x795   : > { %v10063_v8 = vadd.f32 %v10062_v49, %v7490_v34  ;;  %v7493_v32 = vadd.f32 %v9478_v24, %v9450_v12 }
 0x797   : > { %v10075_v44 = vadd.f32 %v10074_v18, %v7493_v32 }
 0x7a7   : > { %v9505_v22 = vpop.f32.mrb[32].mxu1 }
 0x7a8   : > { %v9506_v16 = vpop.f32.mrb[33].mxu1 }
 0x7a9   : > { %v9507_v33 = vadd.f32 %v9506_v16, %v9505_v22  ;;  %v9508_v61 = vpop.f32.mrb[34].mxu1  ;;  %v8815_v22 = vld [vmem:[%s14539_s6] ss:$0 sm:$0xff] }
 0x7aa   : > { %v9509_v37 = vpop.f32.mrb[35].mxu1 }
 0x7ab   : > { %v9510_v48 = vadd.f32 %v9509_v37, %v9508_v61 }
 0x7af   : > { %v9511_v3 = vpop.f32.mrb[36].mxu1 }
 0x7b0   : > { %v9512_v36 = vpop.f32.mrb[37].mxu1 }
 0x7b1   : > { %v9513_v26 = vadd.f32 %v9512_v36, %v9511_v3  ;;  %v9514_v59 = vpop.f32.mrb[38].mxu1 }
 0x7b2   : > { %v9515_v10 = vpop.f32.mrb[39].mxu1 }
 0x7b3   : > { %v9516_v53 = vadd.f32 %v9515_v10, %v9514_v59 }
 0x7c6   : > { %v9533_v20 = vpop.f32.mrb[20].mxu0 }
 0x7c7   : > { %v9571_v46 = vpop.f32.mrb[40].mxu1  ;;  %v9534_v15 = vpop.f32.mrb[21].mxu0 }
 0x7c8   : > { %v9572_v62 = vpop.f32.mrb[41].mxu1  ;;  %v9535_v11 = vadd.f32 %v9534_v15, %v9533_v20  ;;  %v9536_v5 = vpop.f32.mrb[22].mxu0 }
 0x7c9   : > { %v9573_v63 = vadd.f32 %v9572_v62, %v9571_v46  ;;  %v9574_v13 = vpop.f32.mrb[42].mxu1  ;;  %v9537_v28 = vpop.f32.mrb[23].mxu0 }
 0x7ca   : > { %v9575_v42 = vpop.f32.mrb[43].mxu1  ;;  %v7815_v23 = vadd.f32 %v9535_v11, %v9507_v33  ;;  %v9538_v51 = vadd.f32 %v9537_v28, %v9536_v5 }
 0x7cb   : > { %v9576_v41 = vadd.f32 %v9575_v42, %v9574_v13 }
 0x7cc   : > { %v7818_v35 = vadd.f32 %v9538_v51, %v9510_v48  ;;  %v10070_v47 = vadd.f32 %v10069_v43, %v7815_v23 }
 0x7ce   : > { %v9539_v58 = vpop.f32.mrb[24].mxu0  ;;  %v10082_v50 = vadd.f32 %v10081_v55, %v7818_v35 }
 0x7cf   : > { %v9577_v31 = vpop.f32.mrb[44].mxu1  ;;  %v9540_v30 = vpop.f32.mrb[25].mxu0 }
 0x7d0   : > { %v9578_v7 = vpop.f32.mrb[45].mxu1  ;;  %v9541_v0 = vadd.f32 %v9540_v30, %v9539_v58  ;;  %v9542_v45 = vpop.f32.mrb[26].mxu0 }
 0x7d1   : > { %v9579_v60 = vadd.f32 %v9578_v7, %v9577_v31  ;;  %v9580_v57 = vpop.f32.mrb[46].mxu1  ;;  %v9543_v9 = vpop.f32.mrb[27].mxu0 }
 0x7d2   : > { %v9581_v56 = vpop.f32.mrb[47].mxu1  ;;  %v7823_v2 = vadd.f32 %v9541_v0, %v9513_v26  ;;  %v9544_v25 = vadd.f32 %v9543_v9, %v9542_v45 }
 0x7d3   : > { %v9582_v49 = vadd.f32 %v9581_v56, %v9580_v57 }
 0x7d4   : > { %v7826_v39 = vadd.f32 %v9544_v25, %v9516_v53  ;;  %v10064_v12 = vadd.f32 %v10063_v8, %v7823_v2 }
 0x7d6   : > { %v10076_v18 = vadd.f32 %v10075_v44, %v7826_v39 }
 0x7e7   : > { %v9599_v17 = vpop.f32.mrb[48].mxu1 }
 0x7e8   : > { %v9600_v38 = vpop.f32.mrb[49].mxu1 }
 0x7e9   : > { %v9601_v29 = vadd.f32 %v9600_v38, %v9599_v17  ;;  %v9602_v14 = vpop.f32.mrb[50].mxu1 }
 0x7ea   : > { %v9603_v40 = vpop.f32.mrb[51].mxu1 }
 0x7eb   : > { %v8148_v1 = vadd.f32 %v9601_v29, %v9573_v63  ;;  %v9604_v6 = vadd.f32 %v9603_v40, %v9602_v14 }
 0x7ed   : > { %v8151_v43 = vadd.f32 %v9604_v6, %v9576_v41  ;;  %v10071_v52 = vadd.f32 %v10070_v47, %v8148_v1 }
 0x7ef   : > { %v9605_v55 = vpop.f32.mrb[52].mxu1  ;;  %v10083_v4 = vadd.f32 %v10082_v50, %v8151_v43 }
 0x7f0   : > { %v9606_v19 = vpop.f32.mrb[53].mxu1 }
 0x7f1   : > { %v9607_v27 = vadd.f32 %v9606_v19, %v9605_v55  ;;  %v9608_v54 = vpop.f32.mrb[54].mxu1 }
 0x7f2   : > { %v9609_v21 = vpop.f32.mrb[55].mxu1 }
 0x7f3   : > { %v8156_v34 = vadd.f32 %v9607_v27, %v9579_v60  ;;  %v9610_v24 = vadd.f32 %v9609_v21, %v9608_v54 }
 0x7f5   : > { %v8159_v32 = vadd.f32 %v9610_v24, %v9582_v49  ;;  %v10065_v8 = vadd.f32 %v10064_v12, %v8156_v34 }
 0x7f7   : > { %v10077_v44 = vadd.f32 %v10076_v18, %v8159_v32 }
 0x806   : > { %v10031_v16 = vpop.f32.mrb[8].mxu0 }
 0x807   : > { %v10066_v33 = vadd.f32 %v10065_v8, %v10031_v16  ;;  %v8196_v61 = vpop.f32.mrb[9].mxu0 }
 0x808   : > { %v10072_v37 = vadd.f32 %v10071_v52, %v8196_v61  ;;  %v10032_v48 = vpop.f32.mrb[10].mxu0 }
 0x809   : > { %v8223_v3 = vadd.f32 %v10066_v33, %v8815_v22  ;;  %v10078_v36 = vadd.f32 %v10077_v44, %v10032_v48  ;;  %v8199_v26 = vpop.f32.mrb[11].mxu0 }
 0x80a   : > { %v8221_v59 = vadd.f32 %v10072_v37, %v8815_v22  ;;  %v10084_v10 = vadd.f32 %v10083_v4, %v8199_v26 }
 0x80b   : > { %v8227_v53 = vsub.f32 0.0, %v8223_v3  ;;  %v8224_v20 = vadd.f32 %v10078_v36, %v8815_v22 }
 0x80c   : > { %v8225_v46 = vsub.f32 0.0, %v8221_v59  ;;  %v8222_v15 = vadd.f32 %v10084_v10, %v8815_v22 }
 0x80d   : > { %v8233_v62 = vmul.f32 1.442695, %v8227_v53  ;;  %v8228_v11 = vsub.f32 0.0, %v8224_v20 }
 0x80e   : > { %v8229_v5 = vmul.f32 1.442695, %v8225_v46  ;;  %v8226_v63 = vsub.f32 0.0, %v8222_v15 }
 0x80f   : > { %10645 = vpow2.f32 %v8233_v62  ;;  %v8235_v13 = vmul.f32 1.442695, %v8228_v11 }
 0x810   : > { %10647 = vpow2.f32 %v8229_v5  ;;  %v8231_v28 = vmul.f32 1.442695, %v8226_v63 }
 0x811   : > { %10649 = vpow2.f32 %v8235_v13 }
 0x812   : > { %10651 = vpow2.f32 %v8231_v28 }
 0x819   : > { %v10646_v42 = vpop.eup %10645 }
 0x81a   : > { %v10648_v23 = vpop.eup %10647  ;;  %v8239_v51 = vadd.f32 1.0, %v10646_v42 }
 0x81b   : > { %v10650_v41 = vpop.eup %10649  ;;  %v8237_v35 = vadd.f32 1.0, %v10648_v23 }
 0x81c   : > { %v10652_v47 = vpop.eup %10651  ;;  %10653 = vrcp.f32 %v8239_v51  ;;  %v8240_v58 = vadd.f32 1.0, %v10650_v41 }
 0x81d   : > { %10655 = vrcp.f32 %v8237_v35  ;;  %v8238_v31 = vadd.f32 1.0, %v10652_v47 }
 0x81e   : > { %10657 = vrcp.f32 %v8240_v58 }
 0x81f   : > { %10659 = vrcp.f32 %v8238_v31 }
 0x826   : > { %v10654_v50 = vpop.eup %10653 }
 0x827   : > { %v10656_v30 = vpop.eup %10655  ;;  %v8247_v45 = vmul.f32 %v10654_v50, %v8223_v3 }
 0x828   : > { %v10658_v7 = vpop.eup %10657  ;;  %v8245_v57 = vmul.f32 %v10656_v30, %v8221_v59 }
 0x829   : > { %v10660_v0 = vpop.eup %10659  ;;  %v8248_v60 = vmul.f32 %v10658_v7, %v8224_v20 }
 0x82a   : > { %v8246_v9 = vmul.f32 %v10660_v0, %v8222_v15 }
 0x82b   : > { %v8250_v56 = vmax.f32 %v8247_v45, %v8248_v60 }
 0x82c   : > { %v8249_v2 = vmax.f32 %v8245_v57, %v8246_v9 }
 0x82d   : > { %8253 = vst.msk [vmem:[#allocation6 + $0x8] sm:$0xff] %vm8251_vm11, %v8250_v56 }
 0x82e   : > { %8252 = vst.msk [vmem:[#allocation6] sm:$0xff] %vm8251_vm11, %v8249_v2 }
 0x834   : > { %v8256_v25 = vld [vmem:[#allocation6 + $0x8] ss:$2 sm:$0x3]  ;;  %v8260_v49 = vld [vmem:[#allocation6 + $0x9] ss:$2 sm:$0x3] }
 0x835   : > { %v8254_v39 = vld [vmem:[#allocation6] ss:$2 sm:$0x3]  ;;  %v8258_v12 = vld [vmem:[#allocation6 + $0x1] ss:$2 sm:$0x3]  ;;  %v8262_v18 = vmax.f32 %v8256_v25, %v8260_v49 }
 0x836   : > { %v8261_v17 = vmax.f32 %v8254_v39, %v8258_v12 }
 0x837   : > { %8265 = vst.msk [vmem:[%s11155_s18 + $0x2] sm:$0x3] %vm8263_vm12, %v8262_v18 }
 0x838   : > { %8264 = vst.msk [vmem:[%s11155_s18] sm:$0x3] %vm8263_vm12, %v8261_v17 }
 0x839   : > { %10674 = shalt.err (!%p10671_p7)
}
 0x83a   : > { %s10675_s13 = scalar_lea.hbm %s14484_s21, 64  ;;  %s10679_s9 = scalar_lea.hbm %s14540_s7, 128 }
 0x83b   : > { %p10676_p8 = scmp.ne.s32.totalorder %s14484_s21, %s10675_s13  ;;  %p10680_p11 = scmp.lt.u32.totalorder %s14484_s21, %s14540_s7 }
 0x83c   : > { %p10681_p12 = scmp.lt.u32.totalorder %s10679_s9, %s10675_s13  ;;  %p10683_p0 = scmp.lt.u32.totalorder %s10675_s13, %s14484_s21 }
 0x83d   : > { %p10677_p9 = pnand %p10676_p8, %p10830_p5 }
 0x83e   : > { %p10682_p13 = por %p10681_p12, %p10680_p11 }
 0x83f   : > { %p10678_p10 = pneg %p10677_p9 }
 0x840   : > { %p10684_p1 = por %p10683_p0, %p10682_p13 }
 0x842   : > { %p10685_p2 = pnand %p10684_p1, %p10678_p10 }
 0x844   : > { %10688 = shalt.err (!%p10685_p2)
}
 0x845   : > { %s10750_s14 = smov 32   ;;  %s10751_s17 = smov 2  }
 0x846   : > { %10102 = dma.vmem_to_hbm [thread:$0]  (%p10830_p5), %s14486_s20, 64, %s14484_s21, %s14492_s28, %s10750_s14, %s10750_s14, %s10751_s17  }
 0x847 PF: > { %p10108_p3 = scmp.ge.s32.totalorder %s10735_s27, 2  ;;  %s8295_s19 = sand.u32 1, %s10723_s24  }
 0x848   : > { %s8296_s23 = scalar_lea.sflag [#allocation11], %s8295_s19 }
 0x849   : > { %p10105_p4 = pnand %p10108_p3, %p10834_p6 }
 0x84b   : > { %10718 = dma.done.wait (!%p10105_p4), %s8296_s23, 64  }
 0x84c   : > { %10720 = vsyncadd (!%p10105_p4), %s8296_s23, 4294967232  ;;  %p17_p7 = scmp.ge.s32.totalorder %s10817_s30, 4   ;;  %s14631_s24 = smov %s10727_s25 }
 0x84d   : > { %s14632_s25 = smov %s10731_s26  ;;  %s14633_s26 = smov %s10828_s10 }
 0x84e   : > { %s14634_s27 = smov %s10817_s30  ;;  %19 = sbr.rel (!%p17_p7) target bundleno = 3 (0x3), region = 267 }
 0x855   :  { %8301 = vsyncpa [#allocation11], 1 }
 0x856   :  { %8303 = vsyncpa [#allocation11 + $0x1], 1 }
 0x857   :  { %8304 = vsyncmov [#allocation9] }
 0x85a   :  { %s8305_s27 = vpop.sfrf %8304 }
 0x85b   :  { %p8821_p5 = scmp.ne.s32.totalorder %s8305_s27, 0 }
 0x85d   :  { %8309 = shalt.err (%p8821_p5)  }
 0x85e   :  { %8311 = vsyncmov [#allocation9 + $0x1] }
 0x861   :  { %s8312_s11 = vpop.sfrf %8311 }
 0x862   :  { %p8822_p6 = scmp.ne.s32.totalorder %s8312_s11, 0 }
 0x864   :  { %8316 = shalt.err (%p8822_p6)  }

</bundles_post_ra>
